<compile_context>
chip_gen: v5e
topology: v5e:2x2
jax: 0.10.0
libtpu: 0.0.40
codegen_flags: <defaults>
</compile_context>

<pallas_src>
import jax
import jax.numpy as jnp
from jax.experimental import pallas as pl
from jax.experimental.pallas import tpu as pltpu


# --------------------------------------------------------------------------------------
# Pallas kernel
# --------------------------------------------------------------------------------------
def gru_kernel(
    len_ref,             # [Bp, 1]  int32 sequence lengths
    x_ref,               # [T*Bp, E] time-major embedded inputs
    wih0_ref,            # [E, 2G]   layer-0 input proj, fwd|bwd gate blocks concatenated
    whh0_ref,            # [2Hp, 2G] layer-0 recurrent weights, block-diagonal fwd (+) bwd
    wih1_ref,            # [2Hp, G]  layer-1 (bwd dir) input proj, rows = [fwd ; bwd]
    whh1_ref,            # [Hp, G]   layer-1 (bwd dir) recurrent weights
    wfc1_ref,            # [Hp, F1p] classifier layer 1
    wfc2_ref,            # [F1p, Cp] classifier layer 2
    bias_ref,            # [1, 6G + F1p + Cp] all biases, lane-aligned segments
    out_ref,             # [Bp, Cp]
    gi0_scr,             # [T*Bp, 2G] layer-0 input-gate projections (fwd | bwd)
    l1_scr,              # [T*Bp, 2Hp] layer-0 outputs (fwd | bwd) = layer-1 input
    gi1_scr,             # [T*Bp, G]  layer-1 input-gate projections
):
    Bp = len_ref.shape[0]                # padded batch (multiple of 8 sublanes)
    Hp = whh1_ref.shape[0]               # padded hidden width per gate (multiple of 128)
    G = 3 * Hp
    TB = x_ref.shape[0]
    T = TB // Bp
    F1p = wfc1_ref.shape[1]
    Cp = out_ref.shape[1]

    # Bias segment offsets inside bias_ref (all multiples of 128 lanes).
    o_bih0, o_bhh0, o_bih1, o_bhh1 = 0, 2 * G, 4 * G, 5 * G
    o_bfc1, o_bfc2 = 6 * G, 6 * G + F1p

    lengths = len_ref[...]               # [Bp, 1] int32 (single vreg, safe to hoist)

    # ---- Bulk layer-0 input projection: both directions in ONE MXU matmul, written
    # straight into scratch (no value split / re-slice -> no spill round trip). ----
    gi0_scr[...] = (
        jnp.dot(x_ref[...], wih0_ref[...], preferred_element_type=jnp.float32)
        + bias_ref[:, o_bih0:o_bih0 + 2 * G])

    def cell(gi, gh, h):
        # PyTorch GRU gate order (r, z, n); each gate padded to Hp lanes so every
        # slice below is a full 128-lane tile.  r and z share one sigmoid pass (EUP).
        rz = jax.nn.sigmoid(gi[:, :2 * Hp] + gh[:, :2 * Hp])
        r = rz[:, :Hp]
        z = rz[:, Hp:]
        n = jnp.tanh(gi[:, 2 * Hp:] + r * gh[:, 2 * Hp:])
        return (1.0 - z) * n + z * h

    zeros_h = jnp.zeros((Bp, Hp), jnp.float32)

    # ---- Pass 1: layer-0 forward + backward recurrences. ----
    # The two directions are fused into a single K=2Hp block-diagonal matmul per step
    # (one dependent MXU op instead of two on the serialized critical path; K=256
    # exactly fills the 256-deep MXU on v6e/v7x, neutral on v5e).
    # Weights / biases are read from their refs AT the call sites; only the two
    # [Bp, Hp] hidden states stay live across the unrolled loop.
    # NOTE: fully unrolled (small fixed T).  For large T switch to
    # lax.fori_loop(..., unroll=2..4) with pl.multiple_of(t*Bp, 8) on slice starts, or
    # tile T with a grid axis and stream x/gi (required for v7x's 64 MiB VMEM once
    # T*Bp grows past a few thousand rows).
    h_f = zeros_h
    h_b = zeros_h
    for i in range(T):
        tb = T - 1 - i
        gi_f = gi0_scr[pl.ds(i * Bp, Bp), 0:G]
        gi_b = gi0_scr[pl.ds(tb * Bp, Bp), G:2 * G]
        h_cat = jnp.concatenate([h_f, h_b], axis=1)                      # [Bp, 2Hp]
        gh = (jnp.dot(h_cat, whh0_ref[...], preferred_element_type=jnp.float32)
              + bias_ref[:, o_bhh0:o_bhh0 + 2 * G])                      # [Bp, 2G]
        h_f = jnp.where(i < lengths, cell(gi_f, gh[:, 0:G], h_f), h_f)
        h_b = jnp.where(tb < lengths, cell(gi_b, gh[:, G:2 * G], h_b), h_b)
        l1_scr[pl.ds(i * Bp, Bp), 0:Hp] = h_f
        l1_scr[pl.ds(tb * Bp, Bp), Hp:2 * Hp] = h_b

    # ---- Bulk layer-1 input projection: ONE K=2Hp matmul, straight to scratch. ----
    gi1_scr[...] = (
        jnp.dot(l1_scr[...], wih1_ref[...], preferred_element_type=jnp.float32)
        + bias_ref[:, o_bih1:o_bih1 + G])

    # ---- Pass 2: layer-1 backward recurrence; its final state IS hn[-1]. ----
    h1 = zeros_h
    for i in range(T):
        t = T - 1 - i
        gi = gi1_scr[pl.ds(t * Bp, Bp), :]
        gh = (jnp.dot(h1, whh1_ref[...], preferred_element_type=jnp.float32)
              + bias_ref[:, o_bhh1:o_bhh1 + G])
        h1 = jnp.where(t < lengths, cell(gi, gh, h1), h1)

    # ---- Classifier head: Linear -> ReLU -> Linear (lane-dense Cp=128 output). ----
    z1 = jnp.maximum(
        jnp.dot(h1, wfc1_ref[...], preferred_element_type=jnp.float32)
        + bias_ref[:, o_bfc1:o_bfc1 + F1p], 0.0)
    out_ref[...] = (jnp.dot(z1, wfc2_ref[...], preferred_element_type=jnp.float32)
                    + bias_ref[:, o_bfc2:o_bfc2 + Cp])


# --------------------------------------------------------------------------------------
# Wrapper: padding / layout / weight-packing glue + pallas_call
# --------------------------------------------------------------------------------------
def gru_forward(params, tokens, lengths, num_classes):
    """tokens: [B, T] int32, lengths: [B] int32 -> logits [B, num_classes]."""
    B, T = tokens.shape
    E = params["embedding"].shape[1]
    H = params["whh0f"].shape[0]
    F1 = params["wfc1"].shape[1]
    C = num_classes

    Hp = ((H + 127) // 128) * 128        # pad each gate to a 128-lane tile
    Bp = ((B + 7) // 8) * 8              # pad batch to a sublane multiple
    F1p = ((F1 + 127) // 128) * 128
    Cp = ((C + 127) // 128) * 128        # lane-dense classifier output
    G = 3 * Hp

    def pad_gate_cols(w):                # [K, 3H] -> [K, 3Hp], gate blocks lane-aligned
        parts = [jnp.pad(w[:, g * H:(g + 1) * H], ((0, 0), (0, Hp - H))) for g in range(3)]
        return jnp.concatenate(parts, axis=1)

    def pad_rows(w, rows):
        return jnp.pad(w, ((0, rows - w.shape[0]), (0, 0)))

    # Layer-0 input projection, both directions concatenated along the output lanes.
    wih0 = jnp.concatenate([pad_gate_cols(params["wih0f"]),
                            pad_gate_cols(params["wih0b"])], axis=1)          # [E, 2G]
    # Layer-0 recurrent weights as ONE block-diagonal matrix: fwd (+) bwd.
    whh0f = pad_rows(pad_gate_cols(params["whh0f"]), Hp)                      # [Hp, G]
    whh0b = pad_rows(pad_gate_cols(params["whh0b"]), Hp)                      # [Hp, G]
    whh0 = jnp.zeros((2 * Hp, 2 * G), jnp.float32)
    whh0 = whh0.at[:Hp, :G].set(whh0f).at[Hp:, G:].set(whh0b)                 # [2Hp, 2G]
    # Layer-1 (backward dir) input projection, fwd/bwd input rows pre-concatenated.
    wih1 = jnp.concatenate([pad_rows(pad_gate_cols(params["wih1bf"]), Hp),
                            pad_rows(pad_gate_cols(params["wih1bb"]), Hp)], axis=0)  # [2Hp, G]
    whh1 = pad_rows(pad_gate_cols(params["whh1b"]), Hp)                       # [Hp, G]
    # Classifier head.
    wfc1 = jnp.pad(params["wfc1"], ((0, Hp - H), (0, F1p - F1)))              # [Hp, F1p]
    wfc2 = jnp.pad(params["wfc2"], ((0, F1p - F1), (0, Cp - C)))              # [F1p, Cp]

    # All biases concatenated into ONE lane-aligned buffer (one prologue DMA).
    bih0 = jnp.concatenate([pad_gate_cols(params["bih0f"]),
                            pad_gate_cols(params["bih0b"])], axis=1)          # [1, 2G]
    bhh0 = jnp.concatenate([pad_gate_cols(params["bhh0f"]),
                            pad_gate_cols(params["bhh0b"])], axis=1)          # [1, 2G]
    bih1 = pad_gate_cols(params["bih1b"])                                     # [1, G]
    bhh1 = pad_gate_cols(params["bhh1b"])                                     # [1, G]
    bfc1 = jnp.pad(params["bfc1"], ((0, 0), (0, F1p - F1)))                   # [1, F1p]
    bfc2 = jnp.pad(params["bfc2"], ((0, 0), (0, Cp - C)))                     # [1, Cp]
    biases = jnp.concatenate([bih0, bhh0, bih1, bhh1, bfc1, bfc2], axis=1)    # [1, 6G+F1p+Cp]

    # Glue: embedding gather + time-major layout + batch padding (not the hot path).
    emb = params["embedding"][tokens].astype(jnp.float32)        # [B, T, E]
    x_tm = jnp.transpose(emb, (1, 0, 2))                         # [T, B, E]
    x_tm = jnp.pad(x_tm, ((0, 0), (0, Bp - B), (0, 0)))          # [T, Bp, E]
    x2d = x_tm.reshape(T * Bp, E)                                # time-major, 2-D
    len_p = jnp.pad(lengths.astype(jnp.int32), (0, Bp - B)).reshape(Bp, 1)

    kernel_inputs = (len_p, x2d, wih0, whh0, wih1, whh1, wfc1, wfc2, biases)

    vmem = pl.BlockSpec(memory_space=pltpu.MemorySpace.VMEM)
    out = pl.pallas_call(
        gru_kernel,
        out_shape=jax.ShapeDtypeStruct((Bp, Cp), jnp.float32),
        in_specs=[vmem] * len(kernel_inputs),
        out_specs=vmem,
        scratch_shapes=[
            pltpu.VMEM((T * Bp, 2 * G), jnp.float32),    # layer-0 input-gate projections
            pltpu.VMEM((T * Bp, 2 * Hp), jnp.float32),   # layer-0 outputs (fwd | bwd)
            pltpu.VMEM((T * Bp, G), jnp.float32),        # layer-1 input-gate projections
        ],
        compiler_params=pltpu.CompilerParams(vmem_limit_bytes=32 * 1024 * 1024),
    )(*kernel_inputs)
    return out[:B, :C]


# --------------------------------------------------------------------------------------
# Pure-JAX reference (mirrors PyTorch packed bidirectional 2-layer GRU)
# --------------------------------------------------------------------------------------
def ref_forward(params, tokens, lengths, num_classes):
    B, T = tokens.shape
    H = params["whh0f"].shape[0]
    hp = jax.lax.Precision.HIGHEST
    emb = params["embedding"][tokens].astype(jnp.float32)        # [B, T, E]
    x = jnp.transpose(emb, (1, 0, 2))                            # [T, B, E]
    lv = lengths.astype(jnp.int32)

    def step(x_t, h, wih, whh, bih, bhh):
        gi = jnp.dot(x_t, wih, precision=hp) + bih
        gh = jnp.dot(h, whh, precision=hp) + bhh
        r = jax.nn.sigmoid(gi[:, :H] + gh[:, :H])
        z = jax.nn.sigmoid(gi[:, H:2 * H] + gh[:, H:2 * H])
        n = jnp.tanh(gi[:, 2 * H:] + r * gh[:, 2 * H:])
        return (1.0 - z) * n + z * h

    def run_dir(inputs, wih, whh, bih, bhh, reverse):
        h = jnp.zeros((B, H), jnp.float32)
        outs = [None] * T
        order = range(T - 1, -1, -1) if reverse else range(T)
        for t in order:
            h_new = step(inputs[t], h, wih, whh, bih, bhh)
            valid = (t < lv)[:, None]
            h = jnp.where(valid, h_new, h)
            outs[t] = h
        return h, outs

    _, of = run_dir(list(x), params["wih0f"], params["whh0f"],
                    params["bih0f"], params["bhh0f"], reverse=False)
    _, ob = run_dir(list(x), params["wih0b"], params["whh0b"],
                    params["bih0b"], params["bhh0b"], reverse=True)
    l1_in = [jnp.concatenate([of[t], ob[t]], axis=-1) for t in range(T)]
    wih1 = jnp.concatenate([params["wih1bf"], params["wih1bb"]], axis=0)
    h_last, _ = run_dir(l1_in, wih1, params["whh1b"],
                        params["bih1b"], params["bhh1b"], reverse=True)

    z1 = jnp.maximum(jnp.dot(h_last, params["wfc1"], precision=hp) + params["bfc1"], 0.0)
    return jnp.dot(z1, params["wfc2"], precision=hp) + params["bfc2"]


# --------------------------------------------------------------------------------------
# Deterministic parameter init (logical, unpadded shapes; gate order r, z, n)
# --------------------------------------------------------------------------------------
def make_params(key, num_words, num_classes, input_size=64, hidden=32):
    ks = jax.random.split(key, 24)
    it = iter(range(24))
    s = hidden ** -0.5

    def u(shape, scale):
        return jax.random.uniform(ks[next(it)], shape, jnp.float32, -scale, scale)

    H, E = hidden, input_size
    p = {}
    p["embedding"] = jax.random.normal(ks[next(it)], (num_words, E), jnp.float32)
    # GRU weights stored pre-transposed as [in_dim, 3H] / [H, 3H]; gate order r, z, n.
    p["wih0f"], p["whh0f"] = u((E, 3 * H), s), u((H, 3 * H), s)
    p["bih0f"], p["bhh0f"] = u((1, 3 * H), s), u((1, 3 * H), s)
    p["wih0b"], p["whh0b"] = u((E, 3 * H), s), u((H, 3 * H), s)
    p["bih0b"], p["bhh0b"] = u((1, 3 * H), s), u((1, 3 * H), s)
    # Layer-1 backward: input is [fwd(H) | bwd(H)] -> weight split along the input dim.
    p["wih1bf"], p["wih1bb"] = u((H, 3 * H), s), u((H, 3 * H), s)
    p["whh1b"] = u((H, 3 * H), s)
    p["bih1b"], p["bhh1b"] = u((1, 3 * H), s), u((1, 3 * H), s)
    # NOTE: layer-1 forward-direction GRU weights exist in the PyTorch module but
    # cannot influence hn[-1]; they are intentionally not materialized/computed.
    # Classifier: Linear(H, 32) -> ReLU -> Linear(32, num_classes), stored [in, out].
    p["wfc1"], p["bfc1"] = u((H, 32), H ** -0.5), u((1, 32), H ** -0.5)
    p["wfc2"], p["bfc2"] = u((32, num_classes), 32 ** -0.5), u((1, num_classes), 32 ** -0.5)
    return p


if __name__ == "__main__":
    num_words, num_classes = 100, 5
    B, T = 2, 8

    key = jax.random.PRNGKey(0)
    kp, kx = jax.random.split(key)
    params = make_params(kp, num_words, num_classes)

    tokens = jax.random.randint(kx, (B, T), 0, num_words, dtype=jnp.int32)
    lengths = jnp.array([8, 5], dtype=jnp.int32)   # variable lengths (pack semantics)

    out = jax.block_until_ready(gru_forward(params, tokens, lengths, num_classes))
    ref = jax.block_until_ready(ref_forward(params, tokens, lengths, num_classes))

    assert out.shape == (B, num_classes)
    assert bool(jnp.all(jnp.isfinite(out)))
    assert bool(jnp.allclose(out, ref, atol=2e-3, rtol=2e-3)), (out, ref)

    print("KERNEL_OK")
</pallas_src>

<mosaic_0001>
module attributes {stable_mosaic.version = 11 : i64} {
  func.func @gru_kernel(%arg0: memref<8x1xi32, #tpu.memory_space<vmem>>, %arg1: memref<64x64xf32, #tpu.memory_space<vmem>>, %arg2: memref<64x768xf32, #tpu.memory_space<vmem>>, %arg3: memref<256x768xf32, #tpu.memory_space<vmem>>, %arg4: memref<256x384xf32, #tpu.memory_space<vmem>>, %arg5: memref<128x384xf32, #tpu.memory_space<vmem>>, %arg6: memref<128x128xf32, #tpu.memory_space<vmem>>, %arg7: memref<128x128xf32, #tpu.memory_space<vmem>>, %arg8: memref<1x2560xf32, #tpu.memory_space<vmem>>, %arg9: memref<8x128xf32, #tpu.memory_space<vmem>>, %arg10: memref<64x768xf32, #tpu.memory_space<vmem>>, %arg11: memref<64x256xf32, #tpu.memory_space<vmem>>, %arg12: memref<64x384xf32, #tpu.memory_space<vmem>>) attributes {dimension_semantics = [], scalar_prefetch = 0 : i64, scratch_operands = 3 : i64, tpu.core_type = #tpu.core_type<tc>} {
    %c0 = arith.constant 0 : index
    %c0_0 = arith.constant 0 : index
    %0 = vector.load %arg0[%c0, %c0_0] : memref<8x1xi32, #tpu.memory_space<vmem>>, vector<8x1xi32>
    %c0_1 = arith.constant 0 : index
    %c0_2 = arith.constant 0 : index
    %1 = vector.load %arg1[%c0_1, %c0_2] : memref<64x64xf32, #tpu.memory_space<vmem>>, vector<64x64xf32>
    %c0_3 = arith.constant 0 : index
    %c0_4 = arith.constant 0 : index
    %2 = vector.load %arg2[%c0_3, %c0_4] : memref<64x768xf32, #tpu.memory_space<vmem>>, vector<64x768xf32>
    %cst = arith.constant dense<0.000000e+00> : vector<64x768xf32>
    %3 = tpu.matmul %1, %2, %cst {dimension_numbers = #tpu.dot_dimension_numbers<[1], [0], [0], [1], [0, 0, 1, 1], [], []>} : vector<64x64xf32>, vector<64x768xf32>, vector<64x768xf32> -> vector<64x768xf32>
    %c0_5 = arith.constant 0 : index
    %c0_6 = arith.constant 0 : index
    %4 = vector.load %arg8[%c0_5, %c0_6] : memref<1x2560xf32, #tpu.memory_space<vmem>>, vector<1x768xf32>
    %5 = vector.broadcast %4 : vector<1x768xf32> to vector<64x768xf32>
    %6 = arith.addf %3, %5 : vector<64x768xf32>
    %c0_7 = arith.constant 0 : index
    %c0_8 = arith.constant 0 : index
    %7 = vector.load %arg10[%c0_7, %c0_8] : memref<64x768xf32, #tpu.memory_space<vmem>>, vector<64x768xf32>
    tpu.vector_store %arg10[%c0_7, %c0_8], %6 {strides = array<i32>} : memref<64x768xf32, #tpu.memory_space<vmem>>, vector<64x768xf32>,
    %cst_9 = arith.constant 0.000000e+00 : f32
    %8 = vector.broadcast %cst_9 : f32 to vector<8x128xf32>
    %c0_10 = arith.constant 0 : index
    %c0_11 = arith.constant 0 : index
    %9 = vector.load %arg10[%c0_10, %c0_11] : memref<64x768xf32, #tpu.memory_space<vmem>>, vector<8x384xf32>
    %c56 = arith.constant 56 : index
    %c384 = arith.constant 384 : index
    %10 = vector.load %arg10[%c56, %c384] : memref<64x768xf32, #tpu.memory_space<vmem>>, vector<8x384xf32>
    %11 = tpu.concatenate %8, %8 in 1 : vector<8x128xf32>, vector<8x128xf32> -> vector<8x256xf32>
    %c0_12 = arith.constant 0 : index
    %c0_13 = arith.constant 0 : index
    %12 = vector.load %arg3[%c0_12, %c0_13] : memref<256x768xf32, #tpu.memory_space<vmem>>, vector<256x768xf32>
    %cst_14 = arith.constant dense<0.000000e+00> : vector<8x768xf32>
    %13 = tpu.matmul %11, %12, %cst_14 {dimension_numbers = #tpu.dot_dimension_numbers<[1], [0], [0], [1], [0, 0, 1, 1], [], []>} : vector<8x256xf32>, vector<256x768xf32>, vector<8x768xf32> -> vector<8x768xf32>
    %c0_15 = arith.constant 0 : index
    %c768 = arith.constant 768 : index
    %14 = vector.load %arg8[%c0_15, %c768] : memref<1x2560xf32, #tpu.memory_space<vmem>>, vector<1x768xf32>
    %15 = vector.broadcast %14 : vector<1x768xf32> to vector<8x768xf32>
    %16 = arith.addf %13, %15 : vector<8x768xf32>
    %c0_i32 = arith.constant 0 : i32
    %17 = vector.broadcast %c0_i32 : i32 to vector<8x1xi32>
    %18 = arith.cmpi sgt, %0, %17 : vector<8x1xi32>
    %19 = vector.extract_strided_slice %16 {offsets = [0, 0], sizes = [8, 384], strides = [1, 1]} : vector<8x768xf32> to vector<8x384xf32>
    %20 = vector.extract_strided_slice %9 {offsets = [0, 0], sizes = [8, 256], strides = [1, 1]} : vector<8x384xf32> to vector<8x256xf32>
    %21 = vector.extract_strided_slice %19 {offsets = [0, 0], sizes = [8, 256], strides = [1, 1]} : vector<8x384xf32> to vector<8x256xf32>
    %22 = arith.addf %20, %21 : vector<8x256xf32>
    %23 = arith.negf %22 : vector<8x256xf32>
    %24 = math.exp %23 : vector<8x256xf32>
    %cst_16 = arith.constant 1.000000e+00 : f32
    %25 = vector.broadcast %cst_16 : f32 to vector<8x256xf32>
    %26 = arith.addf %25, %24 : vector<8x256xf32>
    %27 = arith.divf %25, %26 : vector<8x256xf32>
    %28 = vector.extract_strided_slice %27 {offsets = [0, 0], sizes = [8, 128], strides = [1, 1]} : vector<8x256xf32> to vector<8x128xf32>
    %29 = vector.extract_strided_slice %27 {offsets = [0, 128], sizes = [8, 128], strides = [1, 1]} : vector<8x256xf32> to vector<8x128xf32>
    %30 = vector.extract_strided_slice %9 {offsets = [0, 256], sizes = [8, 128], strides = [1, 1]} : vector<8x384xf32> to vector<8x128xf32>
    %31 = vector.extract_strided_slice %19 {offsets = [0, 256], sizes = [8, 128], strides = [1, 1]} : vector<8x384xf32> to vector<8x128xf32>
    %32 = arith.mulf %28, %31 : vector<8x128xf32>
    %33 = arith.addf %30, %32 : vector<8x128xf32>
    %34 = math.tanh %33 : vector<8x128xf32>
    %cst_17 = arith.constant 1.000000e+00 : f32
    %35 = vector.broadcast %cst_17 : f32 to vector<8x128xf32>
    %36 = arith.subf %35, %29 : vector<8x128xf32>
    %37 = arith.mulf %36, %34 : vector<8x128xf32>
    %38 = arith.mulf %29, %8 : vector<8x128xf32>
    %39 = arith.addf %37, %38 : vector<8x128xf32>
    %40 = vector.shape_cast %18 : vector<8x1xi1> to vector<8x1xi1>
    %41 = vector.broadcast %40 : vector<8x1xi1> to vector<8x128xi1>
    %42 = arith.select %41, %39, %8 : vector<8x128xi1>, vector<8x128xf32>
    %c7_i32 = arith.constant 7 : i32
    %43 = vector.broadcast %c7_i32 : i32 to vector<8x1xi32>
    %44 = arith.cmpi sgt, %0, %43 : vector<8x1xi32>
    %45 = vector.extract_strided_slice %16 {offsets = [0, 384], sizes = [8, 384], strides = [1, 1]} : vector<8x768xf32> to vector<8x384xf32>
    %46 = vector.extract_strided_slice %10 {offsets = [0, 0], sizes = [8, 256], strides = [1, 1]} : vector<8x384xf32> to vector<8x256xf32>
    %47 = vector.extract_strided_slice %45 {offsets = [0, 0], sizes = [8, 256], strides = [1, 1]} : vector<8x384xf32> to vector<8x256xf32>
    %48 = arith.addf %46, %47 : vector<8x256xf32>
    %49 = arith.negf %48 : vector<8x256xf32>
    %50 = math.exp %49 : vector<8x256xf32>
    %cst_18 = arith.constant 1.000000e+00 : f32
    %51 = vector.broadcast %cst_18 : f32 to vector<8x256xf32>
    %52 = arith.addf %51, %50 : vector<8x256xf32>
    %53 = arith.divf %51, %52 : vector<8x256xf32>
    %54 = vector.extract_strided_slice %53 {offsets = [0, 0], sizes = [8, 128], strides = [1, 1]} : vector<8x256xf32> to vector<8x128xf32>
    %55 = vector.extract_strided_slice %53 {offsets = [0, 128], sizes = [8, 128], strides = [1, 1]} : vector<8x256xf32> to vector<8x128xf32>
    %56 = vector.extract_strided_slice %10 {offsets = [0, 256], sizes = [8, 128], strides = [1, 1]} : vector<8x384xf32> to vector<8x128xf32>
    %57 = vector.extract_strided_slice %45 {offsets = [0, 256], sizes = [8, 128], strides = [1, 1]} : vector<8x384xf32> to vector<8x128xf32>
    %58 = arith.mulf %54, %57 : vector<8x128xf32>
    %59 = arith.addf %56, %58 : vector<8x128xf32>
    %60 = math.tanh %59 : vector<8x128xf32>
    %cst_19 = arith.constant 1.000000e+00 : f32
    %61 = vector.broadcast %cst_19 : f32 to vector<8x128xf32>
    %62 = arith.subf %61, %55 : vector<8x128xf32>
    %63 = arith.mulf %62, %60 : vector<8x128xf32>
    %64 = arith.mulf %55, %8 : vector<8x128xf32>
    %65 = arith.addf %63, %64 : vector<8x128xf32>
    %66 = vector.shape_cast %44 : vector<8x1xi1> to vector<8x1xi1>
    %67 = vector.broadcast %66 : vector<8x1xi1> to vector<8x128xi1>
    %68 = arith.select %67, %65, %8 : vector<8x128xi1>, vector<8x128xf32>
    %c0_20 = arith.constant 0 : index
    %c0_21 = arith.constant 0 : index
    %69 = vector.load %arg11[%c0_20, %c0_21] : memref<64x256xf32, #tpu.memory_space<vmem>>, vector<8x128xf32>
    tpu.vector_store %arg11[%c0_20, %c0_21], %42 {strides = array<i32>} : memref<64x256xf32, #tpu.memory_space<vmem>>, vector<8x128xf32>,
    %c56_22 = arith.constant 56 : index
    %c128 = arith.constant 128 : index
    %70 = vector.load %arg11[%c56_22, %c128] : memref<64x256xf32, #tpu.memory_space<vmem>>, vector<8x128xf32>
    tpu.vector_store %arg11[%c56_22, %c128], %68 {strides = array<i32>} : memref<64x256xf32, #tpu.memory_space<vmem>>, vector<8x128xf32>,
    %c8 = arith.constant 8 : index
    %c0_23 = arith.constant 0 : index
    %71 = vector.load %arg10[%c8, %c0_23] : memref<64x768xf32, #tpu.memory_space<vmem>>, vector<8x384xf32>
    %c48 = arith.constant 48 : index
    %c384_24 = arith.constant 384 : index
    %72 = vector.load %arg10[%c48, %c384_24] : memref<64x768xf32, #tpu.memory_space<vmem>>, vector<8x384xf32>
    %73 = tpu.concatenate %42, %68 in 1 : vector<8x128xf32>, vector<8x128xf32> -> vector<8x256xf32>
    %c0_25 = arith.constant 0 : index
    %c0_26 = arith.constant 0 : index
    %74 = vector.load %arg3[%c0_25, %c0_26] : memref<256x768xf32, #tpu.memory_space<vmem>>, vector<256x768xf32>
    %cst_27 = arith.constant dense<0.000000e+00> : vector<8x768xf32>
    %75 = tpu.matmul %73, %74, %cst_27 {dimension_numbers = #tpu.dot_dimension_numbers<[1], [0], [0], [1], [0, 0, 1, 1], [], []>} : vector<8x256xf32>, vector<256x768xf32>, vector<8x768xf32> -> vector<8x768xf32>
    %c0_28 = arith.constant 0 : index
    %c768_29 = arith.constant 768 : index
    %76 = vector.load %arg8[%c0_28, %c768_29] : memref<1x2560xf32, #tpu.memory_space<vmem>>, vector<1x768xf32>
    %77 = vector.broadcast %76 : vector<1x768xf32> to vector<8x768xf32>
    %78 = arith.addf %75, %77 : vector<8x768xf32>
    %c1_i32 = arith.constant 1 : i32
    %79 = vector.broadcast %c1_i32 : i32 to vector<8x1xi32>
    %80 = arith.cmpi sgt, %0, %79 : vector<8x1xi32>
    %81 = vector.extract_strided_slice %78 {offsets = [0, 0], sizes = [8, 384], strides = [1, 1]} : vector<8x768xf32> to vector<8x384xf32>
    %82 = vector.extract_strided_slice %71 {offsets = [0, 0], sizes = [8, 256], strides = [1, 1]} : vector<8x384xf32> to vector<8x256xf32>
    %83 = vector.extract_strided_slice %81 {offsets = [0, 0], sizes = [8, 256], strides = [1, 1]} : vector<8x384xf32> to vector<8x256xf32>
    %84 = arith.addf %82, %83 : vector<8x256xf32>
    %85 = arith.negf %84 : vector<8x256xf32>
    %86 = math.exp %85 : vector<8x256xf32>
    %cst_30 = arith.constant 1.000000e+00 : f32
    %87 = vector.broadcast %cst_30 : f32 to vector<8x256xf32>
    %88 = arith.addf %87, %86 : vector<8x256xf32>
    %89 = arith.divf %87, %88 : vector<8x256xf32>
    %90 = vector.extract_strided_slice %89 {offsets = [0, 0], sizes = [8, 128], strides = [1, 1]} : vector<8x256xf32> to vector<8x128xf32>
    %91 = vector.extract_strided_slice %89 {offsets = [0, 128], sizes = [8, 128], strides = [1, 1]} : vector<8x256xf32> to vector<8x128xf32>
    %92 = vector.extract_strided_slice %71 {offsets = [0, 256], sizes = [8, 128], strides = [1, 1]} : vector<8x384xf32> to vector<8x128xf32>
    %93 = vector.extract_strided_slice %81 {offsets = [0, 256], sizes = [8, 128], strides = [1, 1]} : vector<8x384xf32> to vector<8x128xf32>
    %94 = arith.mulf %90, %93 : vector<8x128xf32>
    %95 = arith.addf %92, %94 : vector<8x128xf32>
    %96 = math.tanh %95 : vector<8x128xf32>
    %cst_31 = arith.constant 1.000000e+00 : f32
    %97 = vector.broadcast %cst_31 : f32 to vector<8x128xf32>
    %98 = arith.subf %97, %91 : vector<8x128xf32>
    %99 = arith.mulf %98, %96 : vector<8x128xf32>
    %100 = arith.mulf %91, %42 : vector<8x128xf32>
    %101 = arith.addf %99, %100 : vector<8x128xf32>
    %102 = vector.shape_cast %80 : vector<8x1xi1> to vector<8x1xi1>
    %103 = vector.broadcast %102 : vector<8x1xi1> to vector<8x128xi1>
    %104 = arith.select %103, %101, %42 : vector<8x128xi1>, vector<8x128xf32>
    %c6_i32 = arith.constant 6 : i32
    %105 = vector.broadcast %c6_i32 : i32 to vector<8x1xi32>
    %106 = arith.cmpi sgt, %0, %105 : vector<8x1xi32>
    %107 = vector.extract_strided_slice %78 {offsets = [0, 384], sizes = [8, 384], strides = [1, 1]} : vector<8x768xf32> to vector<8x384xf32>
    %108 = vector.extract_strided_slice %72 {offsets = [0, 0], sizes = [8, 256], strides = [1, 1]} : vector<8x384xf32> to vector<8x256xf32>
    %109 = vector.extract_strided_slice %107 {offsets = [0, 0], sizes = [8, 256], strides = [1, 1]} : vector<8x384xf32> to vector<8x256xf32>
    %110 = arith.addf %108, %109 : vector<8x256xf32>
    %111 = arith.negf %110 : vector<8x256xf32>
    %112 = math.exp %111 : vector<8x256xf32>
    %cst_32 = arith.constant 1.000000e+00 : f32
    %113 = vector.broadcast %cst_32 : f32 to vector<8x256xf32>
    %114 = arith.addf %113, %112 : vector<8x256xf32>
    %115 = arith.divf %113, %114 : vector<8x256xf32>
    %116 = vector.extract_strided_slice %115 {offsets = [0, 0], sizes = [8, 128], strides = [1, 1]} : vector<8x256xf32> to vector<8x128xf32>
    %117 = vector.extract_strided_slice %115 {offsets = [0, 128], sizes = [8, 128], strides = [1, 1]} : vector<8x256xf32> to vector<8x128xf32>
    %118 = vector.extract_strided_slice %72 {offsets = [0, 256], sizes = [8, 128], strides = [1, 1]} : vector<8x384xf32> to vector<8x128xf32>
    %119 = vector.extract_strided_slice %107 {offsets = [0, 256], sizes = [8, 128], strides = [1, 1]} : vector<8x384xf32> to vector<8x128xf32>
    %120 = arith.mulf %116, %119 : vector<8x128xf32>
    %121 = arith.addf %118, %120 : vector<8x128xf32>
    %122 = math.tanh %121 : vector<8x128xf32>
    %cst_33 = arith.constant 1.000000e+00 : f32
    %123 = vector.broadcast %cst_33 : f32 to vector<8x128xf32>
    %124 = arith.subf %123, %117 : vector<8x128xf32>
    %125 = arith.mulf %124, %122 : vector<8x128xf32>
    %126 = arith.mulf %117, %68 : vector<8x128xf32>
    %127 = arith.addf %125, %126 : vector<8x128xf32>
    %128 = vector.shape_cast %106 : vector<8x1xi1> to vector<8x1xi1>
    %129 = vector.broadcast %128 : vector<8x1xi1> to vector<8x128xi1>
    %130 = arith.select %129, %127, %68 : vector<8x128xi1>, vector<8x128xf32>
    %c8_34 = arith.constant 8 : index
    %c0_35 = arith.constant 0 : index
    %131 = vector.load %arg11[%c8_34, %c0_35] : memref<64x256xf32, #tpu.memory_space<vmem>>, vector<8x128xf32>
    tpu.vector_store %arg11[%c8_34, %c0_35], %104 {strides = array<i32>} : memref<64x256xf32, #tpu.memory_space<vmem>>, vector<8x128xf32>,
    %c48_36 = arith.constant 48 : index
    %c128_37 = arith.constant 128 : index
    %132 = vector.load %arg11[%c48_36, %c128_37] : memref<64x256xf32, #tpu.memory_space<vmem>>, vector<8x128xf32>
    tpu.vector_store %arg11[%c48_36, %c128_37], %130 {strides = array<i32>} : memref<64x256xf32, #tpu.memory_space<vmem>>, vector<8x128xf32>,
    %c16 = arith.constant 16 : index
    %c0_38 = arith.constant 0 : index
    %133 = vector.load %arg10[%c16, %c0_38] : memref<64x768xf32, #tpu.memory_space<vmem>>, vector<8x384xf32>
    %c40 = arith.constant 40 : index
    %c384_39 = arith.constant 384 : index
    %134 = vector.load %arg10[%c40, %c384_39] : memref<64x768xf32, #tpu.memory_space<vmem>>, vector<8x384xf32>
    %135 = tpu.concatenate %104, %130 in 1 : vector<8x128xf32>, vector<8x128xf32> -> vector<8x256xf32>
    %c0_40 = arith.constant 0 : index
    %c0_41 = arith.constant 0 : index
    %136 = vector.load %arg3[%c0_40, %c0_41] : memref<256x768xf32, #tpu.memory_space<vmem>>, vector<256x768xf32>
    %cst_42 = arith.constant dense<0.000000e+00> : vector<8x768xf32>
    %137 = tpu.matmul %135, %136, %cst_42 {dimension_numbers = #tpu.dot_dimension_numbers<[1], [0], [0], [1], [0, 0, 1, 1], [], []>} : vector<8x256xf32>, vector<256x768xf32>, vector<8x768xf32> -> vector<8x768xf32>
    %c0_43 = arith.constant 0 : index
    %c768_44 = arith.constant 768 : index
    %138 = vector.load %arg8[%c0_43, %c768_44] : memref<1x2560xf32, #tpu.memory_space<vmem>>, vector<1x768xf32>
    %139 = vector.broadcast %138 : vector<1x768xf32> to vector<8x768xf32>
    %140 = arith.addf %137, %139 : vector<8x768xf32>
    %c2_i32 = arith.constant 2 : i32
    %141 = vector.broadcast %c2_i32 : i32 to vector<8x1xi32>
    %142 = arith.cmpi sgt, %0, %141 : vector<8x1xi32>
    %143 = vector.extract_strided_slice %140 {offsets = [0, 0], sizes = [8, 384], strides = [1, 1]} : vector<8x768xf32> to vector<8x384xf32>
    %144 = vector.extract_strided_slice %133 {offsets = [0, 0], sizes = [8, 256], strides = [1, 1]} : vector<8x384xf32> to vector<8x256xf32>
    %145 = vector.extract_strided_slice %143 {offsets = [0, 0], sizes = [8, 256], strides = [1, 1]} : vector<8x384xf32> to vector<8x256xf32>
    %146 = arith.addf %144, %145 : vector<8x256xf32>
    %147 = arith.negf %146 : vector<8x256xf32>
    %148 = math.exp %147 : vector<8x256xf32>
    %cst_45 = arith.constant 1.000000e+00 : f32
    %149 = vector.broadcast %cst_45 : f32 to vector<8x256xf32>
    %150 = arith.addf %149, %148 : vector<8x256xf32>
    %151 = arith.divf %149, %150 : vector<8x256xf32>
    %152 = vector.extract_strided_slice %151 {offsets = [0, 0], sizes = [8, 128], strides = [1, 1]} : vector<8x256xf32> to vector<8x128xf32>
    %153 = vector.extract_strided_slice %151 {offsets = [0, 128], sizes = [8, 128], strides = [1, 1]} : vector<8x256xf32> to vector<8x128xf32>
    %154 = vector.extract_strided_slice %133 {offsets = [0, 256], sizes = [8, 128], strides = [1, 1]} : vector<8x384xf32> to vector<8x128xf32>
    %155 = vector.extract_strided_slice %143 {offsets = [0, 256], sizes = [8, 128], strides = [1, 1]} : vector<8x384xf32> to vector<8x128xf32>
    %156 = arith.mulf %152, %155 : vector<8x128xf32>
    %157 = arith.addf %154, %156 : vector<8x128xf32>
    %158 = math.tanh %157 : vector<8x128xf32>
    %cst_46 = arith.constant 1.000000e+00 : f32
    %159 = vector.broadcast %cst_46 : f32 to vector<8x128xf32>
    %160 = arith.subf %159, %153 : vector<8x128xf32>
    %161 = arith.mulf %160, %158 : vector<8x128xf32>
    %162 = arith.mulf %153, %104 : vector<8x128xf32>
    %163 = arith.addf %161, %162 : vector<8x128xf32>
    %164 = vector.shape_cast %142 : vector<8x1xi1> to vector<8x1xi1>
    %165 = vector.broadcast %164 : vector<8x1xi1> to vector<8x128xi1>
    %166 = arith.select %165, %163, %104 : vector<8x128xi1>, vector<8x128xf32>
    %c5_i32 = arith.constant 5 : i32
    %167 = vector.broadcast %c5_i32 : i32 to vector<8x1xi32>
    %168 = arith.cmpi sgt, %0, %167 : vector<8x1xi32>
    %169 = vector.extract_strided_slice %140 {offsets = [0, 384], sizes = [8, 384], strides = [1, 1]} : vector<8x768xf32> to vector<8x384xf32>
    %170 = vector.extract_strided_slice %134 {offsets = [0, 0], sizes = [8, 256], strides = [1, 1]} : vector<8x384xf32> to vector<8x256xf32>
    %171 = vector.extract_strided_slice %169 {offsets = [0, 0], sizes = [8, 256], strides = [1, 1]} : vector<8x384xf32> to vector<8x256xf32>
    %172 = arith.addf %170, %171 : vector<8x256xf32>
    %173 = arith.negf %172 : vector<8x256xf32>
    %174 = math.exp %173 : vector<8x256xf32>
    %cst_47 = arith.constant 1.000000e+00 : f32
    %175 = vector.broadcast %cst_47 : f32 to vector<8x256xf32>
    %176 = arith.addf %175, %174 : vector<8x256xf32>
    %177 = arith.divf %175, %176 : vector<8x256xf32>
    %178 = vector.extract_strided_slice %177 {offsets = [0, 0], sizes = [8, 128], strides = [1, 1]} : vector<8x256xf32> to vector<8x128xf32>
    %179 = vector.extract_strided_slice %177 {offsets = [0, 128], sizes = [8, 128], strides = [1, 1]} : vector<8x256xf32> to vector<8x128xf32>
    %180 = vector.extract_strided_slice %134 {offsets = [0, 256], sizes = [8, 128], strides = [1, 1]} : vector<8x384xf32> to vector<8x128xf32>
    %181 = vector.extract_strided_slice %169 {offsets = [0, 256], sizes = [8, 128], strides = [1, 1]} : vector<8x384xf32> to vector<8x128xf32>
    %182 = arith.mulf %178, %181 : vector<8x128xf32>
    %183 = arith.addf %180, %182 : vector<8x128xf32>
    %184 = math.tanh %183 : vector<8x128xf32>
    %cst_48 = arith.constant 1.000000e+00 : f32
    %185 = vector.broadcast %cst_48 : f32 to vector<8x128xf32>
    %186 = arith.subf %185, %179 : vector<8x128xf32>
    %187 = arith.mulf %186, %184 : vector<8x128xf32>
    %188 = arith.mulf %179, %130 : vector<8x128xf32>
    %189 = arith.addf %187, %188 : vector<8x128xf32>
    %190 = vector.shape_cast %168 : vector<8x1xi1> to vector<8x1xi1>
    %191 = vector.broadcast %190 : vector<8x1xi1> to vector<8x128xi1>
    %192 = arith.select %191, %189, %130 : vector<8x128xi1>, vector<8x128xf32>
    %c16_49 = arith.constant 16 : index
    %c0_50 = arith.constant 0 : index
    %193 = vector.load %arg11[%c16_49, %c0_50] : memref<64x256xf32, #tpu.memory_space<vmem>>, vector<8x128xf32>
    tpu.vector_store %arg11[%c16_49, %c0_50], %166 {strides = array<i32>} : memref<64x256xf32, #tpu.memory_space<vmem>>, vector<8x128xf32>,
    %c40_51 = arith.constant 40 : index
    %c128_52 = arith.constant 128 : index
    %194 = vector.load %arg11[%c40_51, %c128_52] : memref<64x256xf32, #tpu.memory_space<vmem>>, vector<8x128xf32>
    tpu.vector_store %arg11[%c40_51, %c128_52], %192 {strides = array<i32>} : memref<64x256xf32, #tpu.memory_space<vmem>>, vector<8x128xf32>,
    %c24 = arith.constant 24 : index
    %c0_53 = arith.constant 0 : index
    %195 = vector.load %arg10[%c24, %c0_53] : memref<64x768xf32, #tpu.memory_space<vmem>>, vector<8x384xf32>
    %c32 = arith.constant 32 : index
    %c384_54 = arith.constant 384 : index
    %196 = vector.load %arg10[%c32, %c384_54] : memref<64x768xf32, #tpu.memory_space<vmem>>, vector<8x384xf32>
    %197 = tpu.concatenate %166, %192 in 1 : vector<8x128xf32>, vector<8x128xf32> -> vector<8x256xf32>
    %c0_55 = arith.constant 0 : index
    %c0_56 = arith.constant 0 : index
    %198 = vector.load %arg3[%c0_55, %c0_56] : memref<256x768xf32, #tpu.memory_space<vmem>>, vector<256x768xf32>
    %cst_57 = arith.constant dense<0.000000e+00> : vector<8x768xf32>
    %199 = tpu.matmul %197, %198, %cst_57 {dimension_numbers = #tpu.dot_dimension_numbers<[1], [0], [0], [1], [0, 0, 1, 1], [], []>} : vector<8x256xf32>, vector<256x768xf32>, vector<8x768xf32> -> vector<8x768xf32>
    %c0_58 = arith.constant 0 : index
    %c768_59 = arith.constant 768 : index
    %200 = vector.load %arg8[%c0_58, %c768_59] : memref<1x2560xf32, #tpu.memory_space<vmem>>, vector<1x768xf32>
    %201 = vector.broadcast %200 : vector<1x768xf32> to vector<8x768xf32>
    %202 = arith.addf %199, %201 : vector<8x768xf32>
    %c3_i32 = arith.constant 3 : i32
    %203 = vector.broadcast %c3_i32 : i32 to vector<8x1xi32>
    %204 = arith.cmpi sgt, %0, %203 : vector<8x1xi32>
    %205 = vector.extract_strided_slice %202 {offsets = [0, 0], sizes = [8, 384], strides = [1, 1]} : vector<8x768xf32> to vector<8x384xf32>
    %206 = vector.extract_strided_slice %195 {offsets = [0, 0], sizes = [8, 256], strides = [1, 1]} : vector<8x384xf32> to vector<8x256xf32>
    %207 = vector.extract_strided_slice %205 {offsets = [0, 0], sizes = [8, 256], strides = [1, 1]} : vector<8x384xf32> to vector<8x256xf32>
    %208 = arith.addf %206, %207 : vector<8x256xf32>
    %209 = arith.negf %208 : vector<8x256xf32>
    %210 = math.exp %209 : vector<8x256xf32>
    %cst_60 = arith.constant 1.000000e+00 : f32
    %211 = vector.broadcast %cst_60 : f32 to vector<8x256xf32>
    %212 = arith.addf %211, %210 : vector<8x256xf32>
    %213 = arith.divf %211, %212 : vector<8x256xf32>
    %214 = vector.extract_strided_slice %213 {offsets = [0, 0], sizes = [8, 128], strides = [1, 1]} : vector<8x256xf32> to vector<8x128xf32>
    %215 = vector.extract_strided_slice %213 {offsets = [0, 128], sizes = [8, 128], strides = [1, 1]} : vector<8x256xf32> to vector<8x128xf32>
    %216 = vector.extract_strided_slice %195 {offsets = [0, 256], sizes = [8, 128], strides = [1, 1]} : vector<8x384xf32> to vector<8x128xf32>
    %217 = vector.extract_strided_slice %205 {offsets = [0, 256], sizes = [8, 128], strides = [1, 1]} : vector<8x384xf32> to vector<8x128xf32>
    %218 = arith.mulf %214, %217 : vector<8x128xf32>
    %219 = arith.addf %216, %218 : vector<8x128xf32>
    %220 = math.tanh %219 : vector<8x128xf32>
    %cst_61 = arith.constant 1.000000e+00 : f32
    %221 = vector.broadcast %cst_61 : f32 to vector<8x128xf32>
    %222 = arith.subf %221, %215 : vector<8x128xf32>
    %223 = arith.mulf %222, %220 : vector<8x128xf32>
    %224 = arith.mulf %215, %166 : vector<8x128xf32>
    %225 = arith.addf %223, %224 : vector<8x128xf32>
    %226 = vector.shape_cast %204 : vector<8x1xi1> to vector<8x1xi1>
    %227 = vector.broadcast %226 : vector<8x1xi1> to vector<8x128xi1>
    %228 = arith.select %227, %225, %166 : vector<8x128xi1>, vector<8x128xf32>
    %c4_i32 = arith.constant 4 : i32
    %229 = vector.broadcast %c4_i32 : i32 to vector<8x1xi32>
    %230 = arith.cmpi sgt, %0, %229 : vector<8x1xi32>
    %231 = vector.extract_strided_slice %202 {offsets = [0, 384], sizes = [8, 384], strides = [1, 1]} : vector<8x768xf32> to vector<8x384xf32>
    %232 = vector.extract_strided_slice %196 {offsets = [0, 0], sizes = [8, 256], strides = [1, 1]} : vector<8x384xf32> to vector<8x256xf32>
    %233 = vector.extract_strided_slice %231 {offsets = [0, 0], sizes = [8, 256], strides = [1, 1]} : vector<8x384xf32> to vector<8x256xf32>
    %234 = arith.addf %232, %233 : vector<8x256xf32>
    %235 = arith.negf %234 : vector<8x256xf32>
    %236 = math.exp %235 : vector<8x256xf32>
    %cst_62 = arith.constant 1.000000e+00 : f32
    %237 = vector.broadcast %cst_62 : f32 to vector<8x256xf32>
    %238 = arith.addf %237, %236 : vector<8x256xf32>
    %239 = arith.divf %237, %238 : vector<8x256xf32>
    %240 = vector.extract_strided_slice %239 {offsets = [0, 0], sizes = [8, 128], strides = [1, 1]} : vector<8x256xf32> to vector<8x128xf32>
    %241 = vector.extract_strided_slice %239 {offsets = [0, 128], sizes = [8, 128], strides = [1, 1]} : vector<8x256xf32> to vector<8x128xf32>
    %242 = vector.extract_strided_slice %196 {offsets = [0, 256], sizes = [8, 128], strides = [1, 1]} : vector<8x384xf32> to vector<8x128xf32>
    %243 = vector.extract_strided_slice %231 {offsets = [0, 256], sizes = [8, 128], strides = [1, 1]} : vector<8x384xf32> to vector<8x128xf32>
    %244 = arith.mulf %240, %243 : vector<8x128xf32>
    %245 = arith.addf %242, %244 : vector<8x128xf32>
    %246 = math.tanh %245 : vector<8x128xf32>
    %cst_63 = arith.constant 1.000000e+00 : f32
    %247 = vector.broadcast %cst_63 : f32 to vector<8x128xf32>
    %248 = arith.subf %247, %241 : vector<8x128xf32>
    %249 = arith.mulf %248, %246 : vector<8x128xf32>
    %250 = arith.mulf %241, %192 : vector<8x128xf32>
    %251 = arith.addf %249, %250 : vector<8x128xf32>
    %252 = vector.shape_cast %230 : vector<8x1xi1> to vector<8x1xi1>
    %253 = vector.broadcast %252 : vector<8x1xi1> to vector<8x128xi1>
    %254 = arith.select %253, %251, %192 : vector<8x128xi1>, vector<8x128xf32>
    %c24_64 = arith.constant 24 : index
    %c0_65 = arith.constant 0 : index
    %255 = vector.load %arg11[%c24_64, %c0_65] : memref<64x256xf32, #tpu.memory_space<vmem>>, vector<8x128xf32>
    tpu.vector_store %arg11[%c24_64, %c0_65], %228 {strides = array<i32>} : memref<64x256xf32, #tpu.memory_space<vmem>>, vector<8x128xf32>,
    %c32_66 = arith.constant 32 : index
    %c128_67 = arith.constant 128 : index
    %256 = vector.load %arg11[%c32_66, %c128_67] : memref<64x256xf32, #tpu.memory_space<vmem>>, vector<8x128xf32>
    tpu.vector_store %arg11[%c32_66, %c128_67], %254 {strides = array<i32>} : memref<64x256xf32, #tpu.memory_space<vmem>>, vector<8x128xf32>,
    %c32_68 = arith.constant 32 : index
    %c0_69 = arith.constant 0 : index
    %257 = vector.load %arg10[%c32_68, %c0_69] : memref<64x768xf32, #tpu.memory_space<vmem>>, vector<8x384xf32>
    %c24_70 = arith.constant 24 : index
    %c384_71 = arith.constant 384 : index
    %258 = vector.load %arg10[%c24_70, %c384_71] : memref<64x768xf32, #tpu.memory_space<vmem>>, vector<8x384xf32>
    %259 = tpu.concatenate %228, %254 in 1 : vector<8x128xf32>, vector<8x128xf32> -> vector<8x256xf32>
    %c0_72 = arith.constant 0 : index
    %c0_73 = arith.constant 0 : index
    %260 = vector.load %arg3[%c0_72, %c0_73] : memref<256x768xf32, #tpu.memory_space<vmem>>, vector<256x768xf32>
    %cst_74 = arith.constant dense<0.000000e+00> : vector<8x768xf32>
    %261 = tpu.matmul %259, %260, %cst_74 {dimension_numbers = #tpu.dot_dimension_numbers<[1], [0], [0], [1], [0, 0, 1, 1], [], []>} : vector<8x256xf32>, vector<256x768xf32>, vector<8x768xf32> -> vector<8x768xf32>
    %c0_75 = arith.constant 0 : index
    %c768_76 = arith.constant 768 : index
    %262 = vector.load %arg8[%c0_75, %c768_76] : memref<1x2560xf32, #tpu.memory_space<vmem>>, vector<1x768xf32>
    %263 = vector.broadcast %262 : vector<1x768xf32> to vector<8x768xf32>
    %264 = arith.addf %261, %263 : vector<8x768xf32>
    %c4_i32_77 = arith.constant 4 : i32
    %265 = vector.broadcast %c4_i32_77 : i32 to vector<8x1xi32>
    %266 = arith.cmpi sgt, %0, %265 : vector<8x1xi32>
    %267 = vector.extract_strided_slice %264 {offsets = [0, 0], sizes = [8, 384], strides = [1, 1]} : vector<8x768xf32> to vector<8x384xf32>
    %268 = vector.extract_strided_slice %257 {offsets = [0, 0], sizes = [8, 256], strides = [1, 1]} : vector<8x384xf32> to vector<8x256xf32>
    %269 = vector.extract_strided_slice %267 {offsets = [0, 0], sizes = [8, 256], strides = [1, 1]} : vector<8x384xf32> to vector<8x256xf32>
    %270 = arith.addf %268, %269 : vector<8x256xf32>
    %271 = arith.negf %270 : vector<8x256xf32>
    %272 = math.exp %271 : vector<8x256xf32>
    %cst_78 = arith.constant 1.000000e+00 : f32
    %273 = vector.broadcast %cst_78 : f32 to vector<8x256xf32>
    %274 = arith.addf %273, %272 : vector<8x256xf32>
    %275 = arith.divf %273, %274 : vector<8x256xf32>
    %276 = vector.extract_strided_slice %275 {offsets = [0, 0], sizes = [8, 128], strides = [1, 1]} : vector<8x256xf32> to vector<8x128xf32>
    %277 = vector.extract_strided_slice %275 {offsets = [0, 128], sizes = [8, 128], strides = [1, 1]} : vector<8x256xf32> to vector<8x128xf32>
    %278 = vector.extract_strided_slice %257 {offsets = [0, 256], sizes = [8, 128], strides = [1, 1]} : vector<8x384xf32> to vector<8x128xf32>
    %279 = vector.extract_strided_slice %267 {offsets = [0, 256], sizes = [8, 128], strides = [1, 1]} : vector<8x384xf32> to vector<8x128xf32>
    %280 = arith.mulf %276, %279 : vector<8x128xf32>
    %281 = arith.addf %278, %280 : vector<8x128xf32>
    %282 = math.tanh %281 : vector<8x128xf32>
    %cst_79 = arith.constant 1.000000e+00 : f32
    %283 = vector.broadcast %cst_79 : f32 to vector<8x128xf32>
    %284 = arith.subf %283, %277 : vector<8x128xf32>
    %285 = arith.mulf %284, %282 : vector<8x128xf32>
    %286 = arith.mulf %277, %228 : vector<8x128xf32>
    %287 = arith.addf %285, %286 : vector<8x128xf32>
    %288 = vector.shape_cast %266 : vector<8x1xi1> to vector<8x1xi1>
    %289 = vector.broadcast %288 : vector<8x1xi1> to vector<8x128xi1>
    %290 = arith.select %289, %287, %228 : vector<8x128xi1>, vector<8x128xf32>
    %c3_i32_80 = arith.constant 3 : i32
    %291 = vector.broadcast %c3_i32_80 : i32 to vector<8x1xi32>
    %292 = arith.cmpi sgt, %0, %291 : vector<8x1xi32>
    %293 = vector.extract_strided_slice %264 {offsets = [0, 384], sizes = [8, 384], strides = [1, 1]} : vector<8x768xf32> to vector<8x384xf32>
    %294 = vector.extract_strided_slice %258 {offsets = [0, 0], sizes = [8, 256], strides = [1, 1]} : vector<8x384xf32> to vector<8x256xf32>
    %295 = vector.extract_strided_slice %293 {offsets = [0, 0], sizes = [8, 256], strides = [1, 1]} : vector<8x384xf32> to vector<8x256xf32>
    %296 = arith.addf %294, %295 : vector<8x256xf32>
    %297 = arith.negf %296 : vector<8x256xf32>
    %298 = math.exp %297 : vector<8x256xf32>
    %cst_81 = arith.constant 1.000000e+00 : f32
    %299 = vector.broadcast %cst_81 : f32 to vector<8x256xf32>
    %300 = arith.addf %299, %298 : vector<8x256xf32>
    %301 = arith.divf %299, %300 : vector<8x256xf32>
    %302 = vector.extract_strided_slice %301 {offsets = [0, 0], sizes = [8, 128], strides = [1, 1]} : vector<8x256xf32> to vector<8x128xf32>
    %303 = vector.extract_strided_slice %301 {offsets = [0, 128], sizes = [8, 128], strides = [1, 1]} : vector<8x256xf32> to vector<8x128xf32>
    %304 = vector.extract_strided_slice %258 {offsets = [0, 256], sizes = [8, 128], strides = [1, 1]} : vector<8x384xf32> to vector<8x128xf32>
    %305 = vector.extract_strided_slice %293 {offsets = [0, 256], sizes = [8, 128], strides = [1, 1]} : vector<8x384xf32> to vector<8x128xf32>
    %306 = arith.mulf %302, %305 : vector<8x128xf32>
    %307 = arith.addf %304, %306 : vector<8x128xf32>
    %308 = math.tanh %307 : vector<8x128xf32>
    %cst_82 = arith.constant 1.000000e+00 : f32
    %309 = vector.broadcast %cst_82 : f32 to vector<8x128xf32>
    %310 = arith.subf %309, %303 : vector<8x128xf32>
    %311 = arith.mulf %310, %308 : vector<8x128xf32>
    %312 = arith.mulf %303, %254 : vector<8x128xf32>
    %313 = arith.addf %311, %312 : vector<8x128xf32>
    %314 = vector.shape_cast %292 : vector<8x1xi1> to vector<8x1xi1>
    %315 = vector.broadcast %314 : vector<8x1xi1> to vector<8x128xi1>
    %316 = arith.select %315, %313, %254 : vector<8x128xi1>, vector<8x128xf32>
    %c32_83 = arith.constant 32 : index
    %c0_84 = arith.constant 0 : index
    %317 = vector.load %arg11[%c32_83, %c0_84] : memref<64x256xf32, #tpu.memory_space<vmem>>, vector<8x128xf32>
    tpu.vector_store %arg11[%c32_83, %c0_84], %290 {strides = array<i32>} : memref<64x256xf32, #tpu.memory_space<vmem>>, vector<8x128xf32>,
    %c24_85 = arith.constant 24 : index
    %c128_86 = arith.constant 128 : index
    %318 = vector.load %arg11[%c24_85, %c128_86] : memref<64x256xf32, #tpu.memory_space<vmem>>, vector<8x128xf32>
    tpu.vector_store %arg11[%c24_85, %c128_86], %316 {strides = array<i32>} : memref<64x256xf32, #tpu.memory_space<vmem>>, vector<8x128xf32>,
    %c40_87 = arith.constant 40 : index
    %c0_88 = arith.constant 0 : index
    %319 = vector.load %arg10[%c40_87, %c0_88] : memref<64x768xf32, #tpu.memory_space<vmem>>, vector<8x384xf32>
    %c16_89 = arith.constant 16 : index
    %c384_90 = arith.constant 384 : index
    %320 = vector.load %arg10[%c16_89, %c384_90] : memref<64x768xf32, #tpu.memory_space<vmem>>, vector<8x384xf32>
    %321 = tpu.concatenate %290, %316 in 1 : vector<8x128xf32>, vector<8x128xf32> -> vector<8x256xf32>
    %c0_91 = arith.constant 0 : index
    %c0_92 = arith.constant 0 : index
    %322 = vector.load %arg3[%c0_91, %c0_92] : memref<256x768xf32, #tpu.memory_space<vmem>>, vector<256x768xf32>
    %cst_93 = arith.constant dense<0.000000e+00> : vector<8x768xf32>
    %323 = tpu.matmul %321, %322, %cst_93 {dimension_numbers = #tpu.dot_dimension_numbers<[1], [0], [0], [1], [0, 0, 1, 1], [], []>} : vector<8x256xf32>, vector<256x768xf32>, vector<8x768xf32> -> vector<8x768xf32>
    %c0_94 = arith.constant 0 : index
    %c768_95 = arith.constant 768 : index
    %324 = vector.load %arg8[%c0_94, %c768_95] : memref<1x2560xf32, #tpu.memory_space<vmem>>, vector<1x768xf32>
    %325 = vector.broadcast %324 : vector<1x768xf32> to vector<8x768xf32>
    %326 = arith.addf %323, %325 : vector<8x768xf32>
    %c5_i32_96 = arith.constant 5 : i32
    %327 = vector.broadcast %c5_i32_96 : i32 to vector<8x1xi32>
    %328 = arith.cmpi sgt, %0, %327 : vector<8x1xi32>
    %329 = vector.extract_strided_slice %326 {offsets = [0, 0], sizes = [8, 384], strides = [1, 1]} : vector<8x768xf32> to vector<8x384xf32>
    %330 = vector.extract_strided_slice %319 {offsets = [0, 0], sizes = [8, 256], strides = [1, 1]} : vector<8x384xf32> to vector<8x256xf32>
    %331 = vector.extract_strided_slice %329 {offsets = [0, 0], sizes = [8, 256], strides = [1, 1]} : vector<8x384xf32> to vector<8x256xf32>
    %332 = arith.addf %330, %331 : vector<8x256xf32>
    %333 = arith.negf %332 : vector<8x256xf32>
    %334 = math.exp %333 : vector<8x256xf32>
    %cst_97 = arith.constant 1.000000e+00 : f32
    %335 = vector.broadcast %cst_97 : f32 to vector<8x256xf32>
    %336 = arith.addf %335, %334 : vector<8x256xf32>
    %337 = arith.divf %335, %336 : vector<8x256xf32>
    %338 = vector.extract_strided_slice %337 {offsets = [0, 0], sizes = [8, 128], strides = [1, 1]} : vector<8x256xf32> to vector<8x128xf32>
    %339 = vector.extract_strided_slice %337 {offsets = [0, 128], sizes = [8, 128], strides = [1, 1]} : vector<8x256xf32> to vector<8x128xf32>
    %340 = vector.extract_strided_slice %319 {offsets = [0, 256], sizes = [8, 128], strides = [1, 1]} : vector<8x384xf32> to vector<8x128xf32>
    %341 = vector.extract_strided_slice %329 {offsets = [0, 256], sizes = [8, 128], strides = [1, 1]} : vector<8x384xf32> to vector<8x128xf32>
    %342 = arith.mulf %338, %341 : vector<8x128xf32>
    %343 = arith.addf %340, %342 : vector<8x128xf32>
    %344 = math.tanh %343 : vector<8x128xf32>
    %cst_98 = arith.constant 1.000000e+00 : f32
    %345 = vector.broadcast %cst_98 : f32 to vector<8x128xf32>
    %346 = arith.subf %345, %339 : vector<8x128xf32>
    %347 = arith.mulf %346, %344 : vector<8x128xf32>
    %348 = arith.mulf %339, %290 : vector<8x128xf32>
    %349 = arith.addf %347, %348 : vector<8x128xf32>
    %350 = vector.shape_cast %328 : vector<8x1xi1> to vector<8x1xi1>
    %351 = vector.broadcast %350 : vector<8x1xi1> to vector<8x128xi1>
    %352 = arith.select %351, %349, %290 : vector<8x128xi1>, vector<8x128xf32>
    %c2_i32_99 = arith.constant 2 : i32
    %353 = vector.broadcast %c2_i32_99 : i32 to vector<8x1xi32>
    %354 = arith.cmpi sgt, %0, %353 : vector<8x1xi32>
    %355 = vector.extract_strided_slice %326 {offsets = [0, 384], sizes = [8, 384], strides = [1, 1]} : vector<8x768xf32> to vector<8x384xf32>
    %356 = vector.extract_strided_slice %320 {offsets = [0, 0], sizes = [8, 256], strides = [1, 1]} : vector<8x384xf32> to vector<8x256xf32>
    %357 = vector.extract_strided_slice %355 {offsets = [0, 0], sizes = [8, 256], strides = [1, 1]} : vector<8x384xf32> to vector<8x256xf32>
    %358 = arith.addf %356, %357 : vector<8x256xf32>
    %359 = arith.negf %358 : vector<8x256xf32>
    %360 = math.exp %359 : vector<8x256xf32>
    %cst_100 = arith.constant 1.000000e+00 : f32
    %361 = vector.broadcast %cst_100 : f32 to vector<8x256xf32>
    %362 = arith.addf %361, %360 : vector<8x256xf32>
    %363 = arith.divf %361, %362 : vector<8x256xf32>
    %364 = vector.extract_strided_slice %363 {offsets = [0, 0], sizes = [8, 128], strides = [1, 1]} : vector<8x256xf32> to vector<8x128xf32>
    %365 = vector.extract_strided_slice %363 {offsets = [0, 128], sizes = [8, 128], strides = [1, 1]} : vector<8x256xf32> to vector<8x128xf32>
    %366 = vector.extract_strided_slice %320 {offsets = [0, 256], sizes = [8, 128], strides = [1, 1]} : vector<8x384xf32> to vector<8x128xf32>
    %367 = vector.extract_strided_slice %355 {offsets = [0, 256], sizes = [8, 128], strides = [1, 1]} : vector<8x384xf32> to vector<8x128xf32>
    %368 = arith.mulf %364, %367 : vector<8x128xf32>
    %369 = arith.addf %366, %368 : vector<8x128xf32>
    %370 = math.tanh %369 : vector<8x128xf32>
    %cst_101 = arith.constant 1.000000e+00 : f32
    %371 = vector.broadcast %cst_101 : f32 to vector<8x128xf32>
    %372 = arith.subf %371, %365 : vector<8x128xf32>
    %373 = arith.mulf %372, %370 : vector<8x128xf32>
    %374 = arith.mulf %365, %316 : vector<8x128xf32>
    %375 = arith.addf %373, %374 : vector<8x128xf32>
    %376 = vector.shape_cast %354 : vector<8x1xi1> to vector<8x1xi1>
    %377 = vector.broadcast %376 : vector<8x1xi1> to vector<8x128xi1>
    %378 = arith.select %377, %375, %316 : vector<8x128xi1>, vector<8x128xf32>
    %c40_102 = arith.constant 40 : index
    %c0_103 = arith.constant 0 : index
    %379 = vector.load %arg11[%c40_102, %c0_103] : memref<64x256xf32, #tpu.memory_space<vmem>>, vector<8x128xf32>
    tpu.vector_store %arg11[%c40_102, %c0_103], %352 {strides = array<i32>} : memref<64x256xf32, #tpu.memory_space<vmem>>, vector<8x128xf32>,
    %c16_104 = arith.constant 16 : index
    %c128_105 = arith.constant 128 : index
    %380 = vector.load %arg11[%c16_104, %c128_105] : memref<64x256xf32, #tpu.memory_space<vmem>>, vector<8x128xf32>
    tpu.vector_store %arg11[%c16_104, %c128_105], %378 {strides = array<i32>} : memref<64x256xf32, #tpu.memory_space<vmem>>, vector<8x128xf32>,
    %c48_106 = arith.constant 48 : index
    %c0_107 = arith.constant 0 : index
    %381 = vector.load %arg10[%c48_106, %c0_107] : memref<64x768xf32, #tpu.memory_space<vmem>>, vector<8x384xf32>
    %c8_108 = arith.constant 8 : index
    %c384_109 = arith.constant 384 : index
    %382 = vector.load %arg10[%c8_108, %c384_109] : memref<64x768xf32, #tpu.memory_space<vmem>>, vector<8x384xf32>
    %383 = tpu.concatenate %352, %378 in 1 : vector<8x128xf32>, vector<8x128xf32> -> vector<8x256xf32>
    %c0_110 = arith.constant 0 : index
    %c0_111 = arith.constant 0 : index
    %384 = vector.load %arg3[%c0_110, %c0_111] : memref<256x768xf32, #tpu.memory_space<vmem>>, vector<256x768xf32>
    %cst_112 = arith.constant dense<0.000000e+00> : vector<8x768xf32>
    %385 = tpu.matmul %383, %384, %cst_112 {dimension_numbers = #tpu.dot_dimension_numbers<[1], [0], [0], [1], [0, 0, 1, 1], [], []>} : vector<8x256xf32>, vector<256x768xf32>, vector<8x768xf32> -> vector<8x768xf32>
    %c0_113 = arith.constant 0 : index
    %c768_114 = arith.constant 768 : index
    %386 = vector.load %arg8[%c0_113, %c768_114] : memref<1x2560xf32, #tpu.memory_space<vmem>>, vector<1x768xf32>
    %387 = vector.broadcast %386 : vector<1x768xf32> to vector<8x768xf32>
    %388 = arith.addf %385, %387 : vector<8x768xf32>
    %c6_i32_115 = arith.constant 6 : i32
    %389 = vector.broadcast %c6_i32_115 : i32 to vector<8x1xi32>
    %390 = arith.cmpi sgt, %0, %389 : vector<8x1xi32>
    %391 = vector.extract_strided_slice %388 {offsets = [0, 0], sizes = [8, 384], strides = [1, 1]} : vector<8x768xf32> to vector<8x384xf32>
    %392 = vector.extract_strided_slice %381 {offsets = [0, 0], sizes = [8, 256], strides = [1, 1]} : vector<8x384xf32> to vector<8x256xf32>
    %393 = vector.extract_strided_slice %391 {offsets = [0, 0], sizes = [8, 256], strides = [1, 1]} : vector<8x384xf32> to vector<8x256xf32>
    %394 = arith.addf %392, %393 : vector<8x256xf32>
    %395 = arith.negf %394 : vector<8x256xf32>
    %396 = math.exp %395 : vector<8x256xf32>
    %cst_116 = arith.constant 1.000000e+00 : f32
    %397 = vector.broadcast %cst_116 : f32 to vector<8x256xf32>
    %398 = arith.addf %397, %396 : vector<8x256xf32>
    %399 = arith.divf %397, %398 : vector<8x256xf32>
    %400 = vector.extract_strided_slice %399 {offsets = [0, 0], sizes = [8, 128], strides = [1, 1]} : vector<8x256xf32> to vector<8x128xf32>
    %401 = vector.extract_strided_slice %399 {offsets = [0, 128], sizes = [8, 128], strides = [1, 1]} : vector<8x256xf32> to vector<8x128xf32>
    %402 = vector.extract_strided_slice %381 {offsets = [0, 256], sizes = [8, 128], strides = [1, 1]} : vector<8x384xf32> to vector<8x128xf32>
    %403 = vector.extract_strided_slice %391 {offsets = [0, 256], sizes = [8, 128], strides = [1, 1]} : vector<8x384xf32> to vector<8x128xf32>
    %404 = arith.mulf %400, %403 : vector<8x128xf32>
    %405 = arith.addf %402, %404 : vector<8x128xf32>
    %406 = math.tanh %405 : vector<8x128xf32>
    %cst_117 = arith.constant 1.000000e+00 : f32
    %407 = vector.broadcast %cst_117 : f32 to vector<8x128xf32>
    %408 = arith.subf %407, %401 : vector<8x128xf32>
    %409 = arith.mulf %408, %406 : vector<8x128xf32>
    %410 = arith.mulf %401, %352 : vector<8x128xf32>
    %411 = arith.addf %409, %410 : vector<8x128xf32>
    %412 = vector.shape_cast %390 : vector<8x1xi1> to vector<8x1xi1>
    %413 = vector.broadcast %412 : vector<8x1xi1> to vector<8x128xi1>
    %414 = arith.select %413, %411, %352 : vector<8x128xi1>, vector<8x128xf32>
    %c1_i32_118 = arith.constant 1 : i32
    %415 = vector.broadcast %c1_i32_118 : i32 to vector<8x1xi32>
    %416 = arith.cmpi sgt, %0, %415 : vector<8x1xi32>
    %417 = vector.extract_strided_slice %388 {offsets = [0, 384], sizes = [8, 384], strides = [1, 1]} : vector<8x768xf32> to vector<8x384xf32>
    %418 = vector.extract_strided_slice %382 {offsets = [0, 0], sizes = [8, 256], strides = [1, 1]} : vector<8x384xf32> to vector<8x256xf32>
    %419 = vector.extract_strided_slice %417 {offsets = [0, 0], sizes = [8, 256], strides = [1, 1]} : vector<8x384xf32> to vector<8x256xf32>
    %420 = arith.addf %418, %419 : vector<8x256xf32>
    %421 = arith.negf %420 : vector<8x256xf32>
    %422 = math.exp %421 : vector<8x256xf32>
    %cst_119 = arith.constant 1.000000e+00 : f32
    %423 = vector.broadcast %cst_119 : f32 to vector<8x256xf32>
    %424 = arith.addf %423, %422 : vector<8x256xf32>
    %425 = arith.divf %423, %424 : vector<8x256xf32>
    %426 = vector.extract_strided_slice %425 {offsets = [0, 0], sizes = [8, 128], strides = [1, 1]} : vector<8x256xf32> to vector<8x128xf32>
    %427 = vector.extract_strided_slice %425 {offsets = [0, 128], sizes = [8, 128], strides = [1, 1]} : vector<8x256xf32> to vector<8x128xf32>
    %428 = vector.extract_strided_slice %382 {offsets = [0, 256], sizes = [8, 128], strides = [1, 1]} : vector<8x384xf32> to vector<8x128xf32>
    %429 = vector.extract_strided_slice %417 {offsets = [0, 256], sizes = [8, 128], strides = [1, 1]} : vector<8x384xf32> to vector<8x128xf32>
    %430 = arith.mulf %426, %429 : vector<8x128xf32>
    %431 = arith.addf %428, %430 : vector<8x128xf32>
    %432 = math.tanh %431 : vector<8x128xf32>
    %cst_120 = arith.constant 1.000000e+00 : f32
    %433 = vector.broadcast %cst_120 : f32 to vector<8x128xf32>
    %434 = arith.subf %433, %427 : vector<8x128xf32>
    %435 = arith.mulf %434, %432 : vector<8x128xf32>
    %436 = arith.mulf %427, %378 : vector<8x128xf32>
    %437 = arith.addf %435, %436 : vector<8x128xf32>
    %438 = vector.shape_cast %416 : vector<8x1xi1> to vector<8x1xi1>
    %439 = vector.broadcast %438 : vector<8x1xi1> to vector<8x128xi1>
    %440 = arith.select %439, %437, %378 : vector<8x128xi1>, vector<8x128xf32>
    %c48_121 = arith.constant 48 : index
    %c0_122 = arith.constant 0 : index
    %441 = vector.load %arg11[%c48_121, %c0_122] : memref<64x256xf32, #tpu.memory_space<vmem>>, vector<8x128xf32>
    tpu.vector_store %arg11[%c48_121, %c0_122], %414 {strides = array<i32>} : memref<64x256xf32, #tpu.memory_space<vmem>>, vector<8x128xf32>,
    %c8_123 = arith.constant 8 : index
    %c128_124 = arith.constant 128 : index
    %442 = vector.load %arg11[%c8_123, %c128_124] : memref<64x256xf32, #tpu.memory_space<vmem>>, vector<8x128xf32>
    tpu.vector_store %arg11[%c8_123, %c128_124], %440 {strides = array<i32>} : memref<64x256xf32, #tpu.memory_space<vmem>>, vector<8x128xf32>,
    %c56_125 = arith.constant 56 : index
    %c0_126 = arith.constant 0 : index
    %443 = vector.load %arg10[%c56_125, %c0_126] : memref<64x768xf32, #tpu.memory_space<vmem>>, vector<8x384xf32>
    %c0_127 = arith.constant 0 : index
    %c384_128 = arith.constant 384 : index
    %444 = vector.load %arg10[%c0_127, %c384_128] : memref<64x768xf32, #tpu.memory_space<vmem>>, vector<8x384xf32>
    %445 = tpu.concatenate %414, %440 in 1 : vector<8x128xf32>, vector<8x128xf32> -> vector<8x256xf32>
    %c0_129 = arith.constant 0 : index
    %c0_130 = arith.constant 0 : index
    %446 = vector.load %arg3[%c0_129, %c0_130] : memref<256x768xf32, #tpu.memory_space<vmem>>, vector<256x768xf32>
    %cst_131 = arith.constant dense<0.000000e+00> : vector<8x768xf32>
    %447 = tpu.matmul %445, %446, %cst_131 {dimension_numbers = #tpu.dot_dimension_numbers<[1], [0], [0], [1], [0, 0, 1, 1], [], []>} : vector<8x256xf32>, vector<256x768xf32>, vector<8x768xf32> -> vector<8x768xf32>
    %c0_132 = arith.constant 0 : index
    %c768_133 = arith.constant 768 : index
    %448 = vector.load %arg8[%c0_132, %c768_133] : memref<1x2560xf32, #tpu.memory_space<vmem>>, vector<1x768xf32>
    %449 = vector.broadcast %448 : vector<1x768xf32> to vector<8x768xf32>
    %450 = arith.addf %447, %449 : vector<8x768xf32>
    %c7_i32_134 = arith.constant 7 : i32
    %451 = vector.broadcast %c7_i32_134 : i32 to vector<8x1xi32>
    %452 = arith.cmpi sgt, %0, %451 : vector<8x1xi32>
    %453 = vector.extract_strided_slice %450 {offsets = [0, 0], sizes = [8, 384], strides = [1, 1]} : vector<8x768xf32> to vector<8x384xf32>
    %454 = vector.extract_strided_slice %443 {offsets = [0, 0], sizes = [8, 256], strides = [1, 1]} : vector<8x384xf32> to vector<8x256xf32>
    %455 = vector.extract_strided_slice %453 {offsets = [0, 0], sizes = [8, 256], strides = [1, 1]} : vector<8x384xf32> to vector<8x256xf32>
    %456 = arith.addf %454, %455 : vector<8x256xf32>
    %457 = arith.negf %456 : vector<8x256xf32>
    %458 = math.exp %457 : vector<8x256xf32>
    %cst_135 = arith.constant 1.000000e+00 : f32
    %459 = vector.broadcast %cst_135 : f32 to vector<8x256xf32>
    %460 = arith.addf %459, %458 : vector<8x256xf32>
    %461 = arith.divf %459, %460 : vector<8x256xf32>
    %462 = vector.extract_strided_slice %461 {offsets = [0, 0], sizes = [8, 128], strides = [1, 1]} : vector<8x256xf32> to vector<8x128xf32>
    %463 = vector.extract_strided_slice %461 {offsets = [0, 128], sizes = [8, 128], strides = [1, 1]} : vector<8x256xf32> to vector<8x128xf32>
    %464 = vector.extract_strided_slice %443 {offsets = [0, 256], sizes = [8, 128], strides = [1, 1]} : vector<8x384xf32> to vector<8x128xf32>
    %465 = vector.extract_strided_slice %453 {offsets = [0, 256], sizes = [8, 128], strides = [1, 1]} : vector<8x384xf32> to vector<8x128xf32>
    %466 = arith.mulf %462, %465 : vector<8x128xf32>
    %467 = arith.addf %464, %466 : vector<8x128xf32>
    %468 = math.tanh %467 : vector<8x128xf32>
    %cst_136 = arith.constant 1.000000e+00 : f32
    %469 = vector.broadcast %cst_136 : f32 to vector<8x128xf32>
    %470 = arith.subf %469, %463 : vector<8x128xf32>
    %471 = arith.mulf %470, %468 : vector<8x128xf32>
    %472 = arith.mulf %463, %414 : vector<8x128xf32>
    %473 = arith.addf %471, %472 : vector<8x128xf32>
    %474 = vector.shape_cast %452 : vector<8x1xi1> to vector<8x1xi1>
    %475 = vector.broadcast %474 : vector<8x1xi1> to vector<8x128xi1>
    %476 = arith.select %475, %473, %414 : vector<8x128xi1>, vector<8x128xf32>
    %c0_i32_137 = arith.constant 0 : i32
    %477 = vector.broadcast %c0_i32_137 : i32 to vector<8x1xi32>
    %478 = arith.cmpi sgt, %0, %477 : vector<8x1xi32>
    %479 = vector.extract_strided_slice %450 {offsets = [0, 384], sizes = [8, 384], strides = [1, 1]} : vector<8x768xf32> to vector<8x384xf32>
    %480 = vector.extract_strided_slice %444 {offsets = [0, 0], sizes = [8, 256], strides = [1, 1]} : vector<8x384xf32> to vector<8x256xf32>
    %481 = vector.extract_strided_slice %479 {offsets = [0, 0], sizes = [8, 256], strides = [1, 1]} : vector<8x384xf32> to vector<8x256xf32>
    %482 = arith.addf %480, %481 : vector<8x256xf32>
    %483 = arith.negf %482 : vector<8x256xf32>
    %484 = math.exp %483 : vector<8x256xf32>
    %cst_138 = arith.constant 1.000000e+00 : f32
    %485 = vector.broadcast %cst_138 : f32 to vector<8x256xf32>
    %486 = arith.addf %485, %484 : vector<8x256xf32>
    %487 = arith.divf %485, %486 : vector<8x256xf32>
    %488 = vector.extract_strided_slice %487 {offsets = [0, 0], sizes = [8, 128], strides = [1, 1]} : vector<8x256xf32> to vector<8x128xf32>
    %489 = vector.extract_strided_slice %487 {offsets = [0, 128], sizes = [8, 128], strides = [1, 1]} : vector<8x256xf32> to vector<8x128xf32>
    %490 = vector.extract_strided_slice %444 {offsets = [0, 256], sizes = [8, 128], strides = [1, 1]} : vector<8x384xf32> to vector<8x128xf32>
    %491 = vector.extract_strided_slice %479 {offsets = [0, 256], sizes = [8, 128], strides = [1, 1]} : vector<8x384xf32> to vector<8x128xf32>
    %492 = arith.mulf %488, %491 : vector<8x128xf32>
    %493 = arith.addf %490, %492 : vector<8x128xf32>
    %494 = math.tanh %493 : vector<8x128xf32>
    %cst_139 = arith.constant 1.000000e+00 : f32
    %495 = vector.broadcast %cst_139 : f32 to vector<8x128xf32>
    %496 = arith.subf %495, %489 : vector<8x128xf32>
    %497 = arith.mulf %496, %494 : vector<8x128xf32>
    %498 = arith.mulf %489, %440 : vector<8x128xf32>
    %499 = arith.addf %497, %498 : vector<8x128xf32>
    %500 = vector.shape_cast %478 : vector<8x1xi1> to vector<8x1xi1>
    %501 = vector.broadcast %500 : vector<8x1xi1> to vector<8x128xi1>
    %502 = arith.select %501, %499, %440 : vector<8x128xi1>, vector<8x128xf32>
    %c56_140 = arith.constant 56 : index
    %c0_141 = arith.constant 0 : index
    %503 = vector.load %arg11[%c56_140, %c0_141] : memref<64x256xf32, #tpu.memory_space<vmem>>, vector<8x128xf32>
    tpu.vector_store %arg11[%c56_140, %c0_141], %476 {strides = array<i32>} : memref<64x256xf32, #tpu.memory_space<vmem>>, vector<8x128xf32>,
    %c0_142 = arith.constant 0 : index
    %c128_143 = arith.constant 128 : index
    %504 = vector.load %arg11[%c0_142, %c128_143] : memref<64x256xf32, #tpu.memory_space<vmem>>, vector<8x128xf32>
    tpu.vector_store %arg11[%c0_142, %c128_143], %502 {strides = array<i32>} : memref<64x256xf32, #tpu.memory_space<vmem>>, vector<8x128xf32>,
    %c0_144 = arith.constant 0 : index
    %c0_145 = arith.constant 0 : index
    %505 = vector.load %arg11[%c0_144, %c0_145] : memref<64x256xf32, #tpu.memory_space<vmem>>, vector<64x256xf32>
    %c0_146 = arith.constant 0 : index
    %c0_147 = arith.constant 0 : index
    %506 = vector.load %arg4[%c0_146, %c0_147] : memref<256x384xf32, #tpu.memory_space<vmem>>, vector<256x384xf32>
    %cst_148 = arith.constant dense<0.000000e+00> : vector<64x384xf32>
    %507 = tpu.matmul %505, %506, %cst_148 {dimension_numbers = #tpu.dot_dimension_numbers<[1], [0], [0], [1], [0, 0, 1, 1], [], []>} : vector<64x256xf32>, vector<256x384xf32>, vector<64x384xf32> -> vector<64x384xf32>
    %c0_149 = arith.constant 0 : index
    %c1536 = arith.constant 1536 : index
    %508 = vector.load %arg8[%c0_149, %c1536] : memref<1x2560xf32, #tpu.memory_space<vmem>>, vector<1x384xf32>
    %509 = vector.broadcast %508 : vector<1x384xf32> to vector<64x384xf32>
    %510 = arith.addf %507, %509 : vector<64x384xf32>
    %c0_150 = arith.constant 0 : index
    %c0_151 = arith.constant 0 : index
    %511 = vector.load %arg12[%c0_150, %c0_151] : memref<64x384xf32, #tpu.memory_space<vmem>>, vector<64x384xf32>
    tpu.vector_store %arg12[%c0_150, %c0_151], %510 {strides = array<i32>} : memref<64x384xf32, #tpu.memory_space<vmem>>, vector<64x384xf32>,
    %c56_152 = arith.constant 56 : index
    %c0_153 = arith.constant 0 : index
    %512 = vector.load %arg12[%c56_152, %c0_153] : memref<64x384xf32, #tpu.memory_space<vmem>>, vector<8x384xf32>
    %c0_154 = arith.constant 0 : index
    %c0_155 = arith.constant 0 : index
    %513 = vector.load %arg5[%c0_154, %c0_155] : memref<128x384xf32, #tpu.memory_space<vmem>>, vector<128x384xf32>
    %cst_156 = arith.constant dense<0.000000e+00> : vector<8x384xf32>
    %514 = tpu.matmul %8, %513, %cst_156 {dimension_numbers = #tpu.dot_dimension_numbers<[1], [0], [0], [1], [0, 0, 1, 1], [], []>} : vector<8x128xf32>, vector<128x384xf32>, vector<8x384xf32> -> vector<8x384xf32>
    %c0_157 = arith.constant 0 : index
    %c1920 = arith.constant 1920 : index
    %515 = vector.load %arg8[%c0_157, %c1920] : memref<1x2560xf32, #tpu.memory_space<vmem>>, vector<1x384xf32>
    %516 = vector.broadcast %515 : vector<1x384xf32> to vector<8x384xf32>
    %517 = arith.addf %514, %516 : vector<8x384xf32>
    %c7_i32_158 = arith.constant 7 : i32
    %518 = vector.broadcast %c7_i32_158 : i32 to vector<8x1xi32>
    %519 = arith.cmpi sgt, %0, %518 : vector<8x1xi32>
    %520 = vector.extract_strided_slice %512 {offsets = [0, 0], sizes = [8, 256], strides = [1, 1]} : vector<8x384xf32> to vector<8x256xf32>
    %521 = vector.extract_strided_slice %517 {offsets = [0, 0], sizes = [8, 256], strides = [1, 1]} : vector<8x384xf32> to vector<8x256xf32>
    %522 = arith.addf %520, %521 : vector<8x256xf32>
    %523 = arith.negf %522 : vector<8x256xf32>
    %524 = math.exp %523 : vector<8x256xf32>
    %cst_159 = arith.constant 1.000000e+00 : f32
    %525 = vector.broadcast %cst_159 : f32 to vector<8x256xf32>
    %526 = arith.addf %525, %524 : vector<8x256xf32>
    %527 = arith.divf %525, %526 : vector<8x256xf32>
    %528 = vector.extract_strided_slice %527 {offsets = [0, 0], sizes = [8, 128], strides = [1, 1]} : vector<8x256xf32> to vector<8x128xf32>
    %529 = vector.extract_strided_slice %527 {offsets = [0, 128], sizes = [8, 128], strides = [1, 1]} : vector<8x256xf32> to vector<8x128xf32>
    %530 = vector.extract_strided_slice %512 {offsets = [0, 256], sizes = [8, 128], strides = [1, 1]} : vector<8x384xf32> to vector<8x128xf32>
    %531 = vector.extract_strided_slice %517 {offsets = [0, 256], sizes = [8, 128], strides = [1, 1]} : vector<8x384xf32> to vector<8x128xf32>
    %532 = arith.mulf %528, %531 : vector<8x128xf32>
    %533 = arith.addf %530, %532 : vector<8x128xf32>
    %534 = math.tanh %533 : vector<8x128xf32>
    %cst_160 = arith.constant 1.000000e+00 : f32
    %535 = vector.broadcast %cst_160 : f32 to vector<8x128xf32>
    %536 = arith.subf %535, %529 : vector<8x128xf32>
    %537 = arith.mulf %536, %534 : vector<8x128xf32>
    %538 = arith.mulf %529, %8 : vector<8x128xf32>
    %539 = arith.addf %537, %538 : vector<8x128xf32>
    %540 = vector.shape_cast %519 : vector<8x1xi1> to vector<8x1xi1>
    %541 = vector.broadcast %540 : vector<8x1xi1> to vector<8x128xi1>
    %542 = arith.select %541, %539, %8 : vector<8x128xi1>, vector<8x128xf32>
    %c48_161 = arith.constant 48 : index
    %c0_162 = arith.constant 0 : index
    %543 = vector.load %arg12[%c48_161, %c0_162] : memref<64x384xf32, #tpu.memory_space<vmem>>, vector<8x384xf32>
    %c0_163 = arith.constant 0 : index
    %c0_164 = arith.constant 0 : index
    %544 = vector.load %arg5[%c0_163, %c0_164] : memref<128x384xf32, #tpu.memory_space<vmem>>, vector<128x384xf32>
    %cst_165 = arith.constant dense<0.000000e+00> : vector<8x384xf32>
    %545 = tpu.matmul %542, %544, %cst_165 {dimension_numbers = #tpu.dot_dimension_numbers<[1], [0], [0], [1], [0, 0, 1, 1], [], []>} : vector<8x128xf32>, vector<128x384xf32>, vector<8x384xf32> -> vector<8x384xf32>
    %c0_166 = arith.constant 0 : index
    %c1920_167 = arith.constant 1920 : index
    %546 = vector.load %arg8[%c0_166, %c1920_167] : memref<1x2560xf32, #tpu.memory_space<vmem>>, vector<1x384xf32>
    %547 = vector.broadcast %546 : vector<1x384xf32> to vector<8x384xf32>
    %548 = arith.addf %545, %547 : vector<8x384xf32>
    %c6_i32_168 = arith.constant 6 : i32
    %549 = vector.broadcast %c6_i32_168 : i32 to vector<8x1xi32>
    %550 = arith.cmpi sgt, %0, %549 : vector<8x1xi32>
    %551 = vector.extract_strided_slice %543 {offsets = [0, 0], sizes = [8, 256], strides = [1, 1]} : vector<8x384xf32> to vector<8x256xf32>
    %552 = vector.extract_strided_slice %548 {offsets = [0, 0], sizes = [8, 256], strides = [1, 1]} : vector<8x384xf32> to vector<8x256xf32>
    %553 = arith.addf %551, %552 : vector<8x256xf32>
    %554 = arith.negf %553 : vector<8x256xf32>
    %555 = math.exp %554 : vector<8x256xf32>
    %cst_169 = arith.constant 1.000000e+00 : f32
    %556 = vector.broadcast %cst_169 : f32 to vector<8x256xf32>
    %557 = arith.addf %556, %555 : vector<8x256xf32>
    %558 = arith.divf %556, %557 : vector<8x256xf32>
    %559 = vector.extract_strided_slice %558 {offsets = [0, 0], sizes = [8, 128], strides = [1, 1]} : vector<8x256xf32> to vector<8x128xf32>
    %560 = vector.extract_strided_slice %558 {offsets = [0, 128], sizes = [8, 128], strides = [1, 1]} : vector<8x256xf32> to vector<8x128xf32>
    %561 = vector.extract_strided_slice %543 {offsets = [0, 256], sizes = [8, 128], strides = [1, 1]} : vector<8x384xf32> to vector<8x128xf32>
    %562 = vector.extract_strided_slice %548 {offsets = [0, 256], sizes = [8, 128], strides = [1, 1]} : vector<8x384xf32> to vector<8x128xf32>
    %563 = arith.mulf %559, %562 : vector<8x128xf32>
    %564 = arith.addf %561, %563 : vector<8x128xf32>
    %565 = math.tanh %564 : vector<8x128xf32>
    %cst_170 = arith.constant 1.000000e+00 : f32
    %566 = vector.broadcast %cst_170 : f32 to vector<8x128xf32>
    %567 = arith.subf %566, %560 : vector<8x128xf32>
    %568 = arith.mulf %567, %565 : vector<8x128xf32>
    %569 = arith.mulf %560, %542 : vector<8x128xf32>
    %570 = arith.addf %568, %569 : vector<8x128xf32>
    %571 = vector.shape_cast %550 : vector<8x1xi1> to vector<8x1xi1>
    %572 = vector.broadcast %571 : vector<8x1xi1> to vector<8x128xi1>
    %573 = arith.select %572, %570, %542 : vector<8x128xi1>, vector<8x128xf32>
    %c40_171 = arith.constant 40 : index
    %c0_172 = arith.constant 0 : index
    %574 = vector.load %arg12[%c40_171, %c0_172] : memref<64x384xf32, #tpu.memory_space<vmem>>, vector<8x384xf32>
    %c0_173 = arith.constant 0 : index
    %c0_174 = arith.constant 0 : index
    %575 = vector.load %arg5[%c0_173, %c0_174] : memref<128x384xf32, #tpu.memory_space<vmem>>, vector<128x384xf32>
    %cst_175 = arith.constant dense<0.000000e+00> : vector<8x384xf32>
    %576 = tpu.matmul %573, %575, %cst_175 {dimension_numbers = #tpu.dot_dimension_numbers<[1], [0], [0], [1], [0, 0, 1, 1], [], []>} : vector<8x128xf32>, vector<128x384xf32>, vector<8x384xf32> -> vector<8x384xf32>
    %c0_176 = arith.constant 0 : index
    %c1920_177 = arith.constant 1920 : index
    %577 = vector.load %arg8[%c0_176, %c1920_177] : memref<1x2560xf32, #tpu.memory_space<vmem>>, vector<1x384xf32>
    %578 = vector.broadcast %577 : vector<1x384xf32> to vector<8x384xf32>
    %579 = arith.addf %576, %578 : vector<8x384xf32>
    %c5_i32_178 = arith.constant 5 : i32
    %580 = vector.broadcast %c5_i32_178 : i32 to vector<8x1xi32>
    %581 = arith.cmpi sgt, %0, %580 : vector<8x1xi32>
    %582 = vector.extract_strided_slice %574 {offsets = [0, 0], sizes = [8, 256], strides = [1, 1]} : vector<8x384xf32> to vector<8x256xf32>
    %583 = vector.extract_strided_slice %579 {offsets = [0, 0], sizes = [8, 256], strides = [1, 1]} : vector<8x384xf32> to vector<8x256xf32>
    %584 = arith.addf %582, %583 : vector<8x256xf32>
    %585 = arith.negf %584 : vector<8x256xf32>
    %586 = math.exp %585 : vector<8x256xf32>
    %cst_179 = arith.constant 1.000000e+00 : f32
    %587 = vector.broadcast %cst_179 : f32 to vector<8x256xf32>
    %588 = arith.addf %587, %586 : vector<8x256xf32>
    %589 = arith.divf %587, %588 : vector<8x256xf32>
    %590 = vector.extract_strided_slice %589 {offsets = [0, 0], sizes = [8, 128], strides = [1, 1]} : vector<8x256xf32> to vector<8x128xf32>
    %591 = vector.extract_strided_slice %589 {offsets = [0, 128], sizes = [8, 128], strides = [1, 1]} : vector<8x256xf32> to vector<8x128xf32>
    %592 = vector.extract_strided_slice %574 {offsets = [0, 256], sizes = [8, 128], strides = [1, 1]} : vector<8x384xf32> to vector<8x128xf32>
    %593 = vector.extract_strided_slice %579 {offsets = [0, 256], sizes = [8, 128], strides = [1, 1]} : vector<8x384xf32> to vector<8x128xf32>
    %594 = arith.mulf %590, %593 : vector<8x128xf32>
    %595 = arith.addf %592, %594 : vector<8x128xf32>
    %596 = math.tanh %595 : vector<8x128xf32>
    %cst_180 = arith.constant 1.000000e+00 : f32
    %597 = vector.broadcast %cst_180 : f32 to vector<8x128xf32>
    %598 = arith.subf %597, %591 : vector<8x128xf32>
    %599 = arith.mulf %598, %596 : vector<8x128xf32>
    %600 = arith.mulf %591, %573 : vector<8x128xf32>
    %601 = arith.addf %599, %600 : vector<8x128xf32>
    %602 = vector.shape_cast %581 : vector<8x1xi1> to vector<8x1xi1>
    %603 = vector.broadcast %602 : vector<8x1xi1> to vector<8x128xi1>
    %604 = arith.select %603, %601, %573 : vector<8x128xi1>, vector<8x128xf32>
    %c32_181 = arith.constant 32 : index
    %c0_182 = arith.constant 0 : index
    %605 = vector.load %arg12[%c32_181, %c0_182] : memref<64x384xf32, #tpu.memory_space<vmem>>, vector<8x384xf32>
    %c0_183 = arith.constant 0 : index
    %c0_184 = arith.constant 0 : index
    %606 = vector.load %arg5[%c0_183, %c0_184] : memref<128x384xf32, #tpu.memory_space<vmem>>, vector<128x384xf32>
    %cst_185 = arith.constant dense<0.000000e+00> : vector<8x384xf32>
    %607 = tpu.matmul %604, %606, %cst_185 {dimension_numbers = #tpu.dot_dimension_numbers<[1], [0], [0], [1], [0, 0, 1, 1], [], []>} : vector<8x128xf32>, vector<128x384xf32>, vector<8x384xf32> -> vector<8x384xf32>
    %c0_186 = arith.constant 0 : index
    %c1920_187 = arith.constant 1920 : index
    %608 = vector.load %arg8[%c0_186, %c1920_187] : memref<1x2560xf32, #tpu.memory_space<vmem>>, vector<1x384xf32>
    %609 = vector.broadcast %608 : vector<1x384xf32> to vector<8x384xf32>
    %610 = arith.addf %607, %609 : vector<8x384xf32>
    %c4_i32_188 = arith.constant 4 : i32
    %611 = vector.broadcast %c4_i32_188 : i32 to vector<8x1xi32>
    %612 = arith.cmpi sgt, %0, %611 : vector<8x1xi32>
    %613 = vector.extract_strided_slice %605 {offsets = [0, 0], sizes = [8, 256], strides = [1, 1]} : vector<8x384xf32> to vector<8x256xf32>
    %614 = vector.extract_strided_slice %610 {offsets = [0, 0], sizes = [8, 256], strides = [1, 1]} : vector<8x384xf32> to vector<8x256xf32>
    %615 = arith.addf %613, %614 : vector<8x256xf32>
    %616 = arith.negf %615 : vector<8x256xf32>
    %617 = math.exp %616 : vector<8x256xf32>
    %cst_189 = arith.constant 1.000000e+00 : f32
    %618 = vector.broadcast %cst_189 : f32 to vector<8x256xf32>
    %619 = arith.addf %618, %617 : vector<8x256xf32>
    %620 = arith.divf %618, %619 : vector<8x256xf32>
    %621 = vector.extract_strided_slice %620 {offsets = [0, 0], sizes = [8, 128], strides = [1, 1]} : vector<8x256xf32> to vector<8x128xf32>
    %622 = vector.extract_strided_slice %620 {offsets = [0, 128], sizes = [8, 128], strides = [1, 1]} : vector<8x256xf32> to vector<8x128xf32>
    %623 = vector.extract_strided_slice %605 {offsets = [0, 256], sizes = [8, 128], strides = [1, 1]} : vector<8x384xf32> to vector<8x128xf32>
    %624 = vector.extract_strided_slice %610 {offsets = [0, 256], sizes = [8, 128], strides = [1, 1]} : vector<8x384xf32> to vector<8x128xf32>
    %625 = arith.mulf %621, %624 : vector<8x128xf32>
    %626 = arith.addf %623, %625 : vector<8x128xf32>
    %627 = math.tanh %626 : vector<8x128xf32>
    %cst_190 = arith.constant 1.000000e+00 : f32
    %628 = vector.broadcast %cst_190 : f32 to vector<8x128xf32>
    %629 = arith.subf %628, %622 : vector<8x128xf32>
    %630 = arith.mulf %629, %627 : vector<8x128xf32>
    %631 = arith.mulf %622, %604 : vector<8x128xf32>
    %632 = arith.addf %630, %631 : vector<8x128xf32>
    %633 = vector.shape_cast %612 : vector<8x1xi1> to vector<8x1xi1>
    %634 = vector.broadcast %633 : vector<8x1xi1> to vector<8x128xi1>
    %635 = arith.select %634, %632, %604 : vector<8x128xi1>, vector<8x128xf32>
    %c24_191 = arith.constant 24 : index
    %c0_192 = arith.constant 0 : index
    %636 = vector.load %arg12[%c24_191, %c0_192] : memref<64x384xf32, #tpu.memory_space<vmem>>, vector<8x384xf32>
    %c0_193 = arith.constant 0 : index
    %c0_194 = arith.constant 0 : index
    %637 = vector.load %arg5[%c0_193, %c0_194] : memref<128x384xf32, #tpu.memory_space<vmem>>, vector<128x384xf32>
    %cst_195 = arith.constant dense<0.000000e+00> : vector<8x384xf32>
    %638 = tpu.matmul %635, %637, %cst_195 {dimension_numbers = #tpu.dot_dimension_numbers<[1], [0], [0], [1], [0, 0, 1, 1], [], []>} : vector<8x128xf32>, vector<128x384xf32>, vector<8x384xf32> -> vector<8x384xf32>
    %c0_196 = arith.constant 0 : index
    %c1920_197 = arith.constant 1920 : index
    %639 = vector.load %arg8[%c0_196, %c1920_197] : memref<1x2560xf32, #tpu.memory_space<vmem>>, vector<1x384xf32>
    %640 = vector.broadcast %639 : vector<1x384xf32> to vector<8x384xf32>
    %641 = arith.addf %638, %640 : vector<8x384xf32>
    %c3_i32_198 = arith.constant 3 : i32
    %642 = vector.broadcast %c3_i32_198 : i32 to vector<8x1xi32>
    %643 = arith.cmpi sgt, %0, %642 : vector<8x1xi32>
    %644 = vector.extract_strided_slice %636 {offsets = [0, 0], sizes = [8, 256], strides = [1, 1]} : vector<8x384xf32> to vector<8x256xf32>
    %645 = vector.extract_strided_slice %641 {offsets = [0, 0], sizes = [8, 256], strides = [1, 1]} : vector<8x384xf32> to vector<8x256xf32>
    %646 = arith.addf %644, %645 : vector<8x256xf32>
    %647 = arith.negf %646 : vector<8x256xf32>
    %648 = math.exp %647 : vector<8x256xf32>
    %cst_199 = arith.constant 1.000000e+00 : f32
    %649 = vector.broadcast %cst_199 : f32 to vector<8x256xf32>
    %650 = arith.addf %649, %648 : vector<8x256xf32>
    %651 = arith.divf %649, %650 : vector<8x256xf32>
    %652 = vector.extract_strided_slice %651 {offsets = [0, 0], sizes = [8, 128], strides = [1, 1]} : vector<8x256xf32> to vector<8x128xf32>
    %653 = vector.extract_strided_slice %651 {offsets = [0, 128], sizes = [8, 128], strides = [1, 1]} : vector<8x256xf32> to vector<8x128xf32>
    %654 = vector.extract_strided_slice %636 {offsets = [0, 256], sizes = [8, 128], strides = [1, 1]} : vector<8x384xf32> to vector<8x128xf32>
    %655 = vector.extract_strided_slice %641 {offsets = [0, 256], sizes = [8, 128], strides = [1, 1]} : vector<8x384xf32> to vector<8x128xf32>
    %656 = arith.mulf %652, %655 : vector<8x128xf32>
    %657 = arith.addf %654, %656 : vector<8x128xf32>
    %658 = math.tanh %657 : vector<8x128xf32>
    %cst_200 = arith.constant 1.000000e+00 : f32
    %659 = vector.broadcast %cst_200 : f32 to vector<8x128xf32>
    %660 = arith.subf %659, %653 : vector<8x128xf32>
    %661 = arith.mulf %660, %658 : vector<8x128xf32>
    %662 = arith.mulf %653, %635 : vector<8x128xf32>
    %663 = arith.addf %661, %662 : vector<8x128xf32>
    %664 = vector.shape_cast %643 : vector<8x1xi1> to vector<8x1xi1>
    %665 = vector.broadcast %664 : vector<8x1xi1> to vector<8x128xi1>
    %666 = arith.select %665, %663, %635 : vector<8x128xi1>, vector<8x128xf32>
    %c16_201 = arith.constant 16 : index
    %c0_202 = arith.constant 0 : index
    %667 = vector.load %arg12[%c16_201, %c0_202] : memref<64x384xf32, #tpu.memory_space<vmem>>, vector<8x384xf32>
    %c0_203 = arith.constant 0 : index
    %c0_204 = arith.constant 0 : index
    %668 = vector.load %arg5[%c0_203, %c0_204] : memref<128x384xf32, #tpu.memory_space<vmem>>, vector<128x384xf32>
    %cst_205 = arith.constant dense<0.000000e+00> : vector<8x384xf32>
    %669 = tpu.matmul %666, %668, %cst_205 {dimension_numbers = #tpu.dot_dimension_numbers<[1], [0], [0], [1], [0, 0, 1, 1], [], []>} : vector<8x128xf32>, vector<128x384xf32>, vector<8x384xf32> -> vector<8x384xf32>
    %c0_206 = arith.constant 0 : index
    %c1920_207 = arith.constant 1920 : index
    %670 = vector.load %arg8[%c0_206, %c1920_207] : memref<1x2560xf32, #tpu.memory_space<vmem>>, vector<1x384xf32>
    %671 = vector.broadcast %670 : vector<1x384xf32> to vector<8x384xf32>
    %672 = arith.addf %669, %671 : vector<8x384xf32>
    %c2_i32_208 = arith.constant 2 : i32
    %673 = vector.broadcast %c2_i32_208 : i32 to vector<8x1xi32>
    %674 = arith.cmpi sgt, %0, %673 : vector<8x1xi32>
    %675 = vector.extract_strided_slice %667 {offsets = [0, 0], sizes = [8, 256], strides = [1, 1]} : vector<8x384xf32> to vector<8x256xf32>
    %676 = vector.extract_strided_slice %672 {offsets = [0, 0], sizes = [8, 256], strides = [1, 1]} : vector<8x384xf32> to vector<8x256xf32>
    %677 = arith.addf %675, %676 : vector<8x256xf32>
    %678 = arith.negf %677 : vector<8x256xf32>
    %679 = math.exp %678 : vector<8x256xf32>
    %cst_209 = arith.constant 1.000000e+00 : f32
    %680 = vector.broadcast %cst_209 : f32 to vector<8x256xf32>
    %681 = arith.addf %680, %679 : vector<8x256xf32>
    %682 = arith.divf %680, %681 : vector<8x256xf32>
    %683 = vector.extract_strided_slice %682 {offsets = [0, 0], sizes = [8, 128], strides = [1, 1]} : vector<8x256xf32> to vector<8x128xf32>
    %684 = vector.extract_strided_slice %682 {offsets = [0, 128], sizes = [8, 128], strides = [1, 1]} : vector<8x256xf32> to vector<8x128xf32>
    %685 = vector.extract_strided_slice %667 {offsets = [0, 256], sizes = [8, 128], strides = [1, 1]} : vector<8x384xf32> to vector<8x128xf32>
    %686 = vector.extract_strided_slice %672 {offsets = [0, 256], sizes = [8, 128], strides = [1, 1]} : vector<8x384xf32> to vector<8x128xf32>
    %687 = arith.mulf %683, %686 : vector<8x128xf32>
    %688 = arith.addf %685, %687 : vector<8x128xf32>
    %689 = math.tanh %688 : vector<8x128xf32>
    %cst_210 = arith.constant 1.000000e+00 : f32
    %690 = vector.broadcast %cst_210 : f32 to vector<8x128xf32>
    %691 = arith.subf %690, %684 : vector<8x128xf32>
    %692 = arith.mulf %691, %689 : vector<8x128xf32>
    %693 = arith.mulf %684, %666 : vector<8x128xf32>
    %694 = arith.addf %692, %693 : vector<8x128xf32>
    %695 = vector.shape_cast %674 : vector<8x1xi1> to vector<8x1xi1>
    %696 = vector.broadcast %695 : vector<8x1xi1> to vector<8x128xi1>
    %697 = arith.select %696, %694, %666 : vector<8x128xi1>, vector<8x128xf32>
    %c8_211 = arith.constant 8 : index
    %c0_212 = arith.constant 0 : index
    %698 = vector.load %arg12[%c8_211, %c0_212] : memref<64x384xf32, #tpu.memory_space<vmem>>, vector<8x384xf32>
    %c0_213 = arith.constant 0 : index
    %c0_214 = arith.constant 0 : index
    %699 = vector.load %arg5[%c0_213, %c0_214] : memref<128x384xf32, #tpu.memory_space<vmem>>, vector<128x384xf32>
    %cst_215 = arith.constant dense<0.000000e+00> : vector<8x384xf32>
    %700 = tpu.matmul %697, %699, %cst_215 {dimension_numbers = #tpu.dot_dimension_numbers<[1], [0], [0], [1], [0, 0, 1, 1], [], []>} : vector<8x128xf32>, vector<128x384xf32>, vector<8x384xf32> -> vector<8x384xf32>
    %c0_216 = arith.constant 0 : index
    %c1920_217 = arith.constant 1920 : index
    %701 = vector.load %arg8[%c0_216, %c1920_217] : memref<1x2560xf32, #tpu.memory_space<vmem>>, vector<1x384xf32>
    %702 = vector.broadcast %701 : vector<1x384xf32> to vector<8x384xf32>
    %703 = arith.addf %700, %702 : vector<8x384xf32>
    %c1_i32_218 = arith.constant 1 : i32
    %704 = vector.broadcast %c1_i32_218 : i32 to vector<8x1xi32>
    %705 = arith.cmpi sgt, %0, %704 : vector<8x1xi32>
    %706 = vector.extract_strided_slice %698 {offsets = [0, 0], sizes = [8, 256], strides = [1, 1]} : vector<8x384xf32> to vector<8x256xf32>
    %707 = vector.extract_strided_slice %703 {offsets = [0, 0], sizes = [8, 256], strides = [1, 1]} : vector<8x384xf32> to vector<8x256xf32>
    %708 = arith.addf %706, %707 : vector<8x256xf32>
    %709 = arith.negf %708 : vector<8x256xf32>
    %710 = math.exp %709 : vector<8x256xf32>
    %cst_219 = arith.constant 1.000000e+00 : f32
    %711 = vector.broadcast %cst_219 : f32 to vector<8x256xf32>
    %712 = arith.addf %711, %710 : vector<8x256xf32>
    %713 = arith.divf %711, %712 : vector<8x256xf32>
    %714 = vector.extract_strided_slice %713 {offsets = [0, 0], sizes = [8, 128], strides = [1, 1]} : vector<8x256xf32> to vector<8x128xf32>
    %715 = vector.extract_strided_slice %713 {offsets = [0, 128], sizes = [8, 128], strides = [1, 1]} : vector<8x256xf32> to vector<8x128xf32>
    %716 = vector.extract_strided_slice %698 {offsets = [0, 256], sizes = [8, 128], strides = [1, 1]} : vector<8x384xf32> to vector<8x128xf32>
    %717 = vector.extract_strided_slice %703 {offsets = [0, 256], sizes = [8, 128], strides = [1, 1]} : vector<8x384xf32> to vector<8x128xf32>
    %718 = arith.mulf %714, %717 : vector<8x128xf32>
    %719 = arith.addf %716, %718 : vector<8x128xf32>
    %720 = math.tanh %719 : vector<8x128xf32>
    %cst_220 = arith.constant 1.000000e+00 : f32
    %721 = vector.broadcast %cst_220 : f32 to vector<8x128xf32>
    %722 = arith.subf %721, %715 : vector<8x128xf32>
    %723 = arith.mulf %722, %720 : vector<8x128xf32>
    %724 = arith.mulf %715, %697 : vector<8x128xf32>
    %725 = arith.addf %723, %724 : vector<8x128xf32>
    %726 = vector.shape_cast %705 : vector<8x1xi1> to vector<8x1xi1>
    %727 = vector.broadcast %726 : vector<8x1xi1> to vector<8x128xi1>
    %728 = arith.select %727, %725, %697 : vector<8x128xi1>, vector<8x128xf32>
    %c0_221 = arith.constant 0 : index
    %c0_222 = arith.constant 0 : index
    %729 = vector.load %arg12[%c0_221, %c0_222] : memref<64x384xf32, #tpu.memory_space<vmem>>, vector<8x384xf32>
    %c0_223 = arith.constant 0 : index
    %c0_224 = arith.constant 0 : index
    %730 = vector.load %arg5[%c0_223, %c0_224] : memref<128x384xf32, #tpu.memory_space<vmem>>, vector<128x384xf32>
    %cst_225 = arith.constant dense<0.000000e+00> : vector<8x384xf32>
    %731 = tpu.matmul %728, %730, %cst_225 {dimension_numbers = #tpu.dot_dimension_numbers<[1], [0], [0], [1], [0, 0, 1, 1], [], []>} : vector<8x128xf32>, vector<128x384xf32>, vector<8x384xf32> -> vector<8x384xf32>
    %c0_226 = arith.constant 0 : index
    %c1920_227 = arith.constant 1920 : index
    %732 = vector.load %arg8[%c0_226, %c1920_227] : memref<1x2560xf32, #tpu.memory_space<vmem>>, vector<1x384xf32>
    %733 = vector.broadcast %732 : vector<1x384xf32> to vector<8x384xf32>
    %734 = arith.addf %731, %733 : vector<8x384xf32>
    %c0_i32_228 = arith.constant 0 : i32
    %735 = vector.broadcast %c0_i32_228 : i32 to vector<8x1xi32>
    %736 = arith.cmpi sgt, %0, %735 : vector<8x1xi32>
    %737 = vector.extract_strided_slice %729 {offsets = [0, 0], sizes = [8, 256], strides = [1, 1]} : vector<8x384xf32> to vector<8x256xf32>
    %738 = vector.extract_strided_slice %734 {offsets = [0, 0], sizes = [8, 256], strides = [1, 1]} : vector<8x384xf32> to vector<8x256xf32>
    %739 = arith.addf %737, %738 : vector<8x256xf32>
    %740 = arith.negf %739 : vector<8x256xf32>
    %741 = math.exp %740 : vector<8x256xf32>
    %cst_229 = arith.constant 1.000000e+00 : f32
    %742 = vector.broadcast %cst_229 : f32 to vector<8x256xf32>
    %743 = arith.addf %742, %741 : vector<8x256xf32>
    %744 = arith.divf %742, %743 : vector<8x256xf32>
    %745 = vector.extract_strided_slice %744 {offsets = [0, 0], sizes = [8, 128], strides = [1, 1]} : vector<8x256xf32> to vector<8x128xf32>
    %746 = vector.extract_strided_slice %744 {offsets = [0, 128], sizes = [8, 128], strides = [1, 1]} : vector<8x256xf32> to vector<8x128xf32>
    %747 = vector.extract_strided_slice %729 {offsets = [0, 256], sizes = [8, 128], strides = [1, 1]} : vector<8x384xf32> to vector<8x128xf32>
    %748 = vector.extract_strided_slice %734 {offsets = [0, 256], sizes = [8, 128], strides = [1, 1]} : vector<8x384xf32> to vector<8x128xf32>
    %749 = arith.mulf %745, %748 : vector<8x128xf32>
    %750 = arith.addf %747, %749 : vector<8x128xf32>
    %751 = math.tanh %750 : vector<8x128xf32>
    %cst_230 = arith.constant 1.000000e+00 : f32
    %752 = vector.broadcast %cst_230 : f32 to vector<8x128xf32>
    %753 = arith.subf %752, %746 : vector<8x128xf32>
    %754 = arith.mulf %753, %751 : vector<8x128xf32>
    %755 = arith.mulf %746, %728 : vector<8x128xf32>
    %756 = arith.addf %754, %755 : vector<8x128xf32>
    %757 = vector.shape_cast %736 : vector<8x1xi1> to vector<8x1xi1>
    %758 = vector.broadcast %757 : vector<8x1xi1> to vector<8x128xi1>
    %759 = arith.select %758, %756, %728 : vector<8x128xi1>, vector<8x128xf32>
    %c0_231 = arith.constant 0 : index
    %c0_232 = arith.constant 0 : index
    %760 = vector.load %arg6[%c0_231, %c0_232] : memref<128x128xf32, #tpu.memory_space<vmem>>, vector<128x128xf32>
    %cst_233 = arith.constant dense<0.000000e+00> : vector<8x128xf32>
    %761 = tpu.matmul %759, %760, %cst_233 {dimension_numbers = #tpu.dot_dimension_numbers<[1], [0], [0], [1], [0, 0, 1, 1], [], []>} : vector<8x128xf32>, vector<128x128xf32>, vector<8x128xf32> -> vector<8x128xf32>
    %c0_234 = arith.constant 0 : index
    %c2304 = arith.constant 2304 : index
    %762 = vector.load %arg8[%c0_234, %c2304] : memref<1x2560xf32, #tpu.memory_space<vmem>>, vector<1x128xf32>
    %763 = vector.broadcast %762 : vector<1x128xf32> to vector<8x128xf32>
    %764 = arith.addf %761, %763 : vector<8x128xf32>
    %cst_235 = arith.constant 0.000000e+00 : f32
    %765 = vector.broadcast %cst_235 : f32 to vector<8x128xf32>
    %766 = arith.maximumf %764, %765 : vector<8x128xf32>
    %c0_236 = arith.constant 0 : index
    %c0_237 = arith.constant 0 : index
    %767 = vector.load %arg7[%c0_236, %c0_237] : memref<128x128xf32, #tpu.memory_space<vmem>>, vector<128x128xf32>
    %cst_238 = arith.constant dense<0.000000e+00> : vector<8x128xf32>
    %768 = tpu.matmul %766, %767, %cst_238 {dimension_numbers = #tpu.dot_dimension_numbers<[1], [0], [0], [1], [0, 0, 1, 1], [], []>} : vector<8x128xf32>, vector<128x128xf32>, vector<8x128xf32> -> vector<8x128xf32>
    %c0_239 = arith.constant 0 : index
    %c2432 = arith.constant 2432 : index
    %769 = vector.load %arg8[%c0_239, %c2432] : memref<1x2560xf32, #tpu.memory_space<vmem>>, vector<1x128xf32>
    %770 = vector.broadcast %769 : vector<1x128xf32> to vector<8x128xf32>
    %771 = arith.addf %768, %770 : vector<8x128xf32>
    %c0_240 = arith.constant 0 : index
    %c0_241 = arith.constant 0 : index
    %772 = vector.load %arg9[%c0_240, %c0_241] : memref<8x128xf32, #tpu.memory_space<vmem>>, vector<8x128xf32>
    tpu.vector_store %arg9[%c0_240, %c0_241], %771 {strides = array<i32>} : memref<8x128xf32, #tpu.memory_space<vmem>>, vector<8x128xf32>,
    return
  }
}

</mosaic_0001>

<bundles_post_ra>
// kernel: tpu_custom_call.1
= control target key start
LH: loop header
LB: loop body
LE: loop exit
PB: predicated region body
PF: predicated region fallthrough
CT: control target
= control target key end

     0   :  { %14 = vsyncpa [#allocation6], 0  ;;  %s9275_s0 = inlined_call_operand.vmem [shape: s32[8,1], index: 0, kind: input, shape index: {}]   ;;  %s9276_s1 = inlined_call_operand.hbm [shape: f32[64,64], index: 1, kind: input, shape index: {}]   ;;  %s9277_s2 = inlined_call_operand.hbm [shape: f32[64,768], index: 2, kind: input, shape index: {}]   ;;  %s9278_s3 = inlined_call_operand.hbm [shape: f32[256,768], index: 3, kind: input, shape index: {}]   ;;  %s9279_s4 = inlined_call_operand.hbm [shape: f32[256,384], index: 4, kind: input, shape index: {}]   ;;  %s9280_s5 = inlined_call_operand.hbm [shape: f32[128,384], index: 5, kind: input, shape index: {}]   ;;  %s9281_s6 = inlined_call_operand.hbm [shape: f32[128,128], index: 6, kind: input, shape index: {}]   ;;  %s9282_s7 = inlined_call_operand.hbm [shape: f32[128,128], index: 7, kind: input, shape index: {}]   ;;  %s9283_s8 = inlined_call_operand.hbm [shape: f32[1,2560], index: 8, kind: input, shape index: {}]   ;;  %s9284_s9 = inlined_call_operand.hbm [shape: f32[8,128], index: 9, kind: output, shape index: {}]  }
   0x1   :  { %15 = vsyncpa [#allocation9], 0 }
   0x2   :  { %16 = vsyncpa [#allocation12], 0 }
   0x3   :  { %17 = vsyncpa [#allocation15], 0 }
   0x4   :  { %18 = vsyncpa [#allocation18], 0  ;;  %s39_s11 = sshll.u32 %s9277_s2, 4  ;;  %s40_s11 = int_to_ptr.hbm [resolvable:$true] %s39_s11 }
   0x5   :  { %19 = vsyncpa [#allocation7], 0  ;;  %s7128_s12 = smov [#allocation8]   ;;  %s65_s16 = sshll.u32 %s9279_s4, 4  ;;  %s66_s16 = int_to_ptr.hbm [resolvable:$true] %s65_s16 }
   0x6   :  { %s41_s13 = sshll.u32 %s7128_s12, 4  ;;  %s7129_s17 = smov 768   ;;  %s42_s13 = int_to_ptr.vmem [resolvable:$true] %s41_s13 }
   0x7   :  { %s7130_s18 = smov 48   ;;  %s7131_s19 = smov [#allocation11]  }
   0x8   :  { %47 = dma.hbm_to_vmem [thread:$0]  %s40_s11, 6144, %s42_s13, [#allocation9], %s7129_s17, %s7129_s17, %s7130_s18  }
   0x9   :  { %s67_s20 = sshll.u32 %s7131_s19, 4  ;;  %s7132_s2 = smov 384   ;;  %s68_s20 = int_to_ptr.vmem [resolvable:$true] %s67_s20 }
   0xa   :  { %s7133_s21 = smov 24   ;;  %s91_s4 = sshll.u32 %s9281_s6, 4  ;;  %s92_s4 = int_to_ptr.hbm [resolvable:$true] %s91_s4 }
   0xb   :  { %73 = dma.hbm_to_vmem [thread:$0]  %s66_s16, 12288, %s68_s20, [#allocation12], %s7132_s2, %s7132_s2, %s7133_s21  }
   0xc   :  { %s7134_s24 = smov [#allocation14]   ;;  %s26_s28 = sshll.u32 %s9276_s1, 4  ;;  %s27_s28 = int_to_ptr.hbm [resolvable:$true] %s26_s28 }
   0xd   :  { %s93_s25 = sshll.u32 %s7134_s24, 4  ;;  %s7135_s29 = smov 128   ;;  %s94_s25 = int_to_ptr.vmem [resolvable:$true] %s93_s25 }
   0xe   :  { %s7136_s30 = smov 8   ;;  %s7137_s10 = smov [#allocation5]  }
   0xf   :  { %99 = dma.hbm_to_vmem [thread:$0]  %s92_s4, 2048, %s94_s25, [#allocation15], %s7135_s29, %s7135_s29, %s7136_s30  }
  0x10   :  { %s28_s11 = sshll.u32 %s7137_s10, 4  ;;  %s52_s6 = sshll.u32 %s9278_s3, 4  ;;  %s29_s11 = int_to_ptr.vmem [resolvable:$true] %s28_s11  ;;  %s53_s6 = int_to_ptr.hbm [resolvable:$true] %s52_s6 }
  0x11   :  { %34 = dma.hbm_to_vmem [thread:$0]  %s27_s28, 1024, %s29_s11, [#allocation6], %s7135_s29, %s7135_s29, %s7136_s30  }
  0x12   :  { %s78_s15 = sshll.u32 %s9280_s5, 4  ;;  %s7138_s16 = smov [#allocation10]   ;;  %s79_s15 = int_to_ptr.hbm [resolvable:$true] %s78_s15 }
  0x13   :  { %s54_s19 = sshll.u32 %s7138_s16, 4  ;;  %s7139_s20 = smov [#allocation13]   ;;  %s55_s19 = int_to_ptr.vmem [resolvable:$true] %s54_s19 }
  0x14   :  { %60 = dma.hbm_to_vmem [thread:$0]  %s53_s6, 24576, %s55_s19, [#allocation9], %s7129_s17, %s7129_s17, %s7130_s18  }
  0x15   :  { %s80_s3 = sshll.u32 %s7139_s20, 4  ;;  %s104_s4 = sshll.u32 %s9282_s7, 4  ;;  %s81_s3 = int_to_ptr.vmem [resolvable:$true] %s80_s3  ;;  %s105_s4 = int_to_ptr.hbm [resolvable:$true] %s104_s4 }
  0x16   :  { %86 = dma.hbm_to_vmem [thread:$0]  %s79_s15, 6144, %s81_s3, [#allocation12], %s7132_s2, %s7132_s2, %s7133_s21  }
  0x17   :  { %s118_s25 = sshll.u32 %s9283_s8, 4  ;;  %s7140_s26 = smov [#allocation16]   ;;  %s119_s25 = int_to_ptr.hbm [resolvable:$true] %s118_s25 }
  0x18   :  { %s106_s27 = sshll.u32 %s7140_s26, 4  ;;  %s7141_s17 = smov [#allocation17]   ;;  %s107_s27 = int_to_ptr.vmem [resolvable:$true] %s106_s27 }
  0x19   :  { %112 = dma.hbm_to_vmem [thread:$0]  %s105_s4, 2048, %s107_s27, [#allocation15], %s7135_s29, %s7135_s29, %s7136_s30  }
  0x1a   :  { %s120_s7 = sshll.u32 %s7141_s17, 4  ;;  %s121_s7 = int_to_ptr.vmem [resolvable:$true] %s120_s7 }
  0x1b   :  { %123 = dma.hbm_to_vmem [thread:$0]  %s119_s25, 320, %s121_s7, [#allocation18]  }
  0x1c   :  { %7116 = dma.done.wait [#allocation6], 1024  }
  0x1d   :  { %7117 = vsyncadd [#allocation6], 4294966272 }
  0x1e   :  { %7118 = dma.done.wait [#allocation9], 30720  }
  0x1f   :  { %7119 = vsyncadd [#allocation9], 4294936576 }
  0x20   :  { %7120 = dma.done.wait [#allocation12], 18432  }
  0x21   :  { %7121 = vsyncadd [#allocation12], 4294948864 }
  0x22   :  { %7122 = dma.done.wait [#allocation15], 4096  }
  0x23   :  { %7123 = vsyncadd [#allocation15], 4294963200 }
  0x24   :  { %7124 = dma.done.wait [#allocation18], 320  }
  0x25   :  { %7125 = vsyncadd [#allocation18], 4294966976  ;;  %v207_v0 = vld [vmem:[#allocation8 + $0x150] sm:$0xff]  ;;  %v201_v1 = vld [vmem:[#allocation8 + $0x120] sm:$0xff]  ;;  %vm227_vm0 = vcmask 523264   ;;  %s6417_s12 = sshll.u32 %s9284_s9, 4  ;;  %s6418_s12 = int_to_ptr.hbm [resolvable:$true] %s6417_s12 }
  0x26   :  { %v208_v2 = vld [vmem:[#allocation8 + $0x158] sm:$0xff]  ;;  %260 = vmatpush.msra.mxu0 %v207_v0  ;;  %6548 = vmatpush.msra.mxu2 %v207_v0  ;;  %v202_v3 = vld [vmem:[#allocation8 + $0x128] sm:$0xff]  ;;  %v195_v4 = vld [vmem:[#allocation8 + $0xf0] sm:$0xff] }
  0x27   :  { %301 = vmatpush.msra.mxu1 %v208_v2  ;;  %6556 = vmatpush.msra.mxu3 %v208_v2  ;;  %v196_v5 = vld [vmem:[#allocation8 + $0xf8] sm:$0xff]  ;;  %v189_v6 = vld [vmem:[#allocation8 + $0xc0] sm:$0xff]  ;;  %v190_v7 = vld [vmem:[#allocation8 + $0xc8] sm:$0xff] }
  0x28   :  { %261 = vmatpush.msra.mxu0 %v201_v1  ;;  %6549 = vmatpush.msra.mxu2 %v201_v1  ;;  %v183_v8 = vld [vmem:[#allocation8 + $0x90] sm:$0xff]  ;;  %v184_v9 = vld [vmem:[#allocation8 + $0x98] sm:$0xff]  ;;  %v177_v10 = vld [vmem:[#allocation8 + $0x60] sm:$0xff] }
  0x29   :  { %302 = vmatpush.msra.mxu1 %v202_v3  ;;  %6557 = vmatpush.msra.mxu3 %v202_v3  ;;  %v178_v11 = vld [vmem:[#allocation8 + $0x68] sm:$0xff]  ;;  %v171_v12 = vld [vmem:[#allocation8 + $0x30] sm:$0xff]  ;;  %v172_v13 = vld [vmem:[#allocation8 + $0x38] sm:$0xff] }
  0x2a   :  { %262 = vmatpush.msra.mxu0 %v195_v4  ;;  %6550 = vmatpush.msra.mxu2 %v195_v4  ;;  %v165_v14 = vld [vmem:[#allocation8] sm:$0xff]  ;;  %v7242_v16 = vld [vmem:[#allocation5 + $0x30] sm:$0xff]  ;;  %v166_v17 = vld [vmem:[#allocation8 + $0x8] sm:$0xff] }
  0x2b   :  { %303 = vmatpush.msra.mxu1 %v196_v5  ;;  %6558 = vmatpush.msra.mxu3 %v196_v5  ;;  %v7240_v15 = vld [vmem:[#allocation5] sm:$0xff]  ;;  %v211_v19 = vld [vmem:[#allocation8 + $0x170] sm:$0xff]  ;;  %v210_v21 = vld [vmem:[#allocation8 + $0x168] sm:$0xff] }
  0x2c   :  { %263 = vmatpush.msra.mxu0 %v189_v6  ;;  %6551 = vmatpush.msra.mxu2 %v189_v6  ;;  %v209_v18 = vld [vmem:[#allocation8 + $0x160] sm:$0xff]  ;;  %v203_v20 = vld [vmem:[#allocation8 + $0x130] sm:$0xff]  ;;  %v212_v22 = vld [vmem:[#allocation8 + $0x178] sm:$0xff] }
  0x2d   :  { %304 = vmatpush.msra.mxu1 %v190_v7  ;;  %6559 = vmatpush.msra.mxu3 %v190_v7  ;;  %v205_v23 = vld [vmem:[#allocation8 + $0x140] sm:$0xff]  ;;  %v204_v25 = vld [vmem:[#allocation8 + $0x138] sm:$0xff]  ;;  %v206_v26 = vld [vmem:[#allocation8 + $0x148] sm:$0xff] }
  0x2e   :  { %264 = vmatpush.msra.mxu0 %v183_v8  ;;  %6552 = vmatpush.msra.mxu2 %v183_v8  ;;  %v197_v24 = vld [vmem:[#allocation8 + $0x100] sm:$0xff]  ;;  %v199_v27 = vld [vmem:[#allocation8 + $0x110] sm:$0xff]  ;;  %v198_v29 = vld [vmem:[#allocation8 + $0x108] sm:$0xff] }
  0x2f   :  { %305 = vmatpush.msra.mxu1 %v184_v9  ;;  %6560 = vmatpush.msra.mxu3 %v184_v9  ;;  %v191_v28 = vld [vmem:[#allocation8 + $0xd0] sm:$0xff]  ;;  %v7252_v30 = vld [vmem:[#allocation5 + $0x8] sm:$0xff]  ;;  %v7254_v31 = vld [vmem:[#allocation5 + $0x38] sm:$0xff] }
  0x30   :  { %265 = vmatpush.msra.mxu0 %v177_v10  ;;  %6553 = vmatpush.msra.mxu2 %v177_v10  ;;  %v185_v32 = vld [vmem:[#allocation8 + $0xa0] sm:$0xff]  ;;  %v192_v33 = vld [vmem:[#allocation8 + $0xd8] sm:$0xff]  ;;  %v179_v34 = vld [vmem:[#allocation8 + $0x70] sm:$0xff] }
  0x31   :  { %306 = vmatpush.msra.mxu1 %v178_v11  ;;  %6561 = vmatpush.msra.mxu3 %v178_v11  ;;  %v186_v35 = vld [vmem:[#allocation8 + $0xa8] sm:$0xff]  ;;  %v200_v36 = vld [vmem:[#allocation8 + $0x118] sm:$0xff]  ;;  %v193_v37 = vld [vmem:[#allocation8 + $0xe0] sm:$0xff] }
  0x32   :  { %266 = vmatpush.msra.mxu0 %v171_v12  ;;  %6554 = vmatpush.msra.mxu2 %v171_v12  ;;  %v173_v38 = vld [vmem:[#allocation8 + $0x40] sm:$0xff]  ;;  %v180_v39 = vld [vmem:[#allocation8 + $0x78] sm:$0xff]  ;;  %v194_v40 = vld [vmem:[#allocation8 + $0xe8] sm:$0xff] }
  0x33   :  { %307 = vmatpush.msra.mxu1 %v172_v13  ;;  %6562 = vmatpush.msra.mxu3 %v172_v13  ;;  %v187_v41 = vld [vmem:[#allocation8 + $0xb0] sm:$0xff]  ;;  %v174_v43 = vld [vmem:[#allocation8 + $0x48] sm:$0xff]  ;;  %v168_v45 = vld [vmem:[#allocation8 + $0x18] sm:$0xff] }
  0x34   :  { %267 = vmatpush.msra.mxu0 %v165_v14  ;;  %6555 = vmatpush.msra.mxu2 %v165_v14  ;;  %v167_v42 = vld [vmem:[#allocation8 + $0x10] sm:$0xff]  ;;  %v636_v48 = vld [vmem:[#allocation10 + $0x2a0] sm:$0xff]  ;;  %v188_v49 = vld [vmem:[#allocation8 + $0xb8] sm:$0xff] }
  0x35   :  { %6431 = vmatmul.msk.f32.vlgmr.msra.gmra.mxu0 %vm227_vm0, %v7240_v15  ;;  %6437 = vmatmul.msk.f32.vlgmr.msra.gmra.mxu2 %vm227_vm0, %v7242_v16  ;;  %v7264_v44 = vld [vmem:[#allocation5 + $0x10] sm:$0xff]  ;;  %v181_v50 = vld [vmem:[#allocation8 + $0x80] sm:$0xff]  ;;  %v182_v53 = vld [vmem:[#allocation8 + $0x88] sm:$0xff] }
  0x36   :  { %308 = vmatpush.msra.mxu1 %v166_v17  ;;  %6563 = vmatpush.msra.mxu3 %v166_v17  ;;  %v642_v46 = vld [vmem:[#allocation10 + $0x2d0] sm:$0xff]  ;;  %v732_v52 = vld [vmem:[#allocation10 + $0x5a0] sm:$0xff]  ;;  %v7274_v57 = vld [vmem:[#allocation5 + $0x18] sm:$0xff] }
  0x37   :  { %342 = vmatpush.msrb.mxu2 %v209_v18  ;;  %6439 = vmatmul.msk.f32.vlgmr.msra.gmra.mxu1 %vm227_vm0, %v7240_v15  ;;  %v738_v47 = vld [vmem:[#allocation10 + $0x5d0] sm:$0xff]  ;;  %v624_v55 = vld [vmem:[#allocation10 + $0x240] sm:$0xff]  ;;  %v176_v62 = vld [vmem:[#allocation8 + $0x58] sm:$0xff] }
  0x38   :  { %6445 = vmatmul.msk.f32.vlgmr.msra.gmra.mxu3 %vm227_vm0, %v7242_v16  ;;  %424 = vmatpush.msrb.mxu0 %v211_v19  ;;  %v630_v51 = vld [vmem:[#allocation10 + $0x270] sm:$0xff]  ;;  %v720_v59 = vld [vmem:[#allocation10 + $0x540] sm:$0xff]  ;;  %v170_v2 = vld [vmem:[#allocation8 + $0x28] sm:$0xff] }
  0x39   :  { %343 = vmatpush.msrb.mxu2 %v203_v20  ;;  %383 = vmatpush.msrb.mxu3 %v210_v21  ;;  %v175_v54 = vld [vmem:[#allocation8 + $0x50] sm:$0xff]  ;;  %v612_v60 = vld [vmem:[#allocation10 + $0x1e0] sm:$0xff]  ;;  %v7294_v21 = vld [vmem:[#allocation5 + $0x28] sm:$0xff] }
  0x3a   :  { %465 = vmatpush.msrb.mxu1 %v212_v22  ;;  %425 = vmatpush.msrb.mxu0 %v205_v23  ;;  %v726_v56 = vld [vmem:[#allocation10 + $0x570] sm:$0xff]  ;;  %v169_v63 = vld [vmem:[#allocation8 + $0x20] sm:$0xff] }
  0x3b   :  { %344 = vmatpush.msrb.mxu2 %v197_v24  ;;  %384 = vmatpush.msrb.mxu3 %v204_v25  ;;  %v618_v58 = vld [vmem:[#allocation10 + $0x210] sm:$0xff]  ;;  %v708_v1 = vld [vmem:[#allocation10 + $0x4e0] sm:$0xff] }
  0x3c   :  { %466 = vmatpush.msrb.mxu1 %v206_v26  ;;  %426 = vmatpush.msrb.mxu0 %v199_v27  ;;  %v714_v61 = vld [vmem:[#allocation10 + $0x510] sm:$0xff]  ;;  %v644_v3 = vld [vmem:[#allocation10 + $0x2e0] sm:$0xff] }
  0x3d   :  { %345 = vmatpush.msrb.mxu2 %v191_v28  ;;  %385 = vmatpush.msrb.mxu3 %v198_v29  ;;  %v606_v0 = vld [vmem:[#allocation10 + $0x1b0] sm:$0xff]  ;;  %v600_v4 = vld [vmem:[#allocation10 + $0x180] sm:$0xff] }
  0x3e   :  { %6432 = vmatmul.msk.f32.gmra.mxu0 %vm227_vm0, %v7252_v30  ;;  %6438 = vmatmul.msk.f32.gmra.mxu2 %vm227_vm0, %v7254_v31  ;;  %v702_v5 = vld [vmem:[#allocation10 + $0x4b0] sm:$0xff]  ;;  %v7284_v6 = vld [vmem:[#allocation5 + $0x20] sm:$0xff] }
  0x3f   :  { %346 = vmatpush.msrb.mxu2 %v185_v32  ;;  %386 = vmatpush.msrb.mxu3 %v192_v33  ;;  %v594_v7 = vld [vmem:[#allocation10 + $0x150] sm:$0xff]  ;;  %v696_v8 = vld [vmem:[#allocation10 + $0x480] sm:$0xff] }
  0x40   :  { %6440 = vmatmul.msk.f32.gmra.mxu1 %vm227_vm0, %v7252_v30  ;;  %6446 = vmatmul.msk.f32.gmra.mxu3 %vm227_vm0, %v7254_v31  ;;  %v588_v9 = vld [vmem:[#allocation10 + $0x120] sm:$0xff]  ;;  %v690_v10 = vld [vmem:[#allocation10 + $0x450] sm:$0xff] }
  0x41   :  { %347 = vmatpush.msrb.mxu2 %v179_v34  ;;  %387 = vmatpush.msrb.mxu3 %v186_v35  ;;  %v740_v11 = vld [vmem:[#allocation10 + $0x5e0] sm:$0xff]  ;;  %v638_v12 = vld [vmem:[#allocation10 + $0x2b0] sm:$0xff] }
  0x42   :  { %467 = vmatpush.msrb.mxu1 %v200_v36  ;;  %427 = vmatpush.msrb.mxu0 %v193_v37  ;;  %v582_v13 = vld [vmem:[#allocation10 + $0xf0] sm:$0xff]  ;;  %v684_v14 = vld [vmem:[#allocation10 + $0x420] sm:$0xff]  ;;  %v7304_v36 = vld [vmem:[#allocation10 + $0x2d8] sm:$0xff] }
  0x43   :  { %348 = vmatpush.msrb.mxu2 %v173_v38  ;;  %388 = vmatpush.msrb.mxu3 %v180_v39  ;;  %v734_v17 = vld [vmem:[#allocation10 + $0x5b0] sm:$0xff]  ;;  %v632_v18 = vld [vmem:[#allocation10 + $0x280] sm:$0xff]  ;;  %v7310_v38 = vld [vmem:[#allocation10 + $0x2a8] sm:$0xff] }
  0x44   :  { %468 = vmatpush.msrb.mxu1 %v194_v40  ;;  %428 = vmatpush.msrb.mxu0 %v187_v41  ;;  %v576_v19 = vld [vmem:[#allocation10 + $0xc0] sm:$0xff]  ;;  %v678_v20 = vld [vmem:[#allocation10 + $0x3f0] sm:$0xff]  ;;  %v739_v39 = vld [vmem:[#allocation10 + $0x5d8] sm:$0xff] }
  0x45   :  { %349 = vmatpush.msrb.mxu2 %v167_v42  ;;  %389 = vmatpush.msrb.mxu3 %v174_v43  ;;  %v570_v22 = vld [vmem:[#allocation10 + $0x90] sm:$0xff]  ;;  %v672_v23 = vld [vmem:[#allocation10 + $0x3c0] sm:$0xff]  ;;  %v7317_v42 = vld [vmem:[#allocation10 + $0x278] sm:$0xff] }
  0x46   :  { %6433 = vmatmul.msk.f32.gmra.mxu0 %vm227_vm0, %v7264_v44  ;;  %6447 = vmatmul.msk.f32.vlgmr.msrb.gmra.mxu2 %vm227_vm0, %v7240_v15  ;;  %v564_v24 = vld [vmem:[#allocation10 + $0x60] sm:$0xff]  ;;  %v666_v25 = vld [vmem:[#allocation10 + $0x390] sm:$0xff]  ;;  %v733_v43 = vld [vmem:[#allocation10 + $0x5a8] sm:$0xff] }
  0x47   :  { %390 = vmatpush.msrb.mxu3 %v168_v45  ;;  %758 = vmatpush.msra.mxu2 %v642_v46  ;;  %v626_v26 = vld [vmem:[#allocation10 + $0x250] sm:$0xff]  ;;  %v728_v27 = vld [vmem:[#allocation10 + $0x580] sm:$0xff] }
  0x48   :  { %6441 = vmatmul.msk.f32.gmra.mxu1 %vm227_vm0, %v7264_v44  ;;  %6455 = vmatmul.msk.f32.vlgmr.msrb.gmra.mxu3 %vm227_vm0, %v7240_v15  ;;  %v558_v28 = vld [vmem:[#allocation10 + $0x30] sm:$0xff]  ;;  %v660_v29 = vld [vmem:[#allocation10 + $0x360] sm:$0xff] }
  0x49   :  { %778 = vmatpush.msra.mxu3 %v738_v47  ;;  %759 = vmatpush.msra.mxu2 %v636_v48  ;;  %v620_v32 = vld [vmem:[#allocation10 + $0x220] sm:$0xff]  ;;  %v722_v33 = vld [vmem:[#allocation10 + $0x550] sm:$0xff]  ;;  %v7320_v47 = vld [vmem:[#allocation10 + $0x248] sm:$0xff] }
  0x4a   :  { %469 = vmatpush.msrb.mxu1 %v188_v49  ;;  %429 = vmatpush.msrb.mxu0 %v181_v50  ;;  %v552_v34 = vld [vmem:[#allocation10] sm:$0xff]  ;;  %v654_v35 = vld [vmem:[#allocation10 + $0x330] sm:$0xff]  ;;  %v727_v48 = vld [vmem:[#allocation10 + $0x578] sm:$0xff] }
  0x4b   :  { %760 = vmatpush.msra.mxu2 %v630_v51  ;;  %779 = vmatpush.msra.mxu3 %v732_v52  ;;  %v648_v37 = vld [vmem:[#allocation10 + $0x300] sm:$0xff]  ;;  %v614_v40 = vld [vmem:[#allocation10 + $0x1f0] sm:$0xff]  ;;  %v7323_v49 = vld [vmem:[#allocation10 + $0x218] sm:$0xff] }
  0x4c   :  { %470 = vmatpush.msrb.mxu1 %v182_v53  ;;  %430 = vmatpush.msrb.mxu0 %v175_v54  ;;  %v716_v41 = vld [vmem:[#allocation10 + $0x520] sm:$0xff]  ;;  %v710_v46 = vld [vmem:[#allocation10 + $0x4f0] sm:$0xff]  ;;  %v721_v50 = vld [vmem:[#allocation10 + $0x548] sm:$0xff] }
  0x4d   :  { %761 = vmatpush.msra.mxu2 %v624_v55  ;;  %780 = vmatpush.msra.mxu3 %v726_v56  ;;  %v608_v45 = vld [vmem:[#allocation10 + $0x1c0] sm:$0xff]  ;;  %v715_v51 = vld [vmem:[#allocation10 + $0x518] sm:$0xff]  ;;  %v602_v52 = vld [vmem:[#allocation10 + $0x190] sm:$0xff] }
  0x4e   :  { %6434 = vmatmul.msk.f32.gmra.mxu0 %vm227_vm0, %v7274_v57  ;;  %6448 = vmatmul.msk.f32.gmra.mxu2 %vm227_vm0, %v7252_v30  ;;  %v704_v53 = vld [vmem:[#allocation10 + $0x4c0] sm:$0xff]  ;;  %v7337_v54 = vld [vmem:[#allocation10 + $0x1b8] sm:$0xff]  ;;  %v709_v55 = vld [vmem:[#allocation10 + $0x4e8] sm:$0xff] }
  0x4f   :  { %762 = vmatpush.msra.mxu2 %v618_v58  ;;  %781 = vmatpush.msra.mxu3 %v720_v59  ;;  %v596_v56 = vld [vmem:[#allocation10 + $0x160] sm:$0xff]  ;;  %v698_v58 = vld [vmem:[#allocation10 + $0x490] sm:$0xff]  ;;  %v7340_v59 = vld [vmem:[#allocation10 + $0x188] sm:$0xff] }
  0x50   :  { %6442 = vmatmul.msk.f32.gmra.mxu1 %vm227_vm0, %v7274_v57  ;;  %6456 = vmatmul.msk.f32.gmra.mxu3 %vm227_vm0, %v7252_v30 }
  0x51   :  { %763 = vmatpush.msra.mxu2 %v612_v60  ;;  %782 = vmatpush.msra.mxu3 %v714_v61  ;;  %v703_v60 = vld [vmem:[#allocation10 + $0x4b8] sm:$0xff] }
  0x52   :  { %471 = vmatpush.msrb.mxu1 %v176_v62  ;;  %431 = vmatpush.msrb.mxu0 %v169_v63  ;;  %v7343_v61 = vld [vmem:[#allocation10 + $0x158] sm:$0xff]  ;;  %v697_v62 = vld [vmem:[#allocation10 + $0x488] sm:$0xff] }
  0x53   :  { %764 = vmatpush.msra.mxu2 %v606_v0  ;;  %783 = vmatpush.msra.mxu3 %v708_v1  ;;  %v691_v63 = vld [vmem:[#allocation10 + $0x458] sm:$0xff]  ;;  %v590_v0 = vld [vmem:[#allocation10 + $0x130] sm:$0xff]  ;;  %v692_v1 = vld [vmem:[#allocation10 + $0x460] sm:$0xff] }
  0x54   :  { %472 = vmatpush.msrb.mxu1 %v170_v2  ;;  %838 = vmatpush.msra.mxu0 %v644_v3  ;;  %v7357_v2 = vld [vmem:[#allocation10 + $0xf8] sm:$0xff]  ;;  %v685_v3 = vld [vmem:[#allocation10 + $0x428] sm:$0xff] }
  0x55   :  { %765 = vmatpush.msra.mxu2 %v600_v4  ;;  %784 = vmatpush.msra.mxu3 %v702_v5  ;;  %v584_v4 = vld [vmem:[#allocation10 + $0x100] sm:$0xff]  ;;  %v686_v5 = vld [vmem:[#allocation10 + $0x430] sm:$0xff] }
  0x56   :  { %6435 = vmatmul.msk.f32.gmra.mxu0 %vm227_vm0, %v7284_v6  ;;  %6449 = vmatmul.msk.f32.gmra.mxu2 %vm227_vm0, %v7264_v44 }
  0x57   :  { %766 = vmatpush.msra.mxu2 %v594_v7  ;;  %785 = vmatpush.msra.mxu3 %v696_v8  ;;  %v7360_v7 = vld [vmem:[#allocation10 + $0xc8] sm:$0xff]  ;;  %v679_v8 = vld [vmem:[#allocation10 + $0x3f8] sm:$0xff] }
  0x58   :  { %6443 = vmatmul.msk.f32.gmra.mxu1 %vm227_vm0, %v7284_v6  ;;  %6457 = vmatmul.msk.f32.gmra.mxu3 %vm227_vm0, %v7264_v44 }
  0x59   :  { %767 = vmatpush.msra.mxu2 %v588_v9  ;;  %786 = vmatpush.msra.mxu3 %v690_v10  ;;  %v7363_v9 = vld [vmem:[#allocation10 + $0x98] sm:$0xff]  ;;  %v673_v10 = vld [vmem:[#allocation10 + $0x3c8] sm:$0xff] }
  0x5a   :  { %858 = vmatpush.msra.mxu1 %v740_v11  ;;  %839 = vmatpush.msra.mxu0 %v638_v12  ;;  %v667_v11 = vld [vmem:[#allocation10 + $0x398] sm:$0xff]  ;;  %v578_v12 = vld [vmem:[#allocation10 + $0xd0] sm:$0xff] }
  0x5b   :  { %768 = vmatpush.msra.mxu2 %v582_v13  ;;  %787 = vmatpush.msra.mxu3 %v684_v14  ;;  %v680_v13 = vld [vmem:[#allocation10 + $0x400] sm:$0xff]  ;;  %v7377_v14 = vld [vmem:[#allocation10 + $0x38] sm:$0xff] }
  0x5c   :  { %859 = vmatpush.msra.mxu1 %v734_v17  ;;  %840 = vmatpush.msra.mxu0 %v632_v18  ;;  %v661_v17 = vld [vmem:[#allocation10 + $0x368] sm:$0xff]  ;;  %v572_v18 = vld [vmem:[#allocation10 + $0xa0] sm:$0xff] }
  0x5d   :  { %769 = vmatpush.msra.mxu2 %v576_v19  ;;  %788 = vmatpush.msra.mxu3 %v678_v20  ;;  %v674_v19 = vld [vmem:[#allocation10 + $0x3d0] sm:$0xff]  ;;  %v7380_v20 = vld [vmem:[#allocation10 + $0x8] sm:$0xff] }
  0x5e   :  { %6436 = vmatmul.msk.f32.gmra.mxu0 %vm227_vm0, %v7294_v21  ;;  %6450 = vmatmul.msk.f32.gmra.mxu2 %vm227_vm0, %v7274_v57 }
  0x5f   :  { %770 = vmatpush.msra.mxu2 %v570_v22  ;;  %789 = vmatpush.msra.mxu3 %v672_v23  ;;  %v655_v22 = vld [vmem:[#allocation10 + $0x338] sm:$0xff]  ;;  %v7383_v23 = vld [vmem:[#allocation10 + $0x2e8] sm:$0xff] }
  0x60   :  { %6444 = vmatmul.msk.f32.gmra.mxu1 %vm227_vm0, %v7294_v21  ;;  %6458 = vmatmul.msk.f32.gmra.mxu3 %vm227_vm0, %v7274_v57 }
  0x61   :  { %771 = vmatpush.msra.mxu2 %v564_v24  ;;  %790 = vmatpush.msra.mxu3 %v666_v25  ;;  %v649_v24 = vld [vmem:[#allocation10 + $0x308] sm:$0xff]  ;;  %v7389_v25 = vld [vmem:[#allocation10 + $0x2b8] sm:$0xff] }
  0x62   :  { %841 = vmatpush.msra.mxu0 %v626_v26  ;;  %860 = vmatpush.msra.mxu1 %v728_v27  ;;  %v741_v26 = vld [vmem:[#allocation10 + $0x5e8] sm:$0xff]  ;;  %v566_v27 = vld [vmem:[#allocation10 + $0x70] sm:$0xff] }
  0x63   :  { %772 = vmatpush.msra.mxu2 %v558_v28  ;;  %791 = vmatpush.msra.mxu3 %v660_v29  ;;  %v668_v28 = vld [vmem:[#allocation10 + $0x3a0] sm:$0xff]  ;;  %v7395_v29 = vld [vmem:[#allocation10 + $0x288] sm:$0xff] }
  0x64   :  { %842 = vmatpush.msra.mxu0 %v620_v32  ;;  %861 = vmatpush.msra.mxu1 %v722_v33  ;;  %v735_v32 = vld [vmem:[#allocation10 + $0x5b8] sm:$0xff]  ;;  %v560_v33 = vld [vmem:[#allocation10 + $0x40] sm:$0xff] }
  0x65   :  { %773 = vmatpush.msra.mxu2 %v552_v34  ;;  %792 = vmatpush.msra.mxu3 %v654_v35  ;;  %v662_v34 = vld [vmem:[#allocation10 + $0x370] sm:$0xff]  ;;  %v7398_v35 = vld [vmem:[#allocation10 + $0x258] sm:$0xff] }
  0x66   :  { %6451 = vmatmul.msk.f32.gmra.mxu2 %vm227_vm0, %v7284_v6  ;;  %6463 = vmatmul.msk.f32.vlgmr.msrb.gmra.mxu0 %vm227_vm0, %v7240_v15 }
  0x67   :  { %798 = vmatpush.msrb.mxu2 %v7304_v36  ;;  %793 = vmatpush.msra.mxu3 %v648_v37  ;;  %v729_v37 = vld [vmem:[#allocation10 + $0x588] sm:$0xff] }
  0x68   :  { %6459 = vmatmul.msk.f32.gmra.mxu3 %vm227_vm0, %v7284_v6  ;;  %6471 = vmatmul.msk.f32.vlgmr.msrb.gmra.mxu1 %vm227_vm0, %v7240_v15  ;;  %v7330_v15 = vld [vmem:[#allocation10 + $0x1e8] sm:$0xff] }
  0x69   :  { %799 = vmatpush.msrb.mxu2 %v7310_v38  ;;  %818 = vmatpush.msrb.mxu3 %v739_v39  ;;  %v656_v39 = vld [vmem:[#allocation10 + $0x340] sm:$0xff] }
  0x6a   :  { %843 = vmatpush.msra.mxu0 %v614_v40  ;;  %862 = vmatpush.msra.mxu1 %v716_v41  ;;  %v7402_v40 = vld [vmem:[#allocation10 + $0x228] sm:$0xff]  ;;  %v723_v41 = vld [vmem:[#allocation10 + $0x558] sm:$0xff] }
  0x6b   :  { %800 = vmatpush.msrb.mxu2 %v7317_v42  ;;  %819 = vmatpush.msrb.mxu3 %v733_v43  ;;  %v646_v43 = vld [vmem:[#allocation10 + $0x2f0] sm:$0xff] }
  0x6c   :  { %844 = vmatpush.msra.mxu0 %v608_v45  ;;  %863 = vmatpush.msra.mxu1 %v710_v46  ;;  %v650_v45 = vld [vmem:[#allocation10 + $0x310] sm:$0xff]  ;;  %v7408_v46 = vld [vmem:[#allocation10 + $0x1f8] sm:$0xff] }
  0x6d   :  { %801 = vmatpush.msrb.mxu2 %v7320_v47  ;;  %820 = vmatpush.msrb.mxu3 %v727_v48  ;;  %v717_v48 = vld [vmem:[#allocation10 + $0x528] sm:$0xff] }
  0x6e   :  { %6452 = vmatmul.msk.f32.gmra.mxu2 %vm227_vm0, %v7294_v21  ;;  %6464 = vmatmul.msk.f32.gmra.mxu0 %vm227_vm0, %v7252_v30 }
  0x6f   :  { %802 = vmatpush.msrb.mxu2 %v7323_v49  ;;  %821 = vmatpush.msrb.mxu3 %v721_v50  ;;  %v640_v50 = vld [vmem:[#allocation10 + $0x2c0] sm:$0xff] }
  0x70   :  { %6460 = vmatmul.msk.f32.gmra.mxu3 %vm227_vm0, %v7294_v21  ;;  %6472 = vmatmul.msk.f32.gmra.mxu1 %vm227_vm0, %v7252_v30  ;;  %v7350_v30 = vld [vmem:[#allocation10 + $0x128] sm:$0xff] }
  0x71   :  { %803 = vmatpush.msrb.mxu2 %v7330_v15  ;;  %822 = vmatpush.msrb.mxu3 %v715_v51  ;;  %v742_v51 = vld [vmem:[#allocation10 + $0x5f0] sm:$0xff] }
  0x72   :  { %845 = vmatpush.msra.mxu0 %v602_v52  ;;  %864 = vmatpush.msra.mxu1 %v704_v53  ;;  %v7413_v52 = vld [vmem:[#allocation10 + $0x1c8] sm:$0xff]  ;;  %v711_v53 = vld [vmem:[#allocation10 + $0x4f8] sm:$0xff] }
  0x73   :  { %804 = vmatpush.msrb.mxu2 %v7337_v54  ;;  %823 = vmatpush.msrb.mxu3 %v709_v55  ;;  %v634_v55 = vld [vmem:[#allocation10 + $0x290] sm:$0xff] }
  0x74   :  { %846 = vmatpush.msra.mxu0 %v596_v56  ;;  %865 = vmatpush.msra.mxu1 %v698_v58  ;;  %v736_v56 = vld [vmem:[#allocation10 + $0x5c0] sm:$0xff]  ;;  %v7416_v58 = vld [vmem:[#allocation10 + $0x198] sm:$0xff] }
  0x75   :  { %805 = vmatpush.msrb.mxu2 %v7340_v59  ;;  %824 = vmatpush.msrb.mxu3 %v703_v60  ;;  %v705_v60 = vld [vmem:[#allocation10 + $0x4c8] sm:$0xff] }
  0x76   :  { %6453 = vmatmul.msk.f32.gmra.mxu2 %vm227_vm0, %v7242_v16  ;;  %6465 = vmatmul.msk.f32.gmra.mxu0 %vm227_vm0, %v7264_v44 }
  0x77   :  { %806 = vmatpush.msrb.mxu2 %v7343_v61  ;;  %825 = vmatpush.msrb.mxu3 %v697_v62  ;;  %v730_v62 = vld [vmem:[#allocation10 + $0x590] sm:$0xff] }
  0x78   :  { %6461 = vmatmul.msk.f32.gmra.mxu3 %vm227_vm0, %v7242_v16  ;;  %6473 = vmatmul.msk.f32.gmra.mxu1 %vm227_vm0, %v7264_v44  ;;  %v7370_v44 = vld [vmem:[#allocation10 + $0x68] sm:$0xff] }
  0x79   :  { %807 = vmatpush.msrb.mxu2 %v7350_v30  ;;  %826 = vmatpush.msrb.mxu3 %v691_v63  ;;  %v7419_v63 = vld [vmem:[#allocation10 + $0x168] sm:$0xff] }
  0x7a   :  { %847 = vmatpush.msra.mxu0 %v590_v0  ;;  %866 = vmatpush.msra.mxu1 %v692_v1  ;;  %v699_v0 = vld [vmem:[#allocation10 + $0x498] sm:$0xff]  ;;  %v622_v1 = vld [vmem:[#allocation10 + $0x230] sm:$0xff] }
  0x7b   :  { %808 = vmatpush.msrb.mxu2 %v7357_v2  ;;  %827 = vmatpush.msrb.mxu3 %v685_v3  ;;  %v724_v3 = vld [vmem:[#allocation10 + $0x560] sm:$0xff] }
  0x7c   :  { %848 = vmatpush.msra.mxu0 %v584_v4  ;;  %867 = vmatpush.msra.mxu1 %v686_v5  ;;  %v7422_v4 = vld [vmem:[#allocation10 + $0x138] sm:$0xff]  ;;  %v693_v5 = vld [vmem:[#allocation10 + $0x468] sm:$0xff] }
  0x7d   :  { %809 = vmatpush.msrb.mxu2 %v7360_v7  ;;  %828 = vmatpush.msrb.mxu3 %v679_v8  ;;  %v616_v8 = vld [vmem:[#allocation10 + $0x200] sm:$0xff] }
  0x7e   :  { %6454 = vmatmul.msk.f32.gmra.mxu2 %vm227_vm0, %v7254_v31  ;;  %6466 = vmatmul.msk.f32.gmra.mxu0 %vm227_vm0, %v7274_v57 }
  0x7f   :  { %810 = vmatpush.msrb.mxu2 %v7363_v9  ;;  %829 = vmatpush.msrb.mxu3 %v673_v10  ;;  %v718_v10 = vld [vmem:[#allocation10 + $0x530] sm:$0xff] }
  0x80   :  { %6462 = vmatmul.msk.f32.gmra.mxu3 %vm227_vm0, %v7254_v31  ;;  %6474 = vmatmul.msk.f32.gmra.mxu1 %vm227_vm0, %v7274_v57  ;;  %v9285_v57 = vmov 0.0  }
  0x81   :  { %811 = vmatpush.msrb.mxu2 %v7370_v44  ;;  %830 = vmatpush.msrb.mxu3 %v667_v11  ;;  %v7428_v11 = vld [vmem:[#allocation10 + $0x108] sm:$0xff] }
  0x82   :  { %849 = vmatpush.msra.mxu0 %v578_v12  ;;  %868 = vmatpush.msra.mxu1 %v680_v13  ;;  %v687_v12 = vld [vmem:[#allocation10 + $0x438] sm:$0xff]  ;;  %v610_v13 = vld [vmem:[#allocation10 + $0x1d0] sm:$0xff] }
  0x83   :  { %812 = vmatpush.msrb.mxu2 %v7377_v14  ;;  %831 = vmatpush.msrb.mxu3 %v661_v17  ;;  %v712_v17 = vld [vmem:[#allocation10 + $0x500] sm:$0xff] }
  0x84   :  { %850 = vmatpush.msra.mxu0 %v572_v18  ;;  %869 = vmatpush.msra.mxu1 %v674_v19  ;;  %v7432_v18 = vld [vmem:[#allocation10 + $0xd8] sm:$0xff]  ;;  %v681_v19 = vld [vmem:[#allocation10 + $0x408] sm:$0xff] }
  0x85   :  { %813 = vmatpush.msrb.mxu2 %v7380_v20  ;;  %832 = vmatpush.msrb.mxu3 %v655_v22  ;;  %v604_v22 = vld [vmem:[#allocation10 + $0x1a0] sm:$0xff] }
  0x86   :  { %6467 = vmatmul.msk.f32.gmra.mxu0 %vm227_vm0, %v7284_v6  ;;  %774 = vmatmul.f32.vlgmr.msra.gmra.mxu2 %v9285_v57 }
  0x87   :  { %878 = vmatpush.msra.mxu2 %v7383_v23  ;;  %833 = vmatpush.msrb.mxu3 %v649_v24  ;;  %v706_v24 = vld [vmem:[#allocation10 + $0x4d0] sm:$0xff] }
  0x88   :  { %6475 = vmatmul.msk.f32.gmra.mxu1 %vm227_vm0, %v7284_v6  ;;  %794 = vmatmul.f32.vlgmr.msra.gmra.mxu3 %v9285_v57  ;;  %v554_v6 = vld [vmem:[#allocation10 + $0x10] sm:$0xff] }
  0x89   :  { %879 = vmatpush.msra.mxu2 %v7389_v25  ;;  %898 = vmatpush.msra.mxu3 %v741_v26  ;;  %v7435_v26 = vld [vmem:[#allocation10 + $0xa8] sm:$0xff] }
  0x8a   :  { %851 = vmatpush.msra.mxu0 %v566_v27  ;;  %870 = vmatpush.msra.mxu1 %v668_v28  ;;  %v598_v27 = vld [vmem:[#allocation10 + $0x170] sm:$0xff]  ;;  %v700_v28 = vld [vmem:[#allocation10 + $0x4a0] sm:$0xff] }
  0x8b   :  { %880 = vmatpush.msra.mxu2 %v7395_v29  ;;  %899 = vmatpush.msra.mxu3 %v735_v32  ;;  %v7438_v32 = vld [vmem:[#allocation10 + $0x78] sm:$0xff] }
  0x8c   :  { %852 = vmatpush.msra.mxu0 %v560_v33  ;;  %871 = vmatpush.msra.mxu1 %v662_v34  ;;  %v669_v33 = vld [vmem:[#allocation10 + $0x3a8] sm:$0xff]  ;;  %v592_v34 = vld [vmem:[#allocation10 + $0x140] sm:$0xff] }
  0x8d   :  { %881 = vmatpush.msra.mxu2 %v7398_v35  ;;  %900 = vmatpush.msra.mxu3 %v729_v37  ;;  %v694_v37 = vld [vmem:[#allocation10 + $0x470] sm:$0xff] }
  0x8e   :  { %6468 = vmatmul.msk.f32.gmra.mxu0 %vm227_vm0, %v7294_v21  ;;  %814 = vmatmul.f32.vlgmr.msrb.gmra.mxu2 %v9285_v57 }
  0x8f   :  { %853 = vmatpush.msra.mxu0 %v554_v6  ;;  %872 = vmatpush.msra.mxu1 %v656_v39  ;;  %v7444_v6 = vld [vmem:[#allocation10 + $0x48] sm:$0xff]  ;;  %v663_v39 = vld [vmem:[#allocation10 + $0x378] sm:$0xff] }
  0x90   :  { %882 = vmatpush.msra.mxu2 %v7402_v40  ;;  %901 = vmatpush.msra.mxu3 %v723_v41  ;;  %v586_v41 = vld [vmem:[#allocation10 + $0x110] sm:$0xff] }
  0x91   :  { %918 = vmatpush.msrb.mxu0 %v646_v43  ;;  %6476 = vmatmul.msk.f32.gmra.mxu1 %vm227_vm0, %v7294_v21  ;;  %v628_v21 = vld [vmem:[#allocation10 + $0x260] sm:$0xff] }
  0x92   :  { %834 = vmatmul.f32.vlgmr.msrb.gmra.mxu3 %v9285_v57  ;;  %873 = vmatpush.msra.mxu1 %v650_v45  ;;  %v688_v43 = vld [vmem:[#allocation10 + $0x440] sm:$0xff]  ;;  %v7448_v45 = vld [vmem:[#allocation10 + $0x18] sm:$0xff] }
  0x93   :  { %883 = vmatpush.msra.mxu2 %v7408_v46  ;;  %902 = vmatpush.msra.mxu3 %v717_v48  ;;  %v657_v48 = vld [vmem:[#allocation10 + $0x348] sm:$0xff] }
  0x94   :  { %919 = vmatpush.msrb.mxu0 %v640_v50  ;;  %938 = vmatpush.msrb.mxu1 %v742_v51  ;;  %v580_v50 = vld [vmem:[#allocation10 + $0xe0] sm:$0xff]  ;;  %v682_v51 = vld [vmem:[#allocation10 + $0x410] sm:$0xff] }
  0x95   :  { %884 = vmatpush.msra.mxu2 %v7413_v52  ;;  %903 = vmatpush.msra.mxu3 %v711_v53  ;;  %v7451_v53 = vld [vmem:[#allocation10 + $0x2f8] sm:$0xff] }
  0x96   :  { %920 = vmatpush.msrb.mxu0 %v634_v55  ;;  %939 = vmatpush.msrb.mxu1 %v736_v56  ;;  %v574_v55 = vld [vmem:[#allocation10 + $0xb0] sm:$0xff]  ;;  %v676_v56 = vld [vmem:[#allocation10 + $0x3e0] sm:$0xff] }
  0x97   :  { %885 = vmatpush.msra.mxu2 %v7416_v58  ;;  %904 = vmatpush.msra.mxu3 %v705_v60  ;;  %v7456_v60 = vld [vmem:[#allocation10 + $0x2c8] sm:$0xff] }
  0x98   :  { %921 = vmatpush.msrb.mxu0 %v628_v21  ;;  %940 = vmatpush.msrb.mxu1 %v730_v62  ;;  %v743_v21 = vld [vmem:[#allocation10 + $0x5f8] sm:$0xff]  ;;  %v568_v62 = vld [vmem:[#allocation10 + $0x80] sm:$0xff] }
  0x99   :  { %6469 = vmatmul.msk.f32.gmra.mxu0 %vm227_vm0, %v7242_v16  ;;  %886 = vmatpush.msra.mxu2 %v7419_v63 }
  0x9a   :  { %905 = vmatpush.msra.mxu3 %v699_v0  ;;  %922 = vmatpush.msrb.mxu0 %v622_v1  ;;  %v670_v0 = vld [vmem:[#allocation10 + $0x3b0] sm:$0xff]  ;;  %v7461_v1 = vld [vmem:[#allocation10 + $0x298] sm:$0xff] }
  0x9b   :  { %941 = vmatpush.msrb.mxu1 %v724_v3  ;;  %887 = vmatpush.msra.mxu2 %v7422_v4  ;;  %v737_v3 = vld [vmem:[#allocation10 + $0x5c8] sm:$0xff] }
  0x9c   :  { %6477 = vmatmul.msk.f32.gmra.mxu1 %vm227_vm0, %v7242_v16  ;;  %906 = vmatpush.msra.mxu3 %v693_v5  ;;  %v675_v16 = vld [vmem:[#allocation10 + $0x3d8] sm:$0xff]  ;;  %v562_v5 = vld [vmem:[#allocation10 + $0x50] sm:$0xff] }
  0x9d   :  { %923 = vmatpush.msrb.mxu0 %v616_v8  ;;  %942 = vmatpush.msrb.mxu1 %v718_v10  ;;  %v664_v8 = vld [vmem:[#allocation10 + $0x380] sm:$0xff]  ;;  %v7464_v10 = vld [vmem:[#allocation10 + $0x268] sm:$0xff] }
  0x9e   :  { %888 = vmatpush.msra.mxu2 %v7428_v11  ;;  %907 = vmatpush.msra.mxu3 %v687_v12  ;;  %v731_v12 = vld [vmem:[#allocation10 + $0x598] sm:$0xff] }
  0x9f   :  { %924 = vmatpush.msrb.mxu0 %v610_v13  ;;  %943 = vmatpush.msrb.mxu1 %v712_v17  ;;  %v556_v13 = vld [vmem:[#allocation10 + $0x20] sm:$0xff]  ;;  %v658_v17 = vld [vmem:[#allocation10 + $0x350] sm:$0xff] }
  0xa0   :  { %889 = vmatpush.msra.mxu2 %v7432_v18  ;;  %908 = vmatpush.msra.mxu3 %v681_v19  ;;  %v7470_v19 = vld [vmem:[%s9275_s0] sm:$0xff] }
  0xa1   :  { %925 = vmatpush.msrb.mxu0 %v604_v22  ;;  %944 = vmatpush.msrb.mxu1 %v706_v24  ;;  %v7472_v22 = vld [vmem:[#allocation10 + $0x238] sm:$0xff]  ;;  %v725_v24 = vld [vmem:[#allocation10 + $0x568] sm:$0xff]  ;;  %vm998_vm1 = vcmp.gt.s32.totalorder %v7470_v19, 0  ;;  %vm1052_vm2 = vcmp.gt.s32.totalorder %v7470_v19, 7  ;;  %vm2684_vm3 = vcmp.gt.s32.totalorder %v7470_v19, 3 }
  0xa2   :  { %6470 = vmatmul.msk.f32.gmra.mxu0 %vm227_vm0, %v7254_v31  ;;  %890 = vmatpush.msra.mxu2 %v7435_v26 }
  0xa3   :  { %909 = vmatpush.msra.mxu3 %v675_v16  ;;  %926 = vmatpush.msrb.mxu0 %v598_v27  ;;  %v652_v27 = vld [vmem:[#allocation10 + $0x320] sm:$0xff] }
  0xa4   :  { %945 = vmatpush.msrb.mxu1 %v700_v28  ;;  %891 = vmatpush.msra.mxu2 %v7438_v32  ;;  %v7477_v28 = vld [vmem:[#allocation10 + $0x208] sm:$0xff] }
  0xa5   :  { %6478 = vmatmul.msk.f32.gmra.mxu1 %vm227_vm0, %v7254_v31  ;;  %910 = vmatpush.msra.mxu3 %v669_v33  ;;  %v651_v31 = vld [vmem:[#allocation10 + $0x318] sm:$0xff] }
  0xa6   :  { %927 = vmatpush.msrb.mxu0 %v592_v34  ;;  %946 = vmatpush.msrb.mxu1 %v694_v37  ;;  %v719_v33 = vld [vmem:[#allocation10 + $0x538] sm:$0xff] }
  0xa7   :  { %892 = vmatpush.msra.mxu2 %v7444_v6  ;;  %911 = vmatpush.msra.mxu3 %v663_v39  ;;  %v7484_v37 = vld [vmem:[#allocation10 + $0x1d8] sm:$0xff]  ;;  %v713_v39 = vld [vmem:[#allocation10 + $0x508] sm:$0xff] }
  0xa8   :  { %928 = vmatpush.msrb.mxu0 %v586_v41  ;;  %947 = vmatpush.msrb.mxu1 %v688_v43  ;;  %v9287_v41 = vmov 0  }
  0xa9   :  { %893 = vmatpush.msra.mxu2 %v7448_v45  ;;  %912 = vmatpush.msra.mxu3 %v657_v48  ;;  %v1046_v43 = vsel %vm998_vm1, 1, %v9287_v41  ;;  %v605_v48 = vld [vmem:[#allocation10 + $0x1a8] sm:$0xff] }
  0xaa   :  { %894 = vmatmul.f32.vlgmr.msra.gmra.mxu2 %v9285_v57  ;;  %929 = vmatpush.msrb.mxu0 %v580_v50  ;;  %v707_v50 = vld [vmem:[#allocation10 + $0x4d8] sm:$0xff] }
  0xab   :  { %948 = vmatpush.msrb.mxu1 %v682_v51  ;;  %958 = vmatpush.msrb.mxu2 %v7451_v53 }
  0xac   :  { %854 = vmatmul.f32.vlgmr.msra.gmra.mxu0 %v9285_v57  ;;  %913 = vmatpush.msra.mxu3 %v651_v31  ;;  %v599_v31 = vld [vmem:[#allocation10 + $0x178] sm:$0xff] }
  0xad   :  { %914 = vmatmul.f32.vlgmr.msra.gmra.mxu3 %v9285_v57  ;;  %930 = vmatpush.msrb.mxu0 %v574_v55  ;;  %v701_v55 = vld [vmem:[#allocation10 + $0x4a8] sm:$0xff] }
  0xae   :  { %949 = vmatpush.msrb.mxu1 %v676_v56  ;;  %959 = vmatpush.msrb.mxu2 %v7456_v60 }
  0xaf   :  { %978 = vmatpush.msrb.mxu3 %v743_v21  ;;  %874 = vmatmul.f32.vlgmr.msra.gmra.mxu1 %v9285_v57 }
  0xb0   :  { %931 = vmatpush.msrb.mxu0 %v568_v62  ;;  %950 = vmatpush.msrb.mxu1 %v670_v0  ;;  %v593_v62 = vld [vmem:[#allocation10 + $0x148] sm:$0xff]  ;;  %v695_v0 = vld [vmem:[#allocation10 + $0x478] sm:$0xff] }
  0xb1   :  { %960 = vmatpush.msrb.mxu2 %v7461_v1  ;;  %979 = vmatpush.msrb.mxu3 %v737_v3 }
  0xb2   :  { %932 = vmatpush.msrb.mxu0 %v562_v5  ;;  %951 = vmatpush.msrb.mxu1 %v664_v8  ;;  %v7474_v16 = vpop.f32.mrf.mxu0  ;;  %v587_v5 = vld [vmem:[#allocation10 + $0x118] sm:$0xff]  ;;  %v689_v8 = vld [vmem:[#allocation10 + $0x448] sm:$0xff] }
  0xb3   :  { %961 = vmatpush.msrb.mxu2 %v7464_v10  ;;  %980 = vmatpush.msrb.mxu3 %v731_v12  ;;  %v1100_v12 = vsel %vm1052_vm2, 1, %v9287_v41 }
  0xb4   :  { %933 = vmatpush.msrb.mxu0 %v556_v13  ;;  %952 = vmatpush.msrb.mxu1 %v658_v17  ;;  %v7479_v34 = vpop.f32.mrf.mxu1  ;;  %v581_v13 = vld [vmem:[#allocation10 + $0xe8] sm:$0xff]  ;;  %v683_v17 = vld [vmem:[#allocation10 + $0x418] sm:$0xff] }
  0xb5   :  { %962 = vmatpush.msrb.mxu2 %v7472_v22  ;;  %981 = vmatpush.msrb.mxu3 %v725_v24 }
  0xb6   :  { %934 = vmatmul.f32.vlgmr.msrb.gmra.mxu0 %v9285_v57  ;;  %953 = vmatpush.msrb.mxu1 %v652_v27  ;;  %v575_v27 = vld [vmem:[#allocation10 + $0xb8] sm:$0xff] }
  0xb7   :  { %963 = vmatpush.msrb.mxu2 %v7477_v28  ;;  %982 = vmatpush.msrb.mxu3 %v719_v33  ;;  %v677_v33 = vld [vmem:[#allocation10 + $0x3e8] sm:$0xff] }
  0xb8   :  { %954 = vmatmul.f32.vlgmr.msrb.gmra.mxu1 %v9285_v57  ;;  %v7489_v51 = vpop.f32.mrf.mxu2  ;;  %6581 = vset.pattern.permute.xlu0 %v9287_v41 }
  0xb9   :  { %9340 = vst [vmem:[#allocation26_spill] sm:$0xff] %v7489_v51  ;;  %964 = vmatpush.msrb.mxu2 %v7484_v37  ;;  %983 = vmatpush.msrb.mxu3 %v713_v39  ;;  %v7669_v51 = vld [vmem:[#allocation10 + $0x3f0] sm:$0xff] }
  0xba   :  { %1048 = vperm.xlu0 %6581, %v1046_v43   ;;  %6582 = vset.pattern.permute.xlu1 %v9287_v41 }
  0xbb   :  { %965 = vmatpush.msrb.mxu2 %v605_v48  ;;  %984 = vmatpush.msrb.mxu3 %v707_v50  ;;  %v7494_v56 = vpop.f32.mrf.mxu0  ;;  %v7496_v21 = vpop.f32.mrf.mxu3  ;;  %v569_v48 = vld [vmem:[#allocation10 + $0x88] sm:$0xff]  ;;  %v671_v50 = vld [vmem:[#allocation10 + $0x3b8] sm:$0xff] }
  0xbc   :  { %9341 = vst [vmem:[#allocation27_spill] sm:$0xff] %v7496_v21  ;;  %6583 = vset.pattern.permute.xlu2 %v9287_v41 }
  0xbd   :  { %966 = vmatpush.msrb.mxu2 %v599_v31  ;;  %985 = vmatpush.msrb.mxu3 %v701_v55  ;;  %v7500_v3 = vpop.f32.mrf.mxu1  ;;  %v563_v55 = vld [vmem:[#allocation10 + $0x58] sm:$0xff] }
  0xbf   :  { %967 = vmatpush.msrb.mxu2 %v593_v62  ;;  %986 = vmatpush.msrb.mxu3 %v695_v0  ;;  %v665_v62 = vld [vmem:[#allocation10 + $0x388] sm:$0xff]  ;;  %v2732_v0 = vsel %vm2684_vm3, 1, %v9287_v41  ;;  %v1289_v41 = vld [vmem:[#allocation10 + $0x578] sm:$0xff] }
  0xc1   :  { %968 = vmatpush.msrb.mxu2 %v587_v5  ;;  %987 = vmatpush.msrb.mxu3 %v689_v8  ;;  %v7503_v24 = vpop.f32.mrf.mxu2  ;;  %v557_v5 = vld [vmem:[#allocation10 + $0x28] sm:$0xff]  ;;  %v659_v8 = vld [vmem:[#allocation10 + $0x358] sm:$0xff] }
  0xc2   :  { %9342 = vst [vmem:[#allocation28_spill] sm:$0xff] %v7503_v24  ;;  %1102 = vperm.xlu0 %6581, %v1100_v12   ;;  %v7655_v24 = vld [vmem:[#allocation10 + $0x458] sm:$0xff] }
  0xc3   :  { %969 = vmatpush.msrb.mxu2 %v581_v13  ;;  %988 = vmatpush.msrb.mxu3 %v683_v17  ;;  %v7505_v39 = vpop.f32.mrf.mxu0  ;;  %v7507_v43 = vpop.f32.mrf.mxu3  ;;  %v653_v13 = vld [vmem:[#allocation10 + $0x328] sm:$0xff] }
  0xc4   :  { %9343 = vst [vmem:[#allocation29_spill] sm:$0xff] %v7505_v39 }
  0xc5   :  { %9344 = vst [vmem:[#allocation30_spill] sm:$0xff] %v7507_v43  ;;  %970 = vmatpush.msrb.mxu2 %v575_v27  ;;  %989 = vmatpush.msrb.mxu3 %v677_v33  ;;  %v7510_v31 = vpop.f32.mrf.mxu1  ;;  %v7653_v43 = vld [vmem:[#allocation10 + $0x450] sm:$0xff] }
  0xc6   :  { %9345 = vst [vmem:[#allocation31_spill] sm:$0xff] %v7510_v31  ;;  %v1285_v31 = vld [vmem:[#allocation10 + $0x558] sm:$0xff] }
  0xc7   :  { %971 = vmatpush.msrb.mxu2 %v569_v48  ;;  %990 = vmatpush.msrb.mxu3 %v671_v50 }
  0xc9   :  { %972 = vmatpush.msrb.mxu2 %v563_v55  ;;  %991 = vmatpush.msrb.mxu3 %v665_v62  ;;  %v7513_v12 = vpop.f32.mrf.mxu2 }
  0xca   :  { %2734 = vperm.xlu0 %6581, %v2732_v0   ;;  %v1198_v0 = vld [vmem:[#allocation10 + $0x2a0] sm:$0xff] }
  0xcb   :  { %973 = vmatpush.msrb.mxu2 %v557_v5  ;;  %992 = vmatpush.msrb.mxu3 %v659_v8  ;;  %v7515_v19 = vpop.f32.mrf.mxu0  ;;  %v7517_v17 = vpop.f32.mrf.mxu3  ;;  %v1174_v8 = vld [vmem:[#allocation10 + $0x1e0] sm:$0xff] }
  0xcc   :  { %9346 = vst [vmem:[#allocation32_spill] sm:$0xff] %v7515_v19  ;;  %974 = vmatmul.f32.vlgmr.msrb.gmra.mxu2 %v9285_v57  ;;  %v1290_v19 = vld [vmem:[#allocation10 + $0x580] sm:$0xff] }
  0xcd   :  { %9347 = vst [vmem:[#allocation33_spill] sm:$0xff] %v7517_v17  ;;  %993 = vmatpush.msrb.mxu3 %v653_v13  ;;  %v7520_v27 = vpop.f32.mrf.mxu1  ;;  %1360 = vmatpush.msra.mxu2 %v7304_v36  ;;  %v1168_v13 = vld [vmem:[#allocation10 + $0x1b0] sm:$0xff]  ;;  %v7647_v17 = vld [vmem:[#allocation10 + $0x480] sm:$0xff] }
  0xce   :  { %9348 = vst [vmem:[#allocation34_spill] sm:$0xff] %v7520_v27  ;;  %994 = vmatmul.f32.vlgmr.msrb.gmra.mxu3 %v9285_v57  ;;  %v1295_v57 = vld [vmem:[#allocation10 + $0x5a8] sm:$0xff] }
  0xcf   :  { %1361 = vmatpush.msra.mxu2 %v7310_v38 }
  0xd1   :  { %v7525_v33 = vpop.f32.mrf.mxu2  ;;  %1362 = vmatpush.msra.mxu2 %v7317_v42 }
  0xd2   :  { %9349 = vst [vmem:[#allocation35_spill] sm:$0xff] %v7525_v33 }
  0xd3   :  { %v7528_v48 = vpop.f32.mrf.mxu0  ;;  %v7530_v50 = vpop.f32.mrf.mxu3  ;;  %1363 = vmatpush.msra.mxu2 %v7320_v47  ;;  %v1204_v47 = vld [vmem:[#allocation10 + $0x2d0] sm:$0xff] }
  0xd4   :  { %9350 = vst [vmem:[#allocation36_spill] sm:$0xff] %v7528_v48  ;;  %1320 = vmatpush.msra.mxu0 %v1204_v47  ;;  %v7717_v48 = vld [vmem:[#allocation10 + $0x5e0] sm:$0xff] }
  0xd5   :  { %9351 = vst [vmem:[#allocation37_spill] sm:$0xff] %v7530_v50  ;;  %v7533_v55 = vpop.f32.mrf.mxu1  ;;  %1364 = vmatpush.msra.mxu2 %v7323_v49 }
  0xd6   :  { %9352 = vst [vmem:[#allocation38_spill] sm:$0xff] %v7533_v55  ;;  %1321 = vmatpush.msra.mxu0 %v1198_v0  ;;  %v1162_v0 = vld [vmem:[#allocation10 + $0x180] sm:$0xff]  ;;  %v7711_v55 = vld [vmem:[#allocation10 + $0x308] sm:$0xff] }
  0xd7   :  { %1365 = vmatpush.msra.mxu2 %v7330_v15  ;;  %v1192_v15 = vld [vmem:[#allocation10 + $0x270] sm:$0xff] }
  0xd8   :  { %1322 = vmatpush.msra.mxu0 %v1192_v15 }
  0xd9   :  { %v7537_v36 = vpop.f32.mrf.mxu2  ;;  %1366 = vmatpush.msra.mxu2 %v7337_v54 }
  0xda   :  { %9353 = vst [vmem:[#allocation39_spill] sm:$0xff] %v7537_v36 }
  0xdb   :  { %v7540_v38 = vpop.f32.mrf.mxu0  ;;  %v7542_v62 = vpop.f32.mrf.mxu3  ;;  %1367 = vmatpush.msra.mxu2 %v7340_v59  ;;  %v1186_v59 = vld [vmem:[#allocation10 + $0x240] sm:$0xff] }
  0xdc   :  { %9354 = vst [vmem:[#allocation40_spill] sm:$0xff] %v7540_v38  ;;  %1323 = vmatpush.msra.mxu0 %v1186_v59  ;;  %v1156_v59 = vld [vmem:[#allocation10 + $0x150] sm:$0xff] }
  0xdd   :  { %9355 = vst [vmem:[#allocation41_spill] sm:$0xff] %v7542_v62  ;;  %v7545_v42 = vpop.f32.mrf.mxu1  ;;  %1368 = vmatpush.msra.mxu2 %v7343_v61 }
  0xde   :  { %9356 = vst [vmem:[#allocation42_spill] sm:$0xff] %v7545_v42  ;;  %v7702_v42 = vld [vmem:[#allocation10 + $0x338] sm:$0xff] }
  0xdf   :  { %1369 = vmatpush.msra.mxu2 %v7350_v30  ;;  %v1180_v30 = vld [vmem:[#allocation10 + $0x210] sm:$0xff] }
  0xe0   :  { %1324 = vmatpush.msra.mxu0 %v1180_v30 }
  0xe1   :  { %v7549_v49 = vpop.f32.mrf.mxu2  ;;  %1370 = vmatpush.msra.mxu2 %v7357_v2 }
  0xe2   :  { %9357 = vst [vmem:[#allocation43_spill] sm:$0xff] %v7549_v49  ;;  %1325 = vmatpush.msra.mxu0 %v1174_v8  ;;  %v7726_v49 = vld [vmem:[#allocation10 + $0x5b8] sm:$0xff] }
  0xe3   :  { %v7552_v54 = vpop.f32.mrf.mxu3  ;;  %v7554_v5 = vpop.f32.mrf.mxu0  ;;  %1371 = vmatpush.msra.mxu2 %v7360_v7  ;;  %9382 = vst [vmem:[#allocation68_spill] sm:$0xff] %v7726_v49 }
  0xe4   :  { %9358 = vst [vmem:[#allocation44_spill] sm:$0xff] %v7552_v54  ;;  %1326 = vmatpush.msra.mxu0 %v1168_v13  ;;  %v7709_v54 = vld [vmem:[#allocation10 + $0x300] sm:$0xff] }
  0xe5   :  { %9359 = vst [vmem:[#allocation45_spill] sm:$0xff] %v7554_v5  ;;  %v7557_v61 = vpop.f32.mrf.mxu1  ;;  %1372 = vmatpush.msra.mxu2 %v7363_v9  ;;  %v1283_v5 = vld [vmem:[#allocation10 + $0x548] sm:$0xff] }
  0xe6   :  { %9360 = vst [vmem:[#allocation46_spill] sm:$0xff] %v7557_v61  ;;  %1327 = vmatpush.msra.mxu0 %v1162_v0  ;;  %v1282_v61 = vld [vmem:[#allocation10 + $0x540] sm:$0xff] }
  0xe7   :  { %1373 = vmatpush.msra.mxu2 %v7370_v44 }
  0xe8   :  { %1328 = vmatpush.msra.mxu0 %v1156_v59 }
  0xe9   :  { %v7561_v2 = vpop.f32.mrf.mxu2  ;;  %1374 = vmatpush.msra.mxu2 %v7377_v14 }
  0xea   :  { %9361 = vst [vmem:[#allocation47_spill] sm:$0xff] %v7561_v2 }
  0xeb   :  { %v7564_v47 = vpop.f32.mrf.mxu3  ;;  %v7566_v7 = vpop.f32.mrf.mxu0  ;;  %1375 = vmatpush.msra.mxu2 %v7380_v20 }
  0xec   :  { %9362 = vst [vmem:[#allocation48_spill] sm:$0xff] %v7564_v47 }
  0xed   :  { %9363 = vst [vmem:[#allocation49_spill] sm:$0xff] %v7566_v7  ;;  %1440 = vmatpush.msrb.mxu2 %v7383_v23  ;;  %v7570_v9 = vpop.f32.mrf.mxu1  ;;  %v1150_v23 = vld [vmem:[#allocation10 + $0x120] sm:$0xff] }
  0xee   :  { %9364 = vst [vmem:[#allocation50_spill] sm:$0xff] %v7570_v9  ;;  %1329 = vmatpush.msra.mxu0 %v1150_v23  ;;  %v7663_v7 = vld [vmem:[#allocation10 + $0x420] sm:$0xff] }
  0xef   :  { %1441 = vmatpush.msrb.mxu2 %v7389_v25  ;;  %v1144_v25 = vld [vmem:[#allocation10 + $0xf0] sm:$0xff] }
  0xf0   :  { %1330 = vmatpush.msra.mxu0 %v1144_v25  ;;  %v1206_v25 = vld [vmem:[#allocation10 + $0x2e0] sm:$0xff] }
  0xf1   :  { %1442 = vmatpush.msrb.mxu2 %v7395_v29  ;;  %v7574_v44 = vpop.f32.mrf.mxu2 }
  0xf2   :  { %9365 = vst [vmem:[#allocation51_spill] sm:$0xff] %v7574_v44  ;;  %v7681_v44 = vld [vmem:[#allocation10 + $0x3c8] sm:$0xff] }
  0xf3   :  { %1443 = vmatpush.msrb.mxu2 %v7398_v35  ;;  %v7577_v14 = vpop.f32.mrf.mxu3  ;;  %v7579_v15 = vpop.f32.mrf.mxu0  ;;  %v1138_v35 = vld [vmem:[#allocation10 + $0xc0] sm:$0xff] }
  0xf4   :  { %9366 = vst [vmem:[#allocation52_spill] sm:$0xff] %v7577_v14  ;;  %1331 = vmatpush.msra.mxu0 %v1138_v35  ;;  %v1301_v35 = vld [vmem:[#allocation10 + $0x5d8] sm:$0xff] }
  0xf5   :  { %9367 = vst [vmem:[#allocation53_spill] sm:$0xff] %v7579_v15  ;;  %1444 = vmatpush.msrb.mxu2 %v7402_v40  ;;  %v7582_v20 = vpop.f32.mrf.mxu1  ;;  %v1132_v40 = vld [vmem:[#allocation10 + $0x90] sm:$0xff]  ;;  %1380 = vmatpush.msra.mxu3 %v1301_v35  ;;  %v7679_v15 = vld [vmem:[#allocation10 + $0x3c0] sm:$0xff]  ;;  %v1273_v14 = vld [vmem:[#allocation10 + $0x4f8] sm:$0xff] }
  0xf6   :  { %9368 = vst [vmem:[#allocation54_spill] sm:$0xff] %v7582_v20  ;;  %1332 = vmatpush.msra.mxu0 %v1132_v40  ;;  %v1188_v35 = vld [vmem:[#allocation10 + $0x250] sm:$0xff]  ;;  %v7671_v20 = vld [vmem:[#allocation10 + $0x3f8] sm:$0xff] }
  0xf7   :  { %1445 = vmatpush.msrb.mxu2 %v7408_v46  ;;  %v1126_v46 = vld [vmem:[#allocation10 + $0x60] sm:$0xff]  ;;  %1381 = vmatpush.msra.mxu3 %v1295_v57 }
  0xf8   :  { %1333 = vmatpush.msra.mxu0 %v1126_v46 }
  0xf9   :  { %1446 = vmatpush.msrb.mxu2 %v7413_v52  ;;  %v7586_v29 = vpop.f32.mrf.mxu2  ;;  %v1120_v52 = vld [vmem:[#allocation10 + $0x30] sm:$0xff]  ;;  %1382 = vmatpush.msra.mxu3 %v1289_v41  ;;  %v7625_v41 = vld [vmem:[#allocation10 + $0x518] sm:$0xff] }
  0xfa   :  { %9369 = vst [vmem:[#allocation55_spill] sm:$0xff] %v7586_v29  ;;  %1334 = vmatpush.msra.mxu0 %v1120_v52  ;;  %v1294_v52 = vld [vmem:[#allocation10 + $0x5a0] sm:$0xff] }
  0xfb   :  { %1447 = vmatpush.msrb.mxu2 %v7416_v58  ;;  %v7589_v30 = vpop.f32.mrf.mxu3  ;;  %v7591_v8 = vpop.f32.mrf.mxu0  ;;  %v1114_v58 = vld [vmem:[#allocation10] sm:$0xff]  ;;  %1383 = vmatpush.msra.mxu3 %v1283_v5 }
  0xfc   :  { %9370 = vst [vmem:[#allocation56_spill] sm:$0xff] %v7589_v30  ;;  %1335 = vmatpush.msra.mxu0 %v1114_v58  ;;  %v1194_v58 = vld [vmem:[#allocation10 + $0x280] sm:$0xff] }
  0xfd   :  { %9371 = vst [vmem:[#allocation57_spill] sm:$0xff] %v7591_v8  ;;  %1448 = vmatpush.msrb.mxu2 %v7419_v63  ;;  %v7594_v13 = vpop.f32.mrf.mxu1  ;;  %v7605_v63 = vld [vmem:[#allocation17 + $0x6] sm:$0x3f]  ;;  %1384 = vmatpush.msra.mxu3 %v7625_v41 }
  0xfe   :  { %9372 = vst [vmem:[#allocation58_spill] sm:$0xff] %v7594_v13  ;;  %1400 = vmatpush.msrb.mxu0 %v1206_v25  ;;  %v746_v46 = vperm.slane %v7605_v63, 0  ;;  %v747_v5 = vperm.slane %v7605_v63, 1  ;;  %v1146_v29 = vld [vmem:[#allocation10 + $0x100] sm:$0xff]  ;;  %v749_v33 = vperm.slane %v7605_v63, 3 }
  0xff   :  { %1449 = vmatpush.msrb.mxu2 %v7422_v4  ;;  %v1300_v4 = vld [vmem:[#allocation10 + $0x5d0] sm:$0xff] }
 0x100   :  { %1340 = vmatpush.msra.mxu1 %v1300_v4 }
 0x101   :  { %1450 = vmatpush.msrb.mxu2 %v7428_v11  ;;  %v7598_v0 = vpop.f32.mrf.mxu2  ;;  %v7608_v11 = vld [vmem:[#allocation17] sm:$0x3f] }
 0x102   :  { %9373 = vst [vmem:[#allocation59_spill] sm:$0xff] %v7598_v0  ;;  %1341 = vmatpush.msra.mxu1 %v1294_v52  ;;  %v7615_v25 = vperm.slane %v7608_v11, 0 }
 0x103   :  { %1451 = vmatpush.msrb.mxu2 %v7432_v18  ;;  %v7601_v59 = vpop.f32.mrf.mxu3  ;;  %v7603_v23 = vpop.f32.mrf.mxu0  ;;  %v1200_v18 = vld [vmem:[#allocation10 + $0x2b0] sm:$0xff] }
 0x104   :  { %9374 = vst [vmem:[#allocation60_spill] sm:$0xff] %v7603_v23  ;;  %1401 = vmatpush.msrb.mxu0 %v1200_v18  ;;  %v270_v52 = vadd.f32 %v7474_v16, %v7615_v25  ;;  %v7632_v16 = vld [vmem:[#allocation10 + $0x4e8] sm:$0xff] }
 0x105   :  { %1452 = vmatpush.msrb.mxu2 %v7435_v26  ;;  %v7610_v40 = vpop.f32.mrf.mxu1  ;;  %v1288_v26 = vld [vmem:[#allocation10 + $0x570] sm:$0xff]  ;;  %1385 = vmatpush.msra.mxu3 %v7632_v16 }
 0x106   :  { %9375 = vst [vmem:[#allocation61_spill] sm:$0xff] %v7610_v40  ;;  %1402 = vmatpush.msrb.mxu0 %v1194_v58  ;;  %1342 = vmatpush.msra.mxu1 %v1288_v26  ;;  %v7623_v26 = vld [vmem:[#allocation10 + $0x510] sm:$0xff]  ;;  %v7719_v40 = vld [vmem:[#allocation10 + $0x5e8] sm:$0xff] }
 0x107   :  { %1453 = vmatpush.msrb.mxu2 %v7438_v32  ;;  %v1182_v32 = vld [vmem:[#allocation10 + $0x220] sm:$0xff]  ;;  %9380 = vst [vmem:[#allocation66_spill] sm:$0xff] %v7719_v40 }
 0x108   :  { %1403 = vmatpush.msrb.mxu0 %v1188_v35  ;;  %1343 = vmatpush.msra.mxu1 %v1282_v61  ;;  %v7630_v61 = vld [vmem:[#allocation10 + $0x4e0] sm:$0xff] }
 0x109   :  { %1454 = vmatpush.msrb.mxu2 %v7444_v6  ;;  %v775_v4 = vpop.f32.mrf.mxu2  ;;  %v1170_v35 = vld [vmem:[#allocation10 + $0x1c0] sm:$0xff] }
 0x10a   :  { %v776_v18 = vadd.f32 %v775_v4, %v746_v46  ;;  %1404 = vmatpush.msrb.mxu0 %v1182_v32  ;;  %1344 = vmatpush.msra.mxu1 %v7623_v26  ;;  %v7640_v32 = vld [vmem:[#allocation10 + $0x4b8] sm:$0xff] }
 0x10b   :  { %1455 = vmatpush.msrb.mxu2 %v7448_v45  ;;  %v795_v57 = vpop.f32.mrf.mxu3  ;;  %v7621_v58 = vpop.f32.mrf.mxu0  ;;  %v1176_v45 = vld [vmem:[#allocation10 + $0x1f0] sm:$0xff]  ;;  %1386 = vmatpush.msra.mxu3 %v7640_v32 }
 0x10c   :  { %9376 = vst [vmem:[#allocation62_spill] sm:$0xff] %v7621_v58  ;;  %v796_v6 = vadd.f32 %v795_v57, %v776_v18  ;;  %1405 = vmatpush.msrb.mxu0 %v1176_v45  ;;  %1345 = vmatpush.msra.mxu1 %v7630_v61  ;;  %v7638_v57 = vld [vmem:[#allocation10 + $0x4b0] sm:$0xff]  ;;  %v7645_v45 = vperm.slane %v7608_v11, 1 }
 0x10e   :  { %v999_v46 = vadd.f32 %v796_v6, %v270_v52  ;;  %v7634_v4 = vpop.f32.mrf.mxu1  ;;  %1406 = vmatpush.msrb.mxu0 %v1170_v35  ;;  %1346 = vmatpush.msra.mxu1 %v7638_v57  ;;  %v1164_v6 = vld [vmem:[#allocation10 + $0x190] sm:$0xff]  ;;  %v1158_v35 = vld [vmem:[#allocation10 + $0x160] sm:$0xff] }
 0x10f   :  { %9377 = vst [vmem:[#allocation63_spill] sm:$0xff] %v7634_v4  ;;  %v1291_v4 = vld [vmem:[#allocation10 + $0x588] sm:$0xff] }
 0x110   :  { %v6479_v18 = vmul.f32 -1.442695, %v999_v46  ;;  %1407 = vmatpush.msrb.mxu0 %v1164_v6  ;;  %v7649_v46 = vld [vmem:[#allocation10 + $0x488] sm:$0xff]  ;;  %1347 = vmatpush.msra.mxu1 %v7647_v17 }
 0x111   :  { %v815_v52 = vpop.f32.mrf.mxu2  ;;  %1387 = vmatpush.msra.mxu3 %v7649_v46 }
 0x112   :  { %6586 = vpow2.f32 %v6479_v18  ;;  %v816_v0 = vadd.f32 %v815_v52, %v747_v5  ;;  %1408 = vmatpush.msrb.mxu0 %v1158_v35  ;;  %1348 = vmatpush.msra.mxu1 %v7653_v43  ;;  %v1152_v5 = vld [vmem:[#allocation10 + $0x130] sm:$0xff]  ;;  %v311_v18 = vadd.f32 %v7479_v34, %v7645_v45  ;;  %v7665_v35 = vld [vmem:[#allocation10 + $0x428] sm:$0xff] }
 0x113   :  { %1388 = vmatpush.msra.mxu3 %v7655_v24 }
 0x114   :  { %1409 = vmatpush.msrb.mxu0 %v1152_v5  ;;  %1349 = vmatpush.msra.mxu1 %v7663_v7 }
 0x115   :  { %v835_v9 = vpop.f32.mrf.mxu3  ;;  %1389 = vmatpush.msra.mxu3 %v7665_v35 }
 0x116   :  { %v7661_v52 = vpop.f32.mrf.mxu0  ;;  %v836_v6 = vadd.f32 %v835_v9, %v816_v0  ;;  %1410 = vmatpush.msrb.mxu0 %v1146_v29  ;;  %1350 = vmatpush.msra.mxu1 %v7669_v51  ;;  %v1140_v0 = vld [vmem:[#allocation10 + $0xd0] sm:$0xff] }
 0x117   :  { %9378 = vst [vmem:[#allocation64_spill] sm:$0xff] %v7661_v52  ;;  %1390 = vmatpush.msra.mxu3 %v7671_v20  ;;  %v7686_v29 = vld [vmem:[#allocation10 + $0x390] sm:$0xff] }
 0x118   :  { %v6587_v50 = vpop.eup %6586  ;;  %v1000_v21 = vadd.f32 %v836_v6, %v311_v18  ;;  %1411 = vmatpush.msrb.mxu0 %v1140_v0  ;;  %1351 = vmatpush.msra.mxu1 %v7679_v15  ;;  %v7688_v18 = vld [vmem:[#allocation10 + $0x398] sm:$0xff]  ;;  %v7692_v6 = vld [vmem:[#allocation10 + $0x360] sm:$0xff]  ;;  %v7694_v0 = vld [vmem:[#allocation10 + $0x368] sm:$0xff] }
 0x119   :  { %v7673_v34 = vadd.f32 1.0, %v6587_v50  ;;  %v7675_v9 = vpop.f32.mrf.mxu1  ;;  %1391 = vmatpush.msra.mxu3 %v7681_v44  ;;  %v1134_v50 = vld [vmem:[#allocation10 + $0xa0] sm:$0xff] }
 0x11a   :  { %9379 = vst [vmem:[#allocation65_spill] sm:$0xff] %v7675_v9  ;;  %v6480_v5 = vmul.f32 -1.442695, %v1000_v21  ;;  %1412 = vmatpush.msrb.mxu0 %v1134_v50  ;;  %1352 = vmatpush.msra.mxu1 %v7686_v29  ;;  %v1128_v21 = vld [vmem:[#allocation10 + $0x70] sm:$0xff] }
 0x11b   :  { %6588 = vrcp.f32 %v7673_v34  ;;  %1392 = vmatpush.msra.mxu3 %v7688_v18  ;;  %v7700_v50 = vld [vmem:[#allocation10 + $0x330] sm:$0xff]  ;;  %v1020_v27 = vand.u32 2147483648, %v7673_v34  ;;  %vm1014_vm5 = vweird.f32 %v7673_v34 }
 0x11c   :  { %6590 = vpow2.f32 %v6480_v5  ;;  %1413 = vmatpush.msrb.mxu0 %v1128_v21  ;;  %1353 = vmatpush.msra.mxu1 %v7692_v6  ;;  %v1122_v5 = vld [vmem:[#allocation10 + $0x40] sm:$0xff]  ;;  %v1116_v21 = vld [vmem:[#allocation10 + $0x10] sm:$0xff] }
 0x11d   :  { %1393 = vmatpush.msra.mxu3 %v7694_v0  ;;  %v1021_v52 = vor.u32 1.1754944e-38, %v1020_v27  ;;  %v1272_v27 = vld [vmem:[#allocation10 + $0x4f0] sm:$0xff] }
 0x11e   :  { %1414 = vmatpush.msrb.mxu0 %v1122_v5  ;;  %1354 = vmatpush.msra.mxu1 %v7700_v50 }
 0x11f   :  { %v7696_v62 = vpop.f32.mrf.mxu0  ;;  %1394 = vmatpush.msra.mxu3 %v7702_v42 }
 0x120   :  { %1415 = vmatpush.msrb.mxu0 %v1116_v21  ;;  %1355 = vmatpush.msra.mxu1 %v7709_v54  ;;  %v7724_v21 = vld [vmem:[#allocation10 + $0x5b0] sm:$0xff] }
 0x121   :  { %v6589_v38 = vpop.eup %6588  ;;  %1395 = vmatpush.msra.mxu3 %v7711_v55  ;;  %9381 = vst [vmem:[#allocation67_spill] sm:$0xff] %v7724_v21 }
 0x122   :  { %v6591_v13 = vpop.eup %6590  ;;  %v7706_v8 = vpop.f32.mrf.mxu1  ;;  %v1010_v2 = vmul.f32 %v6589_v38, %v7673_v34  ;;  %1420 = vmatpush.msrb.mxu1 %v7717_v48  ;;  %vm1015_vm4 = vweird.f32 %v6589_v38 }
 0x123   :  { %v7713_v5 = vadd.f32 1.0, %v6591_v13  ;;  %1460 = vmatpush.msrb.mxu3 %v7719_v40  ;;  %v748_v13 = vperm.slane %v7605_v63, 2  ;;  %vm7734_vm6 = vmor %vm1014_vm5, %vm1015_vm4 }
 0x124   :  { %v1011_v23 = vsub.f32 1.0, %v1010_v2  ;;  %1421 = vmatpush.msrb.mxu1 %v7724_v21  ;;  %v1018_v2 = vand.u32 2147483647, %v7673_v34  ;;  %v1279_v34 = vld [vmem:[#allocation10 + $0x528] sm:$0xff] }
 0x125   :  { %6592 = vrcp.f32 %v7713_v5  ;;  %1461 = vmatpush.msrb.mxu3 %v7726_v49  ;;  %vm1029_vm9 = vweird.f32 %v7713_v5 }
 0x126   :  { %v1012_v47 = vmul.f32 %v6589_v38, %v1011_v23  ;;  %1422 = vmatpush.msrb.mxu1 %v1290_v19  ;;  %v1284_v23 = vld [vmem:[#allocation10 + $0x550] sm:$0xff]  ;;  %v7742_v19 = vperm.slane %v7608_v11, 2  ;;  %vm1019_vm7 = vcmp.eq.f32.partialorder %v1018_v2, 8.507059e+37  ;;  %v7748_v2 = vperm.slane %v7608_v11, 3 }
 0x127   :  { %1462 = vmatpush.msrb.mxu3 %v1291_v4  ;;  %v1278_v4 = vld [vmem:[#allocation10 + $0x520] sm:$0xff] }
 0x128   :  { %v1013_v58 = vadd.f32 %v6589_v38, %v1012_v47  ;;  %1423 = vmatpush.msrb.mxu1 %v1284_v23  ;;  %9385 = vst [vmem:[#allocation69_spill] sm:$0xff] %v7742_v19  ;;  %v1035_v23 = vand.u32 2147483648, %v7713_v5 }
 0x129   :  { %v855_v36 = vpop.f32.mrf.mxu0  ;;  %1463 = vmatpush.msrb.mxu3 %v1285_v31  ;;  %v352_v31 = vadd.f32 %v7513_v12, %v7742_v19  ;;  %v414_v12 = vadd.f32 %v7601_v59, %v7748_v2  ;;  %v7763_v59 = vld [vmem:[#allocation10 + $0x460] sm:$0xff] }
 0x12a   :  { %v856_v39 = vadd.f32 %v855_v36, %v748_v13  ;;  %v1017_v9 = vsel %vm7734_vm6, %v6589_v38, %v1013_v58  ;;  %1424 = vmatpush.msrb.mxu1 %v1278_v4 }
 0x12b   :  { %v6593_v47 = vpop.eup %6592  ;;  %v1022_v21 = vsel %vm1019_vm7, %v1021_v52, %v1017_v9  ;;  %1464 = vmatpush.msrb.mxu3 %v1279_v34  ;;  %v1266_v52 = vld [vmem:[#allocation10 + $0x4c0] sm:$0xff]  ;;  %v1267_v9 = vld [vmem:[#allocation10 + $0x4c8] sm:$0xff] }
 0x12c   :  { %v1025_v30 = vmul.f32 %v6593_v47, %v7713_v5  ;;  %v875_v49 = vpop.f32.mrf.mxu1  ;;  %1425 = vmatpush.msrb.mxu1 %v1272_v27  ;;  %vm1030_vm8 = vweird.f32 %v6593_v47  ;;  %v7757_v27 = vld [vmem:[#allocation10 + $0x498] sm:$0xff] }
 0x12d   :  { %v876_v36 = vadd.f32 %v875_v49, %v856_v39  ;;  %v895_v38 = vpop.f32.mrf.mxu2  ;;  %1465 = vmatpush.msrb.mxu3 %v1273_v14  ;;  %v1033_v39 = vand.u32 2147483647, %v7713_v5  ;;  %vm1031_vm10 = vmor %vm1029_vm9, %vm1030_vm8 }
 0x12e   :  { %v1026_v58 = vsub.f32 1.0, %v1025_v30  ;;  %v896_v13 = vadd.f32 %v895_v38, %v749_v33  ;;  %v750_v33 = vperm.slane %v7605_v63, 4  ;;  %1426 = vmatpush.msrb.mxu1 %v1266_v52  ;;  %v7755_v38 = vld [vmem:[#allocation10 + $0x490] sm:$0xff] }
 0x12f   :  { %v1039_v40 = vmul.f32 %v1022_v21, %v876_v36  ;;  %1466 = vmatpush.msrb.mxu3 %v1267_v9  ;;  %v1036_v36 = vor.u32 1.1754944e-38, %v1035_v23  ;;  %vm1034_vm11 = vcmp.eq.f32.partialorder %v1033_v39, 8.507059e+37  ;;  %v1243_v39 = vld [vmem:[#allocation10 + $0x408] sm:$0xff] }
 0x130   :  { %v1027_v4 = vmul.f32 %v6593_v47, %v1026_v58  ;;  %v915_v49 = vpop.f32.mrf.mxu3  ;;  %1427 = vmatpush.msrb.mxu1 %v7755_v38 }
 0x131   :  { %v1040_v30 = vadd.f32 %v1039_v40, %v352_v31  ;;  %v916_v34 = vadd.f32 %v915_v49, %v896_v13  ;;  %1467 = vmatpush.msrb.mxu3 %v7757_v27  ;;  %v7765_v40 = vld [vmem:[#allocation10 + $0x468] sm:$0xff]  ;;  %v7768_v13 = vperm.slane %v7608_v11, 4  ;;  %v1249_v49 = vld [vmem:[#allocation10 + $0x438] sm:$0xff] }
 0x132   :  { %v1028_v21 = vadd.f32 %v6593_v47, %v1027_v4  ;;  %9386 = vst [vmem:[#allocation70_spill] sm:$0xff] %v7765_v40  ;;  %1428 = vmatpush.msrb.mxu1 %v7763_v59  ;;  %v1248_v4 = vld [vmem:[#allocation10 + $0x430] sm:$0xff] }
 0x133   :  { %6594 = vtanh.f32 %v1040_v30  ;;  %v1053_v14 = vadd.f32 %v916_v34, %v414_v12  ;;  %v935_v58 = vpop.f32.mrf.mxu0  ;;  %1468 = vmatpush.msrb.mxu3 %v7765_v40  ;;  %v455_v12 = vadd.f32 %v7696_v62, %v7768_v13  ;;  %v1230_v62 = vld [vmem:[#allocation10 + $0x3a0] sm:$0xff] }
 0x134   :  { %v1032_v31 = vsel %vm1031_vm10, %v6593_v47, %v1028_v21  ;;  %v936_v5 = vadd.f32 %v935_v58, %v750_v33  ;;  %1429 = vmatpush.msrb.mxu1 %v1248_v4  ;;  %v1242_v47 = vld [vmem:[#allocation10 + $0x400] sm:$0xff]  ;;  %v7774_v21 = vpop.permute.xlu0 %1048  ;;  %v1237_v58 = vld [vmem:[#allocation10 + $0x3d8] sm:$0xff] }
 0x135   :  { %v1037_v52 = vsel %vm1034_vm11, %v1036_v36, %v1032_v31  ;;  %v6481_v9 = vmul.f32 -1.442695, %v1053_v14  ;;  %v955_v23 = vpop.f32.mrf.mxu1  ;;  %1469 = vmatpush.msrb.mxu3 %v1249_v49  ;;  %9387 = vst [vmem:[#allocation71_spill] sm:$0xff] %v7774_v21  ;;  %v1236_v14 = vld [vmem:[#allocation10 + $0x3d0] sm:$0xff]  ;;  %vm1050_vm12 = vcmp.eq.s32.totalorder %v7774_v21, 1  ;;  %v8598_v21 = vld [vmem:[#allocation13 + $0x58] sm:$0xff] }
 0x136   :  { %v1042_v30 = vsub.f32 1.0, %v1037_v52  ;;  %v956_v34 = vadd.f32 %v955_v23, %v936_v5  ;;  %1430 = vmatpush.msrb.mxu1 %v1242_v47  ;;  %v1044_v19 = vmul.f32 0.0, %v1037_v52  ;;  %v1231_v5 = vld [vmem:[#allocation10 + $0x3a8] sm:$0xff]  ;;  %v1208_v23 = vld [vmem:[#allocation10 + $0x2f0] sm:$0xff]  ;;  %v1202_v52 = vld [vmem:[#allocation10 + $0x2c0] sm:$0xff] }
 0x137   :  { %6596 = vpow2.f32 %v6481_v9  ;;  %1470 = vmatpush.msrb.mxu3 %v1243_v39  ;;  %v1224_v49 = vld [vmem:[#allocation10 + $0x370] sm:$0xff]  ;;  %v1213_v39 = vld [vmem:[#allocation10 + $0x318] sm:$0xff] }
 0x138   :  { %v1054_v33 = vadd.f32 %v956_v34, %v455_v12  ;;  %1431 = vmatpush.msrb.mxu1 %v1236_v14  ;;  %v1225_v12 = vld [vmem:[#allocation10 + $0x378] sm:$0xff]  ;;  %v1212_v47 = vld [vmem:[#allocation10 + $0x310] sm:$0xff] }
 0x139   :  { %v6595_v36 = vpop.eup %6594  ;;  %1471 = vmatpush.msrb.mxu3 %v1237_v58  ;;  %v1178_v58 = vld [vmem:[#allocation10 + $0x200] sm:$0xff] }
 0x13a   :  { %v1043_v31 = vmul.f32 %v6595_v36, %v1042_v30  ;;  %v6482_v40 = vmul.f32 -1.442695, %v1054_v33  ;;  %1432 = vmatpush.msrb.mxu1 %v1230_v62  ;;  %v1196_v30 = vld [vmem:[#allocation10 + $0x290] sm:$0xff]  ;;  %v1190_v36 = vld [vmem:[#allocation10 + $0x260] sm:$0xff] }
 0x13b   :  { %1472 = vmatpush.msrb.mxu3 %v1231_v5  ;;  %v1166_v62 = vld [vmem:[#allocation10 + $0x1a0] sm:$0xff]  ;;  %v1167_v5 = vld [vmem:[#allocation10 + $0x1a8] sm:$0xff] }
 0x13c   :  { %v7777_v9 = vadd.f32 %v1044_v19, %v1043_v31  ;;  %6598 = vpow2.f32 %v6482_v40  ;;  %v1218_v19 = vld [vmem:[#allocation10 + $0x340] sm:$0xff]  ;;  %v1219_v40 = vld [vmem:[#allocation10 + $0x348] sm:$0xff]  ;;  %1433 = vmatpush.msrb.mxu1 %v1224_v49  ;;  %v1172_v31 = vld [vmem:[#allocation10 + $0x1d0] sm:$0xff] }
 0x13d   :  { %v6597_v4 = vpop.eup %6596  ;;  %1473 = vmatpush.msrb.mxu3 %v1225_v12  ;;  %v751_v12 = vperm.slane %v7605_v63, 5 }
 0x13e   :  { %v7779_v34 = vadd.f32 1.0, %v6597_v4  ;;  %6483 = vmatmul.msk.f32.vlgmr.msra.gmra.mxu0 %vm1050_vm12, %v7777_v9  ;;  %6485 = vmatmul.msk.f32.vlgmr.msra.gmra.mxu2 %vm1050_vm12, %v7777_v9 }
 0x13f   :  { %1480 = vmatpush.msra.mxu0 %v1208_v23  ;;  %1520 = vmatpush.msra.mxu2 %v7451_v53  ;;  %v1184_v53 = vld [vmem:[#allocation10 + $0x230] sm:$0xff] }
 0x140   :  { %6600 = vrcp.f32 %v7779_v34  ;;  %1434 = vmatpush.msrb.mxu1 %v1218_v19  ;;  %1474 = vmatpush.msrb.mxu3 %v1219_v40  ;;  %v1074_v49 = vand.u32 2147483648, %v7779_v34  ;;  %v1161_v19 = vld [vmem:[#allocation10 + $0x178] sm:$0xff]  ;;  %vm1068_vm14 = vweird.f32 %v7779_v34 }
 0x141   :  { %1481 = vmatpush.msra.mxu0 %v1202_v52  ;;  %1521 = vmatpush.msra.mxu2 %v7456_v60  ;;  %v1072_v52 = vand.u32 2147483647, %v7779_v34 }
 0x142   :  { %v6599_v33 = vpop.eup %6598  ;;  %1435 = vmatpush.msrb.mxu1 %v1212_v47  ;;  %1475 = vmatpush.msrb.mxu3 %v1213_v39  ;;  %v1155_v47 = vld [vmem:[#allocation10 + $0x148] sm:$0xff] }
 0x143   :  { %v7790_v14 = vadd.f32 1.0, %v6599_v33  ;;  %1482 = vmatpush.msra.mxu0 %v1196_v30  ;;  %1522 = vmatpush.msra.mxu2 %v7461_v1  ;;  %vm1073_vm0 = vcmp.eq.f32.partialorder %v1072_v52, 8.507059e+37  ;;  %v1136_v52 = vld [vmem:[#allocation10 + $0xb0] sm:$0xff] }
 0x145   :  { %6602 = vrcp.f32 %v7790_v14  ;;  %1483 = vmatpush.msra.mxu0 %v1190_v36  ;;  %1523 = vmatpush.msra.mxu2 %v7464_v10  ;;  %v1075_v36 = vor.u32 1.1754944e-38, %v1074_v49  ;;  %vm1083_vm2 = vweird.f32 %v7790_v14 }
 0x146   :  { %v6601_v60 = vpop.eup %6600  ;;  %6487 = vmatmul.msk.f32.vlgmr.msrb.gmra.mxu0 %vm1050_vm12, %v7777_v9  ;;  %6489 = vmatmul.msk.f32.vlgmr.msrb.gmra.mxu2 %vm1050_vm12, %v7777_v9 }
 0x147   :  { %1484 = vmatpush.msra.mxu0 %v1184_v53  ;;  %1524 = vmatpush.msra.mxu2 %v7472_v22  ;;  %v1064_v1 = vmul.f32 %v6601_v60, %v7779_v34  ;;  %vm1069_vm13 = vweird.f32 %v6601_v60  ;;  %v7815_v34 = vperm.slane %v7608_v11, 5  ;;  %v1087_v11 = vand.u32 2147483647, %v7790_v14 }
 0x148   :  { %vm1070_vm15 = vmor %vm1068_vm14, %vm1069_vm13 }
 0x149   :  { %1485 = vmatpush.msra.mxu0 %v1178_v58  ;;  %1525 = vmatpush.msra.mxu2 %v7477_v28  ;;  %v1065_v10 = vsub.f32 1.0, %v1064_v1  ;;  %v1160_v28 = vld [vmem:[#allocation10 + $0x170] sm:$0xff]  ;;  %v1149_v1 = vld [vmem:[#allocation10 + $0x118] sm:$0xff]  ;;  %v496_v49 = vadd.f32 %v7706_v8, %v7815_v34  ;;  %vm1088_vm4 = vcmp.eq.f32.partialorder %v1087_v11, 8.507059e+37  ;;  %v1287_v11 = vld [vmem:[#allocation10 + $0x568] sm:$0xff] }
 0x14a   :  { %v1148_v58 = vld [vmem:[#allocation10 + $0x110] sm:$0xff] }
 0x14b   :  { %v7804_v23 = vpop.eup %6602  ;;  %1486 = vmatpush.msra.mxu0 %v1172_v31  ;;  %1526 = vmatpush.msra.mxu2 %v7484_v37  ;;  %v1066_v4 = vmul.f32 %v6601_v60, %v1065_v10  ;;  %v1154_v37 = vld [vmem:[#allocation10 + $0x140] sm:$0xff] }
 0x14c   :  { %v1079_v22 = vmul.f32 %v7804_v23, %v7790_v14  ;;  %vm1084_vm1 = vweird.f32 %v7804_v23 }
 0x14d   :  { %v1067_v40 = vadd.f32 %v6601_v60, %v1066_v4  ;;  %1487 = vmatpush.msra.mxu0 %v1166_v62  ;;  %1527 = vmatpush.msra.mxu2 %v1167_v5  ;;  %v1142_v5 = vld [vmem:[#allocation10 + $0xe0] sm:$0xff]  ;;  %v1143_v4 = vld [vmem:[#allocation10 + $0xe8] sm:$0xff]  ;;  %vm1085_vm3 = vmor %vm1083_vm2, %vm1084_vm1 }
 0x14e   :  { %v1080_v30 = vsub.f32 1.0, %v1079_v22  ;;  %v1089_v22 = vand.u32 2147483648, %v7790_v14  ;;  %v1119_v14 = vld [vmem:[#allocation10 + $0x28] sm:$0xff] }
 0x14f   :  { %v975_v39 = vpop.f32.mrf.mxu2  ;;  %v1071_v33 = vsel %vm1070_vm15, %v6601_v60, %v1067_v40  ;;  %1488 = vmatpush.msra.mxu0 %v1160_v28  ;;  %1528 = vmatpush.msra.mxu2 %v1161_v19  ;;  %v1137_v28 = vld [vmem:[#allocation10 + $0xb8] sm:$0xff]  ;;  %v1130_v40 = vld [vmem:[#allocation10 + $0x80] sm:$0xff] }
 0x150   :  { %v1081_v63 = vmul.f32 %v7804_v23, %v1080_v30  ;;  %v976_v53 = vadd.f32 %v975_v39, %v751_v12  ;;  %v1076_v10 = vsel %vm1073_vm0, %v1075_v36, %v1071_v33  ;;  %v1131_v30 = vld [vmem:[#allocation10 + $0x88] sm:$0xff]  ;;  %v1090_v8 = vor.u32 1.1754944e-38, %v1089_v22  ;;  %v1125_v39 = vld [vmem:[#allocation10 + $0x58] sm:$0xff]  ;;  %v1118_v36 = vld [vmem:[#allocation10 + $0x20] sm:$0xff] }
 0x151   :  { %v995_v31 = vpop.f32.mrf.mxu3  ;;  %1489 = vmatpush.msra.mxu0 %v1154_v37  ;;  %1529 = vmatpush.msra.mxu2 %v1155_v47  ;;  %v1124_v47 = vld [vmem:[#allocation10 + $0x50] sm:$0xff] }
 0x152   :  { %v996_v62 = vadd.f32 %v995_v31, %v976_v53  ;;  %v1082_v60 = vadd.f32 %v7804_v23, %v1081_v63  ;;  %v7833_v31 = vpop.permute.xlu0 %1102 }
 0x153   :  { %1490 = vmatpush.msra.mxu0 %v1148_v58  ;;  %1530 = vmatpush.msra.mxu2 %v1149_v1  ;;  %vm1104_vm5 = vcmp.eq.s32.totalorder %v7833_v31, 1 }
 0x154   :  { %v1093_v12 = vmul.f32 %v1076_v10, %v996_v62  ;;  %v1086_v37 = vsel %vm1085_vm3, %v7804_v23, %v1082_v60  ;;  %v1304_v10 = vld [vmem:[#allocation10 + $0x5f0] sm:$0xff]  ;;  %v1305_v62 = vld [vmem:[#allocation10 + $0x5f8] sm:$0xff]  ;;  %v6826_v60 = vld [vmem:[%s9275_s0] sm:$0xff] }
 0x155   :  { %1491 = vmatpush.msra.mxu0 %v1142_v5  ;;  %1531 = vmatpush.msra.mxu2 %v1143_v4  ;;  %v1091_v33 = vsel %vm1088_vm4, %v1090_v8, %v1086_v37  ;;  %v1298_v5 = vld [vmem:[#allocation10 + $0x5c0] sm:$0xff]  ;;  %v1299_v4 = vld [vmem:[#allocation10 + $0x5c8] sm:$0xff]  ;;  %vm1560_vm6 = vcmp.gt.s32.totalorder %v6826_v60, 1  ;;  %vm1614_vm7 = vcmp.gt.s32.totalorder %v6826_v60, 6  ;;  %vm2738_vm8 = vcmp.gt.s32.totalorder %v6826_v60, 4  ;;  %v1232_v60 = vld [vmem:[#allocation10 + $0x3b0] sm:$0xff] }
 0x156   :  { %v1094_v19 = vadd.f32 %v1093_v12, %v496_v49  ;;  %v1096_v63 = vsub.f32 1.0, %v1091_v33  ;;  %v1098_v58 = vmul.f32 0.0, %v1091_v33  ;;  %v9388_v49 = vmov 0   ;;  %v1292_v12 = vld [vmem:[#allocation10 + $0x590] sm:$0xff]  ;;  %v1274_v37 = vld [vmem:[#allocation10 + $0x500] sm:$0xff]  ;;  %v1275_v8 = vld [vmem:[#allocation10 + $0x508] sm:$0xff] }
 0x157   :  { %1492 = vmatpush.msra.mxu0 %v1136_v52  ;;  %1532 = vmatpush.msra.mxu2 %v1137_v28  ;;  %v1608_v22 = vsel %vm1560_vm6, 1, %v9388_v49  ;;  %v1293_v52 = vld [vmem:[#allocation10 + $0x598] sm:$0xff]  ;;  %v1286_v28 = vld [vmem:[#allocation10 + $0x560] sm:$0xff] }
 0x158   :  { %6604 = vtanh.f32 %v1094_v19  ;;  %1610 = vperm.xlu1 %6582, %v1608_v22   ;;  %v1280_v19 = vld [vmem:[#allocation10 + $0x530] sm:$0xff]  ;;  %v1262_v33 = vld [vmem:[#allocation10 + $0x4a0] sm:$0xff]  ;;  %v1233_v22 = vld [vmem:[#allocation10 + $0x3b8] sm:$0xff] }
 0x159   :  { %1493 = vmatpush.msra.mxu0 %v1130_v40  ;;  %1533 = vmatpush.msra.mxu2 %v1131_v30  ;;  %v1281_v40 = vld [vmem:[#allocation10 + $0x538] sm:$0xff]  ;;  %v1662_v30 = vsel %vm1614_vm7, 1, %v9388_v49 }
 0x15b   :  { %1494 = vmatpush.msra.mxu0 %v1124_v47  ;;  %1534 = vmatpush.msra.mxu2 %v1125_v39  ;;  %v1268_v47 = vld [vmem:[#allocation10 + $0x4d0] sm:$0xff]  ;;  %v1269_v39 = vld [vmem:[#allocation10 + $0x4d8] sm:$0xff] }
 0x15d   :  { %1495 = vmatpush.msra.mxu0 %v1118_v36  ;;  %1535 = vmatpush.msra.mxu2 %v1119_v14  ;;  %v1263_v36 = vld [vmem:[#allocation10 + $0x4a8] sm:$0xff]  ;;  %v1256_v14 = vld [vmem:[#allocation10 + $0x470] sm:$0xff] }
 0x15e   :  { %v6605_v53 = vpop.eup %6604  ;;  %6491 = vmatmul.msk.f32.vlgmr.msra.gmra.mxu0 %vm1050_vm12, %v7777_v9  ;;  %6493 = vmatmul.msk.f32.vlgmr.msra.gmra.mxu2 %vm1050_vm12, %v7777_v9 }
 0x15f   :  { %v1097_v23 = vmul.f32 %v6605_v53, %v1096_v63  ;;  %v1257_v63 = vld [vmem:[#allocation10 + $0x478] sm:$0xff]  ;;  %v2786_v53 = vsel %vm2738_vm8, 1, %v9388_v49 }
 0x160   :  { %1664 = vperm.xlu1 %6582, %v1662_v30   ;;  %v1766_v30 = vld [vmem:[#allocation10 + $0x2d0] sm:$0xff] }
 0x161   :  { %v7831_v1 = vadd.f32 %v1098_v58, %v1097_v23  ;;  %v1250_v23 = vld [vmem:[#allocation10 + $0x440] sm:$0xff]  ;;  %v1251_v58 = vld [vmem:[#allocation10 + $0x448] sm:$0xff]  ;;  %1882 = vmatpush.msrb.mxu0 %v1766_v30 }
 0x162   :  { %v1701_v30 = vld [vmem:[#allocation10 + $0xc8] sm:$0xff] }
 0x163   :  { %6484 = vmatmul.msk.f32.vlgmr.msra.gmra.mxu1 %vm1104_vm5, %v7831_v1  ;;  %6486 = vmatmul.msk.f32.vlgmr.msra.gmra.mxu3 %vm1104_vm5, %v7831_v1 }
 0x164   :  { %1500 = vmatpush.msra.mxu1 %v1304_v10  ;;  %1540 = vmatpush.msra.mxu3 %v1305_v62  ;;  %v1244_v10 = vld [vmem:[#allocation10 + $0x410] sm:$0xff]  ;;  %v1245_v62 = vld [vmem:[#allocation10 + $0x418] sm:$0xff] }
 0x166   :  { %1501 = vmatpush.msra.mxu1 %v1298_v5  ;;  %1541 = vmatpush.msra.mxu3 %v1299_v4  ;;  %v1238_v5 = vld [vmem:[#allocation10 + $0x3e0] sm:$0xff]  ;;  %v1239_v4 = vld [vmem:[#allocation10 + $0x3e8] sm:$0xff] }
 0x168   :  { %1502 = vmatpush.msra.mxu1 %v1292_v12  ;;  %1542 = vmatpush.msra.mxu3 %v1293_v52  ;;  %v1226_v12 = vld [vmem:[#allocation10 + $0x380] sm:$0xff]  ;;  %v1227_v52 = vld [vmem:[#allocation10 + $0x388] sm:$0xff] }
 0x169   :  { %2788 = vperm.xlu1 %6582, %v2786_v53   ;;  %v1743_v53 = vld [vmem:[#allocation10 + $0x218] sm:$0xff] }
 0x16a   :  { %1503 = vmatpush.msra.mxu1 %v1286_v28  ;;  %1543 = vmatpush.msra.mxu3 %v1287_v11  ;;  %v1220_v28 = vld [vmem:[#allocation10 + $0x350] sm:$0xff]  ;;  %v1221_v11 = vld [vmem:[#allocation10 + $0x358] sm:$0xff] }
 0x16b   :  { %6488 = vmatmul.msk.f32.vlgmr.msrb.gmra.mxu1 %vm1104_vm5, %v7831_v1  ;;  %6490 = vmatmul.msk.f32.vlgmr.msrb.gmra.mxu3 %vm1104_vm5, %v7831_v1 }
 0x16c   :  { %1504 = vmatpush.msra.mxu1 %v1280_v19  ;;  %1544 = vmatpush.msra.mxu3 %v1281_v40  ;;  %v1214_v19 = vld [vmem:[#allocation10 + $0x320] sm:$0xff]  ;;  %v1215_v40 = vld [vmem:[#allocation10 + $0x328] sm:$0xff] }
 0x16e   :  { %1505 = vmatpush.msra.mxu1 %v1274_v37  ;;  %1545 = vmatpush.msra.mxu3 %v1275_v8  ;;  %v1767_v37 = vld [vmem:[#allocation10 + $0x2d8] sm:$0xff]  ;;  %v1760_v8 = vld [vmem:[#allocation10 + $0x2a0] sm:$0xff] }
 0x16f   :  { %1922 = vmatpush.msrb.mxu2 %v1767_v37  ;;  %1883 = vmatpush.msrb.mxu0 %v1760_v8  ;;  %v1863_v37 = vld [vmem:[#allocation10 + $0x5d8] sm:$0xff]  ;;  %v1694_v8 = vld [vmem:[#allocation10 + $0x90] sm:$0xff] }
 0x170   :  { %1506 = vmatpush.msra.mxu1 %v1268_v47  ;;  %1546 = vmatpush.msra.mxu3 %v1269_v39  ;;  %v1761_v47 = vld [vmem:[#allocation10 + $0x2a8] sm:$0xff]  ;;  %v1754_v39 = vld [vmem:[#allocation10 + $0x270] sm:$0xff] }
 0x171   :  { %1923 = vmatpush.msrb.mxu2 %v1761_v47  ;;  %1884 = vmatpush.msrb.mxu0 %v1754_v39  ;;  %v1856_v47 = vld [vmem:[#allocation10 + $0x5a0] sm:$0xff]  ;;  %v1695_v39 = vld [vmem:[#allocation10 + $0x98] sm:$0xff] }
 0x172   :  { %1507 = vmatpush.msra.mxu1 %v1262_v33  ;;  %1547 = vmatpush.msra.mxu3 %v1263_v36  ;;  %v1755_v33 = vld [vmem:[#allocation10 + $0x278] sm:$0xff]  ;;  %v1748_v36 = vld [vmem:[#allocation10 + $0x240] sm:$0xff] }
 0x173   :  { %1924 = vmatpush.msrb.mxu2 %v1755_v33  ;;  %1885 = vmatpush.msrb.mxu0 %v1748_v36  ;;  %v1857_v33 = vld [vmem:[#allocation10 + $0x5a8] sm:$0xff]  ;;  %v1688_v36 = vld [vmem:[#allocation10 + $0x60] sm:$0xff] }
 0x174   :  { %1508 = vmatpush.msra.mxu1 %v1256_v14  ;;  %1548 = vmatpush.msra.mxu3 %v1257_v63  ;;  %v1749_v14 = vld [vmem:[#allocation10 + $0x248] sm:$0xff]  ;;  %v1742_v63 = vld [vmem:[#allocation10 + $0x210] sm:$0xff] }
 0x175   :  { %1925 = vmatpush.msrb.mxu2 %v1749_v14  ;;  %1886 = vmatpush.msrb.mxu0 %v1742_v63  ;;  %v1850_v14 = vld [vmem:[#allocation10 + $0x570] sm:$0xff]  ;;  %v1689_v63 = vld [vmem:[#allocation10 + $0x68] sm:$0xff] }
 0x176   :  { %1509 = vmatpush.msra.mxu1 %v1250_v23  ;;  %1549 = vmatpush.msra.mxu3 %v1251_v58  ;;  %v1736_v23 = vld [vmem:[#allocation10 + $0x1e0] sm:$0xff]  ;;  %v1737_v58 = vld [vmem:[#allocation10 + $0x1e8] sm:$0xff] }
 0x177   :  { %1926 = vmatpush.msrb.mxu2 %v1743_v53  ;;  %1887 = vmatpush.msrb.mxu0 %v1736_v23  ;;  %v1851_v53 = vld [vmem:[#allocation10 + $0x578] sm:$0xff]  ;;  %v1682_v23 = vld [vmem:[#allocation10 + $0x30] sm:$0xff] }
 0x178   :  { %1510 = vmatpush.msra.mxu1 %v1244_v10  ;;  %1550 = vmatpush.msra.mxu3 %v1245_v62  ;;  %v1730_v10 = vld [vmem:[#allocation10 + $0x1b0] sm:$0xff]  ;;  %v1731_v62 = vld [vmem:[#allocation10 + $0x1b8] sm:$0xff] }
 0x179   :  { %1927 = vmatpush.msrb.mxu2 %v1737_v58  ;;  %1888 = vmatpush.msrb.mxu0 %v1730_v10  ;;  %v1844_v58 = vld [vmem:[#allocation10 + $0x540] sm:$0xff]  ;;  %v1683_v10 = vld [vmem:[#allocation10 + $0x38] sm:$0xff] }
 0x17a   :  { %1511 = vmatpush.msra.mxu1 %v1238_v5  ;;  %1551 = vmatpush.msra.mxu3 %v1239_v4  ;;  %v1724_v5 = vld [vmem:[#allocation10 + $0x180] sm:$0xff]  ;;  %v1725_v4 = vld [vmem:[#allocation10 + $0x188] sm:$0xff] }
 0x17b   :  { %1928 = vmatpush.msrb.mxu2 %v1731_v62  ;;  %1889 = vmatpush.msrb.mxu0 %v1724_v5  ;;  %v1845_v62 = vld [vmem:[#allocation10 + $0x548] sm:$0xff]  ;;  %v1676_v5 = vld [vmem:[#allocation10] sm:$0xff] }
 0x17c   :  { %1512 = vmatpush.msra.mxu1 %v1232_v60  ;;  %1552 = vmatpush.msra.mxu3 %v1233_v22  ;;  %v1718_v60 = vld [vmem:[#allocation10 + $0x150] sm:$0xff]  ;;  %v1719_v22 = vld [vmem:[#allocation10 + $0x158] sm:$0xff] }
 0x17d   :  { %1929 = vmatpush.msrb.mxu2 %v1725_v4  ;;  %1890 = vmatpush.msrb.mxu0 %v1718_v60  ;;  %v1677_v4 = vld [vmem:[#allocation10 + $0x8] sm:$0xff]  ;;  %v1768_v60 = vld [vmem:[#allocation10 + $0x2e0] sm:$0xff] }
 0x17e   :  { %1513 = vmatpush.msra.mxu1 %v1226_v12  ;;  %1553 = vmatpush.msra.mxu3 %v1227_v52  ;;  %v1712_v12 = vld [vmem:[#allocation10 + $0x120] sm:$0xff]  ;;  %v1713_v52 = vld [vmem:[#allocation10 + $0x128] sm:$0xff] }
 0x17f   :  { %1930 = vmatpush.msrb.mxu2 %v1719_v22  ;;  %1891 = vmatpush.msrb.mxu0 %v1712_v12  ;;  %v1769_v22 = vld [vmem:[#allocation10 + $0x2e8] sm:$0xff]  ;;  %v1762_v12 = vld [vmem:[#allocation10 + $0x2b0] sm:$0xff] }
 0x180   :  { %1514 = vmatpush.msra.mxu1 %v1220_v28  ;;  %1554 = vmatpush.msra.mxu3 %v1221_v11  ;;  %v1706_v28 = vld [vmem:[#allocation10 + $0xf0] sm:$0xff]  ;;  %v1707_v11 = vld [vmem:[#allocation10 + $0xf8] sm:$0xff] }
 0x181   :  { %1931 = vmatpush.msrb.mxu2 %v1713_v52  ;;  %1892 = vmatpush.msrb.mxu0 %v1706_v28  ;;  %v1763_v52 = vld [vmem:[#allocation10 + $0x2b8] sm:$0xff]  ;;  %v1756_v28 = vld [vmem:[#allocation10 + $0x280] sm:$0xff] }
 0x182   :  { %1515 = vmatpush.msra.mxu1 %v1214_v19  ;;  %1555 = vmatpush.msra.mxu3 %v1215_v40  ;;  %v1700_v19 = vld [vmem:[#allocation10 + $0xc0] sm:$0xff]  ;;  %v1862_v40 = vld [vmem:[#allocation10 + $0x5d0] sm:$0xff] }
 0x183   :  { %6492 = vmatmul.msk.f32.vlgmr.msra.gmra.mxu1 %vm1104_vm5, %v7831_v1  ;;  %6494 = vmatmul.msk.f32.vlgmr.msra.gmra.mxu3 %vm1104_vm5, %v7831_v1 }
 0x184   :  { %1932 = vmatpush.msrb.mxu2 %v1707_v11  ;;  %1893 = vmatpush.msrb.mxu0 %v1700_v19  ;;  %v1757_v11 = vld [vmem:[#allocation10 + $0x288] sm:$0xff]  ;;  %v1751_v19 = vld [vmem:[#allocation10 + $0x258] sm:$0xff] }
 0x185   :  { %1902 = vmatpush.msrb.mxu1 %v1862_v40  ;;  %1942 = vmatpush.msrb.mxu3 %v1863_v37 }
 0x186   :  { %1933 = vmatpush.msrb.mxu2 %v1701_v30  ;;  %1894 = vmatpush.msrb.mxu0 %v1694_v8  ;;  %v1739_v30 = vld [vmem:[#allocation10 + $0x1f8] sm:$0xff]  ;;  %v1726_v8 = vld [vmem:[#allocation10 + $0x190] sm:$0xff] }
 0x187   :  { %1903 = vmatpush.msrb.mxu1 %v1856_v47  ;;  %1943 = vmatpush.msrb.mxu3 %v1857_v33  ;;  %v1727_v47 = vld [vmem:[#allocation10 + $0x198] sm:$0xff] }
 0x188   :  { %1934 = vmatpush.msrb.mxu2 %v1695_v39  ;;  %1895 = vmatpush.msrb.mxu0 %v1688_v36  ;;  %v1714_v36 = vld [vmem:[#allocation10 + $0x130] sm:$0xff] }
 0x189   :  { %1904 = vmatpush.msrb.mxu1 %v1850_v14  ;;  %1944 = vmatpush.msrb.mxu3 %v1851_v53  ;;  %v1709_v53 = vld [vmem:[#allocation10 + $0x108] sm:$0xff] }
 0x18a   :  { %1935 = vmatpush.msrb.mxu2 %v1689_v63  ;;  %1896 = vmatpush.msrb.mxu0 %v1682_v23  ;;  %v1702_v23 = vld [vmem:[#allocation10 + $0xd0] sm:$0xff] }
 0x18b   :  { %1905 = vmatpush.msrb.mxu1 %v1844_v58  ;;  %1945 = vmatpush.msrb.mxu3 %v1845_v62  ;;  %v1697_v62 = vld [vmem:[#allocation10 + $0xa8] sm:$0xff] }
 0x18c   :  { %1936 = vmatpush.msrb.mxu2 %v1683_v10  ;;  %1897 = vmatpush.msrb.mxu0 %v1676_v5  ;;  %v9390_v5 = vld [vmem:[#allocation67_spill] sm:$0xff] }
 0x18d   :  { %1906 = vmatpush.msrb.mxu1 %v7623_v26  ;;  %1946 = vmatpush.msrb.mxu3 %v7625_v41  ;;  %v7866_v26 = vld [vmem:[#allocation17 + $0x6] sm:$0x3f]  ;;  %v1750_v41 = vld [vmem:[#allocation10 + $0x250] sm:$0xff] }
 0x18e   :  { %1937 = vmatpush.msrb.mxu2 %v1677_v4  ;;  %1962 = vmatpush.msra.mxu0 %v1768_v60  ;;  %v1308_v40 = vperm.slane %v7866_v26, 0  ;;  %v1690_v4 = vld [vmem:[#allocation10 + $0x70] sm:$0xff]  ;;  %v1852_v60 = vld [vmem:[#allocation10 + $0x580] sm:$0xff] }
 0x18f   :  { %1907 = vmatpush.msrb.mxu1 %v7630_v61  ;;  %1947 = vmatpush.msrb.mxu3 %v7632_v16  ;;  %v1744_v61 = vld [vmem:[#allocation10 + $0x220] sm:$0xff]  ;;  %v1745_v16 = vld [vmem:[#allocation10 + $0x228] sm:$0xff] }
 0x190   :  { %2002 = vmatpush.msra.mxu2 %v1769_v22  ;;  %1963 = vmatpush.msra.mxu0 %v1762_v12  ;;  %v1691_v22 = vld [vmem:[#allocation10 + $0x78] sm:$0xff] }
 0x191   :  { %1908 = vmatpush.msrb.mxu1 %v7638_v57  ;;  %1948 = vmatpush.msrb.mxu3 %v7640_v32  ;;  %v1738_v32 = vld [vmem:[#allocation10 + $0x1f0] sm:$0xff] }
 0x192   :  { %2003 = vmatpush.msra.mxu2 %v1763_v52  ;;  %1964 = vmatpush.msra.mxu0 %v1756_v28  ;;  %v1853_v52 = vld [vmem:[#allocation10 + $0x588] sm:$0xff] }
 0x193   :  { %1909 = vmatpush.msrb.mxu1 %v7647_v17  ;;  %1949 = vmatpush.msrb.mxu3 %v7649_v46  ;;  %v1732_v17 = vld [vmem:[#allocation10 + $0x1c0] sm:$0xff]  ;;  %v1733_v46 = vld [vmem:[#allocation10 + $0x1c8] sm:$0xff] }
 0x194   :  { %2004 = vmatpush.msra.mxu2 %v1757_v11  ;;  %1965 = vmatpush.msra.mxu0 %v1750_v41  ;;  %v1684_v11 = vld [vmem:[#allocation10 + $0x40] sm:$0xff]  ;;  %v1846_v41 = vld [vmem:[#allocation10 + $0x550] sm:$0xff] }
 0x195   :  { %1910 = vmatpush.msrb.mxu1 %v7653_v43  ;;  %1950 = vmatpush.msrb.mxu3 %v7655_v24 }
 0x196   :  { %2005 = vmatpush.msra.mxu2 %v1751_v19  ;;  %1966 = vmatpush.msra.mxu0 %v1744_v61  ;;  %v1685_v19 = vld [vmem:[#allocation10 + $0x48] sm:$0xff] }
 0x197   :  { %1911 = vmatpush.msrb.mxu1 %v7663_v7  ;;  %1951 = vmatpush.msrb.mxu3 %v7665_v35  ;;  %v273_v7 = vadd.f32 %v7494_v56, %v7615_v25  ;;  %v1309_v35 = vperm.slane %v7866_v26, 1  ;;  %v1715_v56 = vld [vmem:[#allocation10 + $0x138] sm:$0xff]  ;;  %v9392_v61 = vld [vmem:[#allocation56_spill] sm:$0xff] }
 0x198   :  { %2006 = vmatpush.msra.mxu2 %v1745_v16  ;;  %1967 = vmatpush.msra.mxu0 %v1738_v32  ;;  %v411_v16 = vadd.f32 %v9392_v61, %v7748_v2  ;;  %v1678_v32 = vld [vmem:[#allocation10 + $0x10] sm:$0xff] }
 0x199   :  { %1912 = vmatpush.msrb.mxu1 %v7669_v51  ;;  %1952 = vmatpush.msrb.mxu3 %v7671_v20  ;;  %v1720_v51 = vld [vmem:[#allocation10 + $0x160] sm:$0xff]  ;;  %v1721_v20 = vld [vmem:[#allocation10 + $0x168] sm:$0xff] }
 0x19a   :  { %2007 = vmatpush.msra.mxu2 %v1739_v30  ;;  %1968 = vmatpush.msra.mxu0 %v1732_v17  ;;  %v1840_v30 = vld [vmem:[#allocation10 + $0x520] sm:$0xff]  ;;  %v1679_v17 = vld [vmem:[#allocation10 + $0x18] sm:$0xff] }
 0x19b   :  { %1913 = vmatpush.msrb.mxu1 %v7679_v15  ;;  %1953 = vmatpush.msrb.mxu3 %v7681_v44  ;;  %v1708_v15 = vld [vmem:[#allocation10 + $0x100] sm:$0xff] }
 0x19c   :  { %2008 = vmatpush.msra.mxu2 %v1733_v46  ;;  %1969 = vmatpush.msra.mxu0 %v1726_v8 }
 0x19d   :  { %1914 = vmatpush.msrb.mxu1 %v7686_v29  ;;  %1954 = vmatpush.msrb.mxu3 %v7688_v18  ;;  %v314_v29 = vadd.f32 %v7500_v3, %v7645_v45  ;;  %v1696_v3 = vld [vmem:[#allocation10 + $0xa0] sm:$0xff] }
 0x19e   :  { %2009 = vmatpush.msra.mxu2 %v1727_v47  ;;  %1970 = vmatpush.msra.mxu0 %v1720_v51  ;;  %v1829_v51 = vld [vmem:[#allocation10 + $0x4c8] sm:$0xff] }
 0x19f   :  { %1915 = vmatpush.msrb.mxu1 %v7692_v6  ;;  %1955 = vmatpush.msrb.mxu3 %v7694_v0  ;;  %v1703_v6 = vld [vmem:[#allocation10 + $0xd8] sm:$0xff]  ;;  %v1311_v0 = vperm.slane %v7866_v26, 3 }
 0x1a0   :  { %2010 = vmatpush.msra.mxu2 %v1721_v20  ;;  %1971 = vmatpush.msra.mxu0 %v1714_v36 }
 0x1a1   :  { %1916 = vmatpush.msrb.mxu1 %v7700_v50  ;;  %1956 = vmatpush.msrb.mxu3 %v7702_v42  ;;  %v9389_v42 = vld [vmem:[#allocation66_spill] sm:$0xff] }
 0x1a2   :  { %2011 = vmatpush.msra.mxu2 %v1715_v56  ;;  %1972 = vmatpush.msra.mxu0 %v1708_v15  ;;  %v1310_v56 = vperm.slane %v7866_v26, 2 }
 0x1a3   :  { %1917 = vmatpush.msrb.mxu1 %v7709_v54  ;;  %1957 = vmatpush.msrb.mxu3 %v7711_v55  ;;  %v9391_v55 = vld [vmem:[#allocation68_spill] sm:$0xff] }
 0x1a4   :  { %2012 = vmatpush.msra.mxu2 %v1709_v53  ;;  %1973 = vmatpush.msra.mxu0 %v1702_v23  ;;  %v9393_v23 = vld [vmem:[#allocation70_spill] sm:$0xff] }
 0x1a5   :  { %1982 = vmatpush.msra.mxu1 %v7717_v48  ;;  %2022 = vmatpush.msra.mxu3 %v9389_v42 }
 0x1a6   :  { %2013 = vmatpush.msra.mxu2 %v1703_v6  ;;  %1974 = vmatpush.msra.mxu0 %v1696_v3  ;;  %v1811_v6 = vld [vmem:[#allocation10 + $0x438] sm:$0xff]  ;;  %v1804_v3 = vld [vmem:[#allocation10 + $0x400] sm:$0xff] }
 0x1a7   :  { %1983 = vmatpush.msra.mxu1 %v9390_v5  ;;  %2023 = vmatpush.msra.mxu3 %v9391_v55  ;;  %v9395_v55 = vld [vmem:[#allocation35_spill] sm:$0xff] }
 0x1a8   :  { %2014 = vmatpush.msra.mxu2 %v1697_v62  ;;  %1975 = vmatpush.msra.mxu0 %v1690_v4  ;;  %v1805_v62 = vld [vmem:[#allocation10 + $0x408] sm:$0xff] }
 0x1a9   :  { %1984 = vmatpush.msra.mxu1 %v1852_v60  ;;  %2024 = vmatpush.msra.mxu3 %v1853_v52 }
 0x1aa   :  { %2015 = vmatpush.msra.mxu2 %v1691_v22  ;;  %1976 = vmatpush.msra.mxu0 %v1684_v11  ;;  %v1798_v22 = vld [vmem:[#allocation10 + $0x3d0] sm:$0xff] }
 0x1ab   :  { %1985 = vmatpush.msra.mxu1 %v1846_v41 }
 0x1ac   :  { %2016 = vmatpush.msra.mxu2 %v1685_v19  ;;  %1977 = vmatpush.msra.mxu0 %v1678_v32  ;;  %v1793_v32 = vld [vmem:[#allocation10 + $0x3a8] sm:$0xff] }
 0x1ad   :  { %1986 = vmatpush.msra.mxu1 %v1840_v30 }
 0x1ae   :  { %2017 = vmatpush.msra.mxu2 %v1679_v17 }
 0x1bb   :  { %v1337_v57 = vpop.f32.mrf.mxu0 }
 0x1bc   :  { %v1338_v37 = vadd.f32 %v1337_v57, %v1308_v40  ;;  %v1847_v57 = vld [vmem:[#allocation10 + $0x558] sm:$0xff] }
 0x1bd   :  { %2025 = vmatpush.msra.mxu3 %v1847_v57  ;;  %v1792_v57 = vld [vmem:[#allocation10 + $0x3a0] sm:$0xff] }
 0x1c1   :  { %v1377_v43 = vpop.f32.mrf.mxu2 }
 0x1c2   :  { %v1378_v14 = vadd.f32 %v1377_v43, %v1309_v35  ;;  %v1834_v43 = vld [vmem:[#allocation10 + $0x4f0] sm:$0xff] }
 0x1c3   :  { %v1417_v47 = vpop.f32.mrf.mxu0  ;;  %1987 = vmatpush.msra.mxu1 %v1834_v43  ;;  %v1786_v43 = vld [vmem:[#allocation10 + $0x370] sm:$0xff] }
 0x1c9   :  { %v1457_v10 = vpop.f32.mrf.mxu2 }
 0x1ca   :  { %v1458_v54 = vadd.f32 %v1457_v10, %v1311_v0 }
 0x1db   :  { %v1497_v53 = vpop.f32.mrf.mxu0 }
 0x1e0   :  { %v1357_v24 = vpop.f32.mrf.mxu1 }
 0x1e1   :  { %v1358_v39 = vadd.f32 %v1357_v24, %v1338_v37  ;;  %v1841_v37 = vld [vmem:[#allocation10 + $0x528] sm:$0xff]  ;;  %v1835_v24 = vld [vmem:[#allocation10 + $0x4f8] sm:$0xff] }
 0x1e2   :  { %2026 = vmatpush.msra.mxu3 %v1841_v37 }
 0x1e3   :  { %v1561_v33 = vadd.f32 %v1358_v39, %v273_v7  ;;  %v1828_v39 = vld [vmem:[#allocation10 + $0x4c0] sm:$0xff] }
 0x1e4   :  { %2027 = vmatpush.msra.mxu3 %v1835_v24  ;;  %1988 = vmatpush.msra.mxu1 %v1828_v39  ;;  %v1787_v24 = vld [vmem:[#allocation10 + $0x378] sm:$0xff] }
 0x1e5   :  { %v6495_v63 = vmul.f32 -1.442695, %v1561_v33 }
 0x1e6   :  { %v1397_v44 = vpop.f32.mrf.mxu3  ;;  %2028 = vmatpush.msra.mxu3 %v1829_v51  ;;  %1989 = vmatpush.msra.mxu1 %v7755_v38  ;;  %v1810_v38 = vld [vmem:[#allocation10 + $0x430] sm:$0xff]  ;;  %v1780_v51 = vld [vmem:[#allocation10 + $0x340] sm:$0xff] }
 0x1e7   :  { %6606 = vpow2.f32 %v6495_v63  ;;  %v1398_v18 = vadd.f32 %v1397_v44, %v1378_v14  ;;  %v1312_v63 = vperm.slane %v7866_v26, 4 }
 0x1e8   :  { %v1437_v36 = vpop.f32.mrf.mxu1  ;;  %2029 = vmatpush.msra.mxu3 %v7757_v27  ;;  %1990 = vmatpush.msra.mxu1 %v7763_v59  ;;  %v1418_v27 = vadd.f32 %v1417_v47, %v1310_v56 }
 0x1e9   :  { %v1562_v58 = vadd.f32 %v1398_v18, %v314_v29 }
 0x1ea   :  { %2030 = vmatpush.msra.mxu3 %v9393_v23  ;;  %1991 = vmatpush.msra.mxu1 %v1810_v38  ;;  %v1438_v5 = vadd.f32 %v1437_v36, %v1418_v27  ;;  %v1313_v36 = vperm.slane %v7866_v26, 5 }
 0x1eb   :  { %v6496_v50 = vmul.f32 -1.442695, %v1562_v58 }
 0x1ec   :  { %2031 = vmatpush.msra.mxu3 %v1811_v6  ;;  %1992 = vmatpush.msra.mxu1 %v1804_v3 }
 0x1ed   :  { %v6607_v12 = vpop.eup %6606  ;;  %6608 = vpow2.f32 %v6496_v50  ;;  %v1498_v50 = vadd.f32 %v1497_v53, %v1312_v63  ;;  %v1775_v63 = vld [vmem:[#allocation10 + $0x318] sm:$0xff] }
 0x1ee   :  { %v7897_v48 = vadd.f32 1.0, %v6607_v12  ;;  %v1477_v28 = vpop.f32.mrf.mxu3  ;;  %2032 = vmatpush.msra.mxu3 %v1805_v62  ;;  %v1799_v12 = vld [vmem:[#allocation10 + $0x3d8] sm:$0xff]  ;;  %1993 = vmatpush.msra.mxu1 %v1798_v22 }
 0x1ef   :  { %v1478_v40 = vadd.f32 %v1477_v28, %v1458_v54  ;;  %v9394_v54 = vld [vmem:[#allocation69_spill] sm:$0xff] }
 0x1f0   :  { %6610 = vrcp.f32 %v7897_v48  ;;  %v1582_v44 = vand.u32 2147483648, %v7897_v48  ;;  %v1580_v18 = vand.u32 2147483647, %v7897_v48  ;;  %vm1576_vm10 = vweird.f32 %v7897_v48  ;;  %2033 = vmatpush.msra.mxu3 %v1799_v12  ;;  %1994 = vmatpush.msra.mxu1 %v1792_v57 }
 0x1f1   :  { %v1615_v46 = vadd.f32 %v1478_v40, %v411_v16  ;;  %v355_v52 = vadd.f32 %v9395_v55, %v9394_v54  ;;  %v1770_v55 = vld [vmem:[#allocation10 + $0x2f0] sm:$0xff] }
 0x1f2   :  { %v1583_v42 = vor.u32 1.1754944e-38, %v1582_v44  ;;  %vm1581_vm13 = vcmp.eq.f32.partialorder %v1580_v18, 8.507059e+37  ;;  %2034 = vmatpush.msra.mxu3 %v1793_v32  ;;  %1995 = vmatpush.msra.mxu1 %v1786_v43  ;;  %v1537_v44 = vpop.f32.mrf.mxu2  ;;  %v1741_v43 = vld [vmem:[#allocation10 + $0x208] sm:$0xff] }
 0x1f3   :  { %v6609_v8 = vpop.eup %6608  ;;  %v6497_v7 = vmul.f32 -1.442695, %v1615_v46  ;;  %v1538_v6 = vadd.f32 %v1537_v44, %v1313_v36 }
 0x1f4   :  { %v7902_v35 = vadd.f32 1.0, %v6609_v8  ;;  %2035 = vmatpush.msra.mxu3 %v1787_v24  ;;  %1996 = vmatpush.msra.mxu1 %v1780_v51 }
 0x1f5   :  { %6612 = vpow2.f32 %v6497_v7 }
 0x1f6   :  { %v6611_v20 = vpop.eup %6610  ;;  %6614 = vrcp.f32 %v7902_v35  ;;  %v1597_v40 = vand.u32 2147483648, %v7902_v35  ;;  %v1595_v30 = vand.u32 2147483647, %v7902_v35  ;;  %vm1591_vm15 = vweird.f32 %v7902_v35 }
 0x1f7   :  { %v1572_v33 = vmul.f32 %v6611_v20, %v7897_v48  ;;  %vm1577_vm9 = vweird.f32 %v6611_v20  ;;  %v9396_v48 = vld [vmem:[#allocation64_spill] sm:$0xff] }
 0x1f8   :  { %vm1578_vm11 = vmor %vm1576_vm10, %vm1577_vm9  ;;  %v452_v28 = vadd.f32 %v9396_v48, %v7768_v13  ;;  %v1598_v39 = vor.u32 1.1754944e-38, %v1597_v40  ;;  %vm1596_vm1 = vcmp.eq.f32.partialorder %v1595_v30, 8.507059e+37  ;;  %v1753_v40 = vld [vmem:[#allocation10 + $0x268] sm:$0xff]  ;;  %v1746_v30 = vld [vmem:[#allocation10 + $0x230] sm:$0xff] }
 0x1f9   :  { %v1573_v14 = vsub.f32 1.0, %v1572_v33 }
 0x1fb   :  { %v6613_v15 = vpop.eup %6612  ;;  %v1574_v29 = vmul.f32 %v6611_v20, %v1573_v14 }
 0x1fc   :  { %v6615_v0 = vpop.eup %6614  ;;  %v7914_v58 = vadd.f32 1.0, %v6613_v15 }
 0x1fd   :  { %v1575_v10 = vadd.f32 %v6611_v20, %v1574_v29  ;;  %v1587_v59 = vmul.f32 %v6615_v0, %v7902_v35  ;;  %vm1592_vm14 = vweird.f32 %v6615_v0  ;;  %v1774_v35 = vld [vmem:[#allocation10 + $0x310] sm:$0xff] }
 0x1fe   :  { %6616 = vrcp.f32 %v7914_v58  ;;  %vm1593_vm0 = vmor %vm1591_vm15, %vm1592_vm14  ;;  %v1636_v15 = vand.u32 2147483648, %v7914_v58  ;;  %1997 = vmatpush.msra.mxu1 %v1774_v35  ;;  %v1634_v29 = vand.u32 2147483647, %v7914_v58  ;;  %vm1630_vm3 = vweird.f32 %v7914_v58  ;;  %v1723_v35 = vld [vmem:[#allocation10 + $0x178] sm:$0xff] }
 0x1ff   :  { %v1579_v4 = vsel %vm1578_vm11, %v6611_v20, %v1575_v10  ;;  %v1588_v60 = vsub.f32 1.0, %v1587_v59  ;;  %v1781_v20 = vld [vmem:[#allocation10 + $0x348] sm:$0xff]  ;;  %v7936_v10 = vpop.permute.xlu1 %1610 }
 0x200   :  { %v1584_v11 = vsel %vm1581_vm13, %v1583_v42, %v1579_v4  ;;  %v1517_v41 = vpop.f32.mrf.mxu1  ;;  %2036 = vmatpush.msra.mxu3 %v1781_v20  ;;  %v1637_v27 = vor.u32 1.1754944e-38, %v1636_v15  ;;  %9397 = vst [vmem:[#allocation66_spill] sm:$0xff] %v7936_v10  ;;  %vm1635_vm6 = vcmp.eq.f32.partialorder %v1634_v29, 8.507059e+37  ;;  %vm1612_vm7 = vcmp.eq.s32.totalorder %v7936_v10, 1  ;;  %v1728_v20 = vld [vmem:[#allocation10 + $0x1a0] sm:$0xff]  ;;  %v8610_v10 = vld [vmem:[#allocation13 + $0x28] sm:$0xff] }
 0x201   :  { %v1601_v19 = vmul.f32 %v1584_v11, %v1438_v5  ;;  %v1518_v61 = vadd.f32 %v1517_v41, %v1498_v50  ;;  %v1589_v16 = vmul.f32 %v6615_v0, %v1588_v60  ;;  %v1764_v11 = vld [vmem:[#allocation10 + $0x2c0] sm:$0xff]  ;;  %v1765_v41 = vld [vmem:[#allocation10 + $0x2c8] sm:$0xff] }
 0x202   :  { %2037 = vmatpush.msra.mxu3 %v1775_v63  ;;  %v1716_v15 = vld [vmem:[#allocation10 + $0x140] sm:$0xff] }
 0x203   :  { %v1602_v17 = vadd.f32 %v1601_v19, %v355_v52  ;;  %v1616_v46 = vadd.f32 %v1518_v61, %v452_v28  ;;  %v1590_v37 = vadd.f32 %v6615_v0, %v1589_v16  ;;  %v1771_v52 = vld [vmem:[#allocation10 + $0x2f8] sm:$0xff]  ;;  %v1758_v19 = vld [vmem:[#allocation10 + $0x290] sm:$0xff]  ;;  %v1752_v16 = vld [vmem:[#allocation10 + $0x260] sm:$0xff] }
 0x204   :  { %v6617_v8 = vpop.eup %6616  ;;  %v1759_v61 = vld [vmem:[#allocation10 + $0x298] sm:$0xff] }
 0x205   :  { %6618 = vtanh.f32 %v1602_v17  ;;  %v6498_v47 = vmul.f32 -1.442695, %v1616_v46  ;;  %v1626_v7 = vmul.f32 %v6617_v8, %v7914_v58  ;;  %v1594_v33 = vsel %vm1593_vm0, %v6615_v0, %v1590_v37  ;;  %v9398_v58 = vld [vmem:[#allocation65_spill] sm:$0xff]  ;;  %v1740_v37 = vld [vmem:[#allocation10 + $0x200] sm:$0xff] }
 0x206   :  { %v1599_v14 = vsel %vm1596_vm1, %v1598_v39, %v1594_v33  ;;  %vm1631_vm2 = vweird.f32 %v6617_v8  ;;  %v1557_v18 = vpop.f32.mrf.mxu3  ;;  %v1051_v0 = vsel %vm1050_vm12, %v7777_v9, 0.0  ;;  %v493_v22 = vadd.f32 %v9398_v58, %v7815_v34  ;;  %v1747_v17 = vld [vmem:[#allocation10 + $0x238] sm:$0xff]  ;;  %v1729_v33 = vld [vmem:[#allocation10 + $0x1a8] sm:$0xff] }
 0x207   :  { %6620 = vpow2.f32 %v6498_v47  ;;  %v1627_v56 = vsub.f32 1.0, %v1626_v7  ;;  %v1604_v23 = vsub.f32 1.0, %v1599_v14  ;;  %vm1632_vm4 = vmor %vm1630_vm3, %vm1631_vm2  ;;  %v1606_v3 = vmul.f32 %v1599_v14, %v1051_v0  ;;  %v1734_v7 = vld [vmem:[#allocation10 + $0x1d0] sm:$0xff]  ;;  %v1735_v39 = vld [vmem:[#allocation10 + $0x1d8] sm:$0xff] }
 0x208   :  { %v1558_v50 = vadd.f32 %v1557_v18, %v1538_v6  ;;  %v1722_v14 = vld [vmem:[#allocation10 + $0x170] sm:$0xff]  ;;  %v1105_v18 = vsel %vm1104_vm5, %v7831_v1, 0.0  ;;  %v1861_v58 = vld [vmem:[#allocation10 + $0x5c8] sm:$0xff] }
 0x209   :  { %v1628_v53 = vmul.f32 %v6617_v8, %v1627_v56  ;;  %v1710_v6 = vld [vmem:[#allocation10 + $0x110] sm:$0xff] }
 0x20b   :  { %v6619_v38 = vpop.eup %6618  ;;  %v1629_v26 = vadd.f32 %v6617_v8, %v1628_v53  ;;  %v1717_v53 = vld [vmem:[#allocation10 + $0x148] sm:$0xff] }
 0x20c   :  { %v1605_v59 = vmul.f32 %v6619_v38, %v1604_v23 }
 0x20d   :  { %v6621_v62 = vpop.eup %6620  ;;  %v1633_v42 = vsel %vm1632_vm4, %v6617_v8, %v1629_v26  ;;  %v1711_v26 = vld [vmem:[#allocation10 + $0x118] sm:$0xff] }
 0x20e   :  { %v1624_v5 = vadd.f32 1.0, %v6621_v62  ;;  %v1638_v4 = vsel %vm1635_vm6, %v1637_v27, %v1633_v42  ;;  %v1607_v60 = vadd.f32 %v1606_v3, %v1605_v59  ;;  %v1704_v59 = vld [vmem:[#allocation10 + $0xe0] sm:$0xff]  ;;  %v1866_v3 = vld [vmem:[#allocation10 + $0x5f0] sm:$0xff]  ;;  %v1867_v42 = vld [vmem:[#allocation10 + $0x5f8] sm:$0xff] }
 0x20f   :  { %v1655_v12 = vmul.f32 %v1638_v4, %v1558_v50  ;;  %v1705_v50 = vld [vmem:[#allocation10 + $0xe8] sm:$0xff]  ;;  %v1860_v4 = vld [vmem:[#allocation10 + $0x5c0] sm:$0xff] }
 0x210   :  { %6622 = vrcp.f32 %v1624_v5  ;;  %v7943_v48 = vsel %vm1612_vm7, %v1607_v60, %v1051_v0  ;;  %v1651_v24 = vand.u32 2147483648, %v1624_v5  ;;  %v1649_v47 = vand.u32 2147483647, %v1624_v5  ;;  %v7952_v0 = vpop.permute.xlu1 %1664  ;;  %v1699_v60 = vld [vmem:[#allocation10 + $0xb8] sm:$0xff] }
 0x211   :  { %v1656_v28 = vadd.f32 %v1655_v12, %v493_v22  ;;  %1898 = vmatmul.f32.vlgmr.msrb.gmra.mxu0 %v7943_v48  ;;  %1938 = vmatmul.f32.vlgmr.msrb.gmra.mxu2 %v7943_v48  ;;  %vm1645_vm9 = vweird.f32 %v1624_v5  ;;  %9399 = vst [vmem:[#allocation67_spill] sm:$0xff] %v7952_v0  ;;  %vm1666_vm13 = vcmp.eq.s32.totalorder %v7952_v0, 1  ;;  %v1692_v22 = vld [vmem:[#allocation10 + $0x80] sm:$0xff]  ;;  %v1854_v12 = vld [vmem:[#allocation10 + $0x590] sm:$0xff] }
 0x212   :  { %2042 = vmatpush.msrb.mxu0 %v1770_v55  ;;  %2082 = vmatpush.msrb.mxu2 %v1771_v52  ;;  %v1652_v36 = vor.u32 1.1754944e-38, %v1651_v24  ;;  %vm1650_vm11 = vcmp.eq.f32.partialorder %v1649_v47, 8.507059e+37  ;;  %v1693_v55 = vld [vmem:[#allocation10 + $0x88] sm:$0xff]  ;;  %v1855_v52 = vld [vmem:[#allocation10 + $0x598] sm:$0xff]  ;;  %v1824_v24 = vld [vmem:[#allocation10 + $0x4a0] sm:$0xff] }
 0x213   :  { %6624 = vtanh.f32 %v1656_v28  ;;  %v1686_v28 = vld [vmem:[#allocation10 + $0x50] sm:$0xff] }
 0x214   :  { %2043 = vmatpush.msrb.mxu0 %v1764_v11  ;;  %2083 = vmatpush.msrb.mxu2 %v1765_v41  ;;  %v1848_v11 = vld [vmem:[#allocation10 + $0x560] sm:$0xff]  ;;  %v1687_v41 = vld [vmem:[#allocation10 + $0x58] sm:$0xff]  ;;  %v1818_v47 = vld [vmem:[#allocation10 + $0x470] sm:$0xff] }
 0x216   :  { %v6623_v57 = vpop.eup %6622  ;;  %2044 = vmatpush.msrb.mxu0 %v1758_v19  ;;  %2084 = vmatpush.msrb.mxu2 %v1759_v61  ;;  %v1849_v19 = vld [vmem:[#allocation10 + $0x568] sm:$0xff]  ;;  %v1680_v61 = vld [vmem:[#allocation10 + $0x20] sm:$0xff] }
 0x217   :  { %v1641_v32 = vmul.f32 %v6623_v57, %v1624_v5  ;;  %vm1646_vm8 = vweird.f32 %v6623_v57  ;;  %v1698_v5 = vld [vmem:[#allocation10 + $0xb0] sm:$0xff] }
 0x218   :  { %2045 = vmatpush.msrb.mxu0 %v1752_v16  ;;  %2085 = vmatpush.msrb.mxu2 %v1753_v40  ;;  %vm1647_vm10 = vmor %vm1645_vm9, %vm1646_vm8  ;;  %v1842_v16 = vld [vmem:[#allocation10 + $0x530] sm:$0xff]  ;;  %v1681_v40 = vld [vmem:[#allocation10 + $0x28] sm:$0xff] }
 0x219   :  { %v1642_v46 = vsub.f32 1.0, %v1641_v32  ;;  %1978 = vmatmul.f32.vlgmr.msra.gmra.mxu0 %v7943_v48  ;;  %2018 = vmatmul.f32.vlgmr.msra.gmra.mxu2 %v7943_v48  ;;  %v6625_v29 = vpop.eup %6624  ;;  %v6827_v32 = vld [vmem:[%s9275_s0] sm:$0xff]  ;;  %s7144_s0 = smov [#allocation19]  }
 0x21a   :  { %2046 = vmatpush.msrb.mxu0 %v1746_v30  ;;  %2086 = vmatpush.msrb.mxu2 %v1747_v17  ;;  %vm2122_vm14 = vcmp.gt.s32.totalorder %v6827_v32, 2  ;;  %v1836_v30 = vld [vmem:[#allocation10 + $0x500] sm:$0xff]  ;;  %v1837_v17 = vld [vmem:[#allocation10 + $0x508] sm:$0xff]  ;;  %vm2176_vm15 = vcmp.gt.s32.totalorder %v6827_v32, 5  ;;  %v2425_v32 = vld [vmem:[#allocation10 + $0x5d8] sm:$0xff]  ;;  %s6415_s30 = sshll.u32 %s7144_s0, 4  ;;  %s6416_s30 = int_to_ptr.vmem [resolvable:$true] %s6415_s30 }
 0x21b   :  { %v1643_v8 = vmul.f32 %v6623_v57, %v1642_v46  ;;  %v2170_v46 = vsel %vm2122_vm14, 1, %v9388_v49 }
 0x21c   :  { %2047 = vmatpush.msrb.mxu0 %v1740_v37  ;;  %2087 = vmatpush.msrb.mxu2 %v1741_v43  ;;  %v1830_v37 = vld [vmem:[#allocation10 + $0x4d0] sm:$0xff]  ;;  %v1831_v43 = vld [vmem:[#allocation10 + $0x4d8] sm:$0xff] }
 0x21d   :  { %v1644_v51 = vadd.f32 %v6623_v57, %v1643_v8  ;;  %v1825_v8 = vld [vmem:[#allocation10 + $0x4a8] sm:$0xff]  ;;  %2172 = vperm.xlu2 %6583, %v2170_v46   ;;  %v2257_v46 = vld [vmem:[#allocation10 + $0x98] sm:$0xff] }
 0x21e   :  { %2048 = vmatpush.msrb.mxu0 %v1734_v7  ;;  %2088 = vmatpush.msrb.mxu2 %v1735_v39  ;;  %v1819_v7 = vld [vmem:[#allocation10 + $0x478] sm:$0xff]  ;;  %v1812_v39 = vld [vmem:[#allocation10 + $0x440] sm:$0xff] }
 0x21f   :  { %v1648_v56 = vsel %vm1647_vm10, %v6623_v57, %v1644_v51  ;;  %v1843_v57 = vld [vmem:[#allocation10 + $0x538] sm:$0xff]  ;;  %v1813_v51 = vld [vmem:[#allocation10 + $0x448] sm:$0xff] }
 0x220   :  { %v1653_v63 = vsel %vm1650_vm11, %v1652_v36, %v1648_v56  ;;  %2049 = vmatpush.msrb.mxu0 %v1728_v20  ;;  %2089 = vmatpush.msrb.mxu2 %v1729_v33  ;;  %v2224_v20 = vsel %vm2176_vm15, 1, %v9388_v49  ;;  %v1806_v33 = vld [vmem:[#allocation10 + $0x410] sm:$0xff]  ;;  %v1807_v36 = vld [vmem:[#allocation10 + $0x418] sm:$0xff]  ;;  %v1800_v56 = vld [vmem:[#allocation10 + $0x3e0] sm:$0xff] }
 0x221   :  { %v1658_v44 = vsub.f32 1.0, %v1653_v63  ;;  %v1660_v38 = vmul.f32 %v1653_v63, %v1105_v18  ;;  %v1795_v63 = vld [vmem:[#allocation10 + $0x3b8] sm:$0xff]  ;;  %v1776_v49 = vld [vmem:[#allocation10 + $0x320] sm:$0xff] }
 0x222   :  { %2050 = vmatpush.msrb.mxu0 %v1722_v14  ;;  %2090 = vmatpush.msrb.mxu2 %v1723_v35  ;;  %v1801_v14 = vld [vmem:[#allocation10 + $0x3e8] sm:$0xff]  ;;  %v1794_v35 = vld [vmem:[#allocation10 + $0x3b0] sm:$0xff] }
 0x223   :  { %v1659_v23 = vmul.f32 %v6625_v29, %v1658_v44  ;;  %v1788_v44 = vld [vmem:[#allocation10 + $0x380] sm:$0xff]  ;;  %v1783_v29 = vld [vmem:[#allocation10 + $0x358] sm:$0xff] }
 0x224   :  { %2051 = vmatpush.msrb.mxu0 %v1716_v15  ;;  %2091 = vmatpush.msrb.mxu2 %v1717_v53  ;;  %v1789_v15 = vld [vmem:[#allocation10 + $0x388] sm:$0xff]  ;;  %v1782_v53 = vld [vmem:[#allocation10 + $0x350] sm:$0xff] }
 0x225   :  { %v1661_v27 = vadd.f32 %v1660_v38, %v1659_v23  ;;  %2226 = vperm.xlu2 %6583, %v2224_v20   ;;  %v2328_v23 = vld [vmem:[#allocation10 + $0x2d0] sm:$0xff]  ;;  %v2329_v38 = vld [vmem:[#allocation10 + $0x2d8] sm:$0xff]  ;;  %v2407_v20 = vld [vmem:[#allocation10 + $0x548] sm:$0xff] }
 0x226   :  { %2052 = vmatpush.msrb.mxu0 %v1710_v6  ;;  %2092 = vmatpush.msrb.mxu2 %v1711_v26  ;;  %v2322_v6 = vld [vmem:[#allocation10 + $0x2a0] sm:$0xff]  ;;  %v2323_v26 = vld [vmem:[#allocation10 + $0x2a8] sm:$0xff] }
 0x227   :  { %v7957_v62 = vsel %vm1666_vm13, %v1661_v27, %v1105_v18  ;;  %v1777_v18 = vld [vmem:[#allocation10 + $0x328] sm:$0xff]  ;;  %v2316_v27 = vld [vmem:[#allocation10 + $0x270] sm:$0xff] }
 0x228   :  { %1918 = vmatmul.f32.vlgmr.msrb.gmra.mxu1 %v7957_v62  ;;  %1958 = vmatmul.f32.vlgmr.msrb.gmra.mxu3 %v7957_v62 }
 0x229   :  { %2053 = vmatpush.msrb.mxu0 %v1704_v59  ;;  %2062 = vmatpush.msrb.mxu1 %v1866_v3  ;;  %v2317_v59 = vld [vmem:[#allocation10 + $0x278] sm:$0xff]  ;;  %v2310_v3 = vld [vmem:[#allocation10 + $0x240] sm:$0xff] }
 0x22a   :  { %2093 = vmatpush.msrb.mxu2 %v1705_v50  ;;  %2102 = vmatpush.msrb.mxu3 %v1867_v42  ;;  %v2311_v50 = vld [vmem:[#allocation10 + $0x248] sm:$0xff]  ;;  %v2304_v42 = vld [vmem:[#allocation10 + $0x210] sm:$0xff] }
 0x22b   :  { %2054 = vmatpush.msrb.mxu0 %v1698_v5  ;;  %2063 = vmatpush.msrb.mxu1 %v1860_v4  ;;  %v2305_v5 = vld [vmem:[#allocation10 + $0x218] sm:$0xff]  ;;  %v2298_v4 = vld [vmem:[#allocation10 + $0x1e0] sm:$0xff] }
 0x22c   :  { %2094 = vmatpush.msrb.mxu2 %v1699_v60  ;;  %2103 = vmatpush.msrb.mxu3 %v1861_v58  ;;  %v2299_v60 = vld [vmem:[#allocation10 + $0x1e8] sm:$0xff]  ;;  %v2292_v58 = vld [vmem:[#allocation10 + $0x1b0] sm:$0xff] }
 0x22d   :  { %2055 = vmatpush.msrb.mxu0 %v1692_v22  ;;  %2064 = vmatpush.msrb.mxu1 %v1854_v12  ;;  %v2293_v22 = vld [vmem:[#allocation10 + $0x1b8] sm:$0xff]  ;;  %v2286_v12 = vld [vmem:[#allocation10 + $0x180] sm:$0xff] }
 0x22e   :  { %2095 = vmatpush.msrb.mxu2 %v1693_v55  ;;  %2104 = vmatpush.msrb.mxu3 %v1855_v52  ;;  %v2287_v55 = vld [vmem:[#allocation10 + $0x188] sm:$0xff]  ;;  %v2280_v52 = vld [vmem:[#allocation10 + $0x150] sm:$0xff] }
 0x22f   :  { %2056 = vmatpush.msrb.mxu0 %v1686_v28  ;;  %2065 = vmatpush.msrb.mxu1 %v1848_v11  ;;  %v2281_v28 = vld [vmem:[#allocation10 + $0x158] sm:$0xff]  ;;  %v2274_v11 = vld [vmem:[#allocation10 + $0x120] sm:$0xff] }
 0x230   :  { %2096 = vmatpush.msrb.mxu2 %v1687_v41  ;;  %2105 = vmatpush.msrb.mxu3 %v1849_v19  ;;  %v2275_v41 = vld [vmem:[#allocation10 + $0x128] sm:$0xff]  ;;  %v2268_v19 = vld [vmem:[#allocation10 + $0xf0] sm:$0xff] }
 0x231   :  { %1998 = vmatmul.f32.vlgmr.msra.gmra.mxu1 %v7957_v62  ;;  %2038 = vmatmul.f32.vlgmr.msra.gmra.mxu3 %v7957_v62 }
 0x232   :  { %2057 = vmatpush.msrb.mxu0 %v1680_v61  ;;  %2066 = vmatpush.msrb.mxu1 %v1842_v16  ;;  %v2269_v61 = vld [vmem:[#allocation10 + $0xf8] sm:$0xff]  ;;  %v2262_v16 = vld [vmem:[#allocation10 + $0xc0] sm:$0xff] }
 0x233   :  { %2097 = vmatpush.msrb.mxu2 %v1681_v40  ;;  %2106 = vmatpush.msrb.mxu3 %v1843_v57  ;;  %v2424_v40 = vld [vmem:[#allocation10 + $0x5d0] sm:$0xff]  ;;  %v2263_v57 = vld [vmem:[#allocation10 + $0xc8] sm:$0xff] }
 0x234   :  { %2058 = vmatmul.f32.vlgmr.msrb.gmra.mxu0 %v7943_v48  ;;  %2098 = vmatmul.f32.vlgmr.msrb.gmra.mxu2 %v7943_v48 }
 0x235   :  { %2067 = vmatpush.msrb.mxu1 %v1836_v30  ;;  %2107 = vmatpush.msrb.mxu3 %v1837_v17  ;;  %v2256_v30 = vld [vmem:[#allocation10 + $0x90] sm:$0xff]  ;;  %v2418_v17 = vld [vmem:[#allocation10 + $0x5a0] sm:$0xff] }
 0x236   :  { %2444 = vmatpush.msra.mxu0 %v2328_v23  ;;  %2484 = vmatpush.msra.mxu2 %v2329_v38  ;;  %v7972_v23 = vld [vmem:[#allocation17 + $0x6] sm:$0x3f] }
 0x237   :  { %2068 = vmatpush.msrb.mxu1 %v1830_v37  ;;  %2108 = vmatpush.msrb.mxu3 %v1831_v43  ;;  %v2419_v37 = vld [vmem:[#allocation10 + $0x5a8] sm:$0xff]  ;;  %v2250_v43 = vld [vmem:[#allocation10 + $0x60] sm:$0xff] }
 0x238   :  { %2445 = vmatpush.msra.mxu0 %v2322_v6  ;;  %2485 = vmatpush.msra.mxu2 %v2323_v26  ;;  %v2318_v38 = vld [vmem:[#allocation10 + $0x280] sm:$0xff]  ;;  %v2319_v6 = vld [vmem:[#allocation10 + $0x288] sm:$0xff] }
 0x239   :  { %2069 = vmatpush.msrb.mxu1 %v1824_v24  ;;  %2109 = vmatpush.msrb.mxu3 %v1825_v8  ;;  %v2412_v24 = vld [vmem:[#allocation10 + $0x570] sm:$0xff]  ;;  %v2251_v8 = vld [vmem:[#allocation10 + $0x68] sm:$0xff]  ;;  %v2382_v26 = vld [vmem:[#allocation10 + $0x480] sm:$0xff] }
 0x23a   :  { %2446 = vmatpush.msra.mxu0 %v2316_v27  ;;  %2486 = vmatpush.msra.mxu2 %v2317_v59  ;;  %v2383_v27 = vld [vmem:[#allocation10 + $0x488] sm:$0xff]  ;;  %v2312_v59 = vld [vmem:[#allocation10 + $0x250] sm:$0xff] }
 0x23b   :  { %2070 = vmatpush.msrb.mxu1 %v1818_v47  ;;  %2110 = vmatpush.msrb.mxu3 %v1819_v7  ;;  %v2413_v47 = vld [vmem:[#allocation10 + $0x578] sm:$0xff]  ;;  %v2244_v7 = vld [vmem:[#allocation10 + $0x30] sm:$0xff] }
 0x23c   :  { %2447 = vmatpush.msra.mxu0 %v2310_v3  ;;  %2487 = vmatpush.msra.mxu2 %v2311_v50  ;;  %v2313_v3 = vld [vmem:[#allocation10 + $0x258] sm:$0xff]  ;;  %v1870_v50 = vperm.slane %v7972_v23, 0 }
 0x23d   :  { %2071 = vmatpush.msrb.mxu1 %v1812_v39  ;;  %2111 = vmatpush.msrb.mxu3 %v1813_v51  ;;  %v2406_v39 = vld [vmem:[#allocation10 + $0x540] sm:$0xff]  ;;  %v2245_v51 = vld [vmem:[#allocation10 + $0x38] sm:$0xff] }
 0x23e   :  { %2448 = vmatpush.msra.mxu0 %v2304_v42  ;;  %2488 = vmatpush.msra.mxu2 %v2305_v5  ;;  %v2376_v42 = vld [vmem:[#allocation10 + $0x450] sm:$0xff]  ;;  %v2377_v5 = vld [vmem:[#allocation10 + $0x458] sm:$0xff] }
 0x23f   :  { %2072 = vmatpush.msrb.mxu1 %v1806_v33  ;;  %2112 = vmatpush.msrb.mxu3 %v1807_v36  ;;  %v2238_v33 = vld [vmem:[#allocation10] sm:$0xff]  ;;  %v2400_v36 = vld [vmem:[#allocation10 + $0x510] sm:$0xff] }
 0x240   :  { %2449 = vmatpush.msra.mxu0 %v2298_v4  ;;  %2489 = vmatpush.msra.mxu2 %v2299_v60  ;;  %v2306_v60 = vld [vmem:[#allocation10 + $0x220] sm:$0xff] }
 0x241   :  { %2073 = vmatpush.msrb.mxu1 %v1800_v56  ;;  %2113 = vmatpush.msrb.mxu3 %v1801_v14  ;;  %v2239_v56 = vld [vmem:[#allocation10 + $0x8] sm:$0xff]  ;;  %v2401_v14 = vld [vmem:[#allocation10 + $0x518] sm:$0xff] }
 0x242   :  { %2450 = vmatpush.msra.mxu0 %v2292_v58  ;;  %2490 = vmatpush.msra.mxu2 %v2293_v22  ;;  %v2307_v58 = vld [vmem:[#allocation10 + $0x228] sm:$0xff]  ;;  %v2370_v22 = vld [vmem:[#allocation10 + $0x420] sm:$0xff] }
 0x243   :  { %2074 = vmatpush.msrb.mxu1 %v1794_v35  ;;  %2114 = vmatpush.msrb.mxu3 %v1795_v63  ;;  %v2330_v35 = vld [vmem:[#allocation10 + $0x2e0] sm:$0xff]  ;;  %v2331_v63 = vld [vmem:[#allocation10 + $0x2e8] sm:$0xff] }
 0x244   :  { %2451 = vmatpush.msra.mxu0 %v2286_v12  ;;  %2491 = vmatpush.msra.mxu2 %v2287_v55  ;;  %v2371_v12 = vld [vmem:[#allocation10 + $0x428] sm:$0xff]  ;;  %v2300_v55 = vld [vmem:[#allocation10 + $0x1f0] sm:$0xff] }
 0x245   :  { %2075 = vmatpush.msrb.mxu1 %v1788_v44  ;;  %2115 = vmatpush.msrb.mxu3 %v1789_v15  ;;  %v2394_v44 = vld [vmem:[#allocation10 + $0x4e0] sm:$0xff]  ;;  %v2395_v15 = vld [vmem:[#allocation10 + $0x4e8] sm:$0xff] }
 0x246   :  { %2452 = vmatpush.msra.mxu0 %v2280_v52  ;;  %2492 = vmatpush.msra.mxu2 %v2281_v28  ;;  %v2301_v52 = vld [vmem:[#allocation10 + $0x1f8] sm:$0xff] }
 0x247   :  { %2076 = vmatpush.msrb.mxu1 %v1782_v53  ;;  %2116 = vmatpush.msrb.mxu3 %v1783_v29  ;;  %v2324_v53 = vld [vmem:[#allocation10 + $0x2b0] sm:$0xff]  ;;  %v2325_v29 = vld [vmem:[#allocation10 + $0x2b8] sm:$0xff] }
 0x248   :  { %2453 = vmatpush.msra.mxu0 %v2274_v11  ;;  %2493 = vmatpush.msra.mxu2 %v2275_v41  ;;  %v2364_v11 = vld [vmem:[#allocation10 + $0x3f0] sm:$0xff]  ;;  %v2365_v41 = vld [vmem:[#allocation10 + $0x3f8] sm:$0xff] }
 0x249   :  { %2077 = vmatpush.msrb.mxu1 %v1776_v49  ;;  %2117 = vmatpush.msrb.mxu3 %v1777_v18  ;;  %v2388_v49 = vld [vmem:[#allocation10 + $0x4b0] sm:$0xff]  ;;  %v2389_v18 = vld [vmem:[#allocation10 + $0x4b8] sm:$0xff] }
 0x24a   :  { %2078 = vmatmul.f32.vlgmr.msrb.gmra.mxu1 %v7957_v62  ;;  %2118 = vmatmul.f32.vlgmr.msrb.gmra.mxu3 %v7957_v62 }
 0x24b   :  { %2454 = vmatpush.msra.mxu0 %v2268_v19  ;;  %2494 = vmatpush.msra.mxu2 %v2269_v61  ;;  %v2294_v61 = vld [vmem:[#allocation10 + $0x1c0] sm:$0xff] }
 0x24c   :  { %2464 = vmatpush.msra.mxu1 %v2424_v40  ;;  %2504 = vmatpush.msra.mxu3 %v2425_v32  ;;  %v9400_v40 = vld [vmem:[#allocation29_spill] sm:$0xff]  ;;  %v1871_v32 = vperm.slane %v7972_v23, 1 }
 0x24d   :  { %2455 = vmatpush.msra.mxu0 %v2262_v16  ;;  %2495 = vmatpush.msra.mxu2 %v2263_v57  ;;  %v2295_v16 = vld [vmem:[#allocation10 + $0x1c8] sm:$0xff]  ;;  %v276_v57 = vadd.f32 %v9400_v40, %v7615_v25 }
 0x24e   :  { %2465 = vmatpush.msra.mxu1 %v2418_v17  ;;  %2505 = vmatpush.msra.mxu3 %v2419_v37  ;;  %v2358_v17 = vld [vmem:[#allocation10 + $0x3c0] sm:$0xff]  ;;  %v2415_v40 = vld [vmem:[#allocation10 + $0x588] sm:$0xff] }
 0x24f   :  { %2456 = vmatpush.msra.mxu0 %v2256_v30  ;;  %2496 = vmatpush.msra.mxu2 %v2257_v46  ;;  %v2359_v46 = vld [vmem:[#allocation10 + $0x3c8] sm:$0xff] }
 0x250   :  { %2466 = vmatpush.msra.mxu1 %v2412_v24  ;;  %2506 = vmatpush.msra.mxu3 %v2413_v47  ;;  %v2289_v24 = vld [vmem:[#allocation10 + $0x198] sm:$0xff]  ;;  %v2352_v47 = vld [vmem:[#allocation10 + $0x390] sm:$0xff] }
 0x251   :  { %2457 = vmatpush.msra.mxu0 %v2250_v43  ;;  %2497 = vmatpush.msra.mxu2 %v2251_v8  ;;  %v2288_v43 = vld [vmem:[#allocation10 + $0x190] sm:$0xff] }
 0x252   :  { %2467 = vmatpush.msra.mxu1 %v2406_v39  ;;  %2507 = vmatpush.msra.mxu3 %v2407_v20  ;;  %v2282_v39 = vld [vmem:[#allocation10 + $0x160] sm:$0xff] }
 0x253   :  { %2458 = vmatpush.msra.mxu0 %v2244_v7  ;;  %2498 = vmatpush.msra.mxu2 %v2245_v51  ;;  %v2353_v7 = vld [vmem:[#allocation10 + $0x398] sm:$0xff]  ;;  %v2283_v51 = vld [vmem:[#allocation10 + $0x168] sm:$0xff] }
 0x254   :  { %2468 = vmatpush.msra.mxu1 %v2400_v36  ;;  %2508 = vmatpush.msra.mxu3 %v2401_v14  ;;  %v2346_v36 = vld [vmem:[#allocation10 + $0x360] sm:$0xff] }
 0x255   :  { %2459 = vmatpush.msra.mxu0 %v2238_v33  ;;  %2499 = vmatpush.msra.mxu2 %v2239_v56  ;;  %v2347_v56 = vld [vmem:[#allocation10 + $0x368] sm:$0xff] }
 0x256   :  { %2469 = vmatpush.msra.mxu1 %v2394_v44  ;;  %2509 = vmatpush.msra.mxu3 %v2395_v15  ;;  %v9401_v44 = vld [vmem:[#allocation31_spill] sm:$0xff] }
 0x257   :  { %2524 = vmatpush.msrb.mxu0 %v2330_v35  ;;  %2564 = vmatpush.msrb.mxu2 %v2331_v63  ;;  %v2276_v35 = vld [vmem:[#allocation10 + $0x130] sm:$0xff]  ;;  %v2277_v63 = vld [vmem:[#allocation10 + $0x138] sm:$0xff]  ;;  %v317_v15 = vadd.f32 %v9401_v44, %v7645_v45  ;;  %v6828_v44 = vld [vmem:[#allocation10 + $0x4c0] sm:$0xff] }
 0x258   :  { %2470 = vmatpush.msra.mxu1 %v2388_v49  ;;  %2510 = vmatpush.msra.mxu3 %v2389_v18  ;;  %v2341_v49 = vld [vmem:[#allocation10 + $0x338] sm:$0xff]  ;;  %v2270_v18 = vld [vmem:[#allocation10 + $0x100] sm:$0xff] }
 0x259   :  { %2525 = vmatpush.msrb.mxu0 %v2324_v53  ;;  %2565 = vmatpush.msrb.mxu2 %v2325_v29  ;;  %v2340_v29 = vld [vmem:[#allocation10 + $0x330] sm:$0xff] }
 0x25a   :  { %2471 = vmatpush.msra.mxu1 %v2382_v26  ;;  %2511 = vmatpush.msra.mxu3 %v2383_v27  ;;  %v2334_v26 = vld [vmem:[#allocation10 + $0x300] sm:$0xff]  ;;  %v2335_v27 = vld [vmem:[#allocation10 + $0x308] sm:$0xff] }
 0x25b   :  { %2526 = vmatpush.msrb.mxu0 %v2318_v38  ;;  %2566 = vmatpush.msrb.mxu2 %v2319_v6  ;;  %v2271_v38 = vld [vmem:[#allocation10 + $0x108] sm:$0xff] }
 0x25c   :  { %2472 = vmatpush.msra.mxu1 %v2376_v42  ;;  %2512 = vmatpush.msra.mxu3 %v2377_v5  ;;  %v1873_v42 = vperm.slane %v7972_v23, 3 }
 0x25d   :  { %2527 = vmatpush.msrb.mxu0 %v2312_v59  ;;  %2567 = vmatpush.msrb.mxu2 %v2313_v3  ;;  %v2264_v59 = vld [vmem:[#allocation10 + $0xd0] sm:$0xff]  ;;  %v2426_v3 = vld [vmem:[#allocation10 + $0x5e0] sm:$0xff] }
 0x25e   :  { %2473 = vmatpush.msra.mxu1 %v2370_v22  ;;  %2513 = vmatpush.msra.mxu3 %v2371_v12  ;;  %v2420_v22 = vld [vmem:[#allocation10 + $0x5b0] sm:$0xff]  ;;  %v2259_v12 = vld [vmem:[#allocation10 + $0xa8] sm:$0xff] }
 0x25f   :  { %2528 = vmatpush.msrb.mxu0 %v2306_v60  ;;  %2568 = vmatpush.msrb.mxu2 %v2307_v58  ;;  %v2258_v58 = vld [vmem:[#allocation10 + $0xa0] sm:$0xff] }
 0x260   :  { %2474 = vmatpush.msra.mxu1 %v2364_v11  ;;  %2514 = vmatpush.msra.mxu3 %v2365_v41  ;;  %v2252_v11 = vld [vmem:[#allocation10 + $0x70] sm:$0xff]  ;;  %v2414_v41 = vld [vmem:[#allocation10 + $0x580] sm:$0xff] }
 0x261   :  { %2529 = vmatpush.msrb.mxu0 %v2300_v55  ;;  %2569 = vmatpush.msrb.mxu2 %v2301_v52  ;;  %v2421_v52 = vld [vmem:[#allocation10 + $0x5b8] sm:$0xff] }
 0x262   :  { %2475 = vmatpush.msra.mxu1 %v2358_v17  ;;  %2515 = vmatpush.msra.mxu3 %v2359_v46  ;;  %v9402_v17 = vld [vmem:[#allocation52_spill] sm:$0xff] }
 0x263   :  { %2530 = vmatpush.msrb.mxu0 %v2294_v61  ;;  %2570 = vmatpush.msrb.mxu2 %v2295_v16  ;;  %v408_v46 = vadd.f32 %v9402_v17, %v7748_v2  ;;  %v2360_v17 = vld [vmem:[#allocation10 + $0x3d0] sm:$0xff] }
 0x264   :  { %2476 = vmatpush.msra.mxu1 %v2352_v47  ;;  %2516 = vmatpush.msra.mxu3 %v2353_v7  ;;  %v2241_v47 = vld [vmem:[#allocation10 + $0x18] sm:$0xff] }
 0x265   :  { %2531 = vmatpush.msrb.mxu0 %v2288_v43  ;;  %2571 = vmatpush.msrb.mxu2 %v2289_v24  ;;  %v2409_v43 = vld [vmem:[#allocation10 + $0x558] sm:$0xff]  ;;  %v2240_v24 = vld [vmem:[#allocation10 + $0x10] sm:$0xff] }
 0x266   :  { %2477 = vmatpush.msra.mxu1 %v2346_v36  ;;  %2517 = vmatpush.msra.mxu3 %v2347_v56  ;;  %v2397_v36 = vld [vmem:[#allocation10 + $0x4f8] sm:$0xff] }
 0x267   :  { %2532 = vmatpush.msrb.mxu0 %v2282_v39  ;;  %2572 = vmatpush.msrb.mxu2 %v2283_v51  ;;  %v2403_v51 = vld [vmem:[#allocation10 + $0x528] sm:$0xff] }
 0x268   :  { %2478 = vmatpush.msra.mxu1 %v2340_v29  ;;  %2518 = vmatpush.msra.mxu3 %v2341_v49  ;;  %v1872_v29 = vperm.slane %v7972_v23, 2 }
 0x269   :  { %2533 = vmatpush.msrb.mxu0 %v2276_v35  ;;  %2573 = vmatpush.msrb.mxu2 %v2277_v63 }
 0x26a   :  { %2479 = vmatpush.msra.mxu1 %v2334_v26  ;;  %2519 = vmatpush.msra.mxu3 %v2335_v27  ;;  %v2378_v26 = vld [vmem:[#allocation10 + $0x460] sm:$0xff]  ;;  %v2379_v27 = vld [vmem:[#allocation10 + $0x468] sm:$0xff] }
 0x26b   :  { %2534 = vmatpush.msrb.mxu0 %v2270_v18  ;;  %2574 = vmatpush.msrb.mxu2 %v2271_v38  ;;  %v6829_v18 = vld [vmem:[#allocation10 + $0x4c8] sm:$0xff] }
 0x26c   :  { %2544 = vmatpush.msrb.mxu1 %v2426_v3 }
 0x26d   :  { %2535 = vmatpush.msrb.mxu0 %v2264_v59 }
 0x26e   :  { %2545 = vmatpush.msrb.mxu1 %v2420_v22 }
 0x26f   :  { %2536 = vmatpush.msrb.mxu0 %v2258_v58 }
 0x270   :  { %2546 = vmatpush.msrb.mxu1 %v2414_v41  ;;  %v2367_v41 = vld [vmem:[#allocation10 + $0x408] sm:$0xff] }
 0x271   :  { %2537 = vmatpush.msrb.mxu0 %v2252_v11  ;;  %v2366_v11 = vld [vmem:[#allocation10 + $0x400] sm:$0xff] }
 0x28e   :  { %v1899_v4 = vpop.f32.mrf.mxu0 }
 0x28f   :  { %v1900_v28 = vadd.f32 %v1899_v4, %v1870_v50  ;;  %v2265_v50 = vld [vmem:[#allocation10 + $0xd8] sm:$0xff]  ;;  %v2427_v4 = vld [vmem:[#allocation10 + $0x5e8] sm:$0xff] }
 0x290   :  { %2575 = vmatpush.msrb.mxu2 %v2265_v50  ;;  %2584 = vmatpush.msrb.mxu3 %v2427_v4 }
 0x292   :  { %2576 = vmatpush.msrb.mxu2 %v2259_v12  ;;  %2585 = vmatpush.msrb.mxu3 %v2421_v52  ;;  %v6830_v52 = vld [vmem:[#allocation10 + $0x430] sm:$0xff] }
 0x294   :  { %v1939_v37 = vpop.f32.mrf.mxu2  ;;  %2586 = vmatpush.msrb.mxu3 %v2415_v40  ;;  %v6831_v40 = vld [vmem:[#allocation10 + $0x438] sm:$0xff] }
 0x295   :  { %v1940_v20 = vadd.f32 %v1939_v37, %v1871_v32  ;;  %v2408_v32 = vld [vmem:[#allocation10 + $0x550] sm:$0xff] }
 0x296   :  { %2547 = vmatpush.msrb.mxu1 %v2408_v32  ;;  %2587 = vmatpush.msrb.mxu3 %v2409_v43  ;;  %v1979_v56 = vpop.f32.mrf.mxu0 }
 0x297   :  { %v1980_v4 = vadd.f32 %v1979_v56, %v1872_v29 }
 0x298   :  { %2588 = vmatpush.msrb.mxu3 %v2403_v51  ;;  %v2354_v51 = vld [vmem:[#allocation10 + $0x3a0] sm:$0xff] }
 0x29a   :  { %2589 = vmatpush.msrb.mxu3 %v2397_v36 }
 0x29c   :  { %v2019_v60 = vpop.f32.mrf.mxu2  ;;  %2590 = vmatpush.msrb.mxu3 %v6829_v18  ;;  %v2343_v18 = vld [vmem:[#allocation10 + $0x348] sm:$0xff] }
 0x29d   :  { %v2020_v61 = vadd.f32 %v2019_v60, %v1873_v42  ;;  %v1874_v42 = vperm.slane %v7972_v23, 4 }
 0x2a5   :  { %v1919_v19 = vpop.f32.mrf.mxu1 }
 0x2a6   :  { %v1920_v30 = vadd.f32 %v1919_v19, %v1900_v28  ;;  %v2253_v19 = vld [vmem:[#allocation10 + $0x78] sm:$0xff] }
 0x2a7   :  { %2577 = vmatpush.msrb.mxu2 %v2253_v19 }
 0x2a8   :  { %v2123_v8 = vadd.f32 %v1920_v30, %v276_v57  ;;  %v2246_v57 = vld [vmem:[#allocation10 + $0x40] sm:$0xff]  ;;  %v2247_v30 = vld [vmem:[#allocation10 + $0x48] sm:$0xff] }
 0x2a9   :  { %2538 = vmatpush.msrb.mxu0 %v2246_v57  ;;  %2578 = vmatpush.msrb.mxu2 %v2247_v30  ;;  %v9403_v57 = vld [vmem:[#allocation39_spill] sm:$0xff] }
 0x2aa   :  { %v6499_v33 = vmul.f32 -1.442695, %v2123_v8  ;;  %v2402_v8 = vld [vmem:[#allocation10 + $0x520] sm:$0xff]  ;;  %v358_v32 = vadd.f32 %v9403_v57, %v9394_v54 }
 0x2ab   :  { %v1959_v14 = vpop.f32.mrf.mxu3  ;;  %2539 = vmatpush.msrb.mxu0 %v2240_v24  ;;  %2548 = vmatpush.msrb.mxu1 %v2402_v8  ;;  %v9404_v8 = vld [vmem:[#allocation62_spill] sm:$0xff] }
 0x2ac   :  { %6626 = vpow2.f32 %v6499_v33  ;;  %v1960_v53 = vadd.f32 %v1959_v14, %v1940_v20  ;;  %v2396_v33 = vld [vmem:[#allocation10 + $0x4f0] sm:$0xff]  ;;  %2579 = vmatpush.msrb.mxu2 %v2241_v47  ;;  %v449_v47 = vadd.f32 %v9404_v8, %v7768_v13  ;;  %v2326_v8 = vld [vmem:[#allocation10 + $0x2c0] sm:$0xff] }
 0x2ad   :  { %2549 = vmatpush.msrb.mxu1 %v2396_v33  ;;  %v2355_v33 = vld [vmem:[#allocation10 + $0x3a8] sm:$0xff] }
 0x2ae   :  { %v2124_v6 = vadd.f32 %v1960_v53, %v317_v15  ;;  %v2384_v15 = vld [vmem:[#allocation10 + $0x490] sm:$0xff]  ;;  %v2385_v53 = vld [vmem:[#allocation10 + $0x498] sm:$0xff]  ;;  %v1999_v38 = vpop.f32.mrf.mxu1 }
 0x2af   :  { %2550 = vmatpush.msrb.mxu1 %v6828_v44  ;;  %2591 = vmatpush.msrb.mxu3 %v2385_v53  ;;  %v2349_v44 = vld [vmem:[#allocation10 + $0x378] sm:$0xff] }
 0x2b0   :  { %v6500_v5 = vmul.f32 -1.442695, %v2124_v6 }
 0x2b1   :  { %2551 = vmatpush.msrb.mxu1 %v2384_v15  ;;  %v2059_v22 = vpop.f32.mrf.mxu0  ;;  %2592 = vmatpush.msrb.mxu3 %v2379_v27  ;;  %v2336_v27 = vld [vmem:[#allocation10 + $0x310] sm:$0xff] }
 0x2b2   :  { %v6627_v55 = vpop.eup %6626  ;;  %6628 = vpow2.f32 %v6500_v5  ;;  %v2060_v30 = vadd.f32 %v2059_v22, %v1874_v42 }
 0x2b3   :  { %v7981_v28 = vadd.f32 1.0, %v6627_v55  ;;  %2552 = vmatpush.msrb.mxu1 %v2378_v26  ;;  %2593 = vmatpush.msrb.mxu3 %v6831_v40 }
 0x2b4   :  { %v2039_v16 = vpop.f32.mrf.mxu3 }
 0x2b5   :  { %6630 = vrcp.f32 %v7981_v28  ;;  %v2040_v37 = vadd.f32 %v2039_v16, %v2020_v61  ;;  %v2144_v6 = vand.u32 2147483648, %v7981_v28  ;;  %v2142_v3 = vand.u32 2147483647, %v7981_v28  ;;  %2553 = vmatpush.msrb.mxu1 %v6830_v52  ;;  %2594 = vmatpush.msrb.mxu3 %v2367_v41 }
 0x2b6   :  { %vm2138_vm1 = vweird.f32 %v7981_v28  ;;  %v2000_v61 = vadd.f32 %v1999_v38, %v1980_v4  ;;  %v8022_v4 = vpop.permute.xlu2 %2172 }
 0x2b7   :  { %v2177_v39 = vadd.f32 %v2040_v37, %v408_v46  ;;  %v2145_v12 = vor.u32 1.1754944e-38, %v2144_v6  ;;  %vm2143_vm3 = vcmp.eq.f32.partialorder %v2142_v3, 8.507059e+37  ;;  %2554 = vmatpush.msrb.mxu1 %v2366_v11  ;;  %v2361_v46 = vld [vmem:[#allocation10 + $0x3d8] sm:$0xff]  ;;  %v1875_v3 = vperm.slane %v7972_v23, 5  ;;  %9407 = vst [vmem:[#allocation68_spill] sm:$0xff] %v8022_v4 }
 0x2b8   :  { %v6629_v7 = vpop.eup %6628  ;;  %2595 = vmatpush.msrb.mxu3 %v2361_v46  ;;  %vm2174_vm14 = vcmp.eq.s32.totalorder %v8022_v4, 1  ;;  %v8618_v4 = vld [vmem:[#allocation13 + $0x10] sm:$0xff] }
 0x2b9   :  { %v7986_v20 = vadd.f32 1.0, %v6629_v7  ;;  %v6501_v14 = vmul.f32 -1.442695, %v2177_v39  ;;  %2555 = vmatpush.msrb.mxu1 %v2360_v17 }
 0x2ba   :  { %2596 = vmatpush.msrb.mxu3 %v2355_v33 }
 0x2bb   :  { %v6631_v35 = vpop.eup %6630  ;;  %6632 = vrcp.f32 %v7986_v20  ;;  %v2159_v24 = vand.u32 2147483648, %v7986_v20  ;;  %v2157_v39 = vand.u32 2147483647, %v7986_v20  ;;  %vm2153_vm6 = vweird.f32 %v7986_v20  ;;  %2556 = vmatpush.msrb.mxu1 %v2354_v51  ;;  %v6833_v51 = vld [vmem:[#allocation10 + $0x298] sm:$0xff] }
 0x2bc   :  { %v2134_v63 = vmul.f32 %v6631_v35, %v7981_v28  ;;  %6634 = vpow2.f32 %v6501_v14  ;;  %vm2139_vm0 = vweird.f32 %v6631_v35  ;;  %2597 = vmatpush.msrb.mxu3 %v2349_v44 }
 0x2bd   :  { %vm2140_vm2 = vmor %vm2138_vm1, %vm2139_vm0  ;;  %v2160_v29 = vor.u32 1.1754944e-38, %v2159_v24  ;;  %vm2158_vm9 = vcmp.eq.f32.partialorder %v2157_v39, 8.507059e+37  ;;  %v6832_v39 = vld [vmem:[#allocation10 + $0x290] sm:$0xff] }
 0x2be   :  { %v2135_v49 = vsub.f32 1.0, %v2134_v63  ;;  %v2348_v63 = vld [vmem:[#allocation10 + $0x370] sm:$0xff]  ;;  %2598 = vmatpush.msrb.mxu3 %v2343_v18 }
 0x2bf   :  { %2557 = vmatpush.msrb.mxu1 %v2348_v63  ;;  %v6837_v63 = vld [vmem:[#allocation10 + $0x238] sm:$0xff] }
 0x2c0   :  { %v2136_v59 = vmul.f32 %v6631_v35, %v2135_v49 }
 0x2c1   :  { %v7993_v50 = vpop.eup %6632 }
 0x2c2   :  { %v6635_v5 = vpop.eup %6634  ;;  %v2149_v60 = vmul.f32 %v7993_v50, %v7986_v20  ;;  %v2137_v58 = vadd.f32 %v6631_v35, %v2136_v59  ;;  %vm2154_vm4 = vweird.f32 %v7993_v50  ;;  %v2342_v20 = vld [vmem:[#allocation10 + $0x340] sm:$0xff]  ;;  %v2337_v59 = vld [vmem:[#allocation10 + $0x318] sm:$0xff] }
 0x2c3   :  { %v7999_v55 = vadd.f32 1.0, %v6635_v5  ;;  %vm8012_vm8 = vmor %vm2153_vm6, %vm2154_vm4  ;;  %2558 = vmatpush.msrb.mxu1 %v2342_v20  ;;  %2599 = vmatpush.msrb.mxu3 %v2337_v59  ;;  %v2284_v59 = vld [vmem:[#allocation10 + $0x170] sm:$0xff] }
 0x2c4   :  { %v2150_v19 = vsub.f32 1.0, %v2149_v60  ;;  %v2141_v16 = vsel %vm2140_vm2, %v6631_v35, %v2137_v58  ;;  %v6836_v35 = vld [vmem:[#allocation10 + $0x230] sm:$0xff] }
 0x2c5   :  { %v2146_v28 = vsel %vm2143_vm3, %v2145_v12, %v2141_v16  ;;  %6636 = vrcp.f32 %v7999_v55  ;;  %v2198_v5 = vand.u32 2147483648, %v7999_v55  ;;  %2559 = vmatpush.msrb.mxu1 %v2336_v27  ;;  %v2196_v12 = vand.u32 2147483647, %v7999_v55 }
 0x2c6   :  { %v2163_v37 = vmul.f32 %v2146_v28, %v2000_v61  ;;  %v2151_v43 = vmul.f32 %v7993_v50, %v2150_v19  ;;  %vm2192_vm11 = vweird.f32 %v7999_v55  ;;  %v2332_v28 = vld [vmem:[#allocation10 + $0x2f0] sm:$0xff] }
 0x2c7   :  { %v2079_v7 = vpop.f32.mrf.mxu1  ;;  %v2199_v61 = vor.u32 1.1754944e-38, %v2198_v5  ;;  %vm2197_vm0 = vcmp.eq.f32.partialorder %v2196_v12, 8.507059e+37  ;;  %v2278_v5 = vld [vmem:[#allocation10 + $0x140] sm:$0xff]  ;;  %v2272_v12 = vld [vmem:[#allocation10 + $0x110] sm:$0xff] }
 0x2c8   :  { %v2164_v36 = vadd.f32 %v2163_v37, %v358_v32  ;;  %v2080_v56 = vadd.f32 %v2079_v7, %v2060_v30  ;;  %v2152_v14 = vadd.f32 %v7993_v50, %v2151_v43  ;;  %v2333_v30 = vld [vmem:[#allocation10 + $0x2f8] sm:$0xff] }
 0x2ca   :  { %6638 = vtanh.f32 %v2164_v36  ;;  %v2178_v15 = vadd.f32 %v2080_v56, %v449_v47  ;;  %v2156_v53 = vsel %vm8012_vm8, %v7993_v50, %v2152_v14  ;;  %v2099_v50 = vpop.f32.mrf.mxu2  ;;  %v2327_v47 = vld [vmem:[#allocation10 + $0x2c8] sm:$0xff]  ;;  %v6834_v36 = vld [vmem:[#allocation10 + $0x260] sm:$0xff] }
 0x2cb   :  { %v6637_v49 = vpop.eup %6636  ;;  %v2161_v26 = vsel %vm2158_vm9, %v2160_v29, %v2156_v53  ;;  %v2100_v41 = vadd.f32 %v2099_v50, %v1875_v3  ;;  %v6835_v56 = vld [vmem:[#allocation10 + $0x268] sm:$0xff]  ;;  %v2297_v53 = vld [vmem:[#allocation10 + $0x1d8] sm:$0xff]  ;;  %v6838_v29 = vld [vmem:[#allocation10 + $0x200] sm:$0xff] }
 0x2cc   :  { %v6502_v38 = vmul.f32 -1.442695, %v2178_v15  ;;  %v2188_v6 = vmul.f32 %v6637_v49, %v7999_v55  ;;  %v2166_v60 = vsub.f32 1.0, %v2161_v26  ;;  %vm2193_vm10 = vweird.f32 %v6637_v49  ;;  %v9408_v55 = vld [vmem:[#allocation63_spill] sm:$0xff]  ;;  %v2296_v15 = vld [vmem:[#allocation10 + $0x1d0] sm:$0xff]  ;;  %v2285_v3 = vld [vmem:[#allocation10 + $0x178] sm:$0xff] }
 0x2cd   :  { %v2119_v52 = vpop.f32.mrf.mxu3  ;;  %v2168_v23 = vmul.f32 %v2161_v26, %v7943_v48  ;;  %vm2194_vm15 = vmor %vm2192_vm11, %vm2193_vm10  ;;  %v490_v43 = vadd.f32 %v9408_v55, %v7815_v34  ;;  %v2291_v26 = vld [vmem:[#allocation10 + $0x1a8] sm:$0xff] }
 0x2ce   :  { %6640 = vpow2.f32 %v6502_v38  ;;  %v2189_v42 = vsub.f32 1.0, %v2188_v6  ;;  %v2120_v57 = vadd.f32 %v2119_v52, %v2100_v41  ;;  %v2290_v6 = vld [vmem:[#allocation10 + $0x1a0] sm:$0xff]  ;;  %v2273_v52 = vld [vmem:[#allocation10 + $0x118] sm:$0xff]  ;;  %v2423_v55 = vld [vmem:[#allocation10 + $0x5c8] sm:$0xff] }
 0x2d0   :  { %v6639_v58 = vpop.eup %6638  ;;  %v2190_v22 = vmul.f32 %v6637_v49, %v2189_v42 }
 0x2d1   :  { %v2167_v11 = vmul.f32 %v6639_v58, %v2166_v60  ;;  %v2279_v60 = vld [vmem:[#allocation10 + $0x148] sm:$0xff] }
 0x2d2   :  { %v2191_v19 = vadd.f32 %v6637_v49, %v2190_v22 }
 0x2d3   :  { %v2169_v16 = vadd.f32 %v2168_v23, %v2167_v11  ;;  %v8039_v23 = vpop.permute.xlu2 %2226 }
 0x2d4   :  { %v6641_v40 = vpop.eup %6640  ;;  %v2195_v32 = vsel %vm2194_vm15, %v6637_v49, %v2191_v19  ;;  %v6839_v49 = vld [vmem:[#allocation10 + $0x208] sm:$0xff]  ;;  %9409 = vst [vmem:[#allocation56_spill] sm:$0xff] %v8039_v23  ;;  %vm2228_vm6 = vcmp.eq.s32.totalorder %v8039_v23, 1 }
 0x2d5   :  { %v2186_v17 = vadd.f32 1.0, %v6641_v40  ;;  %v2200_v46 = vsel %vm2197_vm0, %v2199_v61, %v2195_v32  ;;  %v8031_v37 = vsel %vm2174_vm14, %v2169_v16, %v7943_v48  ;;  %v2266_v61 = vld [vmem:[#allocation10 + $0xe0] sm:$0xff]  ;;  %v2267_v16 = vld [vmem:[#allocation10 + $0xe8] sm:$0xff]  ;;  %v2429_v32 = vld [vmem:[#allocation10 + $0x5f8] sm:$0xff] }
 0x2d6   :  { %v2217_v24 = vmul.f32 %v2200_v46, %v2120_v57  ;;  %2460 = vmatmul.f32.vlgmr.msra.gmra.mxu0 %v8031_v37  ;;  %2500 = vmatmul.f32.vlgmr.msra.gmra.mxu2 %v8031_v37  ;;  %v2428_v57 = vld [vmem:[#allocation10 + $0x5f0] sm:$0xff]  ;;  %v2422_v46 = vld [vmem:[#allocation10 + $0x5c0] sm:$0xff] }
 0x2d7   :  { %6642 = vrcp.f32 %v2186_v17  ;;  %2604 = vmatpush.msra.mxu0 %v2332_v28  ;;  %2644 = vmatpush.msra.mxu2 %v2333_v30  ;;  %v2213_v20 = vand.u32 2147483648, %v2186_v17  ;;  %v2211_v38 = vand.u32 2147483647, %v2186_v17  ;;  %vm2207_vm2 = vweird.f32 %v2186_v17  ;;  %v2260_v30 = vld [vmem:[#allocation10 + $0xb0] sm:$0xff] }
 0x2d8   :  { %v2218_v7 = vadd.f32 %v2217_v24, %v490_v43  ;;  %v2254_v43 = vld [vmem:[#allocation10 + $0x80] sm:$0xff]  ;;  %v2255_v24 = vld [vmem:[#allocation10 + $0x88] sm:$0xff] }
 0x2d9   :  { %2605 = vmatpush.msra.mxu0 %v2326_v8  ;;  %2645 = vmatpush.msra.mxu2 %v2327_v47  ;;  %v2214_v42 = vor.u32 1.1754944e-38, %v2213_v20  ;;  %vm2212_vm4 = vcmp.eq.f32.partialorder %v2211_v38, 8.507059e+37  ;;  %v2416_v8 = vld [vmem:[#allocation10 + $0x590] sm:$0xff]  ;;  %v2417_v47 = vld [vmem:[#allocation10 + $0x598] sm:$0xff]  ;;  %v2374_v38 = vld [vmem:[#allocation10 + $0x440] sm:$0xff] }
 0x2da   :  { %6644 = vtanh.f32 %v2218_v7  ;;  %v2248_v7 = vld [vmem:[#allocation10 + $0x50] sm:$0xff] }
 0x2db   :  { %2606 = vmatpush.msra.mxu0 %v6832_v39  ;;  %2646 = vmatpush.msra.mxu2 %v6833_v51  ;;  %v2249_v39 = vld [vmem:[#allocation10 + $0x58] sm:$0xff]  ;;  %v2410_v51 = vld [vmem:[#allocation10 + $0x560] sm:$0xff]  ;;  %v2380_v20 = vld [vmem:[#allocation10 + $0x470] sm:$0xff] }
 0x2dd   :  { %v6643_v33 = vpop.eup %6642  ;;  %2607 = vmatpush.msra.mxu0 %v6834_v36  ;;  %2647 = vmatpush.msra.mxu2 %v6835_v56  ;;  %v2242_v36 = vld [vmem:[#allocation10 + $0x20] sm:$0xff]  ;;  %v2404_v56 = vld [vmem:[#allocation10 + $0x530] sm:$0xff] }
 0x2de   :  { %v2203_v14 = vmul.f32 %v6643_v33, %v2186_v17  ;;  %2540 = vmatmul.f32.vlgmr.msrb.gmra.mxu0 %v8031_v37  ;;  %2580 = vmatmul.f32.vlgmr.msrb.gmra.mxu2 %v8031_v37  ;;  %vm2208_vm1 = vweird.f32 %v6643_v33  ;;  %v2261_v17 = vld [vmem:[#allocation10 + $0xb8] sm:$0xff] }
 0x2df   :  { %2608 = vmatpush.msra.mxu0 %v6836_v35  ;;  %2648 = vmatpush.msra.mxu2 %v6837_v63  ;;  %vm2209_vm3 = vmor %vm2207_vm2, %vm2208_vm1  ;;  %v2405_v35 = vld [vmem:[#allocation10 + $0x538] sm:$0xff]  ;;  %v2398_v63 = vld [vmem:[#allocation10 + $0x500] sm:$0xff] }
 0x2e0   :  { %v2204_v44 = vsub.f32 1.0, %v2203_v14  ;;  %v6645_v11 = vpop.eup %6644  ;;  %v2243_v14 = vld [vmem:[#allocation10 + $0x28] sm:$0xff] }
 0x2e1   :  { %2609 = vmatpush.msra.mxu0 %v6838_v29  ;;  %2649 = vmatpush.msra.mxu2 %v6839_v49  ;;  %v2386_v29 = vld [vmem:[#allocation10 + $0x4a0] sm:$0xff]  ;;  %v2387_v49 = vld [vmem:[#allocation10 + $0x4a8] sm:$0xff] }
 0x2e2   :  { %v2205_v18 = vmul.f32 %v6643_v33, %v2204_v44  ;;  %v2399_v44 = vld [vmem:[#allocation10 + $0x508] sm:$0xff] }
 0x2e3   :  { %2610 = vmatpush.msra.mxu0 %v2296_v15  ;;  %2650 = vmatpush.msra.mxu2 %v2297_v53  ;;  %v2392_v15 = vld [vmem:[#allocation10 + $0x4d0] sm:$0xff]  ;;  %v2393_v53 = vld [vmem:[#allocation10 + $0x4d8] sm:$0xff] }
 0x2e4   :  { %v2206_v27 = vadd.f32 %v6643_v33, %v2205_v18  ;;  %v2381_v18 = vld [vmem:[#allocation10 + $0x478] sm:$0xff] }
 0x2e5   :  { %2611 = vmatpush.msra.mxu0 %v2290_v6  ;;  %2651 = vmatpush.msra.mxu2 %v2291_v26  ;;  %v2375_v6 = vld [vmem:[#allocation10 + $0x448] sm:$0xff]  ;;  %v2368_v26 = vld [vmem:[#allocation10 + $0x410] sm:$0xff] }
 0x2e6   :  { %v2210_v50 = vsel %vm2209_vm3, %v6643_v33, %v2206_v27  ;;  %v2411_v33 = vld [vmem:[#allocation10 + $0x568] sm:$0xff]  ;;  %v2369_v27 = vld [vmem:[#allocation10 + $0x418] sm:$0xff] }
 0x2e7   :  { %v2215_v58 = vsel %vm2212_vm4, %v2214_v42, %v2210_v50  ;;  %2612 = vmatpush.msra.mxu0 %v2284_v59  ;;  %2652 = vmatpush.msra.mxu2 %v2285_v3  ;;  %v2362_v59 = vld [vmem:[#allocation10 + $0x3e0] sm:$0xff]  ;;  %v2363_v3 = vld [vmem:[#allocation10 + $0x3e8] sm:$0xff]  ;;  %v2356_v42 = vld [vmem:[#allocation10 + $0x3b0] sm:$0xff] }
 0x2e8   :  { %v2220_v22 = vsub.f32 1.0, %v2215_v58  ;;  %v2222_v19 = vmul.f32 %v2215_v58, %v7957_v62  ;;  %v2357_v50 = vld [vmem:[#allocation10 + $0x3b8] sm:$0xff]  ;;  %v2344_v58 = vld [vmem:[#allocation10 + $0x350] sm:$0xff] }
 0x2e9   :  { %2613 = vmatpush.msra.mxu0 %v2278_v5  ;;  %2653 = vmatpush.msra.mxu2 %v2279_v60  ;;  %v2350_v5 = vld [vmem:[#allocation10 + $0x380] sm:$0xff]  ;;  %v2351_v60 = vld [vmem:[#allocation10 + $0x388] sm:$0xff] }
 0x2ea   :  { %v2221_v41 = vmul.f32 %v6645_v11, %v2220_v22  ;;  %v2345_v22 = vld [vmem:[#allocation10 + $0x358] sm:$0xff]  ;;  %v2890_v11 = vld [vmem:[#allocation10 + $0x2d0] sm:$0xff] }
 0x2eb   :  { %2614 = vmatpush.msra.mxu0 %v2272_v12  ;;  %2654 = vmatpush.msra.mxu2 %v2273_v52  ;;  %v2338_v12 = vld [vmem:[#allocation10 + $0x320] sm:$0xff]  ;;  %v2339_v52 = vld [vmem:[#allocation10 + $0x328] sm:$0xff] }
 0x2ec   :  { %v2223_v40 = vadd.f32 %v2222_v19, %v2221_v41  ;;  %v2891_v41 = vld [vmem:[#allocation10 + $0x2d8] sm:$0xff]  ;;  %v2884_v19 = vld [vmem:[#allocation10 + $0x2a0] sm:$0xff] }
 0x2ed   :  { %2615 = vmatpush.msra.mxu0 %v2266_v61  ;;  %2655 = vmatpush.msra.mxu2 %v2267_v16  ;;  %v2885_v61 = vld [vmem:[#allocation10 + $0x2a8] sm:$0xff]  ;;  %v2878_v16 = vld [vmem:[#allocation10 + $0x270] sm:$0xff] }
 0x2ee   :  { %v8046_v28 = vsel %vm2228_vm6, %v2223_v40, %v7957_v62  ;;  %v2879_v40 = vld [vmem:[#allocation10 + $0x278] sm:$0xff] }
 0x2ef   :  { %2480 = vmatmul.f32.vlgmr.msra.gmra.mxu1 %v8046_v28  ;;  %2520 = vmatmul.f32.vlgmr.msra.gmra.mxu3 %v8046_v28 }
 0x2f0   :  { %2624 = vmatpush.msra.mxu1 %v2428_v57  ;;  %2664 = vmatpush.msra.mxu3 %v2429_v32  ;;  %v2872_v57 = vld [vmem:[#allocation10 + $0x240] sm:$0xff]  ;;  %v2873_v32 = vld [vmem:[#allocation10 + $0x248] sm:$0xff] }
 0x2f1   :  { %2616 = vmatpush.msra.mxu0 %v2260_v30  ;;  %2656 = vmatpush.msra.mxu2 %v2261_v17  ;;  %v2866_v30 = vld [vmem:[#allocation10 + $0x210] sm:$0xff]  ;;  %v2867_v17 = vld [vmem:[#allocation10 + $0x218] sm:$0xff] }
 0x2f2   :  { %2625 = vmatpush.msra.mxu1 %v2422_v46  ;;  %2665 = vmatpush.msra.mxu3 %v2423_v55  ;;  %v2860_v46 = vld [vmem:[#allocation10 + $0x1e0] sm:$0xff]  ;;  %v2861_v55 = vld [vmem:[#allocation10 + $0x1e8] sm:$0xff] }
 0x2f3   :  { %2617 = vmatpush.msra.mxu0 %v2254_v43  ;;  %2657 = vmatpush.msra.mxu2 %v2255_v24  ;;  %v2854_v43 = vld [vmem:[#allocation10 + $0x1b0] sm:$0xff]  ;;  %v2855_v24 = vld [vmem:[#allocation10 + $0x1b8] sm:$0xff] }
 0x2f4   :  { %2626 = vmatpush.msra.mxu1 %v2416_v8  ;;  %2666 = vmatpush.msra.mxu3 %v2417_v47  ;;  %v2848_v8 = vld [vmem:[#allocation10 + $0x180] sm:$0xff]  ;;  %v2849_v47 = vld [vmem:[#allocation10 + $0x188] sm:$0xff] }
 0x2f5   :  { %2618 = vmatpush.msra.mxu0 %v2248_v7  ;;  %2658 = vmatpush.msra.mxu2 %v2249_v39  ;;  %v2842_v7 = vld [vmem:[#allocation10 + $0x150] sm:$0xff]  ;;  %v2843_v39 = vld [vmem:[#allocation10 + $0x158] sm:$0xff] }
 0x2f6   :  { %2627 = vmatpush.msra.mxu1 %v2410_v51  ;;  %2667 = vmatpush.msra.mxu3 %v2411_v33  ;;  %v2836_v51 = vld [vmem:[#allocation10 + $0x120] sm:$0xff]  ;;  %v2837_v33 = vld [vmem:[#allocation10 + $0x128] sm:$0xff] }
 0x2f7   :  { %2560 = vmatmul.f32.vlgmr.msrb.gmra.mxu1 %v8046_v28  ;;  %2600 = vmatmul.f32.vlgmr.msrb.gmra.mxu3 %v8046_v28 }
 0x2f8   :  { %2619 = vmatpush.msra.mxu0 %v2242_v36  ;;  %2628 = vmatpush.msra.mxu1 %v2404_v56  ;;  %v2830_v36 = vld [vmem:[#allocation10 + $0xf0] sm:$0xff]  ;;  %v2831_v56 = vld [vmem:[#allocation10 + $0xf8] sm:$0xff] }
 0x2f9   :  { %2659 = vmatpush.msra.mxu2 %v2243_v14  ;;  %2668 = vmatpush.msra.mxu3 %v2405_v35  ;;  %v2824_v14 = vld [vmem:[#allocation10 + $0xc0] sm:$0xff]  ;;  %v2986_v35 = vld [vmem:[#allocation10 + $0x5d0] sm:$0xff] }
 0x2fa   :  { %2620 = vmatmul.f32.vlgmr.msra.gmra.mxu0 %v8031_v37  ;;  %2660 = vmatmul.f32.vlgmr.msra.gmra.mxu2 %v8031_v37 }
 0x2fb   :  { %2629 = vmatpush.msra.mxu1 %v2398_v63  ;;  %2669 = vmatpush.msra.mxu3 %v2399_v44  ;;  %v2825_v63 = vld [vmem:[#allocation10 + $0xc8] sm:$0xff]  ;;  %v2987_v44 = vld [vmem:[#allocation10 + $0x5d8] sm:$0xff] }
 0x2fc   :  { %3006 = vmatpush.msrb.mxu0 %v2890_v11  ;;  %3046 = vmatpush.msrb.mxu2 %v2891_v41  ;;  %v2886_v11 = vld [vmem:[#allocation10 + $0x2b0] sm:$0xff]  ;;  %v2887_v41 = vld [vmem:[#allocation10 + $0x2b8] sm:$0xff] }
 0x2fd   :  { %2630 = vmatpush.msra.mxu1 %v2392_v15  ;;  %2670 = vmatpush.msra.mxu3 %v2393_v53  ;;  %v2818_v15 = vld [vmem:[#allocation10 + $0x90] sm:$0xff]  ;;  %v2980_v53 = vld [vmem:[#allocation10 + $0x5a0] sm:$0xff] }
 0x2fe   :  { %3007 = vmatpush.msrb.mxu0 %v2884_v19  ;;  %3047 = vmatpush.msrb.mxu2 %v2885_v61  ;;  %v2950_v19 = vld [vmem:[#allocation10 + $0x4b0] sm:$0xff]  ;;  %v2951_v61 = vld [vmem:[#allocation10 + $0x4b8] sm:$0xff] }
 0x2ff   :  { %2631 = vmatpush.msra.mxu1 %v2386_v29  ;;  %2671 = vmatpush.msra.mxu3 %v2387_v49  ;;  %v2819_v29 = vld [vmem:[#allocation10 + $0x98] sm:$0xff]  ;;  %v2981_v49 = vld [vmem:[#allocation10 + $0x5a8] sm:$0xff] }
 0x300   :  { %3008 = vmatpush.msrb.mxu0 %v2878_v16  ;;  %3048 = vmatpush.msrb.mxu2 %v2879_v40  ;;  %v2880_v16 = vld [vmem:[#allocation10 + $0x280] sm:$0xff]  ;;  %v2881_v40 = vld [vmem:[#allocation10 + $0x288] sm:$0xff] }
 0x301   :  { %2632 = vmatpush.msra.mxu1 %v2380_v20  ;;  %2672 = vmatpush.msra.mxu3 %v2381_v18  ;;  %v2812_v20 = vld [vmem:[#allocation10 + $0x60] sm:$0xff]  ;;  %v2974_v18 = vld [vmem:[#allocation10 + $0x570] sm:$0xff] }
 0x302   :  { %3009 = vmatpush.msrb.mxu0 %v2872_v57  ;;  %3049 = vmatpush.msrb.mxu2 %v2873_v32  ;;  %v8056_v57 = vld [vmem:[#allocation17 + $0x6] sm:$0x3f] }
 0x303   :  { %2633 = vmatpush.msra.mxu1 %v2374_v38  ;;  %2673 = vmatpush.msra.mxu3 %v2375_v6  ;;  %v2813_v38 = vld [vmem:[#allocation10 + $0x68] sm:$0xff]  ;;  %v2975_v6 = vld [vmem:[#allocation10 + $0x578] sm:$0xff]  ;;  %v2944_v32 = vld [vmem:[#allocation10 + $0x480] sm:$0xff] }
 0x304   :  { %3010 = vmatpush.msrb.mxu0 %v2866_v30  ;;  %3050 = vmatpush.msrb.mxu2 %v2867_v17  ;;  %v2945_v30 = vld [vmem:[#allocation10 + $0x488] sm:$0xff]  ;;  %v2874_v17 = vld [vmem:[#allocation10 + $0x250] sm:$0xff] }
 0x305   :  { %2634 = vmatpush.msra.mxu1 %v2368_v26  ;;  %2674 = vmatpush.msra.mxu3 %v2369_v27  ;;  %v2806_v26 = vld [vmem:[#allocation10 + $0x30] sm:$0xff]  ;;  %v2968_v27 = vld [vmem:[#allocation10 + $0x540] sm:$0xff] }
 0x306   :  { %3011 = vmatpush.msrb.mxu0 %v2860_v46  ;;  %3051 = vmatpush.msrb.mxu2 %v2861_v55  ;;  %v2875_v46 = vld [vmem:[#allocation10 + $0x258] sm:$0xff]  ;;  %v2938_v55 = vld [vmem:[#allocation10 + $0x450] sm:$0xff] }
 0x307   :  { %2635 = vmatpush.msra.mxu1 %v2362_v59  ;;  %2675 = vmatpush.msra.mxu3 %v2363_v3  ;;  %v2807_v59 = vld [vmem:[#allocation10 + $0x38] sm:$0xff]  ;;  %v2969_v3 = vld [vmem:[#allocation10 + $0x548] sm:$0xff] }
 0x308   :  { %3012 = vmatpush.msrb.mxu0 %v2854_v43  ;;  %3052 = vmatpush.msrb.mxu2 %v2855_v24  ;;  %v2939_v43 = vld [vmem:[#allocation10 + $0x458] sm:$0xff]  ;;  %v2432_v24 = vperm.slane %v8056_v57, 0 }
 0x309   :  { %2636 = vmatpush.msra.mxu1 %v2356_v42  ;;  %2676 = vmatpush.msra.mxu3 %v2357_v50  ;;  %v2800_v42 = vld [vmem:[#allocation10] sm:$0xff]  ;;  %v2962_v50 = vld [vmem:[#allocation10 + $0x510] sm:$0xff] }
 0x30a   :  { %3013 = vmatpush.msrb.mxu0 %v2848_v8  ;;  %3053 = vmatpush.msrb.mxu2 %v2849_v47  ;;  %v2868_v8 = vld [vmem:[#allocation10 + $0x220] sm:$0xff]  ;;  %v2869_v47 = vld [vmem:[#allocation10 + $0x228] sm:$0xff] }
 0x30b   :  { %2637 = vmatpush.msra.mxu1 %v2350_v5  ;;  %2677 = vmatpush.msra.mxu3 %v2351_v60  ;;  %v2801_v5 = vld [vmem:[#allocation10 + $0x8] sm:$0xff]  ;;  %v2963_v60 = vld [vmem:[#allocation10 + $0x518] sm:$0xff] }
 0x30c   :  { %3014 = vmatpush.msrb.mxu0 %v2842_v7  ;;  %3054 = vmatpush.msrb.mxu2 %v2843_v39  ;;  %v2932_v39 = vld [vmem:[#allocation10 + $0x420] sm:$0xff] }
 0x30d   :  { %2638 = vmatpush.msra.mxu1 %v2344_v58  ;;  %2678 = vmatpush.msra.mxu3 %v2345_v22  ;;  %v2892_v58 = vld [vmem:[#allocation10 + $0x2e0] sm:$0xff]  ;;  %v2893_v22 = vld [vmem:[#allocation10 + $0x2e8] sm:$0xff] }
 0x30e   :  { %3015 = vmatpush.msrb.mxu0 %v2836_v51  ;;  %3055 = vmatpush.msrb.mxu2 %v2837_v33  ;;  %v2933_v51 = vld [vmem:[#allocation10 + $0x428] sm:$0xff]  ;;  %v2862_v33 = vld [vmem:[#allocation10 + $0x1f0] sm:$0xff] }
 0x30f   :  { %2639 = vmatpush.msra.mxu1 %v2338_v12  ;;  %2679 = vmatpush.msra.mxu3 %v2339_v52  ;;  %v2956_v12 = vld [vmem:[#allocation10 + $0x4e0] sm:$0xff]  ;;  %v2957_v52 = vld [vmem:[#allocation10 + $0x4e8] sm:$0xff] }
 0x310   :  { %2640 = vmatmul.f32.vlgmr.msra.gmra.mxu1 %v8046_v28  ;;  %2680 = vmatmul.f32.vlgmr.msra.gmra.mxu3 %v8046_v28 }
 0x311   :  { %3016 = vmatpush.msrb.mxu0 %v2830_v36  ;;  %3056 = vmatpush.msrb.mxu2 %v2831_v56  ;;  %v2863_v36 = vld [vmem:[#allocation10 + $0x1f8] sm:$0xff]  ;;  %v2926_v56 = vld [vmem:[#allocation10 + $0x3f0] sm:$0xff] }
 0x312   :  { %3026 = vmatpush.msrb.mxu1 %v2986_v35  ;;  %3066 = vmatpush.msrb.mxu3 %v2987_v44  ;;  %v2857_v44 = vld [vmem:[#allocation10 + $0x1c8] sm:$0xff] }
 0x313   :  { %3017 = vmatpush.msrb.mxu0 %v2824_v14  ;;  %3057 = vmatpush.msrb.mxu2 %v2825_v63  ;;  %v2927_v14 = vld [vmem:[#allocation10 + $0x3f8] sm:$0xff]  ;;  %v2856_v63 = vld [vmem:[#allocation10 + $0x1c0] sm:$0xff] }
 0x314   :  { %3027 = vmatpush.msrb.mxu1 %v2980_v53  ;;  %3067 = vmatpush.msrb.mxu3 %v2981_v49  ;;  %v2921_v49 = vld [vmem:[#allocation10 + $0x3c8] sm:$0xff] }
 0x315   :  { %3018 = vmatpush.msrb.mxu0 %v2818_v15  ;;  %3058 = vmatpush.msrb.mxu2 %v2819_v29  ;;  %v2920_v29 = vld [vmem:[#allocation10 + $0x3c0] sm:$0xff] }
 0x316   :  { %3028 = vmatpush.msrb.mxu1 %v2974_v18  ;;  %3068 = vmatpush.msrb.mxu3 %v2975_v6 }
 0x317   :  { %3019 = vmatpush.msrb.mxu0 %v2812_v20  ;;  %3059 = vmatpush.msrb.mxu2 %v2813_v38  ;;  %v9410_v20 = vld [vmem:[#allocation32_spill] sm:$0xff]  ;;  %v2433_v38 = vperm.slane %v8056_v57, 1 }
 0x318   :  { %3029 = vmatpush.msrb.mxu1 %v2968_v27  ;;  %3069 = vmatpush.msrb.mxu3 %v2969_v3  ;;  %v279_v18 = vadd.f32 %v9410_v20, %v7615_v25  ;;  %v2851_v27 = vld [vmem:[#allocation10 + $0x198] sm:$0xff] }
 0x319   :  { %3020 = vmatpush.msrb.mxu0 %v2806_v26  ;;  %3060 = vmatpush.msrb.mxu2 %v2807_v59  ;;  %v2850_v26 = vld [vmem:[#allocation10 + $0x190] sm:$0xff]  ;;  %v2915_v3 = vld [vmem:[#allocation10 + $0x398] sm:$0xff] }
 0x31a   :  { %3030 = vmatpush.msrb.mxu1 %v2962_v50  ;;  %3070 = vmatpush.msrb.mxu3 %v2963_v60  ;;  %v2914_v59 = vld [vmem:[#allocation10 + $0x390] sm:$0xff]  ;;  %v2844_v50 = vld [vmem:[#allocation10 + $0x160] sm:$0xff] }
 0x31b   :  { %3021 = vmatpush.msrb.mxu0 %v2800_v42  ;;  %3061 = vmatpush.msrb.mxu2 %v2801_v5  ;;  %v2845_v5 = vld [vmem:[#allocation10 + $0x168] sm:$0xff]  ;;  %v2908_v60 = vld [vmem:[#allocation10 + $0x360] sm:$0xff] }
 0x31c   :  { %3031 = vmatpush.msrb.mxu1 %v2956_v12  ;;  %3071 = vmatpush.msrb.mxu3 %v2957_v52  ;;  %v2838_v52 = vld [vmem:[#allocation10 + $0x130] sm:$0xff] }
 0x31d   :  { %3086 = vmatpush.msra.mxu0 %v2892_v58  ;;  %3126 = vmatpush.msra.mxu2 %v2893_v22  ;;  %v2909_v58 = vld [vmem:[#allocation10 + $0x368] sm:$0xff] }
 0x31e   :  { %3032 = vmatpush.msrb.mxu1 %v2950_v19  ;;  %3072 = vmatpush.msrb.mxu3 %v2951_v61  ;;  %v2902_v19 = vld [vmem:[#allocation10 + $0x330] sm:$0xff]  ;;  %v2903_v61 = vld [vmem:[#allocation10 + $0x338] sm:$0xff] }
 0x31f   :  { %3087 = vmatpush.msra.mxu0 %v2886_v11  ;;  %3127 = vmatpush.msra.mxu2 %v2887_v41  ;;  %v2839_v11 = vld [vmem:[#allocation10 + $0x138] sm:$0xff] }
 0x320   :  { %3033 = vmatpush.msrb.mxu1 %v2944_v32  ;;  %3073 = vmatpush.msrb.mxu3 %v2945_v30  ;;  %v2832_v30 = vld [vmem:[#allocation10 + $0x100] sm:$0xff] }
 0x321   :  { %3088 = vmatpush.msra.mxu0 %v2880_v16  ;;  %3128 = vmatpush.msra.mxu2 %v2881_v40  ;;  %v9411_v16 = vld [vmem:[#allocation34_spill] sm:$0xff] }
 0x322   :  { %3034 = vmatpush.msrb.mxu1 %v2938_v55  ;;  %3074 = vmatpush.msrb.mxu3 %v2939_v43  ;;  %v320_v40 = vadd.f32 %v9411_v16, %v7645_v45  ;;  %v2897_v55 = vld [vmem:[#allocation10 + $0x308] sm:$0xff]  ;;  %v2435_v43 = vperm.slane %v8056_v57, 3  ;;  %v2952_v16 = vld [vmem:[#allocation10 + $0x4c0] sm:$0xff]  ;;  %9455 = vst [vmem:[#allocation34_spill] sm:$0xff] %v8598_v21 }
 0x323   :  { %3089 = vmatpush.msra.mxu0 %v2874_v17  ;;  %3129 = vmatpush.msra.mxu2 %v2875_v46  ;;  %v2833_v17 = vld [vmem:[#allocation10 + $0x108] sm:$0xff]  ;;  %v2896_v46 = vld [vmem:[#allocation10 + $0x300] sm:$0xff] }
 0x324   :  { %3035 = vmatpush.msrb.mxu1 %v2932_v39  ;;  %3075 = vmatpush.msrb.mxu3 %v2933_v51  ;;  %v2989_v51 = vld [vmem:[#allocation10 + $0x5e8] sm:$0xff] }
 0x325   :  { %3090 = vmatpush.msra.mxu0 %v2868_v8  ;;  %3130 = vmatpush.msra.mxu2 %v2869_v47  ;;  %v2826_v8 = vld [vmem:[#allocation10 + $0xd0] sm:$0xff]  ;;  %v2988_v47 = vld [vmem:[#allocation10 + $0x5e0] sm:$0xff] }
 0x326   :  { %3036 = vmatpush.msrb.mxu1 %v2926_v56  ;;  %3076 = vmatpush.msrb.mxu3 %v2927_v14  ;;  %v2982_v56 = vld [vmem:[#allocation10 + $0x5b0] sm:$0xff]  ;;  %v2821_v14 = vld [vmem:[#allocation10 + $0xa8] sm:$0xff] }
 0x327   :  { %3091 = vmatpush.msra.mxu0 %v2862_v33  ;;  %3131 = vmatpush.msra.mxu2 %v2863_v36  ;;  %v2820_v36 = vld [vmem:[#allocation10 + $0xa0] sm:$0xff] }
 0x328   :  { %3037 = vmatpush.msrb.mxu1 %v2920_v29  ;;  %3077 = vmatpush.msrb.mxu3 %v2921_v49  ;;  %v2815_v29 = vld [vmem:[#allocation10 + $0x78] sm:$0xff] }
 0x329   :  { %3092 = vmatpush.msra.mxu0 %v2856_v63  ;;  %3132 = vmatpush.msra.mxu2 %v2857_v44 }
 0x32a   :  { %3038 = vmatpush.msrb.mxu1 %v2914_v59  ;;  %3078 = vmatpush.msrb.mxu3 %v2915_v3  ;;  %v2970_v59 = vld [vmem:[#allocation10 + $0x550] sm:$0xff]  ;;  %v2809_v3 = vld [vmem:[#allocation10 + $0x48] sm:$0xff] }
 0x32b   :  { %3093 = vmatpush.msra.mxu0 %v2850_v26  ;;  %3133 = vmatpush.msra.mxu2 %v2851_v27  ;;  %v2808_v27 = vld [vmem:[#allocation10 + $0x40] sm:$0xff] }
 0x32c   :  { %3039 = vmatpush.msrb.mxu1 %v2908_v60  ;;  %3079 = vmatpush.msrb.mxu3 %v2909_v58  ;;  %v2964_v60 = vld [vmem:[#allocation10 + $0x520] sm:$0xff]  ;;  %v2803_v58 = vld [vmem:[#allocation10 + $0x18] sm:$0xff] }
 0x32d   :  { %3094 = vmatpush.msra.mxu0 %v2844_v50  ;;  %3134 = vmatpush.msra.mxu2 %v2845_v5  ;;  %v2802_v5 = vld [vmem:[#allocation10 + $0x10] sm:$0xff] }
 0x32e   :  { %3040 = vmatpush.msrb.mxu1 %v2902_v19  ;;  %3080 = vmatpush.msrb.mxu3 %v2903_v61 }
 0x32f   :  { %3095 = vmatpush.msra.mxu0 %v2838_v52  ;;  %3135 = vmatpush.msra.mxu2 %v2839_v11  ;;  %v2958_v11 = vld [vmem:[#allocation10 + $0x4f0] sm:$0xff] }
 0x330   :  { %3041 = vmatpush.msrb.mxu1 %v2896_v46  ;;  %3081 = vmatpush.msrb.mxu3 %v2897_v55  ;;  %v2947_v46 = vld [vmem:[#allocation10 + $0x498] sm:$0xff]  ;;  %v2434_v55 = vperm.slane %v8056_v57, 2 }
 0x331   :  { %3096 = vmatpush.msra.mxu0 %v2832_v30  ;;  %3136 = vmatpush.msra.mxu2 %v2833_v17  ;;  %v2946_v17 = vld [vmem:[#allocation10 + $0x490] sm:$0xff] }
 0x332   :  { %3106 = vmatpush.msra.mxu1 %v2988_v47  ;;  %3146 = vmatpush.msra.mxu3 %v2989_v51  ;;  %v2941_v47 = vld [vmem:[#allocation10 + $0x468] sm:$0xff] }
 0x333   :  { %3097 = vmatpush.msra.mxu0 %v2826_v8  ;;  %v2940_v8 = vld [vmem:[#allocation10 + $0x460] sm:$0xff] }
 0x334   :  { %3107 = vmatpush.msra.mxu1 %v2982_v56  ;;  %v2935_v56 = vld [vmem:[#allocation10 + $0x438] sm:$0xff] }
 0x335   :  { %3098 = vmatpush.msra.mxu0 %v2820_v36  ;;  %v2934_v36 = vld [vmem:[#allocation10 + $0x430] sm:$0xff] }
 0x353   :  { %v2461_v7 = vpop.f32.mrf.mxu0 }
 0x354   :  { %v2462_v35 = vadd.f32 %v2461_v7, %v2432_v24  ;;  %v2827_v7 = vld [vmem:[#allocation10 + $0xd8] sm:$0xff] }
 0x355   :  { %3137 = vmatpush.msra.mxu2 %v2827_v7 }
 0x357   :  { %3138 = vmatpush.msra.mxu2 %v2821_v14 }
 0x359   :  { %v2501_v15 = vpop.f32.mrf.mxu2  ;;  %3139 = vmatpush.msra.mxu2 %v2815_v29 }
 0x35a   :  { %v2502_v22 = vadd.f32 %v2501_v15, %v2433_v38  ;;  %v2814_v15 = vld [vmem:[#allocation10 + $0x70] sm:$0xff] }
 0x35b   :  { %v9412_v38 = vld [vmem:[#allocation48_spill] sm:$0xff]  ;;  %3099 = vmatpush.msra.mxu0 %v2814_v15  ;;  %3140 = vmatpush.msra.mxu2 %v2809_v3  ;;  %v2541_v61 = vpop.f32.mrf.mxu0  ;;  %v2923_v3 = vld [vmem:[#allocation10 + $0x3d8] sm:$0xff] }
 0x35d   :  { %3100 = vmatpush.msra.mxu0 %v2808_v27  ;;  %3141 = vmatpush.msra.mxu2 %v2803_v58 }
 0x35f   :  { %3101 = vmatpush.msra.mxu0 %v2802_v5 }
 0x361   :  { %v2581_v39 = vpop.f32.mrf.mxu2 }
 0x362   :  { %v2582_v44 = vadd.f32 %v2581_v39, %v2435_v43 }
 0x36c   :  { %v2481_v53 = vpop.f32.mrf.mxu1 }
 0x36d   :  { %v2482_v6 = vadd.f32 %v2481_v53, %v2462_v35  ;;  %v2983_v35 = vld [vmem:[#allocation10 + $0x5b8] sm:$0xff]  ;;  %v2976_v53 = vld [vmem:[#allocation10 + $0x580] sm:$0xff] }
 0x36e   :  { %3147 = vmatpush.msra.mxu3 %v2983_v35  ;;  %3108 = vmatpush.msra.mxu1 %v2976_v53  ;;  %v2436_v35 = vperm.slane %v8056_v57, 4 }
 0x36f   :  { %v2685_v42 = vadd.f32 %v2482_v6, %v279_v18  ;;  %v2977_v18 = vld [vmem:[#allocation10 + $0x588] sm:$0xff]  ;;  %v405_v6 = vadd.f32 %v9412_v38, %v7748_v2 }
 0x370   :  { %3148 = vmatpush.msra.mxu3 %v2977_v18  ;;  %3109 = vmatpush.msra.mxu1 %v2970_v59  ;;  %v2929_v18 = vld [vmem:[#allocation10 + $0x408] sm:$0xff]  ;;  %v2922_v59 = vld [vmem:[#allocation10 + $0x3d0] sm:$0xff] }
 0x371   :  { %v6503_v12 = vmul.f32 -1.442695, %v2685_v42  ;;  %v2971_v42 = vld [vmem:[#allocation10 + $0x558] sm:$0xff] }
 0x372   :  { %v2521_v41 = vpop.f32.mrf.mxu3  ;;  %3149 = vmatpush.msra.mxu3 %v2971_v42  ;;  %3110 = vmatpush.msra.mxu1 %v2964_v60  ;;  %v9413_v42 = vld [vmem:[#allocation43_spill] sm:$0xff] }
 0x373   :  { %6646 = vpow2.f32 %v6503_v12  ;;  %v2522_v32 = vadd.f32 %v2521_v41, %v2502_v22  ;;  %v2965_v22 = vld [vmem:[#allocation10 + $0x528] sm:$0xff]  ;;  %v2959_v41 = vld [vmem:[#allocation10 + $0x4f8] sm:$0xff]  ;;  %9457 = vst [vmem:[#allocation43_spill] sm:$0xff] %v8610_v10 }
 0x374   :  { %3150 = vmatpush.msra.mxu3 %v2965_v22  ;;  %3111 = vmatpush.msra.mxu1 %v2958_v11  ;;  %v2561_v43 = vpop.f32.mrf.mxu1  ;;  %v2917_v11 = vld [vmem:[#allocation10 + $0x3a8] sm:$0xff] }
 0x375   :  { %v2686_v24 = vadd.f32 %v2522_v32, %v320_v40  ;;  %v2953_v40 = vld [vmem:[#allocation10 + $0x4c8] sm:$0xff] }
 0x376   :  { %3151 = vmatpush.msra.mxu3 %v2959_v41  ;;  %3112 = vmatpush.msra.mxu1 %v2952_v16  ;;  %v9414_v41 = vld [vmem:[#allocation60_spill] sm:$0xff] }
 0x377   :  { %v6504_v33 = vmul.f32 -1.442695, %v2686_v24  ;;  %v2621_v29 = vpop.f32.mrf.mxu0  ;;  %9458 = vst [vmem:[#allocation60_spill] sm:$0xff] %v8618_v4 }
 0x378   :  { %3152 = vmatpush.msra.mxu3 %v2953_v40  ;;  %3113 = vmatpush.msra.mxu1 %v2946_v17  ;;  %v2622_v5 = vadd.f32 %v2621_v29, %v2436_v35  ;;  %v2910_v17 = vld [vmem:[#allocation10 + $0x370] sm:$0xff]  ;;  %v2899_v35 = vld [vmem:[#allocation10 + $0x318] sm:$0xff] }
 0x379   :  { %v6647_v63 = vpop.eup %6646  ;;  %6648 = vpow2.f32 %v6504_v33 }
 0x37a   :  { %v8065_v49 = vadd.f32 1.0, %v6647_v63  ;;  %v2601_v20 = vpop.f32.mrf.mxu3  ;;  %3153 = vmatpush.msra.mxu3 %v2947_v46  ;;  %3114 = vmatpush.msra.mxu1 %v2940_v8  ;;  %v2911_v46 = vld [vmem:[#allocation10 + $0x378] sm:$0xff] }
 0x37b   :  { %v2602_v26 = vadd.f32 %v2601_v20, %v2582_v44  ;;  %v2542_v44 = vadd.f32 %v2541_v61, %v2434_v55  ;;  %v2928_v20 = vld [vmem:[#allocation10 + $0x400] sm:$0xff]  ;;  %v446_v61 = vadd.f32 %v9414_v41, %v7768_v13 }
 0x37c   :  { %6650 = vrcp.f32 %v8065_v49  ;;  %v2706_v7 = vand.u32 2147483648, %v8065_v49  ;;  %v2704_v33 = vand.u32 2147483647, %v8065_v49  ;;  %3154 = vmatpush.msra.mxu3 %v2941_v47  ;;  %vm2700_vm9 = vweird.f32 %v8065_v49  ;;  %3115 = vmatpush.msra.mxu1 %v2934_v36  ;;  %v2888_v41 = vld [vmem:[#allocation10 + $0x2c0] sm:$0xff] }
 0x37d   :  { %v2739_v50 = vadd.f32 %v2602_v26, %v405_v6  ;;  %v2562_v26 = vadd.f32 %v2561_v43, %v2542_v44  ;;  %v2661_v44 = vpop.f32.mrf.mxu2 }
 0x37e   :  { %v2707_v38 = vor.u32 1.1754944e-38, %v2706_v7  ;;  %3155 = vmatpush.msra.mxu3 %v2935_v56  ;;  %vm2705_vm11 = vcmp.eq.f32.partialorder %v2704_v33, 8.507059e+37  ;;  %3116 = vmatpush.msra.mxu1 %v2928_v20  ;;  %v2904_v7 = vld [vmem:[#allocation10 + $0x340] sm:$0xff]  ;;  %v2437_v33 = vperm.slane %v8056_v57, 5  ;;  %v2898_v56 = vld [vmem:[#allocation10 + $0x310] sm:$0xff] }
 0x37f   :  { %v6649_v12 = vpop.eup %6648  ;;  %v6505_v52 = vmul.f32 -1.442695, %v2739_v50 }
 0x380   :  { %v8070_v19 = vadd.f32 1.0, %v6649_v12  ;;  %3156 = vmatpush.msra.mxu3 %v2929_v18  ;;  %3117 = vmatpush.msra.mxu1 %v2922_v59 }
 0x381   :  { %6652 = vpow2.f32 %v6505_v52  ;;  %v2916_v52 = vld [vmem:[#allocation10 + $0x3a0] sm:$0xff] }
 0x382   :  { %v6651_v32 = vpop.eup %6650  ;;  %6654 = vrcp.f32 %v8070_v19  ;;  %v2721_v58 = vand.u32 2147483648, %v8070_v19  ;;  %v2719_v16 = vand.u32 2147483647, %v8070_v19  ;;  %3157 = vmatpush.msra.mxu3 %v2923_v3  ;;  %vm2715_vm0 = vweird.f32 %v8070_v19  ;;  %3118 = vmatpush.msra.mxu1 %v2916_v52 }
 0x383   :  { %v2696_v30 = vmul.f32 %v6651_v32, %v8065_v49  ;;  %vm2701_vm8 = vweird.f32 %v6651_v32  ;;  %v361_v49 = vadd.f32 %v9413_v42, %v9394_v54 }
 0x384   :  { %vm2702_vm10 = vmor %vm2700_vm9, %vm2701_vm8  ;;  %3158 = vmatpush.msra.mxu3 %v2917_v11  ;;  %3119 = vmatpush.msra.mxu1 %v2910_v17  ;;  %vm2720_vm2 = vcmp.eq.f32.partialorder %v2719_v16, 8.507059e+37  ;;  %v2877_v17 = vld [vmem:[#allocation10 + $0x268] sm:$0xff] }
 0x385   :  { %v2697_v24 = vsub.f32 1.0, %v2696_v30 }
 0x386   :  { %3159 = vmatpush.msra.mxu3 %v2911_v46  ;;  %3120 = vmatpush.msra.mxu1 %v2904_v7 }
 0x387   :  { %v6653_v39 = vpop.eup %6652  ;;  %v2698_v51 = vmul.f32 %v6651_v32, %v2697_v24  ;;  %v2722_v24 = vor.u32 1.1754944e-38, %v2721_v58 }
 0x388   :  { %v6655_v14 = vpop.eup %6654  ;;  %v8078_v63 = vadd.f32 1.0, %v6653_v39  ;;  %v2905_v39 = vld [vmem:[#allocation10 + $0x348] sm:$0xff]  ;;  %3121 = vmatpush.msra.mxu1 %v2898_v56  ;;  %v2852_v56 = vld [vmem:[#allocation10 + $0x1a0] sm:$0xff] }
 0x389   :  { %v2711_v15 = vmul.f32 %v6655_v14, %v8070_v19  ;;  %v2699_v53 = vadd.f32 %v6651_v32, %v2698_v51  ;;  %vm2716_vm15 = vweird.f32 %v6655_v14  ;;  %3160 = vmatpush.msra.mxu3 %v2905_v39 }
 0x38a   :  { %6656 = vrcp.f32 %v8078_v63  ;;  %vm2717_vm1 = vmor %vm2715_vm0, %vm2716_vm15  ;;  %vm2754_vm4 = vweird.f32 %v8078_v63 }
 0x38b   :  { %v2712_v6 = vsub.f32 1.0, %v2711_v15  ;;  %v2703_v27 = vsel %vm2702_vm10, %v6651_v32, %v2699_v53  ;;  %v2758_v53 = vand.u32 2147483647, %v8078_v63  ;;  %3161 = vmatpush.msra.mxu3 %v2899_v35  ;;  %v2853_v35 = vld [vmem:[#allocation10 + $0x1a8] sm:$0xff] }
 0x38c   :  { %v2708_v50 = vsel %vm2705_vm11, %v2707_v38, %v2703_v27  ;;  %v2662_v38 = vadd.f32 %v2661_v44, %v2437_v33 }
 0x38d   :  { %v2713_v60 = vmul.f32 %v6655_v14, %v2712_v6  ;;  %v2725_v22 = vmul.f32 %v2708_v50, %v2562_v26  ;;  %v2641_v12 = vpop.f32.mrf.mxu1  ;;  %v8097_v6 = vpop.permute.xlu0 %2734  ;;  %vm2759_vm9 = vcmp.eq.f32.partialorder %v2758_v53, 8.507059e+37  ;;  %v2847_v53 = vld [vmem:[#allocation10 + $0x178] sm:$0xff] }
 0x38e   :  { %v2642_v40 = vadd.f32 %v2641_v12, %v2622_v5  ;;  %9415 = vst [vmem:[#allocation70_spill] sm:$0xff] %v8097_v6  ;;  %vm2736_vm10 = vcmp.eq.s32.totalorder %v8097_v6, 1  ;;  %v2895_v12 = vld [vmem:[#allocation10 + $0x2f8] sm:$0xff] }
 0x38f   :  { %v2714_v32 = vadd.f32 %v6655_v14, %v2713_v60  ;;  %v2726_v30 = vadd.f32 %v2725_v22, %v361_v49  ;;  %v2894_v22 = vld [vmem:[#allocation10 + $0x2f0] sm:$0xff] }
 0x390   :  { %v6657_v55 = vpop.eup %6656  ;;  %v2740_v43 = vadd.f32 %v2642_v40, %v446_v61  ;;  %v2889_v61 = vld [vmem:[#allocation10 + $0x2c8] sm:$0xff]  ;;  %v2882_v40 = vld [vmem:[#allocation10 + $0x290] sm:$0xff] }
 0x391   :  { %v2718_v8 = vsel %vm2717_vm1, %v6655_v14, %v2714_v32  ;;  %6658 = vtanh.f32 %v2726_v30  ;;  %v2750_v47 = vmul.f32 %v6657_v55, %v8078_v63  ;;  %v2760_v14 = vand.u32 2147483648, %v8078_v63  ;;  %v9416_v63 = vld [vmem:[#allocation61_spill] sm:$0xff]  ;;  %v2876_v30 = vld [vmem:[#allocation10 + $0x260] sm:$0xff] }
 0x392   :  { %v6506_v19 = vmul.f32 -1.442695, %v2740_v43  ;;  %v2723_v51 = vsel %vm2720_vm2, %v2722_v24, %v2718_v8  ;;  %vm2755_vm3 = vweird.f32 %v6657_v55  ;;  %v487_v52 = vadd.f32 %v9416_v63, %v7815_v34  ;;  %v2883_v32 = vld [vmem:[#allocation10 + $0x298] sm:$0xff]  ;;  %v2864_v8 = vld [vmem:[#allocation10 + $0x200] sm:$0xff]  ;;  %v2822_v63 = vld [vmem:[#allocation10 + $0xb0] sm:$0xff] }
 0x393   :  { %v2751_v36 = vsub.f32 1.0, %v2750_v47  ;;  %v2728_v29 = vsub.f32 1.0, %v2723_v51  ;;  %v2681_v20 = vpop.f32.mrf.mxu3  ;;  %v2730_v27 = vmul.f32 %v2723_v51, %v8031_v37  ;;  %vm2756_vm8 = vmor %vm2754_vm4, %vm2755_vm3  ;;  %v2761_v59 = vor.u32 1.1754944e-38, %v2760_v14  ;;  %v2871_v43 = vld [vmem:[#allocation10 + $0x238] sm:$0xff]  ;;  %v2865_v47 = vld [vmem:[#allocation10 + $0x208] sm:$0xff] }
 0x394   :  { %6660 = vpow2.f32 %v6506_v19  ;;  %v2682_v3 = vadd.f32 %v2681_v20, %v2662_v38  ;;  %v2858_v19 = vld [vmem:[#allocation10 + $0x1d0] sm:$0xff]  ;;  %v2859_v51 = vld [vmem:[#allocation10 + $0x1d8] sm:$0xff]  ;;  %v2841_v38 = vld [vmem:[#allocation10 + $0x148] sm:$0xff] }
 0x395   :  { %v2752_v15 = vmul.f32 %v6657_v55, %v2751_v36 }
 0x397   :  { %v6659_v18 = vpop.eup %6658  ;;  %v2753_v57 = vadd.f32 %v6657_v55, %v2752_v15  ;;  %v2846_v15 = vld [vmem:[#allocation10 + $0x170] sm:$0xff] }
 0x398   :  { %v2729_v26 = vmul.f32 %v6659_v18, %v2728_v29  ;;  %v2840_v18 = vld [vmem:[#allocation10 + $0x140] sm:$0xff] }
 0x399   :  { %v2757_v42 = vsel %vm2756_vm8, %v6657_v55, %v2753_v57  ;;  %v2870_v55 = vld [vmem:[#allocation10 + $0x230] sm:$0xff] }
 0x39a   :  { %v6661_v49 = vpop.eup %6660  ;;  %v2731_v50 = vadd.f32 %v2730_v27, %v2729_v26  ;;  %v2762_v5 = vsel %vm2759_vm9, %v2761_v59, %v2757_v42  ;;  %v2834_v27 = vld [vmem:[#allocation10 + $0x110] sm:$0xff]  ;;  %v2835_v59 = vld [vmem:[#allocation10 + $0x118] sm:$0xff] }
 0x39b   :  { %v2748_v60 = vadd.f32 1.0, %v6661_v49  ;;  %v2779_v58 = vmul.f32 %v2762_v5, %v2682_v3  ;;  %v8112_v3 = vpop.permute.xlu1 %2788  ;;  %v2829_v5 = vld [vmem:[#allocation10 + $0xe8] sm:$0xff] }
 0x39c   :  { %v8106_v11 = vsel %vm2736_vm10, %v2731_v50, %v8031_v37  ;;  %9417 = vst [vmem:[#allocation69_spill] sm:$0xff] %v8112_v3  ;;  %v2828_v50 = vld [vmem:[#allocation10 + $0xe0] sm:$0xff]  ;;  %vm2790_vm2 = vcmp.eq.s32.totalorder %v8112_v3, 1 }
 0x39d   :  { %6662 = vrcp.f32 %v2748_v60  ;;  %3022 = vmatmul.f32.vlgmr.msrb.gmra.mxu0 %v8106_v11  ;;  %3062 = vmatmul.f32.vlgmr.msrb.gmra.mxu2 %v8106_v11  ;;  %v2780_v16 = vadd.f32 %v2779_v58, %v487_v52  ;;  %v2775_v39 = vand.u32 2147483648, %v2748_v60  ;;  %v2773_v36 = vand.u32 2147483647, %v2748_v60  ;;  %v2990_v58 = vld [vmem:[#allocation10 + $0x5f0] sm:$0xff]  ;;  %v2823_v52 = vld [vmem:[#allocation10 + $0xb8] sm:$0xff] }
 0x39e   :  { %3166 = vmatpush.msrb.mxu0 %v2894_v22  ;;  %3206 = vmatpush.msrb.mxu2 %v2895_v12  ;;  %vm2769_vm15 = vweird.f32 %v2748_v60  ;;  %v2991_v22 = vld [vmem:[#allocation10 + $0x5f8] sm:$0xff] }
 0x39f   :  { %6664 = vtanh.f32 %v2780_v16  ;;  %v2776_v14 = vor.u32 1.1754944e-38, %v2775_v39  ;;  %vm2774_vm1 = vcmp.eq.f32.partialorder %v2773_v36, 8.507059e+37  ;;  %v2816_v16 = vld [vmem:[#allocation10 + $0x80] sm:$0xff] }
 0x3a0   :  { %3167 = vmatpush.msrb.mxu0 %v2888_v41  ;;  %3207 = vmatpush.msrb.mxu2 %v2889_v61  ;;  %v2984_v41 = vld [vmem:[#allocation10 + $0x5c0] sm:$0xff]  ;;  %v2985_v61 = vld [vmem:[#allocation10 + $0x5c8] sm:$0xff] }
 0x3a1   :  { %v2960_v39 = vld [vmem:[#allocation10 + $0x500] sm:$0xff] }
 0x3a2   :  { %3168 = vmatpush.msrb.mxu0 %v2882_v40  ;;  %3208 = vmatpush.msrb.mxu2 %v2883_v32  ;;  %v2817_v40 = vld [vmem:[#allocation10 + $0x88] sm:$0xff]  ;;  %v2978_v32 = vld [vmem:[#allocation10 + $0x590] sm:$0xff]  ;;  %v2948_v36 = vld [vmem:[#allocation10 + $0x4a0] sm:$0xff] }
 0x3a3   :  { %v6663_v46 = vpop.eup %6662 }
 0x3a4   :  { %v2765_v24 = vmul.f32 %v6663_v46, %v2748_v60  ;;  %3169 = vmatpush.msrb.mxu0 %v2876_v30  ;;  %3209 = vmatpush.msrb.mxu2 %v2877_v17  ;;  %vm2770_vm11 = vweird.f32 %v6663_v46  ;;  %v2979_v30 = vld [vmem:[#allocation10 + $0x598] sm:$0xff]  ;;  %v2810_v17 = vld [vmem:[#allocation10 + $0x50] sm:$0xff] }
 0x3a5   :  { %3102 = vmatmul.f32.vlgmr.msra.gmra.mxu0 %v8106_v11  ;;  %3142 = vmatmul.f32.vlgmr.msra.gmra.mxu2 %v8106_v11  ;;  %vm2771_vm0 = vmor %vm2769_vm15, %vm2770_vm11  ;;  %v6665_v26 = vpop.eup %6664 }
 0x3a6   :  { %v2766_v7 = vsub.f32 1.0, %v2765_v24  ;;  %3170 = vmatpush.msrb.mxu0 %v2870_v55  ;;  %3210 = vmatpush.msrb.mxu2 %v2871_v43  ;;  %v2972_v55 = vld [vmem:[#allocation10 + $0x560] sm:$0xff]  ;;  %v2973_v43 = vld [vmem:[#allocation10 + $0x568] sm:$0xff] }
 0x3a7   :  { %v2804_v24 = vld [vmem:[#allocation10 + $0x20] sm:$0xff] }
 0x3a8   :  { %v2767_v33 = vmul.f32 %v6663_v46, %v2766_v7  ;;  %3171 = vmatpush.msrb.mxu0 %v2864_v8  ;;  %3211 = vmatpush.msrb.mxu2 %v2865_v47  ;;  %v2966_v8 = vld [vmem:[#allocation10 + $0x530] sm:$0xff]  ;;  %v2805_v47 = vld [vmem:[#allocation10 + $0x28] sm:$0xff]  ;;  %v2967_v7 = vld [vmem:[#allocation10 + $0x538] sm:$0xff] }
 0x3aa   :  { %v2768_v44 = vadd.f32 %v6663_v46, %v2767_v33  ;;  %3172 = vmatpush.msrb.mxu0 %v2858_v19  ;;  %3212 = vmatpush.msrb.mxu2 %v2859_v51  ;;  %v2961_v19 = vld [vmem:[#allocation10 + $0x508] sm:$0xff]  ;;  %v2954_v51 = vld [vmem:[#allocation10 + $0x4d0] sm:$0xff]  ;;  %v2955_v33 = vld [vmem:[#allocation10 + $0x4d8] sm:$0xff] }
 0x3ac   :  { %v2772_v29 = vsel %vm2771_vm0, %v6663_v46, %v2768_v44  ;;  %3173 = vmatpush.msrb.mxu0 %v2852_v56  ;;  %3213 = vmatpush.msrb.mxu2 %v2853_v35  ;;  %v2811_v46 = vld [vmem:[#allocation10 + $0x58] sm:$0xff]  ;;  %v2949_v56 = vld [vmem:[#allocation10 + $0x4a8] sm:$0xff]  ;;  %v2942_v35 = vld [vmem:[#allocation10 + $0x470] sm:$0xff] }
 0x3ad   :  { %v2777_v20 = vsel %vm2774_vm1, %v2776_v14, %v2772_v29  ;;  %v2943_v44 = vld [vmem:[#allocation10 + $0x478] sm:$0xff]  ;;  %v2936_v14 = vld [vmem:[#allocation10 + $0x440] sm:$0xff] }
 0x3ae   :  { %v2782_v57 = vsub.f32 1.0, %v2777_v20  ;;  %3174 = vmatpush.msrb.mxu0 %v2846_v15  ;;  %3214 = vmatpush.msrb.mxu2 %v2847_v53  ;;  %v2784_v49 = vmul.f32 %v2777_v20, %v8046_v28  ;;  %v2937_v15 = vld [vmem:[#allocation10 + $0x448] sm:$0xff]  ;;  %v2930_v53 = vld [vmem:[#allocation10 + $0x410] sm:$0xff]  ;;  %v2931_v29 = vld [vmem:[#allocation10 + $0x418] sm:$0xff] }
 0x3af   :  { %v2924_v20 = vld [vmem:[#allocation10 + $0x3e0] sm:$0xff] }
 0x3b0   :  { %v2783_v42 = vmul.f32 %v6665_v26, %v2782_v57  ;;  %3175 = vmatpush.msrb.mxu0 %v2840_v18  ;;  %3215 = vmatpush.msrb.mxu2 %v2841_v38  ;;  %v2925_v18 = vld [vmem:[#allocation10 + $0x3e8] sm:$0xff]  ;;  %v2918_v38 = vld [vmem:[#allocation10 + $0x3b0] sm:$0xff]  ;;  %v2919_v57 = vld [vmem:[#allocation10 + $0x3b8] sm:$0xff] }
 0x3b1   :  { %v2912_v26 = vld [vmem:[#allocation10 + $0x380] sm:$0xff] }
 0x3b2   :  { %v2785_v60 = vadd.f32 %v2784_v49, %v2783_v42  ;;  %3176 = vmatpush.msrb.mxu0 %v2834_v27  ;;  %3216 = vmatpush.msrb.mxu2 %v2835_v59  ;;  %v2913_v27 = vld [vmem:[#allocation10 + $0x388] sm:$0xff]  ;;  %v2906_v59 = vld [vmem:[#allocation10 + $0x350] sm:$0xff]  ;;  %v2907_v42 = vld [vmem:[#allocation10 + $0x358] sm:$0xff] }
 0x3b3   :  { %v2900_v49 = vld [vmem:[#allocation10 + $0x320] sm:$0xff] }
 0x3b4   :  { %v8119_v12 = vsel %vm2790_vm2, %v2785_v60, %v8046_v28  ;;  %3177 = vmatpush.msrb.mxu0 %v2828_v50  ;;  %3217 = vmatpush.msrb.mxu2 %v2829_v5  ;;  %v2901_v50 = vld [vmem:[#allocation10 + $0x328] sm:$0xff]  ;;  %v3440_v5 = vld [vmem:[#allocation10 + $0x2d0] sm:$0xff]  ;;  %v3441_v60 = vld [vmem:[#allocation10 + $0x2d8] sm:$0xff] }
 0x3b5   :  { %3042 = vmatmul.f32.vlgmr.msrb.gmra.mxu1 %v8119_v12  ;;  %3082 = vmatmul.f32.vlgmr.msrb.gmra.mxu3 %v8119_v12 }
 0x3b6   :  { %3186 = vmatpush.msrb.mxu1 %v2990_v58  ;;  %3226 = vmatpush.msrb.mxu3 %v2991_v22  ;;  %v3434_v58 = vld [vmem:[#allocation10 + $0x2a0] sm:$0xff]  ;;  %v3435_v22 = vld [vmem:[#allocation10 + $0x2a8] sm:$0xff] }
 0x3b7   :  { %3178 = vmatpush.msrb.mxu0 %v2822_v63  ;;  %3218 = vmatpush.msrb.mxu2 %v2823_v52  ;;  %v3428_v63 = vld [vmem:[#allocation10 + $0x270] sm:$0xff]  ;;  %v3429_v52 = vld [vmem:[#allocation10 + $0x278] sm:$0xff] }
 0x3b8   :  { %3187 = vmatpush.msrb.mxu1 %v2984_v41  ;;  %3227 = vmatpush.msrb.mxu3 %v2985_v61  ;;  %v3422_v41 = vld [vmem:[#allocation10 + $0x240] sm:$0xff]  ;;  %v3423_v61 = vld [vmem:[#allocation10 + $0x248] sm:$0xff] }
 0x3b9   :  { %3179 = vmatpush.msrb.mxu0 %v2816_v16  ;;  %3219 = vmatpush.msrb.mxu2 %v2817_v40  ;;  %v3416_v16 = vld [vmem:[#allocation10 + $0x210] sm:$0xff]  ;;  %v3417_v40 = vld [vmem:[#allocation10 + $0x218] sm:$0xff] }
 0x3ba   :  { %3188 = vmatpush.msrb.mxu1 %v2978_v32  ;;  %3228 = vmatpush.msrb.mxu3 %v2979_v30  ;;  %v3410_v32 = vld [vmem:[#allocation10 + $0x1e0] sm:$0xff]  ;;  %v3411_v30 = vld [vmem:[#allocation10 + $0x1e8] sm:$0xff] }
 0x3bb   :  { %3180 = vmatpush.msrb.mxu0 %v2810_v17  ;;  %3220 = vmatpush.msrb.mxu2 %v2811_v46  ;;  %v3404_v17 = vld [vmem:[#allocation10 + $0x1b0] sm:$0xff]  ;;  %v3405_v46 = vld [vmem:[#allocation10 + $0x1b8] sm:$0xff] }
 0x3bc   :  { %3189 = vmatpush.msrb.mxu1 %v2972_v55  ;;  %3229 = vmatpush.msrb.mxu3 %v2973_v43  ;;  %v3398_v55 = vld [vmem:[#allocation10 + $0x180] sm:$0xff]  ;;  %v3399_v43 = vld [vmem:[#allocation10 + $0x188] sm:$0xff] }
 0x3bd   :  { %3122 = vmatmul.f32.vlgmr.msra.gmra.mxu1 %v8119_v12  ;;  %3162 = vmatmul.f32.vlgmr.msra.gmra.mxu3 %v8119_v12 }
 0x3be   :  { %3181 = vmatpush.msrb.mxu0 %v2804_v24  ;;  %3190 = vmatpush.msrb.mxu1 %v2966_v8  ;;  %v3392_v24 = vld [vmem:[#allocation10 + $0x150] sm:$0xff]  ;;  %v3393_v8 = vld [vmem:[#allocation10 + $0x158] sm:$0xff] }
 0x3bf   :  { %3221 = vmatpush.msrb.mxu2 %v2805_v47  ;;  %3230 = vmatpush.msrb.mxu3 %v2967_v7  ;;  %v3386_v47 = vld [vmem:[#allocation10 + $0x120] sm:$0xff]  ;;  %v3387_v7 = vld [vmem:[#allocation10 + $0x128] sm:$0xff] }
 0x3c0   :  { %3182 = vmatmul.f32.vlgmr.msrb.gmra.mxu0 %v8106_v11  ;;  %3222 = vmatmul.f32.vlgmr.msrb.gmra.mxu2 %v8106_v11 }
 0x3c1   :  { %3191 = vmatpush.msrb.mxu1 %v2960_v39  ;;  %3231 = vmatpush.msrb.mxu3 %v2961_v19  ;;  %v3380_v39 = vld [vmem:[#allocation10 + $0xf0] sm:$0xff]  ;;  %v3381_v19 = vld [vmem:[#allocation10 + $0xf8] sm:$0xff] }
 0x3c2   :  { %3556 = vmatpush.msra.mxu0 %v3440_v5  ;;  %3596 = vmatpush.msra.mxu2 %v3441_v60  ;;  %v3442_v5 = vld [vmem:[#allocation10 + $0x2e0] sm:$0xff]  ;;  %v3443_v60 = vld [vmem:[#allocation10 + $0x2e8] sm:$0xff] }
 0x3c3   :  { %3192 = vmatpush.msrb.mxu1 %v2954_v51  ;;  %3232 = vmatpush.msrb.mxu3 %v2955_v33  ;;  %v3374_v51 = vld [vmem:[#allocation10 + $0xc0] sm:$0xff]  ;;  %v3536_v33 = vld [vmem:[#allocation10 + $0x5d0] sm:$0xff] }
 0x3c4   :  { %3557 = vmatpush.msra.mxu0 %v3434_v58  ;;  %3597 = vmatpush.msra.mxu2 %v3435_v22  ;;  %v3506_v58 = vld [vmem:[#allocation10 + $0x4e0] sm:$0xff]  ;;  %v3507_v22 = vld [vmem:[#allocation10 + $0x4e8] sm:$0xff] }
 0x3c5   :  { %3193 = vmatpush.msrb.mxu1 %v2948_v36  ;;  %3233 = vmatpush.msrb.mxu3 %v2949_v56  ;;  %v3375_v36 = vld [vmem:[#allocation10 + $0xc8] sm:$0xff]  ;;  %v3537_v56 = vld [vmem:[#allocation10 + $0x5d8] sm:$0xff] }
 0x3c6   :  { %3558 = vmatpush.msra.mxu0 %v3428_v63  ;;  %3598 = vmatpush.msra.mxu2 %v3429_v52  ;;  %v3436_v63 = vld [vmem:[#allocation10 + $0x2b0] sm:$0xff]  ;;  %v3437_v52 = vld [vmem:[#allocation10 + $0x2b8] sm:$0xff] }
 0x3c7   :  { %3194 = vmatpush.msrb.mxu1 %v2942_v35  ;;  %3234 = vmatpush.msrb.mxu3 %v2943_v44  ;;  %v3368_v35 = vld [vmem:[#allocation10 + $0x90] sm:$0xff]  ;;  %v3530_v44 = vld [vmem:[#allocation10 + $0x5a0] sm:$0xff] }
 0x3c8   :  { %3559 = vmatpush.msra.mxu0 %v3422_v41  ;;  %3599 = vmatpush.msra.mxu2 %v3423_v61  ;;  %v3500_v41 = vld [vmem:[#allocation10 + $0x4b0] sm:$0xff]  ;;  %v3501_v61 = vld [vmem:[#allocation10 + $0x4b8] sm:$0xff] }
 0x3c9   :  { %3195 = vmatpush.msrb.mxu1 %v2936_v14  ;;  %3235 = vmatpush.msrb.mxu3 %v2937_v15  ;;  %v3369_v14 = vld [vmem:[#allocation10 + $0x98] sm:$0xff]  ;;  %v3531_v15 = vld [vmem:[#allocation10 + $0x5a8] sm:$0xff] }
 0x3ca   :  { %3560 = vmatpush.msra.mxu0 %v3416_v16  ;;  %3600 = vmatpush.msra.mxu2 %v3417_v40  ;;  %v3430_v16 = vld [vmem:[#allocation10 + $0x280] sm:$0xff]  ;;  %v3431_v40 = vld [vmem:[#allocation10 + $0x288] sm:$0xff] }
 0x3cb   :  { %3196 = vmatpush.msrb.mxu1 %v2930_v53  ;;  %3236 = vmatpush.msrb.mxu3 %v2931_v29  ;;  %v3362_v53 = vld [vmem:[#allocation10 + $0x60] sm:$0xff]  ;;  %v3524_v29 = vld [vmem:[#allocation10 + $0x570] sm:$0xff] }
 0x3cc   :  { %3561 = vmatpush.msra.mxu0 %v3410_v32  ;;  %3601 = vmatpush.msra.mxu2 %v3411_v30  ;;  %v8129_v32 = vld [vmem:[#allocation17 + $0x6] sm:$0x3f] }
 0x3cd   :  { %3197 = vmatpush.msrb.mxu1 %v2924_v20  ;;  %3237 = vmatpush.msrb.mxu3 %v2925_v18  ;;  %v3363_v20 = vld [vmem:[#allocation10 + $0x68] sm:$0xff]  ;;  %v3525_v18 = vld [vmem:[#allocation10 + $0x578] sm:$0xff]  ;;  %v3494_v30 = vld [vmem:[#allocation10 + $0x480] sm:$0xff] }
 0x3ce   :  { %3562 = vmatpush.msra.mxu0 %v3404_v17  ;;  %3602 = vmatpush.msra.mxu2 %v3405_v46  ;;  %v3495_v17 = vld [vmem:[#allocation10 + $0x488] sm:$0xff]  ;;  %v3424_v46 = vld [vmem:[#allocation10 + $0x250] sm:$0xff] }
 0x3cf   :  { %3198 = vmatpush.msrb.mxu1 %v2918_v38  ;;  %3238 = vmatpush.msrb.mxu3 %v2919_v57  ;;  %v3356_v38 = vld [vmem:[#allocation10 + $0x30] sm:$0xff]  ;;  %v3518_v57 = vld [vmem:[#allocation10 + $0x540] sm:$0xff] }
 0x3d0   :  { %3563 = vmatpush.msra.mxu0 %v3398_v55  ;;  %3603 = vmatpush.msra.mxu2 %v3399_v43  ;;  %v3425_v55 = vld [vmem:[#allocation10 + $0x258] sm:$0xff]  ;;  %v3488_v43 = vld [vmem:[#allocation10 + $0x450] sm:$0xff] }
 0x3d1   :  { %3199 = vmatpush.msrb.mxu1 %v2912_v26  ;;  %3239 = vmatpush.msrb.mxu3 %v2913_v27  ;;  %v3357_v26 = vld [vmem:[#allocation10 + $0x38] sm:$0xff]  ;;  %v3519_v27 = vld [vmem:[#allocation10 + $0x548] sm:$0xff] }
 0x3d2   :  { %3564 = vmatpush.msra.mxu0 %v3392_v24  ;;  %3604 = vmatpush.msra.mxu2 %v3393_v8  ;;  %v3489_v24 = vld [vmem:[#allocation10 + $0x458] sm:$0xff]  ;;  %v2994_v8 = vperm.slane %v8129_v32, 0 }
 0x3d3   :  { %3200 = vmatpush.msrb.mxu1 %v2906_v59  ;;  %3240 = vmatpush.msrb.mxu3 %v2907_v42  ;;  %v3350_v59 = vld [vmem:[#allocation10] sm:$0xff]  ;;  %v3512_v42 = vld [vmem:[#allocation10 + $0x510] sm:$0xff] }
 0x3d4   :  { %3565 = vmatpush.msra.mxu0 %v3386_v47  ;;  %3605 = vmatpush.msra.mxu2 %v3387_v7  ;;  %v3418_v47 = vld [vmem:[#allocation10 + $0x220] sm:$0xff]  ;;  %v3419_v7 = vld [vmem:[#allocation10 + $0x228] sm:$0xff] }
 0x3d5   :  { %3201 = vmatpush.msrb.mxu1 %v2900_v49  ;;  %3241 = vmatpush.msrb.mxu3 %v2901_v50  ;;  %v3351_v49 = vld [vmem:[#allocation10 + $0x8] sm:$0xff]  ;;  %v3513_v50 = vld [vmem:[#allocation10 + $0x518] sm:$0xff] }
 0x3d6   :  { %3202 = vmatmul.f32.vlgmr.msrb.gmra.mxu1 %v8119_v12  ;;  %3242 = vmatmul.f32.vlgmr.msrb.gmra.mxu3 %v8119_v12 }
 0x3d7   :  { %3566 = vmatpush.msra.mxu0 %v3380_v39  ;;  %3606 = vmatpush.msra.mxu2 %v3381_v19  ;;  %v3482_v19 = vld [vmem:[#allocation10 + $0x420] sm:$0xff] }
 0x3d8   :  { %3576 = vmatpush.msra.mxu1 %v3536_v33  ;;  %3616 = vmatpush.msra.mxu3 %v3537_v56  ;;  %v3412_v33 = vld [vmem:[#allocation10 + $0x1f0] sm:$0xff] }
 0x3d9   :  { %3567 = vmatpush.msra.mxu0 %v3374_v51  ;;  %3607 = vmatpush.msra.mxu2 %v3375_v36  ;;  %v3483_v51 = vld [vmem:[#allocation10 + $0x428] sm:$0xff]  ;;  %v3413_v36 = vld [vmem:[#allocation10 + $0x1f8] sm:$0xff]  ;;  %v3476_v56 = vld [vmem:[#allocation10 + $0x3f0] sm:$0xff] }
 0x3da   :  { %3577 = vmatpush.msra.mxu1 %v3530_v44  ;;  %3617 = vmatpush.msra.mxu3 %v3531_v15  ;;  %v3407_v15 = vld [vmem:[#allocation10 + $0x1c8] sm:$0xff] }
 0x3db   :  { %3568 = vmatpush.msra.mxu0 %v3368_v35  ;;  %3608 = vmatpush.msra.mxu2 %v3369_v14  ;;  %v3477_v35 = vld [vmem:[#allocation10 + $0x3f8] sm:$0xff]  ;;  %v3406_v14 = vld [vmem:[#allocation10 + $0x1c0] sm:$0xff] }
 0x3dc   :  { %3578 = vmatpush.msra.mxu1 %v3524_v29  ;;  %3618 = vmatpush.msra.mxu3 %v3525_v18  ;;  %v3471_v18 = vld [vmem:[#allocation10 + $0x3c8] sm:$0xff] }
 0x3dd   :  { %3569 = vmatpush.msra.mxu0 %v3362_v53  ;;  %3609 = vmatpush.msra.mxu2 %v3363_v20  ;;  %v3470_v20 = vld [vmem:[#allocation10 + $0x3c0] sm:$0xff] }
 0x3de   :  { %3579 = vmatpush.msra.mxu1 %v3518_v57  ;;  %3619 = vmatpush.msra.mxu3 %v3519_v27 }
 0x3df   :  { %3570 = vmatpush.msra.mxu0 %v3356_v38  ;;  %3610 = vmatpush.msra.mxu2 %v3357_v26  ;;  %v9418_v38 = vld [vmem:[#allocation36_spill] sm:$0xff]  ;;  %v2995_v26 = vperm.slane %v8129_v32, 1 }
 0x3e0   :  { %3580 = vmatpush.msra.mxu1 %v3512_v42  ;;  %3620 = vmatpush.msra.mxu3 %v3513_v50  ;;  %v282_v57 = vadd.f32 %v9418_v38, %v7615_v25  ;;  %v3401_v42 = vld [vmem:[#allocation10 + $0x198] sm:$0xff]  ;;  %v3364_v38 = vld [vmem:[#allocation10 + $0x70] sm:$0xff] }
 0x3e1   :  { %3571 = vmatpush.msra.mxu0 %v3350_v59  ;;  %3611 = vmatpush.msra.mxu2 %v3351_v49  ;;  %v3400_v59 = vld [vmem:[#allocation10 + $0x190] sm:$0xff]  ;;  %v3465_v50 = vld [vmem:[#allocation10 + $0x398] sm:$0xff] }
 0x3e2   :  { %3581 = vmatpush.msra.mxu1 %v3506_v58  ;;  %3621 = vmatpush.msra.mxu3 %v3507_v22  ;;  %v3464_v49 = vld [vmem:[#allocation10 + $0x390] sm:$0xff]  ;;  %v3395_v58 = vld [vmem:[#allocation10 + $0x168] sm:$0xff]  ;;  %v3458_v22 = vld [vmem:[#allocation10 + $0x360] sm:$0xff] }
 0x3e3   :  { %3636 = vmatpush.msrb.mxu0 %v3442_v5  ;;  %3676 = vmatpush.msrb.mxu2 %v3443_v60  ;;  %v3394_v60 = vld [vmem:[#allocation10 + $0x160] sm:$0xff] }
 0x3e4   :  { %3582 = vmatpush.msra.mxu1 %v3500_v41  ;;  %3622 = vmatpush.msra.mxu3 %v3501_v61  ;;  %v3388_v61 = vld [vmem:[#allocation10 + $0x130] sm:$0xff] }
 0x3e5   :  { %3637 = vmatpush.msrb.mxu0 %v3436_v63  ;;  %3677 = vmatpush.msrb.mxu2 %v3437_v52  ;;  %v3459_v63 = vld [vmem:[#allocation10 + $0x368] sm:$0xff] }
 0x3e6   :  { %3583 = vmatpush.msra.mxu1 %v3494_v30  ;;  %3623 = vmatpush.msra.mxu3 %v3495_v17  ;;  %v3452_v30 = vld [vmem:[#allocation10 + $0x330] sm:$0xff]  ;;  %v3453_v17 = vld [vmem:[#allocation10 + $0x338] sm:$0xff] }
 0x3e7   :  { %3638 = vmatpush.msrb.mxu0 %v3430_v16  ;;  %3678 = vmatpush.msrb.mxu2 %v3431_v40  ;;  %v3389_v16 = vld [vmem:[#allocation10 + $0x138] sm:$0xff] }
 0x3e8   :  { %3584 = vmatpush.msra.mxu1 %v3488_v43  ;;  %3624 = vmatpush.msra.mxu3 %v3489_v24  ;;  %v3382_v24 = vld [vmem:[#allocation10 + $0x100] sm:$0xff] }
 0x3e9   :  { %3639 = vmatpush.msrb.mxu0 %v3424_v46  ;;  %3679 = vmatpush.msrb.mxu2 %v3425_v55  ;;  %v9419_v46 = vld [vmem:[#allocation38_spill] sm:$0xff] }
 0x3ea   :  { %3585 = vmatpush.msra.mxu1 %v3482_v19  ;;  %3625 = vmatpush.msra.mxu3 %v3483_v51  ;;  %v323_v55 = vadd.f32 %v9419_v46, %v7645_v45  ;;  %v3376_v51 = vld [vmem:[#allocation10 + $0xd0] sm:$0xff] }
 0x3eb   :  { %3640 = vmatpush.msrb.mxu0 %v3418_v47  ;;  %3680 = vmatpush.msrb.mxu2 %v3419_v7  ;;  %v3446_v47 = vld [vmem:[#allocation10 + $0x300] sm:$0xff]  ;;  %v3447_v7 = vld [vmem:[#allocation10 + $0x308] sm:$0xff]  ;;  %v3508_v46 = vld [vmem:[#allocation10 + $0x4f0] sm:$0xff] }
 0x3ec   :  { %3586 = vmatpush.msra.mxu1 %v3476_v56  ;;  %3626 = vmatpush.msra.mxu3 %v3477_v35  ;;  %v3539_v35 = vld [vmem:[#allocation10 + $0x5e8] sm:$0xff] }
 0x3ed   :  { %3641 = vmatpush.msrb.mxu0 %v3412_v33  ;;  %3681 = vmatpush.msrb.mxu2 %v3413_v36  ;;  %v3538_v33 = vld [vmem:[#allocation10 + $0x5e0] sm:$0xff]  ;;  %v3377_v36 = vld [vmem:[#allocation10 + $0xd8] sm:$0xff] }
 0x3ee   :  { %3587 = vmatpush.msra.mxu1 %v3470_v20  ;;  %3627 = vmatpush.msra.mxu3 %v3471_v18 }
 0x3ef   :  { %3642 = vmatpush.msrb.mxu0 %v3406_v14  ;;  %3682 = vmatpush.msrb.mxu2 %v3407_v15  ;;  %v3370_v14 = vld [vmem:[#allocation10 + $0xa0] sm:$0xff]  ;;  %v3532_v15 = vld [vmem:[#allocation10 + $0x5b0] sm:$0xff] }
 0x3f0   :  { %3588 = vmatpush.msra.mxu1 %v3464_v49  ;;  %3628 = vmatpush.msra.mxu3 %v3465_v50  ;;  %v9420_v49 = vld [vmem:[#allocation44_spill] sm:$0xff] }
 0x3f1   :  { %3643 = vmatpush.msrb.mxu0 %v3400_v59  ;;  %3683 = vmatpush.msrb.mxu2 %v3401_v42  ;;  %v3527_v42 = vld [vmem:[#allocation10 + $0x588] sm:$0xff]  ;;  %v402_v50 = vadd.f32 %v9420_v49, %v7748_v2 }
 0x3f2   :  { %3589 = vmatpush.msra.mxu1 %v3458_v22  ;;  %3629 = vmatpush.msra.mxu3 %v3459_v63  ;;  %v3359_v22 = vld [vmem:[#allocation10 + $0x48] sm:$0xff]  ;;  %v3521_v63 = vld [vmem:[#allocation10 + $0x558] sm:$0xff] }
 0x3f3   :  { %3644 = vmatpush.msrb.mxu0 %v3394_v60  ;;  %3684 = vmatpush.msrb.mxu2 %v3395_v58  ;;  %v3358_v60 = vld [vmem:[#allocation10 + $0x40] sm:$0xff]  ;;  %v3520_v58 = vld [vmem:[#allocation10 + $0x550] sm:$0xff] }
 0x3f4   :  { %3590 = vmatpush.msra.mxu1 %v3452_v30  ;;  %3630 = vmatpush.msra.mxu3 %v3453_v17 }
 0x3f5   :  { %3645 = vmatpush.msrb.mxu0 %v3388_v61  ;;  %3685 = vmatpush.msrb.mxu2 %v3389_v16  ;;  %v3514_v61 = vld [vmem:[#allocation10 + $0x520] sm:$0xff]  ;;  %v3353_v16 = vld [vmem:[#allocation10 + $0x18] sm:$0xff] }
 0x3f6   :  { %3591 = vmatpush.msra.mxu1 %v3446_v47  ;;  %3631 = vmatpush.msra.mxu3 %v3447_v7  ;;  %v3503_v47 = vld [vmem:[#allocation10 + $0x4c8] sm:$0xff] }
 0x3f7   :  { %3646 = vmatpush.msrb.mxu0 %v3382_v24 }
 0x3f8   :  { %3656 = vmatpush.msrb.mxu1 %v3538_v33  ;;  %3696 = vmatpush.msrb.mxu3 %v3539_v35  ;;  %v2996_v33 = vperm.slane %v8129_v32, 2  ;;  %v3490_v35 = vld [vmem:[#allocation10 + $0x460] sm:$0xff] }
 0x3f9   :  { %3647 = vmatpush.msrb.mxu0 %v3376_v51  ;;  %v3497_v51 = vld [vmem:[#allocation10 + $0x498] sm:$0xff] }
 0x3fa   :  { %3657 = vmatpush.msrb.mxu1 %v3532_v15 }
 0x3fb   :  { %3648 = vmatpush.msrb.mxu0 %v3370_v14 }
 0x3fd   :  { %3649 = vmatpush.msrb.mxu0 %v3364_v38 }
 0x3ff   :  { %3650 = vmatpush.msrb.mxu0 %v3358_v60  ;;  %v3479_v60 = vld [vmem:[#allocation10 + $0x408] sm:$0xff] }
 0x41a   :  { %v3023_v39 = vpop.f32.mrf.mxu0 }
 0x41b   :  { %v3024_v44 = vadd.f32 %v3023_v39, %v2994_v8  ;;  %v3383_v8 = vld [vmem:[#allocation10 + $0x108] sm:$0xff]  ;;  %v2997_v39 = vperm.slane %v8129_v32, 3 }
 0x41c   :  { %3686 = vmatpush.msrb.mxu2 %v3383_v8  ;;  %v3502_v8 = vld [vmem:[#allocation10 + $0x4c0] sm:$0xff] }
 0x41e   :  { %3687 = vmatpush.msrb.mxu2 %v3377_v36 }
 0x420   :  { %v3063_v53 = vpop.f32.mrf.mxu2 }
 0x421   :  { %v3064_v52 = vadd.f32 %v3063_v53, %v2995_v26  ;;  %v3371_v53 = vld [vmem:[#allocation10 + $0xa8] sm:$0xff]  ;;  %v3365_v26 = vld [vmem:[#allocation10 + $0x78] sm:$0xff] }
 0x422   :  { %3688 = vmatpush.msrb.mxu2 %v3371_v53  ;;  %v3103_v24 = vpop.f32.mrf.mxu0 }
 0x424   :  { %3689 = vmatpush.msrb.mxu2 %v3365_v26 }
 0x426   :  { %3690 = vmatpush.msrb.mxu2 %v3359_v22 }
 0x428   :  { %v3143_v56 = vpop.f32.mrf.mxu2  ;;  %3691 = vmatpush.msrb.mxu2 %v3353_v16  ;;  %v9421_v16 = vld [vmem:[#allocation47_spill] sm:$0xff] }
 0x429   :  { %v3144_v18 = vadd.f32 %v3143_v56, %v2997_v39 }
 0x432   :  { %v3043_v29 = vpop.f32.mrf.mxu1 }
 0x433   :  { %v3044_v27 = vadd.f32 %v3043_v29, %v3024_v44  ;;  %v3533_v29 = vld [vmem:[#allocation10 + $0x5b8] sm:$0xff] }
 0x434   :  { %3697 = vmatpush.msrb.mxu3 %v3533_v29 }
 0x435   :  { %v3246_v5 = vadd.f32 %v3044_v27, %v282_v57  ;;  %v3526_v57 = vld [vmem:[#allocation10 + $0x580] sm:$0xff] }
 0x436   :  { %3658 = vmatpush.msrb.mxu1 %v3526_v57  ;;  %3698 = vmatpush.msrb.mxu3 %v3527_v42  ;;  %v2998_v57 = vperm.slane %v8129_v32, 4 }
 0x437   :  { %v6507_v41 = vmul.f32 -1.442695, %v3246_v5 }
 0x438   :  { %v3083_v40 = vpop.f32.mrf.mxu3  ;;  %3659 = vmatpush.msrb.mxu1 %v3520_v58  ;;  %3699 = vmatpush.msrb.mxu3 %v3521_v63 }
 0x439   :  { %6666 = vpow2.f32 %v6507_v41  ;;  %v3084_v43 = vadd.f32 %v3083_v40, %v3064_v52  ;;  %v3352_v41 = vld [vmem:[#allocation10 + $0x10] sm:$0xff]  ;;  %v3515_v40 = vld [vmem:[#allocation10 + $0x528] sm:$0xff] }
 0x43a   :  { %3651 = vmatpush.msrb.mxu0 %v3352_v41  ;;  %3660 = vmatpush.msrb.mxu1 %v3514_v61  ;;  %v3123_v36 = vpop.f32.mrf.mxu1  ;;  %v3472_v41 = vld [vmem:[#allocation10 + $0x3d0] sm:$0xff]  ;;  %v3473_v61 = vld [vmem:[#allocation10 + $0x3d8] sm:$0xff] }
 0x43b   :  { %v3247_v19 = vadd.f32 %v3084_v43, %v323_v55  ;;  %v3509_v55 = vld [vmem:[#allocation10 + $0x4f8] sm:$0xff]  ;;  %3700 = vmatpush.msrb.mxu3 %v3515_v40 }
 0x43c   :  { %3661 = vmatpush.msrb.mxu1 %v3508_v46 }
 0x43d   :  { %v6508_v44 = vmul.f32 -1.442695, %v3247_v19  ;;  %3701 = vmatpush.msrb.mxu3 %v3509_v55  ;;  %v3496_v19 = vld [vmem:[#allocation10 + $0x490] sm:$0xff] }
 0x43e   :  { %3662 = vmatpush.msrb.mxu1 %v3502_v8  ;;  %v3466_v8 = vld [vmem:[#allocation10 + $0x3a0] sm:$0xff] }
 0x43f   :  { %v6667_v20 = vpop.eup %6666  ;;  %6668 = vpow2.f32 %v6508_v44  ;;  %3702 = vmatpush.msrb.mxu3 %v3503_v47  ;;  %v3491_v44 = vld [vmem:[#allocation10 + $0x468] sm:$0xff] }
 0x440   :  { %v8138_v27 = vadd.f32 1.0, %v6667_v20  ;;  %v3163_v59 = vpop.f32.mrf.mxu3  ;;  %3663 = vmatpush.msrb.mxu1 %v3496_v19  ;;  %v3484_v20 = vld [vmem:[#allocation10 + $0x430] sm:$0xff]  ;;  %v3467_v47 = vld [vmem:[#allocation10 + $0x3a8] sm:$0xff] }
 0x441   :  { %v3164_v5 = vadd.f32 %v3163_v59, %v3144_v18  ;;  %3703 = vmatpush.msrb.mxu3 %v3497_v51  ;;  %v3485_v18 = vld [vmem:[#allocation10 + $0x438] sm:$0xff]  ;;  %v3104_v59 = vadd.f32 %v3103_v24, %v2996_v33 }
 0x442   :  { %6670 = vrcp.f32 %v8138_v27  ;;  %v3267_v14 = vand.u32 2147483648, %v8138_v27  ;;  %v3265_v29 = vand.u32 2147483647, %v8138_v27  ;;  %3664 = vmatpush.msrb.mxu1 %v3490_v35  ;;  %vm3261_vm4 = vweird.f32 %v8138_v27  ;;  %v3461_v35 = vld [vmem:[#allocation10 + $0x378] sm:$0xff] }
 0x443   :  { %v3294_v52 = vadd.f32 %v3164_v5, %v402_v50  ;;  %3704 = vmatpush.msrb.mxu3 %v3491_v44  ;;  %v3183_v50 = vpop.f32.mrf.mxu0  ;;  %v3478_v5 = vld [vmem:[#allocation10 + $0x400] sm:$0xff]  ;;  %v3124_v63 = vadd.f32 %v3123_v36, %v3104_v59  ;;  %v2999_v59 = vperm.slane %v8129_v32, 5 }
 0x444   :  { %3665 = vmatpush.msrb.mxu1 %v3484_v20  ;;  %v3268_v58 = vor.u32 1.1754944e-38, %v3267_v14  ;;  %vm3266_vm9 = vcmp.eq.f32.partialorder %v3265_v29, 8.507059e+37  ;;  %v3454_v20 = vld [vmem:[#allocation10 + $0x340] sm:$0xff] }
 0x445   :  { %v6669_v30 = vpop.eup %6668  ;;  %v6509_v17 = vmul.f32 -1.442695, %v3294_v52  ;;  %3705 = vmatpush.msrb.mxu3 %v3485_v18  ;;  %v3455_v18 = vld [vmem:[#allocation10 + $0x348] sm:$0xff] }
 0x446   :  { %v8143_v43 = vadd.f32 1.0, %v6669_v30  ;;  %3666 = vmatpush.msrb.mxu1 %v3478_v5  ;;  %v3184_v30 = vadd.f32 %v3183_v50, %v2998_v57  ;;  %v3449_v50 = vld [vmem:[#allocation10 + $0x318] sm:$0xff]  ;;  %v3223_v5 = vpop.f32.mrf.mxu2 }
 0x447   :  { %6672 = vpow2.f32 %v6509_v17  ;;  %3706 = vmatpush.msrb.mxu3 %v3479_v60 }
 0x448   :  { %v6671_v7 = vpop.eup %6670  ;;  %6674 = vrcp.f32 %v8143_v43  ;;  %v3282_v46 = vand.u32 2147483648, %v8143_v43  ;;  %3667 = vmatpush.msrb.mxu1 %v3472_v41  ;;  %v3280_v19 = vand.u32 2147483647, %v8143_v43  ;;  %vm3276_vm15 = vweird.f32 %v8143_v43 }
 0x449   :  { %v3257_v39 = vmul.f32 %v6671_v7, %v8138_v27  ;;  %vm3262_vm3 = vweird.f32 %v6671_v7  ;;  %v364_v27 = vadd.f32 %v9421_v16, %v9394_v54  ;;  %3707 = vmatpush.msrb.mxu3 %v3473_v61  ;;  %v3224_v41 = vadd.f32 %v3223_v5, %v2999_v59 }
 0x44a   :  { %vm3263_vm8 = vmor %vm3261_vm4, %vm3262_vm3  ;;  %3668 = vmatpush.msrb.mxu1 %v3466_v8  ;;  %vm3281_vm1 = vcmp.eq.f32.partialorder %v3280_v19, 8.507059e+37 }
 0x44b   :  { %v3258_v56 = vsub.f32 1.0, %v3257_v39  ;;  %3708 = vmatpush.msrb.mxu3 %v3467_v47  ;;  %v3444_v47 = vld [vmem:[#allocation10 + $0x2f0] sm:$0xff] }
 0x44d   :  { %v6673_v15 = vpop.eup %6672  ;;  %v3259_v53 = vmul.f32 %v6671_v7, %v3258_v56  ;;  %v3460_v56 = vld [vmem:[#allocation10 + $0x370] sm:$0xff]  ;;  %3709 = vmatpush.msrb.mxu3 %v3461_v35  ;;  %v3433_v35 = vld [vmem:[#allocation10 + $0x298] sm:$0xff] }
 0x44e   :  { %v6675_v38 = vpop.eup %6674  ;;  %v8151_v26 = vadd.f32 1.0, %v6673_v15  ;;  %v3283_v15 = vor.u32 1.1754944e-38, %v3282_v46  ;;  %3669 = vmatpush.msrb.mxu1 %v3460_v56  ;;  %v3432_v56 = vld [vmem:[#allocation10 + $0x290] sm:$0xff] }
 0x44f   :  { %v3272_v42 = vmul.f32 %v6675_v38, %v8143_v43  ;;  %v3260_v49 = vadd.f32 %v6671_v7, %v3259_v53  ;;  %vm3277_vm11 = vweird.f32 %v6675_v38  ;;  %3710 = vmatpush.msrb.mxu3 %v3455_v18  ;;  %v3414_v18 = vld [vmem:[#allocation10 + $0x200] sm:$0xff] }
 0x450   :  { %6676 = vrcp.f32 %v8151_v26  ;;  %vm3278_vm0 = vmor %vm3276_vm15, %vm3277_vm11  ;;  %3670 = vmatpush.msrb.mxu1 %v3454_v20  ;;  %vm3309_vm4 = vweird.f32 %v8151_v26 }
 0x451   :  { %v3273_v22 = vsub.f32 1.0, %v3272_v42  ;;  %v3264_v52 = vsel %vm3263_vm8, %v6671_v7, %v3260_v49  ;;  %v9422_v7 = vld [vmem:[#allocation57_spill] sm:$0xff]  ;;  %3711 = vmatpush.msrb.mxu3 %v3449_v50 }
 0x452   :  { %v3269_v40 = vsel %vm3266_vm9, %v3268_v58, %v3264_v52  ;;  %v443_v39 = vadd.f32 %v9422_v7, %v7768_v13  ;;  %v3448_v49 = vld [vmem:[#allocation10 + $0x310] sm:$0xff]  ;;  %v3313_v58 = vand.u32 2147483647, %v8151_v26  ;;  %v3445_v7 = vld [vmem:[#allocation10 + $0x2f8] sm:$0xff] }
 0x453   :  { %v3274_v17 = vmul.f32 %v6675_v38, %v3273_v22  ;;  %v3286_v55 = vmul.f32 %v3269_v40, %v3124_v63  ;;  %v3203_v24 = vpop.f32.mrf.mxu1  ;;  %3671 = vmatpush.msrb.mxu1 %v3448_v49  ;;  %v3409_v49 = vld [vmem:[#allocation10 + $0x1d8] sm:$0xff] }
 0x454   :  { %v3204_v51 = vadd.f32 %v3203_v24, %v3184_v30  ;;  %vm3314_vm9 = vcmp.eq.f32.partialorder %v3313_v58, 8.507059e+37 }
 0x455   :  { %v3275_v33 = vadd.f32 %v6675_v38, %v3274_v17  ;;  %v3287_v36 = vadd.f32 %v3286_v55, %v364_v27 }
 0x456   :  { %v6677_v44 = vpop.eup %6676  ;;  %v3295_v14 = vadd.f32 %v3204_v51, %v443_v39  ;;  %v9423_v39 = vld [vmem:[#allocation58_spill] sm:$0xff] }
 0x457   :  { %v3279_v53 = vsel %vm3278_vm0, %v6675_v38, %v3275_v33  ;;  %6678 = vtanh.f32 %v3287_v36  ;;  %v3305_v29 = vmul.f32 %v6677_v44, %v8151_v26  ;;  %v3315_v38 = vand.u32 2147483648, %v8151_v26  ;;  %v3438_v51 = vld [vmem:[#allocation10 + $0x2c0] sm:$0xff]  ;;  %v3439_v33 = vld [vmem:[#allocation10 + $0x2c8] sm:$0xff] }
 0x458   :  { %v6510_v43 = vmul.f32 -1.442695, %v3295_v14  ;;  %v3284_v57 = vsel %vm3281_vm1, %v3283_v15, %v3279_v53  ;;  %vm3310_vm3 = vweird.f32 %v6677_v44  ;;  %v484_v19 = vadd.f32 %v9423_v39, %v7815_v34  ;;  %v3427_v14 = vld [vmem:[#allocation10 + $0x268] sm:$0xff]  ;;  %v3420_v53 = vld [vmem:[#allocation10 + $0x230] sm:$0xff]  ;;  %v3541_v39 = vld [vmem:[#allocation10 + $0x5f8] sm:$0xff] }
 0x459   :  { %v3306_v42 = vsub.f32 1.0, %v3305_v29  ;;  %v3289_v22 = vsub.f32 1.0, %v3284_v57  ;;  %v3243_v63 = vpop.f32.mrf.mxu3  ;;  %v3291_v16 = vmul.f32 %v3284_v57, %v8106_v11  ;;  %vm3311_vm8 = vmor %vm3309_vm4, %vm3310_vm3  ;;  %v3316_v27 = vor.u32 1.1754944e-38, %v3315_v38  ;;  %v3421_v29 = vld [vmem:[#allocation10 + $0x238] sm:$0xff]  ;;  %v3402_v38 = vld [vmem:[#allocation10 + $0x1a0] sm:$0xff] }
 0x45a   :  { %6680 = vpow2.f32 %v6510_v43  ;;  %v3244_v40 = vadd.f32 %v3243_v63, %v3224_v41  ;;  %v3415_v43 = vld [vmem:[#allocation10 + $0x208] sm:$0xff]  ;;  %v3396_v63 = vld [vmem:[#allocation10 + $0x170] sm:$0xff] }
 0x45b   :  { %v3307_v60 = vmul.f32 %v6677_v44, %v3306_v42  ;;  %v3408_v42 = vld [vmem:[#allocation10 + $0x1d0] sm:$0xff] }
 0x45d   :  { %v6679_v52 = vpop.eup %6678  ;;  %v3308_v32 = vadd.f32 %v6677_v44, %v3307_v60  ;;  %v3403_v60 = vld [vmem:[#allocation10 + $0x1a8] sm:$0xff] }
 0x45e   :  { %v3290_v61 = vmul.f32 %v6679_v52, %v3289_v22  ;;  %v3397_v52 = vld [vmem:[#allocation10 + $0x178] sm:$0xff] }
 0x45f   :  { %v3312_v30 = vsel %vm3311_vm8, %v6677_v44, %v3308_v32  ;;  %v3426_v44 = vld [vmem:[#allocation10 + $0x260] sm:$0xff] }
 0x460   :  { %v6681_v17 = vpop.eup %6680  ;;  %v3292_v46 = vadd.f32 %v3291_v16, %v3290_v61  ;;  %v3317_v55 = vsel %vm3314_vm9, %v3316_v27, %v3312_v30  ;;  %v3390_v61 = vld [vmem:[#allocation10 + $0x140] sm:$0xff]  ;;  %v3391_v16 = vld [vmem:[#allocation10 + $0x148] sm:$0xff]  ;;  %v3384_v30 = vld [vmem:[#allocation10 + $0x110] sm:$0xff] }
 0x461   :  { %v3303_v24 = vadd.f32 1.0, %v6681_v17  ;;  %v3334_v8 = vmul.f32 %v3317_v55, %v3244_v40  ;;  %v3385_v17 = vld [vmem:[#allocation10 + $0x118] sm:$0xff] }
 0x462   :  { %v8176_v26 = vsel %vm2790_vm2, %v3292_v46, %v8106_v11 }
 0x463   :  { %6682 = vrcp.f32 %v3303_v24  ;;  %3572 = vmatmul.f32.vlgmr.msra.gmra.mxu0 %v8176_v26  ;;  %3612 = vmatmul.f32.vlgmr.msra.gmra.mxu2 %v8176_v26  ;;  %v3335_v36 = vadd.f32 %v3334_v8, %v484_v19  ;;  %v3330_v59 = vand.u32 2147483648, %v3303_v24  ;;  %v3328_v5 = vand.u32 2147483647, %v3303_v24  ;;  %v3379_v8 = vld [vmem:[#allocation10 + $0xe8] sm:$0xff] }
 0x464   :  { %3716 = vmatpush.msra.mxu0 %v3444_v47  ;;  %3756 = vmatpush.msra.mxu2 %v3445_v7  ;;  %vm3324_vm15 = vweird.f32 %v3303_v24  ;;  %v3540_v7 = vld [vmem:[#allocation10 + $0x5f0] sm:$0xff] }
 0x465   :  { %6684 = vtanh.f32 %v3335_v36  ;;  %v3331_v22 = vor.u32 1.1754944e-38, %v3330_v59  ;;  %vm3329_vm1 = vcmp.eq.f32.partialorder %v3328_v5, 8.507059e+37  ;;  %v3534_v36 = vld [vmem:[#allocation10 + $0x5c0] sm:$0xff]  ;;  %v3355_v59 = vld [vmem:[#allocation10 + $0x28] sm:$0xff]  ;;  %v3504_v5 = vld [vmem:[#allocation10 + $0x4d0] sm:$0xff] }
 0x466   :  { %3717 = vmatpush.msra.mxu0 %v3438_v51  ;;  %3757 = vmatpush.msra.mxu2 %v3439_v33  ;;  %v3372_v51 = vld [vmem:[#allocation10 + $0xb0] sm:$0xff]  ;;  %v3373_v33 = vld [vmem:[#allocation10 + $0xb8] sm:$0xff] }
 0x468   :  { %3718 = vmatpush.msra.mxu0 %v3432_v56  ;;  %3758 = vmatpush.msra.mxu2 %v3433_v35  ;;  %v3535_v56 = vld [vmem:[#allocation10 + $0x5c8] sm:$0xff]  ;;  %v3366_v35 = vld [vmem:[#allocation10 + $0x80] sm:$0xff] }
 0x469   :  { %v6683_v15 = vpop.eup %6682 }
 0x46a   :  { %v3320_v20 = vmul.f32 %v6683_v15, %v3303_v24  ;;  %3719 = vmatpush.msra.mxu0 %v3426_v44  ;;  %3759 = vmatpush.msra.mxu2 %v3427_v14  ;;  %vm3325_vm11 = vweird.f32 %v6683_v15  ;;  %v3378_v24 = vld [vmem:[#allocation10 + $0xe0] sm:$0xff]  ;;  %v3367_v44 = vld [vmem:[#allocation10 + $0x88] sm:$0xff]  ;;  %v3528_v14 = vld [vmem:[#allocation10 + $0x590] sm:$0xff] }
 0x46b   :  { %3652 = vmatmul.f32.vlgmr.msrb.gmra.mxu0 %v8176_v26  ;;  %3692 = vmatmul.f32.vlgmr.msrb.gmra.mxu2 %v8176_v26  ;;  %vm3326_vm0 = vmor %vm3324_vm15, %vm3325_vm11  ;;  %v6685_v40 = vpop.eup %6684 }
 0x46c   :  { %v3321_v57 = vsub.f32 1.0, %v3320_v20  ;;  %3720 = vmatpush.msra.mxu0 %v3420_v53  ;;  %3760 = vmatpush.msra.mxu2 %v3421_v29  ;;  %v3360_v53 = vld [vmem:[#allocation10 + $0x50] sm:$0xff]  ;;  %v3361_v29 = vld [vmem:[#allocation10 + $0x58] sm:$0xff]  ;;  %v3522_v20 = vld [vmem:[#allocation10 + $0x560] sm:$0xff] }
 0x46e   :  { %v3322_v50 = vmul.f32 %v6683_v15, %v3321_v57  ;;  %3721 = vmatpush.msra.mxu0 %v3414_v18  ;;  %3761 = vmatpush.msra.mxu2 %v3415_v43  ;;  %v3523_v18 = vld [vmem:[#allocation10 + $0x568] sm:$0xff]  ;;  %v3354_v43 = vld [vmem:[#allocation10 + $0x20] sm:$0xff]  ;;  %v3516_v57 = vld [vmem:[#allocation10 + $0x530] sm:$0xff] }
 0x470   :  { %v3323_v58 = vadd.f32 %v6683_v15, %v3322_v50  ;;  %3722 = vmatpush.msra.mxu0 %v3408_v42  ;;  %3762 = vmatpush.msra.mxu2 %v3409_v49  ;;  %v3517_v42 = vld [vmem:[#allocation10 + $0x538] sm:$0xff]  ;;  %v3510_v49 = vld [vmem:[#allocation10 + $0x500] sm:$0xff]  ;;  %v3511_v50 = vld [vmem:[#allocation10 + $0x508] sm:$0xff] }
 0x472   :  { %v3327_v41 = vsel %vm3326_vm0, %v6683_v15, %v3323_v58  ;;  %3723 = vmatpush.msra.mxu0 %v3402_v38  ;;  %3763 = vmatpush.msra.mxu2 %v3403_v60  ;;  %v3529_v15 = vld [vmem:[#allocation10 + $0x598] sm:$0xff]  ;;  %v3498_v60 = vld [vmem:[#allocation10 + $0x4a0] sm:$0xff]  ;;  %v3499_v58 = vld [vmem:[#allocation10 + $0x4a8] sm:$0xff] }
 0x473   :  { %v3332_v32 = vsel %vm3329_vm1, %v3331_v22, %v3327_v41  ;;  %v3505_v38 = vld [vmem:[#allocation10 + $0x4d8] sm:$0xff]  ;;  %v3492_v22 = vld [vmem:[#allocation10 + $0x470] sm:$0xff]  ;;  %v3487_v41 = vld [vmem:[#allocation10 + $0x448] sm:$0xff] }
 0x474   :  { %v3337_v27 = vsub.f32 1.0, %v3332_v32  ;;  %3724 = vmatpush.msra.mxu0 %v3396_v63  ;;  %3764 = vmatpush.msra.mxu2 %v3397_v52  ;;  %v3339_v55 = vmul.f32 %v3332_v32, %v8119_v12  ;;  %v3493_v63 = vld [vmem:[#allocation10 + $0x478] sm:$0xff]  ;;  %v3486_v52 = vld [vmem:[#allocation10 + $0x440] sm:$0xff]  ;;  %v3480_v32 = vld [vmem:[#allocation10 + $0x410] sm:$0xff] }
 0x476   :  { %v3338_v46 = vmul.f32 %v6685_v40, %v3337_v27  ;;  %3725 = vmatpush.msra.mxu0 %v3390_v61  ;;  %3765 = vmatpush.msra.mxu2 %v3391_v16  ;;  %v3481_v61 = vld [vmem:[#allocation10 + $0x418] sm:$0xff]  ;;  %v3474_v16 = vld [vmem:[#allocation10 + $0x3e0] sm:$0xff]  ;;  %v3475_v27 = vld [vmem:[#allocation10 + $0x3e8] sm:$0xff] }
 0x477   :  { %v3468_v40 = vld [vmem:[#allocation10 + $0x3b0] sm:$0xff] }
 0x478   :  { %v3340_v47 = vadd.f32 %v3339_v55, %v3338_v46  ;;  %3726 = vmatpush.msra.mxu0 %v3384_v30  ;;  %3766 = vmatpush.msra.mxu2 %v3385_v17  ;;  %v3469_v30 = vld [vmem:[#allocation10 + $0x3b8] sm:$0xff]  ;;  %v3462_v17 = vld [vmem:[#allocation10 + $0x380] sm:$0xff]  ;;  %v3463_v46 = vld [vmem:[#allocation10 + $0x388] sm:$0xff] }
 0x479   :  { %v3456_v55 = vld [vmem:[#allocation10 + $0x350] sm:$0xff] }
 0x47a   :  { %v8186_v19 = vsel %vm2736_vm10, %v3340_v47, %v8119_v12  ;;  %3727 = vmatpush.msra.mxu0 %v3378_v24  ;;  %3767 = vmatpush.msra.mxu2 %v3379_v8  ;;  %v3457_v24 = vld [vmem:[#allocation10 + $0x358] sm:$0xff]  ;;  %v3450_v8 = vld [vmem:[#allocation10 + $0x320] sm:$0xff]  ;;  %v3451_v47 = vld [vmem:[#allocation10 + $0x328] sm:$0xff] }
 0x47b   :  { %3592 = vmatmul.f32.vlgmr.msra.gmra.mxu1 %v8186_v19  ;;  %3632 = vmatmul.f32.vlgmr.msra.gmra.mxu3 %v8186_v19 }
 0x47c   :  { %3736 = vmatpush.msra.mxu1 %v3540_v7  ;;  %3776 = vmatpush.msra.mxu3 %v3541_v39  ;;  %v3990_v7 = vld [vmem:[#allocation10 + $0x2d0] sm:$0xff]  ;;  %v3991_v39 = vld [vmem:[#allocation10 + $0x2d8] sm:$0xff] }
 0x47d   :  { %3728 = vmatpush.msra.mxu0 %v3372_v51  ;;  %3768 = vmatpush.msra.mxu2 %v3373_v33  ;;  %v3984_v51 = vld [vmem:[#allocation10 + $0x2a0] sm:$0xff]  ;;  %v3985_v33 = vld [vmem:[#allocation10 + $0x2a8] sm:$0xff] }
 0x47e   :  { %3737 = vmatpush.msra.mxu1 %v3534_v36  ;;  %3777 = vmatpush.msra.mxu3 %v3535_v56  ;;  %v3978_v36 = vld [vmem:[#allocation10 + $0x270] sm:$0xff]  ;;  %v3979_v56 = vld [vmem:[#allocation10 + $0x278] sm:$0xff] }
 0x47f   :  { %3729 = vmatpush.msra.mxu0 %v3366_v35  ;;  %3769 = vmatpush.msra.mxu2 %v3367_v44  ;;  %v3972_v35 = vld [vmem:[#allocation10 + $0x240] sm:$0xff]  ;;  %v3973_v44 = vld [vmem:[#allocation10 + $0x248] sm:$0xff] }
 0x480   :  { %3738 = vmatpush.msra.mxu1 %v3528_v14  ;;  %3778 = vmatpush.msra.mxu3 %v3529_v15  ;;  %v3966_v14 = vld [vmem:[#allocation10 + $0x210] sm:$0xff]  ;;  %v3967_v15 = vld [vmem:[#allocation10 + $0x218] sm:$0xff] }
 0x481   :  { %3730 = vmatpush.msra.mxu0 %v3360_v53  ;;  %3770 = vmatpush.msra.mxu2 %v3361_v29  ;;  %v3960_v53 = vld [vmem:[#allocation10 + $0x1e0] sm:$0xff]  ;;  %v3961_v29 = vld [vmem:[#allocation10 + $0x1e8] sm:$0xff] }
 0x482   :  { %3739 = vmatpush.msra.mxu1 %v3522_v20  ;;  %3779 = vmatpush.msra.mxu3 %v3523_v18  ;;  %v3954_v20 = vld [vmem:[#allocation10 + $0x1b0] sm:$0xff]  ;;  %v3955_v18 = vld [vmem:[#allocation10 + $0x1b8] sm:$0xff] }
 0x483   :  { %3672 = vmatmul.f32.vlgmr.msrb.gmra.mxu1 %v8186_v19  ;;  %3712 = vmatmul.f32.vlgmr.msrb.gmra.mxu3 %v8186_v19 }
 0x484   :  { %3731 = vmatpush.msra.mxu0 %v3354_v43  ;;  %3740 = vmatpush.msra.mxu1 %v3516_v57  ;;  %v3948_v43 = vld [vmem:[#allocation10 + $0x180] sm:$0xff]  ;;  %v3949_v57 = vld [vmem:[#allocation10 + $0x188] sm:$0xff] }
 0x485   :  { %3771 = vmatpush.msra.mxu2 %v3355_v59  ;;  %3780 = vmatpush.msra.mxu3 %v3517_v42  ;;  %v3942_v59 = vld [vmem:[#allocation10 + $0x150] sm:$0xff]  ;;  %v3943_v42 = vld [vmem:[#allocation10 + $0x158] sm:$0xff] }
 0x486   :  { %3732 = vmatmul.f32.vlgmr.msra.gmra.mxu0 %v8176_v26  ;;  %3772 = vmatmul.f32.vlgmr.msra.gmra.mxu2 %v8176_v26 }
 0x487   :  { %3741 = vmatpush.msra.mxu1 %v3510_v49  ;;  %3781 = vmatpush.msra.mxu3 %v3511_v50  ;;  %v3936_v49 = vld [vmem:[#allocation10 + $0x120] sm:$0xff]  ;;  %v3937_v50 = vld [vmem:[#allocation10 + $0x128] sm:$0xff] }
 0x488   :  { %4106 = vmatpush.msrb.mxu0 %v3990_v7  ;;  %4146 = vmatpush.msrb.mxu2 %v3991_v39  ;;  %v3901_v7 = vld [vmem:[#allocation10 + $0x8] sm:$0xff]  ;;  %v4063_v39 = vld [vmem:[#allocation10 + $0x518] sm:$0xff] }
 0x489   :  { %3742 = vmatpush.msra.mxu1 %v3504_v5  ;;  %3782 = vmatpush.msra.mxu3 %v3505_v38  ;;  %v3930_v5 = vld [vmem:[#allocation10 + $0xf0] sm:$0xff]  ;;  %v3931_v38 = vld [vmem:[#allocation10 + $0xf8] sm:$0xff] }
 0x48a   :  { %4107 = vmatpush.msrb.mxu0 %v3984_v51  ;;  %4147 = vmatpush.msrb.mxu2 %v3985_v33  ;;  %v3992_v51 = vld [vmem:[#allocation10 + $0x2e0] sm:$0xff]  ;;  %v3993_v33 = vld [vmem:[#allocation10 + $0x2e8] sm:$0xff] }
 0x48b   :  { %3743 = vmatpush.msra.mxu1 %v3498_v60  ;;  %3783 = vmatpush.msra.mxu3 %v3499_v58  ;;  %v3924_v60 = vld [vmem:[#allocation10 + $0xc0] sm:$0xff]  ;;  %v4086_v58 = vld [vmem:[#allocation10 + $0x5d0] sm:$0xff] }
 0x48c   :  { %4108 = vmatpush.msrb.mxu0 %v3978_v36  ;;  %4148 = vmatpush.msrb.mxu2 %v3979_v56  ;;  %v4056_v36 = vld [vmem:[#allocation10 + $0x4e0] sm:$0xff]  ;;  %v4057_v56 = vld [vmem:[#allocation10 + $0x4e8] sm:$0xff] }
 0x48d   :  { %3744 = vmatpush.msra.mxu1 %v3492_v22  ;;  %3784 = vmatpush.msra.mxu3 %v3493_v63  ;;  %v3925_v22 = vld [vmem:[#allocation10 + $0xc8] sm:$0xff]  ;;  %v4087_v63 = vld [vmem:[#allocation10 + $0x5d8] sm:$0xff] }
 0x48e   :  { %4109 = vmatpush.msrb.mxu0 %v3972_v35  ;;  %4149 = vmatpush.msrb.mxu2 %v3973_v44  ;;  %v3986_v35 = vld [vmem:[#allocation10 + $0x2b0] sm:$0xff]  ;;  %v3987_v44 = vld [vmem:[#allocation10 + $0x2b8] sm:$0xff] }
 0x48f   :  { %3745 = vmatpush.msra.mxu1 %v3486_v52  ;;  %3785 = vmatpush.msra.mxu3 %v3487_v41  ;;  %v3918_v52 = vld [vmem:[#allocation10 + $0x90] sm:$0xff]  ;;  %v4080_v41 = vld [vmem:[#allocation10 + $0x5a0] sm:$0xff] }
 0x490   :  { %4110 = vmatpush.msrb.mxu0 %v3966_v14  ;;  %4150 = vmatpush.msrb.mxu2 %v3967_v15  ;;  %v4050_v14 = vld [vmem:[#allocation10 + $0x4b0] sm:$0xff]  ;;  %v4051_v15 = vld [vmem:[#allocation10 + $0x4b8] sm:$0xff] }
 0x491   :  { %3746 = vmatpush.msra.mxu1 %v3480_v32  ;;  %3786 = vmatpush.msra.mxu3 %v3481_v61  ;;  %v3919_v32 = vld [vmem:[#allocation10 + $0x98] sm:$0xff]  ;;  %v4081_v61 = vld [vmem:[#allocation10 + $0x5a8] sm:$0xff] }
 0x492   :  { %4111 = vmatpush.msrb.mxu0 %v3960_v53  ;;  %4151 = vmatpush.msrb.mxu2 %v3961_v29  ;;  %v3980_v53 = vld [vmem:[#allocation10 + $0x280] sm:$0xff]  ;;  %v3981_v29 = vld [vmem:[#allocation10 + $0x288] sm:$0xff] }
 0x493   :  { %3747 = vmatpush.msra.mxu1 %v3474_v16  ;;  %3787 = vmatpush.msra.mxu3 %v3475_v27  ;;  %v3912_v16 = vld [vmem:[#allocation10 + $0x60] sm:$0xff]  ;;  %v4074_v27 = vld [vmem:[#allocation10 + $0x570] sm:$0xff] }
 0x494   :  { %4112 = vmatpush.msrb.mxu0 %v3954_v20  ;;  %4152 = vmatpush.msrb.mxu2 %v3955_v18  ;;  %v8196_v20 = vld [vmem:[#allocation17 + $0x6] sm:$0x3f] }
 0x495   :  { %3748 = vmatpush.msra.mxu1 %v3468_v40  ;;  %3788 = vmatpush.msra.mxu3 %v3469_v30  ;;  %v3913_v40 = vld [vmem:[#allocation10 + $0x68] sm:$0xff]  ;;  %v4075_v30 = vld [vmem:[#allocation10 + $0x578] sm:$0xff]  ;;  %v4044_v18 = vld [vmem:[#allocation10 + $0x480] sm:$0xff] }
 0x496   :  { %4113 = vmatpush.msrb.mxu0 %v3948_v43  ;;  %4153 = vmatpush.msrb.mxu2 %v3949_v57  ;;  %v4045_v43 = vld [vmem:[#allocation10 + $0x488] sm:$0xff]  ;;  %v3974_v57 = vld [vmem:[#allocation10 + $0x250] sm:$0xff] }
 0x497   :  { %3749 = vmatpush.msra.mxu1 %v3462_v17  ;;  %3789 = vmatpush.msra.mxu3 %v3463_v46  ;;  %v3906_v17 = vld [vmem:[#allocation10 + $0x30] sm:$0xff]  ;;  %v4068_v46 = vld [vmem:[#allocation10 + $0x540] sm:$0xff] }
 0x498   :  { %4114 = vmatpush.msrb.mxu0 %v3942_v59  ;;  %4154 = vmatpush.msrb.mxu2 %v3943_v42  ;;  %v3975_v59 = vld [vmem:[#allocation10 + $0x258] sm:$0xff]  ;;  %v4038_v42 = vld [vmem:[#allocation10 + $0x450] sm:$0xff] }
 0x499   :  { %3750 = vmatpush.msra.mxu1 %v3456_v55  ;;  %3790 = vmatpush.msra.mxu3 %v3457_v24  ;;  %v3907_v55 = vld [vmem:[#allocation10 + $0x38] sm:$0xff]  ;;  %v4069_v24 = vld [vmem:[#allocation10 + $0x548] sm:$0xff] }
 0x49a   :  { %4115 = vmatpush.msrb.mxu0 %v3936_v49  ;;  %4155 = vmatpush.msrb.mxu2 %v3937_v50  ;;  %v4039_v49 = vld [vmem:[#allocation10 + $0x458] sm:$0xff]  ;;  %v3544_v50 = vperm.slane %v8196_v20, 0 }
 0x49b   :  { %3751 = vmatpush.msra.mxu1 %v3450_v8  ;;  %3791 = vmatpush.msra.mxu3 %v3451_v47  ;;  %v3900_v8 = vld [vmem:[#allocation10] sm:$0xff]  ;;  %v4062_v47 = vld [vmem:[#allocation10 + $0x510] sm:$0xff] }
 0x49c   :  { %3752 = vmatmul.f32.vlgmr.msra.gmra.mxu1 %v8186_v19  ;;  %3792 = vmatmul.f32.vlgmr.msra.gmra.mxu3 %v8186_v19 }
 0x49d   :  { %4116 = vmatpush.msrb.mxu0 %v3930_v5  ;;  %4156 = vmatpush.msrb.mxu2 %v3931_v38  ;;  %v3968_v5 = vld [vmem:[#allocation10 + $0x220] sm:$0xff]  ;;  %v3969_v38 = vld [vmem:[#allocation10 + $0x228] sm:$0xff] }
 0x49e   :  { %4126 = vmatpush.msrb.mxu1 %v4086_v58  ;;  %4166 = vmatpush.msrb.mxu3 %v4087_v63  ;;  %v4032_v58 = vld [vmem:[#allocation10 + $0x420] sm:$0xff]  ;;  %v3962_v63 = vld [vmem:[#allocation10 + $0x1f0] sm:$0xff] }
 0x49f   :  { %4117 = vmatpush.msrb.mxu0 %v3924_v60  ;;  %4157 = vmatpush.msrb.mxu2 %v3925_v22  ;;  %v4033_v22 = vld [vmem:[#allocation10 + $0x428] sm:$0xff] }
 0x4a0   :  { %4127 = vmatpush.msrb.mxu1 %v4080_v41  ;;  %4167 = vmatpush.msrb.mxu3 %v4081_v61  ;;  %v4026_v41 = vld [vmem:[#allocation10 + $0x3f0] sm:$0xff] }
 0x4a1   :  { %4118 = vmatpush.msrb.mxu0 %v3918_v52  ;;  %4158 = vmatpush.msrb.mxu2 %v3919_v32  ;;  %v3963_v52 = vld [vmem:[#allocation10 + $0x1f8] sm:$0xff] }
 0x4a2   :  { %4128 = vmatpush.msrb.mxu1 %v4074_v27  ;;  %4168 = vmatpush.msrb.mxu3 %v4075_v30  ;;  %v4027_v32 = vld [vmem:[#allocation10 + $0x3f8] sm:$0xff]  ;;  %v3957_v27 = vld [vmem:[#allocation10 + $0x1c8] sm:$0xff] }
 0x4a3   :  { %4119 = vmatpush.msrb.mxu0 %v3912_v16  ;;  %4159 = vmatpush.msrb.mxu2 %v3913_v40  ;;  %v3956_v16 = vld [vmem:[#allocation10 + $0x1c0] sm:$0xff] }
 0x4a4   :  { %4129 = vmatpush.msrb.mxu1 %v4068_v46  ;;  %4169 = vmatpush.msrb.mxu3 %v4069_v24 }
 0x4a5   :  { %4120 = vmatpush.msrb.mxu0 %v3906_v17  ;;  %4160 = vmatpush.msrb.mxu2 %v3907_v55  ;;  %v9424_v17 = vld [vmem:[#allocation40_spill] sm:$0xff]  ;;  %v3545_v55 = vperm.slane %v8196_v20, 1 }
 0x4a6   :  { %4130 = vmatpush.msrb.mxu1 %v4062_v47  ;;  %4170 = vmatpush.msrb.mxu3 %v4063_v39  ;;  %v285_v46 = vadd.f32 %v9424_v17, %v7615_v25  ;;  %v6841_v47 = vld [vmem:[#allocation10 + $0x3c8] sm:$0xff]  ;;  %v6842_v39 = vld [vmem:[#allocation10 + $0x190] sm:$0xff] }
 0x4a7   :  { %4121 = vmatpush.msrb.mxu0 %v3900_v8  ;;  %4161 = vmatpush.msrb.mxu2 %v3901_v7  ;;  %v6840_v8 = vld [vmem:[#allocation10 + $0x3c0] sm:$0xff]  ;;  %v3921_v17 = vld [vmem:[#allocation10 + $0xa8] sm:$0xff] }
 0x4a8   :  { %4131 = vmatpush.msrb.mxu1 %v4056_v36  ;;  %4171 = vmatpush.msrb.mxu3 %v4057_v56  ;;  %v6845_v36 = vld [vmem:[#allocation10 + $0x398] sm:$0xff] }
 0x4a9   :  { %4186 = vmatpush.msra.mxu0 %v3992_v51  ;;  %4226 = vmatpush.msra.mxu2 %v3993_v33  ;;  %v6843_v51 = vld [vmem:[#allocation10 + $0x198] sm:$0xff]  ;;  %v6844_v33 = vld [vmem:[#allocation10 + $0x390] sm:$0xff] }
 0x4aa   :  { %4132 = vmatpush.msrb.mxu1 %v4050_v14  ;;  %4172 = vmatpush.msrb.mxu3 %v4051_v15  ;;  %v6847_v14 = vld [vmem:[#allocation10 + $0x168] sm:$0xff] }
 0x4ab   :  { %4187 = vmatpush.msra.mxu0 %v3986_v35  ;;  %4227 = vmatpush.msra.mxu2 %v3987_v44  ;;  %v6846_v44 = vld [vmem:[#allocation10 + $0x160] sm:$0xff] }
 0x4ac   :  { %4133 = vmatpush.msrb.mxu1 %v4044_v18  ;;  %4173 = vmatpush.msrb.mxu3 %v4045_v43  ;;  %v4002_v18 = vld [vmem:[#allocation10 + $0x330] sm:$0xff]  ;;  %v4003_v43 = vld [vmem:[#allocation10 + $0x338] sm:$0xff] }
 0x4ad   :  { %4188 = vmatpush.msra.mxu0 %v3980_v53  ;;  %4228 = vmatpush.msra.mxu2 %v3981_v29  ;;  %v6848_v53 = vld [vmem:[#allocation10 + $0x360] sm:$0xff]  ;;  %v6849_v29 = vld [vmem:[#allocation10 + $0x368] sm:$0xff] }
 0x4ae   :  { %4134 = vmatpush.msrb.mxu1 %v4038_v42  ;;  %4174 = vmatpush.msrb.mxu3 %v4039_v49  ;;  %v6850_v49 = vld [vmem:[#allocation10 + $0x130] sm:$0xff] }
 0x4af   :  { %4189 = vmatpush.msra.mxu0 %v3974_v57  ;;  %4229 = vmatpush.msra.mxu2 %v3975_v59  ;;  %v9425_v57 = vld [vmem:[#allocation42_spill] sm:$0xff] }
 0x4b0   :  { %4135 = vmatpush.msrb.mxu1 %v4032_v58  ;;  %4175 = vmatpush.msrb.mxu3 %v4033_v22  ;;  %v326_v59 = vadd.f32 %v9425_v57, %v7645_v45  ;;  %v3997_v58 = vld [vmem:[#allocation10 + $0x308] sm:$0xff]  ;;  %v3547_v22 = vperm.slane %v8196_v20, 3  ;;  %v3903_v57 = vld [vmem:[#allocation10 + $0x18] sm:$0xff] }
 0x4b1   :  { %4190 = vmatpush.msra.mxu0 %v3968_v5  ;;  %4230 = vmatpush.msra.mxu2 %v3969_v38  ;;  %v3932_v5 = vld [vmem:[#allocation10 + $0x100] sm:$0xff]  ;;  %v3933_v38 = vld [vmem:[#allocation10 + $0x108] sm:$0xff] }
 0x4b2   :  { %4136 = vmatpush.msrb.mxu1 %v4026_v41  ;;  %4176 = vmatpush.msrb.mxu3 %v4027_v32  ;;  %v4088_v41 = vld [vmem:[#allocation10 + $0x5e0] sm:$0xff]  ;;  %v3927_v32 = vld [vmem:[#allocation10 + $0xd8] sm:$0xff] }
 0x4b3   :  { %4191 = vmatpush.msra.mxu0 %v3962_v63  ;;  %4231 = vmatpush.msra.mxu2 %v3963_v52  ;;  %v3926_v52 = vld [vmem:[#allocation10 + $0xd0] sm:$0xff] }
 0x4b4   :  { %4137 = vmatpush.msrb.mxu1 %v6840_v8  ;;  %4177 = vmatpush.msrb.mxu3 %v6841_v47  ;;  %v3914_v8 = vld [vmem:[#allocation10 + $0x70] sm:$0xff]  ;;  %v4076_v47 = vld [vmem:[#allocation10 + $0x580] sm:$0xff] }
 0x4b5   :  { %4192 = vmatpush.msra.mxu0 %v3956_v16  ;;  %4232 = vmatpush.msra.mxu2 %v3957_v27  ;;  %v4089_v16 = vld [vmem:[#allocation10 + $0x5e8] sm:$0xff] }
 0x4b6   :  { %4138 = vmatpush.msrb.mxu1 %v6844_v33  ;;  %4178 = vmatpush.msrb.mxu3 %v6845_v36  ;;  %v4077_v33 = vld [vmem:[#allocation10 + $0x588] sm:$0xff]  ;;  %v9426_v36 = vld [vmem:[#allocation41_spill] sm:$0xff] }
 0x4b7   :  { %4193 = vmatpush.msra.mxu0 %v6842_v39  ;;  %4233 = vmatpush.msra.mxu2 %v6843_v51 }
 0x4b8   :  { %4139 = vmatpush.msrb.mxu1 %v6848_v53  ;;  %4179 = vmatpush.msrb.mxu3 %v6849_v29  ;;  %v4071_v53 = vld [vmem:[#allocation10 + $0x558] sm:$0xff] }
 0x4b9   :  { %4194 = vmatpush.msra.mxu0 %v6846_v44  ;;  %4234 = vmatpush.msra.mxu2 %v6847_v14  ;;  %v3908_v44 = vld [vmem:[#allocation10 + $0x40] sm:$0xff]  ;;  %v4070_v14 = vld [vmem:[#allocation10 + $0x550] sm:$0xff] }
 0x4ba   :  { %4140 = vmatpush.msrb.mxu1 %v4002_v18  ;;  %4180 = vmatpush.msrb.mxu3 %v4003_v43  ;;  %v3902_v18 = vld [vmem:[#allocation10 + $0x10] sm:$0xff]  ;;  %v4064_v43 = vld [vmem:[#allocation10 + $0x520] sm:$0xff] }
 0x4bb   :  { %4195 = vmatpush.msra.mxu0 %v6850_v49 }
 0x4bc   :  { %4181 = vmatpush.msrb.mxu3 %v3997_v58  ;;  %v4052_v58 = vld [vmem:[#allocation10 + $0x4c0] sm:$0xff] }
 0x4bd   :  { %4196 = vmatpush.msra.mxu0 %v3932_v5  ;;  %v4059_v5 = vld [vmem:[#allocation10 + $0x4f8] sm:$0xff] }
 0x4be   :  { %4246 = vmatpush.msra.mxu3 %v4089_v16 }
 0x4bf   :  { %4197 = vmatpush.msra.mxu0 %v3926_v52 }
 0x4e0   :  { %v3573_v60 = vpop.f32.mrf.mxu0 }
 0x4e1   :  { %v3574_v61 = vadd.f32 %v3573_v60, %v3544_v50  ;;  %v6851_v50 = vld [vmem:[#allocation10 + $0x138] sm:$0xff]  ;;  %v3996_v60 = vld [vmem:[#allocation10 + $0x300] sm:$0xff] }
 0x4e2   :  { %4235 = vmatpush.msra.mxu2 %v6851_v50  ;;  %4141 = vmatpush.msrb.mxu1 %v3996_v60  ;;  %v4058_v50 = vld [vmem:[#allocation10 + $0x4f0] sm:$0xff] }
 0x4e4   :  { %4236 = vmatpush.msra.mxu2 %v3933_v38  ;;  %4206 = vmatpush.msra.mxu1 %v4088_v41  ;;  %v4046_v41 = vld [vmem:[#allocation10 + $0x490] sm:$0xff] }
 0x4e6   :  { %v3613_v40 = vpop.f32.mrf.mxu2  ;;  %4237 = vmatpush.msra.mxu2 %v3927_v32  ;;  %v4047_v32 = vld [vmem:[#allocation10 + $0x498] sm:$0xff] }
 0x4e7   :  { %v3614_v56 = vadd.f32 %v3613_v40, %v3545_v55  ;;  %v3920_v40 = vld [vmem:[#allocation10 + $0xa0] sm:$0xff] }
 0x4e8   :  { %4198 = vmatpush.msra.mxu0 %v3920_v40  ;;  %4238 = vmatpush.msra.mxu2 %v3921_v17  ;;  %v3653_v60 = vpop.f32.mrf.mxu0  ;;  %v4040_v40 = vld [vmem:[#allocation10 + $0x460] sm:$0xff] }
 0x4ea   :  { %4199 = vmatpush.msra.mxu0 %v3914_v8  ;;  %v4034_v8 = vld [vmem:[#allocation10 + $0x430] sm:$0xff] }
 0x4ec   :  { %4200 = vmatpush.msra.mxu0 %v3908_v44 }
 0x4ee   :  { %4201 = vmatpush.msra.mxu0 %v3902_v18 }
 0x4f8   :  { %v3593_v30 = vpop.f32.mrf.mxu1 }
 0x4f9   :  { %v3594_v24 = vadd.f32 %v3593_v30, %v3574_v61  ;;  %v3693_v61 = vpop.f32.mrf.mxu2  ;;  %v4082_v30 = vld [vmem:[#allocation10 + $0x5b0] sm:$0xff] }
 0x4fa   :  { %4207 = vmatpush.msra.mxu1 %v4082_v30  ;;  %v4041_v30 = vld [vmem:[#allocation10 + $0x468] sm:$0xff] }
 0x4fb   :  { %v3796_v7 = vadd.f32 %v3594_v24, %v285_v46  ;;  %v4083_v46 = vld [vmem:[#allocation10 + $0x5b8] sm:$0xff]  ;;  %v3694_v24 = vadd.f32 %v3693_v61, %v3547_v22  ;;  %v4053_v22 = vld [vmem:[#allocation10 + $0x4c8] sm:$0xff]  ;;  %v3546_v61 = vperm.slane %v8196_v20, 2 }
 0x4fc   :  { %4247 = vmatpush.msra.mxu3 %v4083_v46  ;;  %4208 = vmatpush.msra.mxu1 %v4076_v47  ;;  %v4035_v47 = vld [vmem:[#allocation10 + $0x438] sm:$0xff] }
 0x4fd   :  { %v6511_v35 = vmul.f32 -1.442695, %v3796_v7  ;;  %v3915_v7 = vld [vmem:[#allocation10 + $0x78] sm:$0xff] }
 0x4fe   :  { %v3633_v15 = vpop.f32.mrf.mxu3  ;;  %4239 = vmatpush.msra.mxu2 %v3915_v7  ;;  %4248 = vmatpush.msra.mxu3 %v4077_v33 }
 0x4ff   :  { %6686 = vpow2.f32 %v6511_v35  ;;  %v3634_v42 = vadd.f32 %v3633_v15, %v3614_v56  ;;  %v399_v56 = vadd.f32 %v9426_v36, %v7748_v2  ;;  %v3909_v15 = vld [vmem:[#allocation10 + $0x48] sm:$0xff]  ;;  %4209 = vmatpush.msra.mxu1 %v4070_v14  ;;  %v3654_v36 = vadd.f32 %v3653_v60, %v3546_v61  ;;  %v4028_v14 = vld [vmem:[#allocation10 + $0x400] sm:$0xff] }
 0x500   :  { %4240 = vmatpush.msra.mxu2 %v3909_v15  ;;  %4249 = vmatpush.msra.mxu3 %v4071_v53  ;;  %v3673_v16 = vpop.f32.mrf.mxu1  ;;  %v4029_v15 = vld [vmem:[#allocation10 + $0x408] sm:$0xff] }
 0x501   :  { %v3797_v63 = vadd.f32 %v3634_v42, %v326_v59  ;;  %v4065_v59 = vld [vmem:[#allocation10 + $0x528] sm:$0xff]  ;;  %4210 = vmatpush.msra.mxu1 %v4064_v43  ;;  %v3674_v18 = vadd.f32 %v3673_v16, %v3654_v36 }
 0x502   :  { %4241 = vmatpush.msra.mxu2 %v3903_v57  ;;  %4250 = vmatpush.msra.mxu3 %v4065_v59  ;;  %v4022_v57 = vld [vmem:[#allocation10 + $0x3d0] sm:$0xff]  ;;  %v4023_v59 = vld [vmem:[#allocation10 + $0x3d8] sm:$0xff]  ;;  %v4005_v36 = vld [vmem:[#allocation10 + $0x348] sm:$0xff] }
 0x503   :  { %v6512_v27 = vmul.f32 -1.442695, %v3797_v63  ;;  %4211 = vmatpush.msra.mxu1 %v4058_v50  ;;  %v3733_v44 = vpop.f32.mrf.mxu0 }
 0x504   :  { %4251 = vmatpush.msra.mxu3 %v4059_v5 }
 0x505   :  { %v6687_v55 = vpop.eup %6686  ;;  %6688 = vpow2.f32 %v6512_v27  ;;  %4212 = vmatpush.msra.mxu1 %v4052_v58 }
 0x506   :  { %v8205_v39 = vadd.f32 1.0, %v6687_v55  ;;  %v3713_v51 = vpop.f32.mrf.mxu3  ;;  %4252 = vmatpush.msra.mxu3 %v4053_v22 }
 0x507   :  { %v3714_v35 = vadd.f32 %v3713_v51, %v3694_v24  ;;  %4213 = vmatpush.msra.mxu1 %v4046_v41  ;;  %v3548_v51 = vperm.slane %v8196_v20, 4  ;;  %v4017_v41 = vld [vmem:[#allocation10 + $0x3a8] sm:$0xff] }
 0x508   :  { %6690 = vrcp.f32 %v8205_v39  ;;  %v3817_v17 = vand.u32 2147483648, %v8205_v39  ;;  %4253 = vmatpush.msra.mxu3 %v4047_v32  ;;  %v3815_v24 = vand.u32 2147483647, %v8205_v39  ;;  %vm3811_vm4 = vweird.f32 %v8205_v39 }
 0x509   :  { %v3844_v29 = vadd.f32 %v3714_v35, %v399_v56  ;;  %4214 = vmatpush.msra.mxu1 %v4040_v40  ;;  %v3734_v50 = vadd.f32 %v3733_v44, %v3548_v51  ;;  %v4004_v51 = vld [vmem:[#allocation10 + $0x340] sm:$0xff] }
 0x50a   :  { %4254 = vmatpush.msra.mxu3 %v4041_v30  ;;  %v3818_v53 = vor.u32 1.1754944e-38, %v3817_v17  ;;  %vm3816_vm9 = vcmp.eq.f32.partialorder %v3815_v24, 8.507059e+37  ;;  %v4010_v30 = vld [vmem:[#allocation10 + $0x370] sm:$0xff]  ;;  %v4011_v17 = vld [vmem:[#allocation10 + $0x378] sm:$0xff] }
 0x50b   :  { %v6689_v42 = vpop.eup %6688  ;;  %v6513_v49 = vmul.f32 -1.442695, %v3844_v29  ;;  %4215 = vmatpush.msra.mxu1 %v4034_v8 }
 0x50c   :  { %v8210_v38 = vadd.f32 1.0, %v6689_v42  ;;  %4255 = vmatpush.msra.mxu3 %v4035_v47  ;;  %v9427_v42 = vld [vmem:[#allocation51_spill] sm:$0xff] }
 0x50d   :  { %6692 = vpow2.f32 %v6513_v49  ;;  %4216 = vmatpush.msra.mxu1 %v4028_v14  ;;  %v3998_v14 = vld [vmem:[#allocation10 + $0x310] sm:$0xff] }
 0x50e   :  { %v6691_v63 = vpop.eup %6690  ;;  %6694 = vrcp.f32 %v8210_v38  ;;  %4256 = vmatpush.msra.mxu3 %v4029_v15  ;;  %v3832_v60 = vand.u32 2147483648, %v8210_v38  ;;  %v3830_v61 = vand.u32 2147483647, %v8210_v38  ;;  %vm3826_vm15 = vweird.f32 %v8210_v38  ;;  %v3999_v15 = vld [vmem:[#allocation10 + $0x318] sm:$0xff] }
 0x50f   :  { %v3807_v52 = vmul.f32 %v6691_v63, %v8205_v39  ;;  %vm3812_vm3 = vweird.f32 %v6691_v63  ;;  %v367_v39 = vadd.f32 %v9427_v42, %v9394_v54  ;;  %4217 = vmatpush.msra.mxu1 %v4022_v57 }
 0x510   :  { %vm3813_vm8 = vmor %vm3811_vm4, %vm3812_vm3  ;;  %4257 = vmatpush.msra.mxu3 %v4023_v59  ;;  %v3833_v24 = vor.u32 1.1754944e-38, %v3832_v60  ;;  %vm3831_vm1 = vcmp.eq.f32.partialorder %v3830_v61, 8.507059e+37  ;;  %v3995_v61 = vld [vmem:[#allocation10 + $0x2f8] sm:$0xff] }
 0x511   :  { %v3808_v27 = vsub.f32 1.0, %v3807_v52  ;;  %v4016_v52 = vld [vmem:[#allocation10 + $0x3a0] sm:$0xff] }
 0x512   :  { %4218 = vmatpush.msra.mxu1 %v4016_v52  ;;  %4258 = vmatpush.msra.mxu3 %v4017_v41 }
 0x513   :  { %v6693_v46 = vpop.eup %6692  ;;  %v3809_v55 = vmul.f32 %v6691_v63, %v3808_v27 }
 0x514   :  { %v6695_v7 = vpop.eup %6694  ;;  %v8218_v33 = vadd.f32 1.0, %v6693_v46  ;;  %4219 = vmatpush.msra.mxu1 %v4010_v30  ;;  %4259 = vmatpush.msra.mxu3 %v4011_v17  ;;  %v3989_v30 = vld [vmem:[#allocation10 + $0x2c8] sm:$0xff] }
 0x515   :  { %v3822_v56 = vmul.f32 %v6695_v7, %v8210_v38  ;;  %v3810_v35 = vadd.f32 %v6691_v63, %v3809_v55  ;;  %vm3827_vm11 = vweird.f32 %v6695_v7 }
 0x516   :  { %6696 = vrcp.f32 %v8218_v33  ;;  %vm3828_vm0 = vmor %vm3826_vm15, %vm3827_vm11  ;;  %4220 = vmatpush.msra.mxu1 %v4004_v51  ;;  %4260 = vmatpush.msra.mxu3 %v4005_v36  ;;  %vm3859_vm4 = vweird.f32 %v8218_v33  ;;  %v3970_v51 = vld [vmem:[#allocation10 + $0x230] sm:$0xff]  ;;  %v3971_v36 = vld [vmem:[#allocation10 + $0x238] sm:$0xff] }
 0x517   :  { %v3823_v29 = vsub.f32 1.0, %v3822_v56  ;;  %v3814_v43 = vsel %vm3813_vm8, %v6691_v63, %v3810_v35  ;;  %v9428_v63 = vld [vmem:[#allocation53_spill] sm:$0xff]  ;;  %v3549_v35 = vperm.slane %v8196_v20, 5 }
 0x518   :  { %v3819_v49 = vsel %vm3816_vm9, %v3818_v53, %v3814_v43  ;;  %v440_v32 = vadd.f32 %v9428_v63, %v7768_v13  ;;  %v3773_v53 = vpop.f32.mrf.mxu2  ;;  %4221 = vmatpush.msra.mxu1 %v3998_v14  ;;  %4261 = vmatpush.msra.mxu3 %v3999_v15  ;;  %v3958_v15 = vld [vmem:[#allocation10 + $0x1d0] sm:$0xff] }
 0x519   :  { %v3824_v5 = vmul.f32 %v6695_v7, %v3823_v29  ;;  %v3836_v58 = vmul.f32 %v3819_v49, %v3674_v18  ;;  %v3753_v22 = vpop.f32.mrf.mxu1  ;;  %v3863_v18 = vand.u32 2147483647, %v8218_v33  ;;  %v3774_v42 = vadd.f32 %v3773_v53, %v3549_v35  ;;  %v3965_v35 = vld [vmem:[#allocation10 + $0x208] sm:$0xff]  ;;  %v3959_v53 = vld [vmem:[#allocation10 + $0x1d8] sm:$0xff] }
 0x51a   :  { %v3754_v16 = vadd.f32 %v3753_v22, %v3734_v50 }
 0x51b   :  { %v3825_v27 = vadd.f32 %v6695_v7, %v3824_v5  ;;  %v3837_v40 = vadd.f32 %v3836_v58, %v367_v39  ;;  %vm3864_vm9 = vcmp.eq.f32.partialorder %v3863_v18, 8.507059e+37  ;;  %v3952_v18 = vld [vmem:[#allocation10 + $0x1a0] sm:$0xff] }
 0x51c   :  { %v6697_v46 = vpop.eup %6696  ;;  %v3845_v55 = vadd.f32 %v3754_v16, %v440_v32  ;;  %v3994_v32 = vld [vmem:[#allocation10 + $0x2f0] sm:$0xff]  ;;  %v9429_v16 = vld [vmem:[#allocation54_spill] sm:$0xff] }
 0x51d   :  { %v3829_v8 = vsel %vm3828_vm0, %v6695_v7, %v3825_v27  ;;  %6698 = vtanh.f32 %v3837_v40  ;;  %v3855_v47 = vmul.f32 %v6697_v46, %v8218_v33  ;;  %v3865_v7 = vand.u32 2147483648, %v8218_v33  ;;  %v3988_v40 = vld [vmem:[#allocation10 + $0x2c0] sm:$0xff] }
 0x51e   :  { %v6514_v56 = vmul.f32 -1.442695, %v3845_v55  ;;  %v3834_v38 = vsel %vm3831_vm1, %v3833_v24, %v3829_v8  ;;  %vm3860_vm3 = vweird.f32 %v6697_v46  ;;  %v481_v27 = vadd.f32 %v9429_v16, %v7815_v34  ;;  %v3983_v55 = vld [vmem:[#allocation10 + $0x298] sm:$0xff]  ;;  %v3976_v24 = vld [vmem:[#allocation10 + $0x260] sm:$0xff]  ;;  %v3977_v8 = vld [vmem:[#allocation10 + $0x268] sm:$0xff] }
 0x51f   :  { %v3856_v44 = vsub.f32 1.0, %v3855_v47  ;;  %v3839_v43 = vsub.f32 1.0, %v3834_v38  ;;  %v3793_v57 = vpop.f32.mrf.mxu3  ;;  %v3841_v49 = vmul.f32 %v3834_v38, %v8176_v26  ;;  %vm3861_vm8 = vmor %vm3859_vm4, %vm3860_vm3  ;;  %v3866_v50 = vor.u32 1.1754944e-38, %v3865_v7  ;;  %v3964_v38 = vld [vmem:[#allocation10 + $0x200] sm:$0xff] }
 0x520   :  { %6700 = vpow2.f32 %v6514_v56  ;;  %v3794_v5 = vadd.f32 %v3793_v57, %v3774_v42  ;;  %v3946_v42 = vld [vmem:[#allocation10 + $0x170] sm:$0xff] }
 0x521   :  { %v3857_v29 = vmul.f32 %v6697_v46, %v3856_v44 }
 0x523   :  { %v6699_v59 = vpop.eup %6698  ;;  %v3858_v20 = vadd.f32 %v6697_v46, %v3857_v29 }
 0x524   :  { %v3840_v39 = vmul.f32 %v6699_v59, %v3839_v43  ;;  %v3953_v43 = vld [vmem:[#allocation10 + $0x1a8] sm:$0xff] }
 0x525   :  { %v3862_v60 = vsel %vm3861_vm8, %v6697_v46, %v3858_v20  ;;  %v3982_v46 = vld [vmem:[#allocation10 + $0x290] sm:$0xff]  ;;  %v3947_v20 = vld [vmem:[#allocation10 + $0x178] sm:$0xff] }
 0x526   :  { %v6701_v58 = vpop.eup %6700  ;;  %v3842_v22 = vadd.f32 %v3841_v49, %v3840_v39  ;;  %v3867_v52 = vsel %vm3864_vm9, %v3866_v50, %v3862_v60  ;;  %v3940_v50 = vld [vmem:[#allocation10 + $0x140] sm:$0xff] }
 0x527   :  { %v3853_v41 = vadd.f32 1.0, %v6701_v58  ;;  %v3884_v63 = vmul.f32 %v3867_v52, %v3794_v5  ;;  %v3941_v5 = vld [vmem:[#allocation10 + $0x148] sm:$0xff]  ;;  %v3935_v52 = vld [vmem:[#allocation10 + $0x118] sm:$0xff] }
 0x528   :  { %v8243_v33 = vsel %vm2228_vm6, %v3842_v22, %v8176_v26  ;;  %v3934_v22 = vld [vmem:[#allocation10 + $0x110] sm:$0xff] }
 0x529   :  { %6702 = vrcp.f32 %v3853_v41  ;;  %4122 = vmatmul.f32.vlgmr.msrb.gmra.mxu0 %v8243_v33  ;;  %4162 = vmatmul.f32.vlgmr.msrb.gmra.mxu2 %v8243_v33  ;;  %v3885_v17 = vadd.f32 %v3884_v63, %v481_v27  ;;  %v3880_v14 = vand.u32 2147483648, %v3853_v41  ;;  %v3878_v29 = vand.u32 2147483647, %v3853_v41  ;;  %v4090_v27 = vld [vmem:[#allocation10 + $0x5f0] sm:$0xff] }
 0x52a   :  { %4266 = vmatpush.msrb.mxu0 %v3994_v32  ;;  %4306 = vmatpush.msrb.mxu2 %v3995_v61  ;;  %vm3874_vm15 = vweird.f32 %v3853_v41  ;;  %v3928_v32 = vld [vmem:[#allocation10 + $0xe0] sm:$0xff]  ;;  %v3929_v61 = vld [vmem:[#allocation10 + $0xe8] sm:$0xff] }
 0x52b   :  { %6704 = vtanh.f32 %v3885_v17  ;;  %v3881_v59 = vor.u32 1.1754944e-38, %v3880_v14  ;;  %vm3879_vm1 = vcmp.eq.f32.partialorder %v3878_v29, 8.507059e+37  ;;  %v3922_v17 = vld [vmem:[#allocation10 + $0xb0] sm:$0xff]  ;;  %v3904_v14 = vld [vmem:[#allocation10 + $0x20] sm:$0xff] }
 0x52c   :  { %4267 = vmatpush.msrb.mxu0 %v3988_v40  ;;  %4307 = vmatpush.msrb.mxu2 %v3989_v30  ;;  %v4091_v40 = vld [vmem:[#allocation10 + $0x5f8] sm:$0xff]  ;;  %v4060_v29 = vld [vmem:[#allocation10 + $0x500] sm:$0xff] }
 0x52e   :  { %4268 = vmatpush.msrb.mxu0 %v3982_v46  ;;  %4308 = vmatpush.msrb.mxu2 %v3983_v55  ;;  %v3923_v46 = vld [vmem:[#allocation10 + $0xb8] sm:$0xff]  ;;  %v4084_v55 = vld [vmem:[#allocation10 + $0x5c0] sm:$0xff] }
 0x52f   :  { %v6703_v47 = vpop.eup %6702 }
 0x530   :  { %v3870_v56 = vmul.f32 %v6703_v47, %v3853_v41  ;;  %4269 = vmatpush.msrb.mxu0 %v3976_v24  ;;  %4309 = vmatpush.msrb.mxu2 %v3977_v8  ;;  %vm3875_vm11 = vweird.f32 %v6703_v47  ;;  %v4085_v24 = vld [vmem:[#allocation10 + $0x5c8] sm:$0xff]  ;;  %v3916_v8 = vld [vmem:[#allocation10 + $0x80] sm:$0xff] }
 0x531   :  { %4202 = vmatmul.f32.vlgmr.msra.gmra.mxu0 %v8243_v33  ;;  %4242 = vmatmul.f32.vlgmr.msra.gmra.mxu2 %v8243_v33  ;;  %vm3876_vm0 = vmor %vm3874_vm15, %vm3875_vm11  ;;  %v6705_v58 = vpop.eup %6704 }
 0x532   :  { %v3871_v44 = vsub.f32 1.0, %v3870_v56  ;;  %4270 = vmatpush.msrb.mxu0 %v3970_v51  ;;  %4310 = vmatpush.msrb.mxu2 %v3971_v36  ;;  %v4078_v51 = vld [vmem:[#allocation10 + $0x590] sm:$0xff]  ;;  %v4079_v36 = vld [vmem:[#allocation10 + $0x598] sm:$0xff] }
 0x533   :  { %v3910_v56 = vld [vmem:[#allocation10 + $0x50] sm:$0xff] }
 0x534   :  { %v3872_v7 = vmul.f32 %v6703_v47, %v3871_v44  ;;  %4271 = vmatpush.msrb.mxu0 %v3964_v38  ;;  %4311 = vmatpush.msrb.mxu2 %v3965_v35  ;;  %v3911_v38 = vld [vmem:[#allocation10 + $0x58] sm:$0xff]  ;;  %v4072_v35 = vld [vmem:[#allocation10 + $0x560] sm:$0xff]  ;;  %v4073_v44 = vld [vmem:[#allocation10 + $0x568] sm:$0xff] }
 0x536   :  { %v3873_v57 = vadd.f32 %v6703_v47, %v3872_v7  ;;  %4272 = vmatpush.msrb.mxu0 %v3958_v15  ;;  %4312 = vmatpush.msrb.mxu2 %v3959_v53  ;;  %v4066_v15 = vld [vmem:[#allocation10 + $0x530] sm:$0xff]  ;;  %v3905_v53 = vld [vmem:[#allocation10 + $0x28] sm:$0xff]  ;;  %v4067_v7 = vld [vmem:[#allocation10 + $0x538] sm:$0xff] }
 0x538   :  { %v3877_v39 = vsel %vm3876_vm0, %v6703_v47, %v3873_v57  ;;  %4273 = vmatpush.msrb.mxu0 %v3952_v18  ;;  %4313 = vmatpush.msrb.mxu2 %v3953_v43  ;;  %v3917_v47 = vld [vmem:[#allocation10 + $0x88] sm:$0xff]  ;;  %v4054_v43 = vld [vmem:[#allocation10 + $0x4d0] sm:$0xff]  ;;  %v4055_v57 = vld [vmem:[#allocation10 + $0x4d8] sm:$0xff] }
 0x539   :  { %v3882_v49 = vsel %vm3879_vm1, %v3881_v59, %v3877_v39  ;;  %v4061_v18 = vld [vmem:[#allocation10 + $0x508] sm:$0xff]  ;;  %v4048_v59 = vld [vmem:[#allocation10 + $0x4a0] sm:$0xff]  ;;  %v4043_v39 = vld [vmem:[#allocation10 + $0x478] sm:$0xff] }
 0x53a   :  { %v3887_v60 = vsub.f32 1.0, %v3882_v49  ;;  %4274 = vmatpush.msrb.mxu0 %v3946_v42  ;;  %4314 = vmatpush.msrb.mxu2 %v3947_v20  ;;  %v3889_v63 = vmul.f32 %v3882_v49, %v8186_v19  ;;  %v4049_v42 = vld [vmem:[#allocation10 + $0x4a8] sm:$0xff]  ;;  %v4042_v20 = vld [vmem:[#allocation10 + $0x470] sm:$0xff]  ;;  %v4036_v49 = vld [vmem:[#allocation10 + $0x440] sm:$0xff] }
 0x53c   :  { %v3888_v41 = vmul.f32 %v6705_v58, %v3887_v60  ;;  %4275 = vmatpush.msrb.mxu0 %v3940_v50  ;;  %4315 = vmatpush.msrb.mxu2 %v3941_v5  ;;  %v4037_v50 = vld [vmem:[#allocation10 + $0x448] sm:$0xff]  ;;  %v4030_v5 = vld [vmem:[#allocation10 + $0x410] sm:$0xff]  ;;  %v4031_v60 = vld [vmem:[#allocation10 + $0x418] sm:$0xff] }
 0x53d   :  { %v4024_v58 = vld [vmem:[#allocation10 + $0x3e0] sm:$0xff] }
 0x53e   :  { %v3890_v16 = vadd.f32 %v3889_v63, %v3888_v41  ;;  %4276 = vmatpush.msrb.mxu0 %v3934_v22  ;;  %4316 = vmatpush.msrb.mxu2 %v3935_v52  ;;  %v4025_v22 = vld [vmem:[#allocation10 + $0x3e8] sm:$0xff]  ;;  %v4018_v52 = vld [vmem:[#allocation10 + $0x3b0] sm:$0xff]  ;;  %v4019_v41 = vld [vmem:[#allocation10 + $0x3b8] sm:$0xff] }
 0x53f   :  { %v4012_v63 = vld [vmem:[#allocation10 + $0x380] sm:$0xff] }
 0x540   :  { %v8253_v30 = vsel %vm2174_vm14, %v3890_v16, %v8186_v19  ;;  %4277 = vmatpush.msrb.mxu0 %v3928_v32  ;;  %4317 = vmatpush.msrb.mxu2 %v3929_v61  ;;  %v4013_v32 = vld [vmem:[#allocation10 + $0x388] sm:$0xff]  ;;  %v4006_v61 = vld [vmem:[#allocation10 + $0x350] sm:$0xff]  ;;  %v4007_v16 = vld [vmem:[#allocation10 + $0x358] sm:$0xff] }
 0x541   :  { %4142 = vmatmul.f32.vlgmr.msrb.gmra.mxu1 %v8253_v30  ;;  %4182 = vmatmul.f32.vlgmr.msrb.gmra.mxu3 %v8253_v30 }
 0x542   :  { %4286 = vmatpush.msrb.mxu1 %v4090_v27  ;;  %4326 = vmatpush.msrb.mxu3 %v4091_v40  ;;  %v4000_v27 = vld [vmem:[#allocation10 + $0x320] sm:$0xff]  ;;  %v4001_v40 = vld [vmem:[#allocation10 + $0x328] sm:$0xff] }
 0x543   :  { %4278 = vmatpush.msrb.mxu0 %v3922_v17  ;;  %4318 = vmatpush.msrb.mxu2 %v3923_v46  ;;  %v4540_v17 = vld [vmem:[#allocation10 + $0x2d0] sm:$0xff]  ;;  %v4541_v46 = vld [vmem:[#allocation10 + $0x2d8] sm:$0xff] }
 0x544   :  { %4287 = vmatpush.msrb.mxu1 %v4084_v55  ;;  %4327 = vmatpush.msrb.mxu3 %v4085_v24  ;;  %v4534_v55 = vld [vmem:[#allocation10 + $0x2a0] sm:$0xff]  ;;  %v4535_v24 = vld [vmem:[#allocation10 + $0x2a8] sm:$0xff] }
 0x545   :  { %4279 = vmatpush.msrb.mxu0 %v3916_v8  ;;  %4319 = vmatpush.msrb.mxu2 %v3917_v47  ;;  %v4528_v8 = vld [vmem:[#allocation10 + $0x270] sm:$0xff]  ;;  %v4529_v47 = vld [vmem:[#allocation10 + $0x278] sm:$0xff] }
 0x546   :  { %4288 = vmatpush.msrb.mxu1 %v4078_v51  ;;  %4328 = vmatpush.msrb.mxu3 %v4079_v36  ;;  %v4522_v51 = vld [vmem:[#allocation10 + $0x240] sm:$0xff]  ;;  %v4523_v36 = vld [vmem:[#allocation10 + $0x248] sm:$0xff] }
 0x547   :  { %4280 = vmatpush.msrb.mxu0 %v3910_v56  ;;  %4320 = vmatpush.msrb.mxu2 %v3911_v38  ;;  %v4516_v56 = vld [vmem:[#allocation10 + $0x210] sm:$0xff]  ;;  %v4517_v38 = vld [vmem:[#allocation10 + $0x218] sm:$0xff] }
 0x548   :  { %4289 = vmatpush.msrb.mxu1 %v4072_v35  ;;  %4329 = vmatpush.msrb.mxu3 %v4073_v44  ;;  %v4510_v35 = vld [vmem:[#allocation10 + $0x1e0] sm:$0xff]  ;;  %v4511_v44 = vld [vmem:[#allocation10 + $0x1e8] sm:$0xff] }
 0x549   :  { %4222 = vmatmul.f32.vlgmr.msra.gmra.mxu1 %v8253_v30  ;;  %4262 = vmatmul.f32.vlgmr.msra.gmra.mxu3 %v8253_v30 }
 0x54a   :  { %4281 = vmatpush.msrb.mxu0 %v3904_v14  ;;  %4290 = vmatpush.msrb.mxu1 %v4066_v15  ;;  %v4504_v14 = vld [vmem:[#allocation10 + $0x1b0] sm:$0xff]  ;;  %v4505_v15 = vld [vmem:[#allocation10 + $0x1b8] sm:$0xff] }
 0x54b   :  { %4321 = vmatpush.msrb.mxu2 %v3905_v53  ;;  %4330 = vmatpush.msrb.mxu3 %v4067_v7  ;;  %v4498_v53 = vld [vmem:[#allocation10 + $0x180] sm:$0xff]  ;;  %v4499_v7 = vld [vmem:[#allocation10 + $0x188] sm:$0xff] }
 0x54c   :  { %4282 = vmatmul.f32.vlgmr.msrb.gmra.mxu0 %v8243_v33  ;;  %4322 = vmatmul.f32.vlgmr.msrb.gmra.mxu2 %v8243_v33 }
 0x54d   :  { %4291 = vmatpush.msrb.mxu1 %v4060_v29  ;;  %4331 = vmatpush.msrb.mxu3 %v4061_v18  ;;  %v4492_v29 = vld [vmem:[#allocation10 + $0x150] sm:$0xff]  ;;  %v4493_v18 = vld [vmem:[#allocation10 + $0x158] sm:$0xff] }
 0x54e   :  { %4656 = vmatpush.msra.mxu0 %v4540_v17  ;;  %4696 = vmatpush.msra.mxu2 %v4541_v46  ;;  %v4450_v17 = vld [vmem:[#allocation10] sm:$0xff]  ;;  %v4612_v46 = vld [vmem:[#allocation10 + $0x510] sm:$0xff] }
 0x54f   :  { %4292 = vmatpush.msrb.mxu1 %v4054_v43  ;;  %4332 = vmatpush.msrb.mxu3 %v4055_v57  ;;  %v4486_v43 = vld [vmem:[#allocation10 + $0x120] sm:$0xff]  ;;  %v4487_v57 = vld [vmem:[#allocation10 + $0x128] sm:$0xff] }
 0x550   :  { %4657 = vmatpush.msra.mxu0 %v4534_v55  ;;  %4697 = vmatpush.msra.mxu2 %v4535_v24  ;;  %v4451_v55 = vld [vmem:[#allocation10 + $0x8] sm:$0xff]  ;;  %v4613_v24 = vld [vmem:[#allocation10 + $0x518] sm:$0xff] }
 0x551   :  { %4293 = vmatpush.msrb.mxu1 %v4048_v59  ;;  %4333 = vmatpush.msrb.mxu3 %v4049_v42  ;;  %v4480_v59 = vld [vmem:[#allocation10 + $0xf0] sm:$0xff]  ;;  %v4481_v42 = vld [vmem:[#allocation10 + $0xf8] sm:$0xff] }
 0x552   :  { %4658 = vmatpush.msra.mxu0 %v4528_v8  ;;  %4698 = vmatpush.msra.mxu2 %v4529_v47  ;;  %v4542_v8 = vld [vmem:[#allocation10 + $0x2e0] sm:$0xff]  ;;  %v4543_v47 = vld [vmem:[#allocation10 + $0x2e8] sm:$0xff] }
 0x553   :  { %4294 = vmatpush.msrb.mxu1 %v4042_v20  ;;  %4334 = vmatpush.msrb.mxu3 %v4043_v39  ;;  %v4474_v20 = vld [vmem:[#allocation10 + $0xc0] sm:$0xff]  ;;  %v4636_v39 = vld [vmem:[#allocation10 + $0x5d0] sm:$0xff] }
 0x554   :  { %4659 = vmatpush.msra.mxu0 %v4522_v51  ;;  %4699 = vmatpush.msra.mxu2 %v4523_v36  ;;  %v4606_v51 = vld [vmem:[#allocation10 + $0x4e0] sm:$0xff]  ;;  %v4607_v36 = vld [vmem:[#allocation10 + $0x4e8] sm:$0xff] }
 0x555   :  { %4295 = vmatpush.msrb.mxu1 %v4036_v49  ;;  %4335 = vmatpush.msrb.mxu3 %v4037_v50  ;;  %v4475_v49 = vld [vmem:[#allocation10 + $0xc8] sm:$0xff]  ;;  %v4637_v50 = vld [vmem:[#allocation10 + $0x5d8] sm:$0xff] }
 0x556   :  { %4660 = vmatpush.msra.mxu0 %v4516_v56  ;;  %4700 = vmatpush.msra.mxu2 %v4517_v38  ;;  %v4536_v56 = vld [vmem:[#allocation10 + $0x2b0] sm:$0xff]  ;;  %v4537_v38 = vld [vmem:[#allocation10 + $0x2b8] sm:$0xff] }
 0x557   :  { %4296 = vmatpush.msrb.mxu1 %v4030_v5  ;;  %4336 = vmatpush.msrb.mxu3 %v4031_v60  ;;  %v4468_v5 = vld [vmem:[#allocation10 + $0x90] sm:$0xff]  ;;  %v4630_v60 = vld [vmem:[#allocation10 + $0x5a0] sm:$0xff] }
 0x558   :  { %4661 = vmatpush.msra.mxu0 %v4510_v35  ;;  %4701 = vmatpush.msra.mxu2 %v4511_v44  ;;  %v4600_v35 = vld [vmem:[#allocation10 + $0x4b0] sm:$0xff]  ;;  %v4601_v44 = vld [vmem:[#allocation10 + $0x4b8] sm:$0xff] }
 0x559   :  { %4297 = vmatpush.msrb.mxu1 %v4024_v58  ;;  %4337 = vmatpush.msrb.mxu3 %v4025_v22  ;;  %v4469_v58 = vld [vmem:[#allocation10 + $0x98] sm:$0xff]  ;;  %v4631_v22 = vld [vmem:[#allocation10 + $0x5a8] sm:$0xff] }
 0x55a   :  { %4662 = vmatpush.msra.mxu0 %v4504_v14  ;;  %4702 = vmatpush.msra.mxu2 %v4505_v15  ;;  %v4530_v14 = vld [vmem:[#allocation10 + $0x280] sm:$0xff]  ;;  %v4531_v15 = vld [vmem:[#allocation10 + $0x288] sm:$0xff] }
 0x55b   :  { %4298 = vmatpush.msrb.mxu1 %v4018_v52  ;;  %4338 = vmatpush.msrb.mxu3 %v4019_v41  ;;  %v4462_v52 = vld [vmem:[#allocation10 + $0x60] sm:$0xff]  ;;  %v4624_v41 = vld [vmem:[#allocation10 + $0x570] sm:$0xff] }
 0x55c   :  { %4663 = vmatpush.msra.mxu0 %v4498_v53  ;;  %4703 = vmatpush.msra.mxu2 %v4499_v7  ;;  %v8263_v53 = vld [vmem:[#allocation17 + $0x6] sm:$0x3f] }
 0x55d   :  { %4299 = vmatpush.msrb.mxu1 %v4012_v63  ;;  %4339 = vmatpush.msrb.mxu3 %v4013_v32  ;;  %v4463_v63 = vld [vmem:[#allocation10 + $0x68] sm:$0xff]  ;;  %v4625_v32 = vld [vmem:[#allocation10 + $0x578] sm:$0xff]  ;;  %v4594_v7 = vld [vmem:[#allocation10 + $0x480] sm:$0xff] }
 0x55e   :  { %4664 = vmatpush.msra.mxu0 %v4492_v29  ;;  %4704 = vmatpush.msra.mxu2 %v4493_v18  ;;  %v4595_v29 = vld [vmem:[#allocation10 + $0x488] sm:$0xff]  ;;  %v4524_v18 = vld [vmem:[#allocation10 + $0x250] sm:$0xff] }
 0x55f   :  { %4300 = vmatpush.msrb.mxu1 %v4006_v61  ;;  %4340 = vmatpush.msrb.mxu3 %v4007_v16  ;;  %v4456_v61 = vld [vmem:[#allocation10 + $0x30] sm:$0xff]  ;;  %v4618_v16 = vld [vmem:[#allocation10 + $0x540] sm:$0xff] }
 0x560   :  { %4665 = vmatpush.msra.mxu0 %v4486_v43  ;;  %4705 = vmatpush.msra.mxu2 %v4487_v57  ;;  %v4525_v43 = vld [vmem:[#allocation10 + $0x258] sm:$0xff]  ;;  %v4588_v57 = vld [vmem:[#allocation10 + $0x450] sm:$0xff] }
 0x561   :  { %4301 = vmatpush.msrb.mxu1 %v4000_v27  ;;  %4341 = vmatpush.msrb.mxu3 %v4001_v40  ;;  %v4457_v27 = vld [vmem:[#allocation10 + $0x38] sm:$0xff]  ;;  %v4619_v40 = vld [vmem:[#allocation10 + $0x548] sm:$0xff] }
 0x562   :  { %4302 = vmatmul.f32.vlgmr.msrb.gmra.mxu1 %v8253_v30  ;;  %4342 = vmatmul.f32.vlgmr.msrb.gmra.mxu3 %v8253_v30 }
 0x563   :  { %4666 = vmatpush.msra.mxu0 %v4480_v59  ;;  %4706 = vmatpush.msra.mxu2 %v4481_v42  ;;  %v4589_v59 = vld [vmem:[#allocation10 + $0x458] sm:$0xff]  ;;  %v4094_v42 = vperm.slane %v8263_v53, 0 }
 0x564   :  { %4676 = vmatpush.msra.mxu1 %v4636_v39  ;;  %4716 = vmatpush.msra.mxu3 %v4637_v50  ;;  %v4519_v39 = vld [vmem:[#allocation10 + $0x228] sm:$0xff]  ;;  %v4582_v50 = vld [vmem:[#allocation10 + $0x420] sm:$0xff] }
 0x565   :  { %4667 = vmatpush.msra.mxu0 %v4474_v20  ;;  %4707 = vmatpush.msra.mxu2 %v4475_v49  ;;  %v4518_v20 = vld [vmem:[#allocation10 + $0x220] sm:$0xff] }
 0x566   :  { %4677 = vmatpush.msra.mxu1 %v4630_v60  ;;  %4717 = vmatpush.msra.mxu3 %v4631_v22  ;;  %v4512_v60 = vld [vmem:[#allocation10 + $0x1f0] sm:$0xff] }
 0x567   :  { %4668 = vmatpush.msra.mxu0 %v4468_v5  ;;  %4708 = vmatpush.msra.mxu2 %v4469_v58  ;;  %v4583_v5 = vld [vmem:[#allocation10 + $0x428] sm:$0xff]  ;;  %v4513_v58 = vld [vmem:[#allocation10 + $0x1f8] sm:$0xff]  ;;  %v4576_v22 = vld [vmem:[#allocation10 + $0x3f0] sm:$0xff] }
 0x568   :  { %4678 = vmatpush.msra.mxu1 %v4624_v41  ;;  %4718 = vmatpush.msra.mxu3 %v4625_v32  ;;  %v4507_v32 = vld [vmem:[#allocation10 + $0x1c8] sm:$0xff] }
 0x569   :  { %4669 = vmatpush.msra.mxu0 %v4462_v52  ;;  %4709 = vmatpush.msra.mxu2 %v4463_v63  ;;  %v4577_v52 = vld [vmem:[#allocation10 + $0x3f8] sm:$0xff]  ;;  %v4506_v63 = vld [vmem:[#allocation10 + $0x1c0] sm:$0xff] }
 0x56a   :  { %4679 = vmatpush.msra.mxu1 %v4618_v16  ;;  %4719 = vmatpush.msra.mxu3 %v4619_v40  ;;  %v4571_v40 = vld [vmem:[#allocation10 + $0x3c8] sm:$0xff] }
 0x56b   :  { %4670 = vmatpush.msra.mxu0 %v4456_v61  ;;  %4710 = vmatpush.msra.mxu2 %v4457_v27  ;;  %v4570_v27 = vld [vmem:[#allocation10 + $0x3c0] sm:$0xff] }
 0x56c   :  { %4680 = vmatpush.msra.mxu1 %v4612_v46  ;;  %4720 = vmatpush.msra.mxu3 %v4613_v24 }
 0x56d   :  { %4671 = vmatpush.msra.mxu0 %v4450_v17  ;;  %4711 = vmatpush.msra.mxu2 %v4451_v55  ;;  %v9430_v17 = vld [vmem:[#allocation26_spill] sm:$0xff]  ;;  %v4095_v55 = vperm.slane %v8263_v53, 1 }
 0x56e   :  { %4681 = vmatpush.msra.mxu1 %v4606_v51  ;;  %4721 = vmatpush.msra.mxu3 %v4607_v36  ;;  %v288_v46 = vadd.f32 %v9430_v17, %v7615_v25  ;;  %v4564_v51 = vld [vmem:[#allocation10 + $0x390] sm:$0xff]  ;;  %v4565_v36 = vld [vmem:[#allocation10 + $0x398] sm:$0xff]  ;;  %v4471_v17 = vld [vmem:[#allocation10 + $0xa8] sm:$0xff] }
 0x56f   :  { %4736 = vmatpush.msrb.mxu0 %v4542_v8  ;;  %4776 = vmatpush.msrb.mxu2 %v4543_v47  ;;  %v4500_v8 = vld [vmem:[#allocation10 + $0x190] sm:$0xff]  ;;  %v4501_v47 = vld [vmem:[#allocation10 + $0x198] sm:$0xff] }
 0x570   :  { %4682 = vmatpush.msra.mxu1 %v4600_v35  ;;  %4722 = vmatpush.msra.mxu3 %v4601_v44  ;;  %v4495_v35 = vld [vmem:[#allocation10 + $0x168] sm:$0xff]  ;;  %v4558_v44 = vld [vmem:[#allocation10 + $0x360] sm:$0xff] }
 0x571   :  { %4737 = vmatpush.msrb.mxu0 %v4536_v56  ;;  %4777 = vmatpush.msrb.mxu2 %v4537_v38  ;;  %v4494_v38 = vld [vmem:[#allocation10 + $0x160] sm:$0xff] }
 0x572   :  { %4683 = vmatpush.msra.mxu1 %v4594_v7  ;;  %4723 = vmatpush.msra.mxu3 %v4595_v29  ;;  %v4488_v29 = vld [vmem:[#allocation10 + $0x130] sm:$0xff] }
 0x573   :  { %4738 = vmatpush.msrb.mxu0 %v4530_v14  ;;  %4778 = vmatpush.msrb.mxu2 %v4531_v15  ;;  %v4559_v14 = vld [vmem:[#allocation10 + $0x368] sm:$0xff] }
 0x574   :  { %4684 = vmatpush.msra.mxu1 %v4588_v57  ;;  %4724 = vmatpush.msra.mxu3 %v4589_v59  ;;  %v4552_v57 = vld [vmem:[#allocation10 + $0x330] sm:$0xff]  ;;  %v4553_v59 = vld [vmem:[#allocation10 + $0x338] sm:$0xff] }
 0x575   :  { %4739 = vmatpush.msrb.mxu0 %v4524_v18  ;;  %4779 = vmatpush.msrb.mxu2 %v4525_v43  ;;  %v4489_v18 = vld [vmem:[#allocation10 + $0x138] sm:$0xff] }
 0x576   :  { %4685 = vmatpush.msra.mxu1 %v4582_v50  ;;  %4725 = vmatpush.msra.mxu3 %v4583_v5  ;;  %v4483_v50 = vld [vmem:[#allocation10 + $0x108] sm:$0xff]  ;;  %v4546_v5 = vld [vmem:[#allocation10 + $0x300] sm:$0xff] }
 0x577   :  { %4740 = vmatpush.msrb.mxu0 %v4518_v20  ;;  %4780 = vmatpush.msrb.mxu2 %v4519_v39 }
 0x578   :  { %4686 = vmatpush.msra.mxu1 %v4576_v22  ;;  %4726 = vmatpush.msra.mxu3 %v4577_v52  ;;  %v4476_v52 = vld [vmem:[#allocation10 + $0xd0] sm:$0xff] }
 0x579   :  { %4741 = vmatpush.msrb.mxu0 %v4512_v60  ;;  %4781 = vmatpush.msrb.mxu2 %v4513_v58  ;;  %v4547_v60 = vld [vmem:[#allocation10 + $0x308] sm:$0xff]  ;;  %v4097_v58 = vperm.slane %v8263_v53, 3 }
 0x57a   :  { %4687 = vmatpush.msra.mxu1 %v4570_v27  ;;  %4727 = vmatpush.msra.mxu3 %v4571_v40  ;;  %v4470_v27 = vld [vmem:[#allocation10 + $0xa0] sm:$0xff]  ;;  %v4632_v40 = vld [vmem:[#allocation10 + $0x5b0] sm:$0xff] }
 0x57b   :  { %4742 = vmatpush.msrb.mxu0 %v4506_v63  ;;  %4782 = vmatpush.msrb.mxu2 %v4507_v32  ;;  %v4477_v63 = vld [vmem:[#allocation10 + $0xd8] sm:$0xff] }
 0x57c   :  { %4688 = vmatpush.msra.mxu1 %v4564_v51  ;;  %4728 = vmatpush.msra.mxu3 %v4565_v36  ;;  %v4465_v51 = vld [vmem:[#allocation10 + $0x78] sm:$0xff] }
 0x57d   :  { %4743 = vmatpush.msrb.mxu0 %v4500_v8  ;;  %4783 = vmatpush.msrb.mxu2 %v4501_v47  ;;  %v4464_v8 = vld [vmem:[#allocation10 + $0x70] sm:$0xff]  ;;  %v4626_v47 = vld [vmem:[#allocation10 + $0x580] sm:$0xff] }
 0x57e   :  { %4689 = vmatpush.msra.mxu1 %v4558_v44  ;;  %4729 = vmatpush.msra.mxu3 %v4559_v14 }
 0x57f   :  { %4744 = vmatpush.msrb.mxu0 %v4494_v38  ;;  %4784 = vmatpush.msrb.mxu2 %v4495_v35  ;;  %v4627_v38 = vld [vmem:[#allocation10 + $0x588] sm:$0xff]  ;;  %v9432_v35 = vld [vmem:[#allocation37_spill] sm:$0xff] }
 0x580   :  { %4690 = vmatpush.msra.mxu1 %v4552_v57  ;;  %4730 = vmatpush.msra.mxu3 %v4553_v59  ;;  %v396_v44 = vadd.f32 %v9432_v35, %v7748_v2  ;;  %v4452_v57 = vld [vmem:[#allocation10 + $0x10] sm:$0xff]  ;;  %v4614_v59 = vld [vmem:[#allocation10 + $0x520] sm:$0xff]  ;;  %v4098_v35 = vperm.slane %v8263_v53, 4 }
 0x581   :  { %4745 = vmatpush.msrb.mxu0 %v4488_v29  ;;  %4785 = vmatpush.msrb.mxu2 %v4489_v18  ;;  %v4459_v29 = vld [vmem:[#allocation10 + $0x48] sm:$0xff]  ;;  %v4621_v18 = vld [vmem:[#allocation10 + $0x558] sm:$0xff] }
 0x582   :  { %4691 = vmatpush.msra.mxu1 %v4546_v5  ;;  %4731 = vmatpush.msra.mxu3 %v4547_v60  ;;  %v4609_v5 = vld [vmem:[#allocation10 + $0x4f8] sm:$0xff] }
 0x583   :  { %4786 = vmatpush.msrb.mxu2 %v4483_v50  ;;  %v4608_v50 = vld [vmem:[#allocation10 + $0x4f0] sm:$0xff] }
 0x585   :  { %4787 = vmatpush.msrb.mxu2 %v4477_v63 }
 0x587   :  { %4788 = vmatpush.msrb.mxu2 %v4471_v17  ;;  %v4590_v17 = vld [vmem:[#allocation10 + $0x460] sm:$0xff] }
 0x589   :  { %4789 = vmatpush.msrb.mxu2 %v4465_v51  ;;  %v4584_v51 = vld [vmem:[#allocation10 + $0x430] sm:$0xff] }
 0x58b   :  { %4790 = vmatpush.msrb.mxu2 %v4459_v29 }
 0x5a6   :  { %v4123_v49 = vpop.f32.mrf.mxu0 }
 0x5a7   :  { %v4124_v41 = vadd.f32 %v4123_v49, %v4094_v42  ;;  %v9431_v42 = vld [vmem:[#allocation27_spill] sm:$0xff] }
 0x5a8   :  { %v329_v20 = vadd.f32 %v9431_v42, %v7645_v45  ;;  %v4482_v49 = vld [vmem:[#allocation10 + $0x100] sm:$0xff]  ;;  %v4453_v42 = vld [vmem:[#allocation10 + $0x18] sm:$0xff] }
 0x5a9   :  { %4746 = vmatpush.msrb.mxu0 %v4482_v49  ;;  %4791 = vmatpush.msrb.mxu2 %v4453_v42 }
 0x5ab   :  { %4747 = vmatpush.msrb.mxu0 %v4476_v52  ;;  %v4603_v52 = vld [vmem:[#allocation10 + $0x4c8] sm:$0xff] }
 0x5ac   :  { %v4163_v61 = vpop.f32.mrf.mxu2 }
 0x5ad   :  { %v4164_v15 = vadd.f32 %v4163_v61, %v4095_v55  ;;  %v4639_v61 = vld [vmem:[#allocation10 + $0x5e8] sm:$0xff]  ;;  %4748 = vmatpush.msrb.mxu0 %v4470_v27 }
 0x5ae   :  { %4796 = vmatpush.msrb.mxu3 %v4639_v61  ;;  %v4597_v61 = vld [vmem:[#allocation10 + $0x498] sm:$0xff] }
 0x5af   :  { %4749 = vmatpush.msrb.mxu0 %v4464_v8 }
 0x5b4   :  { %v4243_v32 = vpop.f32.mrf.mxu2 }
 0x5be   :  { %v4143_v16 = vpop.f32.mrf.mxu1 }
 0x5bf   :  { %v4144_v24 = vadd.f32 %v4143_v16, %v4124_v41  ;;  %v4638_v41 = vld [vmem:[#allocation10 + $0x5e0] sm:$0xff] }
 0x5c0   :  { %4756 = vmatpush.msrb.mxu1 %v4638_v41 }
 0x5c1   :  { %v4346_v56 = vadd.f32 %v4144_v24, %v288_v46  ;;  %v4633_v46 = vld [vmem:[#allocation10 + $0x5b8] sm:$0xff]  ;;  %v4244_v24 = vadd.f32 %v4243_v32, %v4097_v58  ;;  %v4203_v58 = vpop.f32.mrf.mxu0  ;;  %v4596_v32 = vld [vmem:[#allocation10 + $0x490] sm:$0xff] }
 0x5c2   :  { %4757 = vmatpush.msrb.mxu1 %v4632_v40  ;;  %4797 = vmatpush.msrb.mxu3 %v4633_v46  ;;  %v4591_v46 = vld [vmem:[#allocation10 + $0x468] sm:$0xff] }
 0x5c3   :  { %v6515_v7 = vmul.f32 -1.442695, %v4346_v56 }
 0x5c4   :  { %v4183_v43 = vpop.f32.mrf.mxu3  ;;  %4758 = vmatpush.msrb.mxu1 %v4626_v47  ;;  %4798 = vmatpush.msrb.mxu3 %v4627_v38 }
 0x5c5   :  { %6706 = vpow2.f32 %v6515_v7  ;;  %v4184_v39 = vadd.f32 %v4183_v43, %v4164_v15  ;;  %v4458_v15 = vld [vmem:[#allocation10 + $0x40] sm:$0xff]  ;;  %v4620_v7 = vld [vmem:[#allocation10 + $0x550] sm:$0xff] }
 0x5c6   :  { %4750 = vmatpush.msrb.mxu0 %v4458_v15  ;;  %4759 = vmatpush.msrb.mxu1 %v4620_v7  ;;  %v4223_v27 = vpop.f32.mrf.mxu1 }
 0x5c7   :  { %v4347_v22 = vadd.f32 %v4184_v39, %v329_v20  ;;  %4799 = vmatpush.msrb.mxu3 %v4621_v18  ;;  %v4615_v20 = vld [vmem:[#allocation10 + $0x528] sm:$0xff]  ;;  %v4578_v18 = vld [vmem:[#allocation10 + $0x400] sm:$0xff] }
 0x5c8   :  { %4751 = vmatpush.msrb.mxu0 %v4452_v57  ;;  %4760 = vmatpush.msrb.mxu1 %v4614_v59 }
 0x5c9   :  { %v6516_v16 = vmul.f32 -1.442695, %v4347_v22  ;;  %4800 = vmatpush.msrb.mxu3 %v4615_v20  ;;  %v4602_v22 = vld [vmem:[#allocation10 + $0x4c0] sm:$0xff]  ;;  %v4283_v29 = vpop.f32.mrf.mxu0 }
 0x5ca   :  { %4761 = vmatpush.msrb.mxu1 %v4608_v50  ;;  %v9433_v50 = vld [vmem:[#allocation55_spill] sm:$0xff] }
 0x5cb   :  { %v6707_v55 = vpop.eup %6706  ;;  %6708 = vpow2.f32 %v6516_v16  ;;  %4801 = vmatpush.msrb.mxu3 %v4609_v5  ;;  %v4096_v16 = vperm.slane %v8263_v53, 2 }
 0x5cc   :  { %v8272_v36 = vadd.f32 1.0, %v6707_v55  ;;  %v4263_v56 = vpop.f32.mrf.mxu3  ;;  %4762 = vmatpush.msrb.mxu1 %v4602_v22 }
 0x5cd   :  { %v4264_v14 = vadd.f32 %v4263_v56, %v4244_v24  ;;  %4802 = vmatpush.msrb.mxu3 %v4603_v52  ;;  %v4585_v56 = vld [vmem:[#allocation10 + $0x438] sm:$0xff] }
 0x5ce   :  { %6710 = vrcp.f32 %v8272_v36  ;;  %4763 = vmatpush.msrb.mxu1 %v4596_v32  ;;  %v4367_v55 = vand.u32 2147483648, %v8272_v36  ;;  %v4365_v47 = vand.u32 2147483647, %v8272_v36  ;;  %vm4361_vm4 = vweird.f32 %v8272_v36 }
 0x5cf   :  { %v4394_v43 = vadd.f32 %v4264_v14, %v396_v44  ;;  %4803 = vmatpush.msrb.mxu3 %v4597_v61  ;;  %v4204_v14 = vadd.f32 %v4203_v58, %v4096_v16  ;;  %v4284_v58 = vadd.f32 %v4283_v29, %v4098_v35  ;;  %v4566_v61 = vld [vmem:[#allocation10 + $0x3a0] sm:$0xff]  ;;  %v4567_v16 = vld [vmem:[#allocation10 + $0x3a8] sm:$0xff] }
 0x5d0   :  { %4764 = vmatpush.msrb.mxu1 %v4590_v17  ;;  %v4368_v57 = vor.u32 1.1754944e-38, %v4367_v55  ;;  %vm4366_vm9 = vcmp.eq.f32.partialorder %v4365_v47, 8.507059e+37 }
 0x5d1   :  { %v6709_v39 = vpop.eup %6708  ;;  %v6517_v49 = vmul.f32 -1.442695, %v4394_v43  ;;  %4804 = vmatpush.msrb.mxu3 %v4591_v46  ;;  %v4579_v43 = vld [vmem:[#allocation10 + $0x408] sm:$0xff]  ;;  %v4224_v42 = vadd.f32 %v4223_v27, %v4204_v14 }
 0x5d2   :  { %v8277_v60 = vadd.f32 1.0, %v6709_v39  ;;  %4765 = vmatpush.msrb.mxu1 %v4584_v51  ;;  %v4572_v39 = vld [vmem:[#allocation10 + $0x3d0] sm:$0xff] }
 0x5d3   :  { %6712 = vpow2.f32 %v6517_v49  ;;  %4805 = vmatpush.msrb.mxu3 %v4585_v56  ;;  %v4573_v49 = vld [vmem:[#allocation10 + $0x3d8] sm:$0xff] }
 0x5d4   :  { %v6711_v41 = vpop.eup %6710  ;;  %6714 = vrcp.f32 %v8277_v60  ;;  %4766 = vmatpush.msrb.mxu1 %v4578_v18  ;;  %v4382_v52 = vand.u32 2147483648, %v8277_v60  ;;  %vm4376_vm15 = vweird.f32 %v8277_v60  ;;  %v4099_v18 = vperm.slane %v8263_v53, 5 }
 0x5d5   :  { %v4357_v63 = vmul.f32 %v6711_v41, %v8272_v36  ;;  %vm4362_vm3 = vweird.f32 %v6711_v41  ;;  %v370_v36 = vadd.f32 %v9433_v50, %v9394_v54  ;;  %4806 = vmatpush.msrb.mxu3 %v4579_v43 }
 0x5d6   :  { %vm4363_vm8 = vmor %vm4361_vm4, %vm4362_vm3  ;;  %4767 = vmatpush.msrb.mxu1 %v4572_v39  ;;  %v4383_v56 = vor.u32 1.1754944e-38, %v4382_v52 }
 0x5d7   :  { %v4358_v40 = vsub.f32 1.0, %v4357_v63  ;;  %4807 = vmatpush.msrb.mxu3 %v4573_v49 }
 0x5d8   :  { %4768 = vmatpush.msrb.mxu1 %v4566_v61 }
 0x5d9   :  { %v6713_v24 = vpop.eup %6712  ;;  %v4359_v8 = vmul.f32 %v6711_v41, %v4358_v40  ;;  %v4380_v40 = vand.u32 2147483647, %v8277_v60  ;;  %4808 = vmatpush.msrb.mxu3 %v4567_v16 }
 0x5da   :  { %v6715_v38 = vpop.eup %6714  ;;  %v8285_v44 = vadd.f32 1.0, %v6713_v24  ;;  %v4560_v24 = vld [vmem:[#allocation10 + $0x370] sm:$0xff] }
 0x5db   :  { %v4372_v15 = vmul.f32 %v6715_v38, %v8277_v60  ;;  %v4360_v7 = vadd.f32 %v6711_v41, %v4359_v8  ;;  %vm4377_vm11 = vweird.f32 %v6715_v38  ;;  %v4561_v8 = vld [vmem:[#allocation10 + $0x378] sm:$0xff]  ;;  %4769 = vmatpush.msrb.mxu1 %v4560_v24  ;;  %vm4381_vm1 = vcmp.eq.f32.partialorder %v4380_v40, 8.507059e+37 }
 0x5dc   :  { %6716 = vrcp.f32 %v8285_v44  ;;  %vm4378_vm0 = vmor %vm4376_vm15, %vm4377_vm11  ;;  %4809 = vmatpush.msrb.mxu3 %v4561_v8  ;;  %v4413_v39 = vand.u32 2147483647, %v8285_v44  ;;  %vm4409_vm4 = vweird.f32 %v8285_v44  ;;  %v4538_v8 = vld [vmem:[#allocation10 + $0x2c0] sm:$0xff] }
 0x5dd   :  { %v4373_v59 = vsub.f32 1.0, %v4372_v15  ;;  %v4364_v20 = vsel %vm4363_vm8, %v6711_v41, %v4360_v7  ;;  %v9434_v41 = vld [vmem:[#allocation49_spill] sm:$0xff]  ;;  %v4554_v15 = vld [vmem:[#allocation10 + $0x340] sm:$0xff]  ;;  %v4555_v7 = vld [vmem:[#allocation10 + $0x348] sm:$0xff] }
 0x5de   :  { %v4369_v5 = vsel %vm4366_vm9, %v4368_v57, %v4364_v20  ;;  %v437_v27 = vadd.f32 %v9434_v41, %v7768_v13  ;;  %4770 = vmatpush.msrb.mxu1 %v4554_v15  ;;  %v4548_v57 = vld [vmem:[#allocation10 + $0x310] sm:$0xff]  ;;  %4810 = vmatpush.msrb.mxu3 %v4555_v7  ;;  %vm4414_vm9 = vcmp.eq.f32.partialorder %v4413_v39, 8.507059e+37  ;;  %v4527_v15 = vld [vmem:[#allocation10 + $0x268] sm:$0xff] }
 0x5df   :  { %v4374_v22 = vmul.f32 %v6715_v38, %v4373_v59  ;;  %v4386_v63 = vmul.f32 %v4369_v5, %v4224_v42  ;;  %v4303_v32 = vpop.f32.mrf.mxu1  ;;  %v4549_v59 = vld [vmem:[#allocation10 + $0x318] sm:$0xff]  ;;  %v4323_v42 = vpop.f32.mrf.mxu2 }
 0x5e0   :  { %v4304_v17 = vadd.f32 %v4303_v32, %v4284_v58  ;;  %4771 = vmatpush.msrb.mxu1 %v4548_v57  ;;  %4811 = vmatpush.msrb.mxu3 %v4549_v59  ;;  %v4324_v5 = vadd.f32 %v4323_v42, %v4099_v18  ;;  %v4515_v57 = vld [vmem:[#allocation10 + $0x208] sm:$0xff] }
 0x5e1   :  { %v4375_v46 = vadd.f32 %v6715_v38, %v4374_v22  ;;  %v4387_v55 = vadd.f32 %v4386_v63, %v370_v36 }
 0x5e2   :  { %v6717_v47 = vpop.eup %6716  ;;  %v4395_v51 = vadd.f32 %v4304_v17, %v437_v27  ;;  %v4544_v17 = vld [vmem:[#allocation10 + $0x2f0] sm:$0xff] }
 0x5e3   :  { %v4379_v35 = vsel %vm4378_vm0, %v6715_v38, %v4375_v46  ;;  %6718 = vtanh.f32 %v4387_v55  ;;  %v4405_v14 = vmul.f32 %v6717_v47, %v8285_v44  ;;  %v4415_v38 = vand.u32 2147483648, %v8285_v44  ;;  %v4545_v46 = vld [vmem:[#allocation10 + $0x2f8] sm:$0xff] }
 0x5e4   :  { %v6518_v29 = vmul.f32 -1.442695, %v4395_v51  ;;  %v4384_v60 = vsel %vm4381_vm1, %v4383_v56, %v4379_v35  ;;  %vm4410_vm3 = vweird.f32 %v6717_v47  ;;  %v9435_v55 = vld [vmem:[#allocation50_spill] sm:$0xff]  ;;  %v4532_v56 = vld [vmem:[#allocation10 + $0x290] sm:$0xff] }
 0x5e5   :  { %v4406_v43 = vsub.f32 1.0, %v4405_v14  ;;  %v4389_v49 = vsub.f32 1.0, %v4384_v60  ;;  %v4343_v50 = vpop.f32.mrf.mxu3  ;;  %v4391_v22 = vmul.f32 %v4384_v60, %v8243_v33  ;;  %vm4411_vm8 = vmor %vm4409_vm4, %vm4410_vm3  ;;  %v4416_v52 = vor.u32 1.1754944e-38, %v4415_v38  ;;  %v4533_v35 = vld [vmem:[#allocation10 + $0x298] sm:$0xff]  ;;  %v4526_v14 = vld [vmem:[#allocation10 + $0x260] sm:$0xff] }
 0x5e6   :  { %6720 = vpow2.f32 %v6518_v29  ;;  %v4344_v63 = vadd.f32 %v4343_v50, %v4324_v5  ;;  %v478_v24 = vadd.f32 %v9435_v55, %v7815_v34  ;;  %v4520_v29 = vld [vmem:[#allocation10 + $0x230] sm:$0xff]  ;;  %v4521_v60 = vld [vmem:[#allocation10 + $0x238] sm:$0xff]  ;;  %v4502_v50 = vld [vmem:[#allocation10 + $0x1a0] sm:$0xff] }
 0x5e7   :  { %v4407_v20 = vmul.f32 %v6717_v47, %v4406_v43  ;;  %v4514_v43 = vld [vmem:[#allocation10 + $0x200] sm:$0xff]  ;;  %v4508_v38 = vld [vmem:[#allocation10 + $0x1d0] sm:$0xff] }
 0x5e8   :  { %v4478_v55 = vld [vmem:[#allocation10 + $0xe0] sm:$0xff] }
 0x5e9   :  { %v6719_v36 = vpop.eup %6718  ;;  %v4408_v53 = vadd.f32 %v6717_v47, %v4407_v20  ;;  %v4509_v20 = vld [vmem:[#allocation10 + $0x1d8] sm:$0xff] }
 0x5ea   :  { %v4390_v58 = vmul.f32 %v6719_v36, %v4389_v49  ;;  %v4503_v36 = vld [vmem:[#allocation10 + $0x1a8] sm:$0xff] }
 0x5eb   :  { %v4412_v32 = vsel %vm4411_vm8, %v6717_v47, %v4408_v53  ;;  %v4539_v47 = vld [vmem:[#allocation10 + $0x2c8] sm:$0xff] }
 0x5ec   :  { %v6721_v61 = vpop.eup %6720  ;;  %v4392_v16 = vadd.f32 %v4391_v22, %v4390_v58  ;;  %v4417_v41 = vsel %vm4414_vm9, %v4416_v52, %v4412_v32  ;;  %v4496_v58 = vld [vmem:[#allocation10 + $0x170] sm:$0xff]  ;;  %v4497_v22 = vld [vmem:[#allocation10 + $0x178] sm:$0xff]  ;;  %v4490_v32 = vld [vmem:[#allocation10 + $0x140] sm:$0xff] }
 0x5ed   :  { %v4403_v27 = vadd.f32 1.0, %v6721_v61  ;;  %v4434_v40 = vmul.f32 %v4417_v41, %v4344_v63  ;;  %v4491_v61 = vld [vmem:[#allocation10 + $0x148] sm:$0xff] }
 0x5ee   :  { %v8310_v44 = vsel %vm1666_vm13, %v4392_v16, %v8243_v33 }
 0x5ef   :  { %6722 = vrcp.f32 %v4403_v27  ;;  %4672 = vmatmul.f32.vlgmr.msra.gmra.mxu0 %v8310_v44  ;;  %4712 = vmatmul.f32.vlgmr.msra.gmra.mxu2 %v8310_v44  ;;  %v4435_v51 = vadd.f32 %v4434_v40, %v478_v24  ;;  %v4430_v42 = vand.u32 2147483648, %v4403_v27  ;;  %v4428_v49 = vand.u32 2147483647, %v4403_v27  ;;  %v4484_v40 = vld [vmem:[#allocation10 + $0x110] sm:$0xff]  ;;  %v4479_v24 = vld [vmem:[#allocation10 + $0xe8] sm:$0xff] }
 0x5f0   :  { %4816 = vmatpush.msra.mxu0 %v4544_v17  ;;  %4856 = vmatpush.msra.mxu2 %v4545_v46  ;;  %vm4424_vm15 = vweird.f32 %v4403_v27 }
 0x5f1   :  { %6724 = vtanh.f32 %v4435_v51  ;;  %v4431_v53 = vor.u32 1.1754944e-38, %v4430_v42  ;;  %vm4429_vm1 = vcmp.eq.f32.partialorder %v4428_v49, 8.507059e+37  ;;  %v4641_v51 = vld [vmem:[#allocation10 + $0x5f8] sm:$0xff]  ;;  %v4622_v42 = vld [vmem:[#allocation10 + $0x560] sm:$0xff]  ;;  %v4455_v49 = vld [vmem:[#allocation10 + $0x28] sm:$0xff] }
 0x5f2   :  { %4817 = vmatpush.msra.mxu0 %v4538_v8  ;;  %4857 = vmatpush.msra.mxu2 %v4539_v47  ;;  %v4640_v47 = vld [vmem:[#allocation10 + $0x5f0] sm:$0xff] }
 0x5f4   :  { %4818 = vmatpush.msra.mxu0 %v4532_v56  ;;  %4858 = vmatpush.msra.mxu2 %v4533_v35  ;;  %v4472_v35 = vld [vmem:[#allocation10 + $0xb0] sm:$0xff] }
 0x5f5   :  { %v6723_v7 = vpop.eup %6722 }
 0x5f6   :  { %v4420_v18 = vmul.f32 %v6723_v7, %v4403_v27  ;;  %4819 = vmatpush.msra.mxu0 %v4526_v14  ;;  %4859 = vmatpush.msra.mxu2 %v4527_v15  ;;  %vm4425_vm11 = vweird.f32 %v6723_v7  ;;  %v4485_v27 = vld [vmem:[#allocation10 + $0x118] sm:$0xff]  ;;  %v4634_v15 = vld [vmem:[#allocation10 + $0x5c0] sm:$0xff] }
 0x5f7   :  { %4752 = vmatmul.f32.vlgmr.msrb.gmra.mxu0 %v8310_v44  ;;  %4792 = vmatmul.f32.vlgmr.msrb.gmra.mxu2 %v8310_v44  ;;  %vm4426_vm0 = vmor %vm4424_vm15, %vm4425_vm11  ;;  %v6725_v41 = vpop.eup %6724  ;;  %v4473_v14 = vld [vmem:[#allocation10 + $0xb8] sm:$0xff] }
 0x5f8   :  { %v4421_v59 = vsub.f32 1.0, %v4420_v18  ;;  %4820 = vmatpush.msra.mxu0 %v4520_v29  ;;  %4860 = vmatpush.msra.mxu2 %v4521_v60  ;;  %v4466_v29 = vld [vmem:[#allocation10 + $0x80] sm:$0xff]  ;;  %v4467_v60 = vld [vmem:[#allocation10 + $0x88] sm:$0xff]  ;;  %v4628_v18 = vld [vmem:[#allocation10 + $0x590] sm:$0xff] }
 0x5fa   :  { %v4422_v39 = vmul.f32 %v6723_v7, %v4421_v59  ;;  %4821 = vmatpush.msra.mxu0 %v4514_v43  ;;  %4861 = vmatpush.msra.mxu2 %v4515_v57  ;;  %v4629_v43 = vld [vmem:[#allocation10 + $0x598] sm:$0xff]  ;;  %v4460_v57 = vld [vmem:[#allocation10 + $0x50] sm:$0xff] }
 0x5fb   :  { %v4461_v59 = vld [vmem:[#allocation10 + $0x58] sm:$0xff] }
 0x5fc   :  { %v4423_v5 = vadd.f32 %v6723_v7, %v4422_v39  ;;  %4822 = vmatpush.msra.mxu0 %v4508_v38  ;;  %4862 = vmatpush.msra.mxu2 %v4509_v20  ;;  %v4623_v38 = vld [vmem:[#allocation10 + $0x568] sm:$0xff]  ;;  %v4454_v20 = vld [vmem:[#allocation10 + $0x20] sm:$0xff]  ;;  %v4616_v39 = vld [vmem:[#allocation10 + $0x530] sm:$0xff] }
 0x5fe   :  { %v4427_v52 = vsel %vm4426_vm0, %v6723_v7, %v4423_v5  ;;  %4823 = vmatpush.msra.mxu0 %v4502_v50  ;;  %4863 = vmatpush.msra.mxu2 %v4503_v36  ;;  %v4635_v7 = vld [vmem:[#allocation10 + $0x5c8] sm:$0xff]  ;;  %v4617_v50 = vld [vmem:[#allocation10 + $0x538] sm:$0xff]  ;;  %v5056_v5 = vld [vmem:[#allocation11 + $0x170] sm:$0xff] }
 0x5ff   :  { %v4432_v63 = vsel %vm4429_vm1, %v4431_v53, %v4427_v52  ;;  %v5055_v36 = vld [vmem:[#allocation11 + $0x168] sm:$0xff]  ;;  %v4610_v53 = vld [vmem:[#allocation10 + $0x500] sm:$0xff]  ;;  %v5053_v52 = vld [vmem:[#allocation11 + $0x158] sm:$0xff] }
 0x600   :  { %v4437_v16 = vsub.f32 1.0, %v4432_v63  ;;  %4824 = vmatpush.msra.mxu0 %v4496_v58  ;;  %4864 = vmatpush.msra.mxu2 %v4497_v22  ;;  %v4439_v46 = vmul.f32 %v4432_v63, %v8253_v30  ;;  %v4611_v58 = vld [vmem:[#allocation10 + $0x508] sm:$0xff]  ;;  %v5052_v22 = vld [vmem:[#allocation11 + $0x150] sm:$0xff] }
 0x601   :  { %v4604_v63 = vld [vmem:[#allocation10 + $0x4d0] sm:$0xff] }
 0x602   :  { %v4438_v17 = vmul.f32 %v6725_v41, %v4437_v16  ;;  %4825 = vmatpush.msra.mxu0 %v4490_v32  ;;  %4865 = vmatpush.msra.mxu2 %v4491_v61  ;;  %v4605_v32 = vld [vmem:[#allocation10 + $0x4d8] sm:$0xff]  ;;  %v5050_v16 = vld [vmem:[#allocation11 + $0x140] sm:$0xff] }
 0x603   :  { %v5049_v61 = vld [vmem:[#allocation11 + $0x138] sm:$0xff]  ;;  %v4598_v41 = vld [vmem:[#allocation10 + $0x4a0] sm:$0xff] }
 0x604   :  { %v4440_v8 = vadd.f32 %v4439_v46, %v4438_v17  ;;  %4826 = vmatpush.msra.mxu0 %v4484_v40  ;;  %4866 = vmatpush.msra.mxu2 %v4485_v27  ;;  %v4599_v40 = vld [vmem:[#allocation10 + $0x4a8] sm:$0xff]  ;;  %v5046_v27 = vld [vmem:[#allocation11 + $0x120] sm:$0xff]  ;;  %v4592_v46 = vld [vmem:[#allocation10 + $0x470] sm:$0xff] }
 0x605   :  { %v5047_v17 = vld [vmem:[#allocation11 + $0x128] sm:$0xff] }
 0x606   :  { %v8320_v56 = vsel %vm1612_vm7, %v4440_v8, %v8253_v30  ;;  %4827 = vmatpush.msra.mxu0 %v4478_v55  ;;  %4867 = vmatpush.msra.mxu2 %v4479_v24  ;;  %v4593_v55 = vld [vmem:[#allocation10 + $0x478] sm:$0xff]  ;;  %v5043_v24 = vld [vmem:[#allocation11 + $0x108] sm:$0xff]  ;;  %v5044_v8 = vld [vmem:[#allocation11 + $0x110] sm:$0xff] }
 0x607   :  { %4692 = vmatmul.f32.vlgmr.msra.gmra.mxu1 %v8320_v56  ;;  %4732 = vmatmul.f32.vlgmr.msra.gmra.mxu3 %v8320_v56 }
 0x608   :  { %4836 = vmatpush.msra.mxu1 %v4640_v47  ;;  %4876 = vmatpush.msra.mxu3 %v4641_v51  ;;  %v4586_v47 = vld [vmem:[#allocation10 + $0x440] sm:$0xff]  ;;  %v4587_v51 = vld [vmem:[#allocation10 + $0x448] sm:$0xff] }
 0x609   :  { %4828 = vmatpush.msra.mxu0 %v4472_v35  ;;  %4868 = vmatpush.msra.mxu2 %v4473_v14  ;;  %v5040_v35 = vld [vmem:[#allocation11 + $0xf0] sm:$0xff]  ;;  %v5041_v14 = vld [vmem:[#allocation11 + $0xf8] sm:$0xff] }
 0x60a   :  { %4837 = vmatpush.msra.mxu1 %v4634_v15  ;;  %4877 = vmatpush.msra.mxu3 %v4635_v7  ;;  %v4580_v15 = vld [vmem:[#allocation10 + $0x410] sm:$0xff]  ;;  %v4581_v7 = vld [vmem:[#allocation10 + $0x418] sm:$0xff] }
 0x60b   :  { %4829 = vmatpush.msra.mxu0 %v4466_v29  ;;  %4869 = vmatpush.msra.mxu2 %v4467_v60  ;;  %v5037_v29 = vld [vmem:[#allocation11 + $0xd8] sm:$0xff]  ;;  %v5038_v60 = vld [vmem:[#allocation11 + $0xe0] sm:$0xff] }
 0x60c   :  { %4838 = vmatpush.msra.mxu1 %v4628_v18  ;;  %4878 = vmatpush.msra.mxu3 %v4629_v43  ;;  %v4574_v18 = vld [vmem:[#allocation10 + $0x3e0] sm:$0xff]  ;;  %v4575_v43 = vld [vmem:[#allocation10 + $0x3e8] sm:$0xff] }
 0x60d   :  { %4830 = vmatpush.msra.mxu0 %v4460_v57  ;;  %4870 = vmatpush.msra.mxu2 %v4461_v59  ;;  %v5034_v57 = vld [vmem:[#allocation11 + $0xc0] sm:$0xff]  ;;  %v5035_v59 = vld [vmem:[#allocation11 + $0xc8] sm:$0xff] }
 0x60e   :  { %4839 = vmatpush.msra.mxu1 %v4622_v42  ;;  %4879 = vmatpush.msra.mxu3 %v4623_v38  ;;  %v4568_v42 = vld [vmem:[#allocation10 + $0x3b0] sm:$0xff]  ;;  %v4569_v38 = vld [vmem:[#allocation10 + $0x3b8] sm:$0xff] }
 0x60f   :  { %4772 = vmatmul.f32.vlgmr.msrb.gmra.mxu1 %v8320_v56  ;;  %4812 = vmatmul.f32.vlgmr.msrb.gmra.mxu3 %v8320_v56 }
 0x610   :  { %4831 = vmatpush.msra.mxu0 %v4454_v20  ;;  %4840 = vmatpush.msra.mxu1 %v4616_v39  ;;  %v5031_v20 = vld [vmem:[#allocation11 + $0xa8] sm:$0xff]  ;;  %v5032_v39 = vld [vmem:[#allocation11 + $0xb0] sm:$0xff] }
 0x611   :  { %4871 = vmatpush.msra.mxu2 %v4455_v49  ;;  %4880 = vmatpush.msra.mxu3 %v4617_v50  ;;  %v4562_v49 = vld [vmem:[#allocation10 + $0x380] sm:$0xff]  ;;  %v4563_v50 = vld [vmem:[#allocation10 + $0x388] sm:$0xff] }
 0x612   :  { %4832 = vmatmul.f32.vlgmr.msra.gmra.mxu0 %v8310_v44  ;;  %4872 = vmatmul.f32.vlgmr.msra.gmra.mxu2 %v8310_v44 }
 0x613   :  { %5114 = vmatpush.msrb.mxu0 %v5055_v36  ;;  %5196 = vmatpush.msrb.mxu2 %v5056_v5  ;;  %v5028_v36 = vld [vmem:[#allocation11 + $0x90] sm:$0xff]  ;;  %v5029_v5 = vld [vmem:[#allocation11 + $0x98] sm:$0xff] }
 0x614   :  { %4841 = vmatpush.msra.mxu1 %v4610_v53  ;;  %4881 = vmatpush.msra.mxu3 %v4611_v58  ;;  %v4556_v53 = vld [vmem:[#allocation10 + $0x350] sm:$0xff]  ;;  %v4557_v58 = vld [vmem:[#allocation10 + $0x358] sm:$0xff] }
 0x615   :  { %5115 = vmatpush.msrb.mxu0 %v5052_v22  ;;  %5197 = vmatpush.msrb.mxu2 %v5053_v52  ;;  %v5025_v22 = vld [vmem:[#allocation11 + $0x78] sm:$0xff]  ;;  %v5026_v52 = vld [vmem:[#allocation11 + $0x80] sm:$0xff] }
 0x616   :  { %4842 = vmatpush.msra.mxu1 %v4604_v63  ;;  %4882 = vmatpush.msra.mxu3 %v4605_v32  ;;  %v4550_v63 = vld [vmem:[#allocation10 + $0x320] sm:$0xff]  ;;  %v4551_v32 = vld [vmem:[#allocation10 + $0x328] sm:$0xff] }
 0x617   :  { %5116 = vmatpush.msrb.mxu0 %v5049_v61  ;;  %5198 = vmatpush.msrb.mxu2 %v5050_v16  ;;  %v5022_v61 = vld [vmem:[#allocation11 + $0x60] sm:$0xff]  ;;  %v5023_v16 = vld [vmem:[#allocation11 + $0x68] sm:$0xff] }
 0x618   :  { %4843 = vmatpush.msra.mxu1 %v4598_v41  ;;  %4883 = vmatpush.msra.mxu3 %v4599_v40  ;;  %v5019_v41 = vld [vmem:[#allocation11 + $0x48] sm:$0xff]  ;;  %v5020_v40 = vld [vmem:[#allocation11 + $0x50] sm:$0xff] }
 0x619   :  { %5117 = vmatpush.msrb.mxu0 %v5046_v27  ;;  %5199 = vmatpush.msrb.mxu2 %v5047_v17  ;;  %v5016_v27 = vld [vmem:[#allocation11 + $0x30] sm:$0xff]  ;;  %v5017_v17 = vld [vmem:[#allocation11 + $0x38] sm:$0xff] }
 0x61a   :  { %4844 = vmatpush.msra.mxu1 %v4592_v46  ;;  %4884 = vmatpush.msra.mxu3 %v4593_v55  ;;  %v5013_v46 = vld [vmem:[#allocation11 + $0x18] sm:$0xff]  ;;  %v5014_v55 = vld [vmem:[#allocation11 + $0x20] sm:$0xff] }
 0x61b   :  { %5118 = vmatpush.msrb.mxu0 %v5043_v24  ;;  %5200 = vmatpush.msrb.mxu2 %v5044_v8  ;;  %v5010_v24 = vld [vmem:[#allocation11] sm:$0xff]  ;;  %v5011_v8 = vld [vmem:[#allocation11 + $0x8] sm:$0xff] }
 0x61c   :  { %4845 = vmatpush.msra.mxu1 %v4586_v47  ;;  %4885 = vmatpush.msra.mxu3 %v4587_v51  ;;  %v8348_v47 = vld [vmem:[#allocation17 + $0x6] sm:$0x3f] }
 0x61d   :  { %5119 = vmatpush.msrb.mxu0 %v5040_v35  ;;  %5201 = vmatpush.msrb.mxu2 %v5041_v14  ;;  %v4644_v51 = vperm.slane %v8348_v47, 0  ;;  %v5057_v14 = vld [vmem:[#allocation11 + $0x178] sm:$0xff] }
 0x61e   :  { %4846 = vmatpush.msra.mxu1 %v4580_v15  ;;  %4886 = vmatpush.msra.mxu3 %v4581_v7  ;;  %v5054_v7 = vld [vmem:[#allocation11 + $0x160] sm:$0xff] }
 0x61f   :  { %5120 = vmatpush.msrb.mxu0 %v5037_v29  ;;  %5202 = vmatpush.msrb.mxu2 %v5038_v60 }
 0x620   :  { %4847 = vmatpush.msra.mxu1 %v4574_v18  ;;  %4887 = vmatpush.msra.mxu3 %v4575_v43  ;;  %v9436_v18 = vld [vmem:[#allocation28_spill] sm:$0xff] }
 0x621   :  { %5121 = vmatpush.msrb.mxu0 %v5034_v57  ;;  %5203 = vmatpush.msrb.mxu2 %v5035_v59  ;;  %v291_v43 = vadd.f32 %v9436_v18, %v7615_v25  ;;  %v4645_v57 = vperm.slane %v8348_v47, 1  ;;  %v4647_v25 = vperm.slane %v8348_v47, 3  ;;  %v5094_v18 = vld [vmem:[#allocation11 + $0x2a0] sm:$0xff] }
 0x622   :  { %4848 = vmatpush.msra.mxu1 %v4568_v42  ;;  %4888 = vmatpush.msra.mxu3 %v4569_v38  ;;  %v5051_v42 = vld [vmem:[#allocation11 + $0x148] sm:$0xff] }
 0x623   :  { %5122 = vmatpush.msrb.mxu0 %v5031_v20  ;;  %5204 = vmatpush.msrb.mxu2 %v5032_v39  ;;  %v5048_v20 = vld [vmem:[#allocation11 + $0x130] sm:$0xff] }
 0x624   :  { %4849 = vmatpush.msra.mxu1 %v4562_v49  ;;  %4889 = vmatpush.msra.mxu3 %v4563_v50  ;;  %v5045_v50 = vld [vmem:[#allocation11 + $0x118] sm:$0xff] }
 0x625   :  { %5123 = vmatpush.msrb.mxu0 %v5028_v36  ;;  %5205 = vmatpush.msrb.mxu2 %v5029_v5  ;;  %v9437_v5 = vld [vmem:[#allocation30_spill] sm:$0xff] }
 0x626   :  { %4850 = vmatpush.msra.mxu1 %v4556_v53  ;;  %4890 = vmatpush.msra.mxu3 %v4557_v58  ;;  %v332_v53 = vadd.f32 %v9437_v5, %v7645_v45  ;;  %v5100_v45 = vld [vmem:[#allocation11 + $0x2d0] sm:$0xff]  ;;  %v5021_v5 = vld [vmem:[#allocation11 + $0x58] sm:$0xff] }
 0x627   :  { %5124 = vmatpush.msrb.mxu0 %v5025_v22  ;;  %5206 = vmatpush.msrb.mxu2 %v5026_v52  ;;  %v5042_v22 = vld [vmem:[#allocation11 + $0x100] sm:$0xff] }
 0x628   :  { %4851 = vmatpush.msra.mxu1 %v4550_v63  ;;  %4891 = vmatpush.msra.mxu3 %v4551_v32  ;;  %v5039_v63 = vld [vmem:[#allocation11 + $0xe8] sm:$0xff] }
 0x629   :  { %4852 = vmatmul.f32.vlgmr.msra.gmra.mxu1 %v8320_v56  ;;  %4892 = vmatmul.f32.vlgmr.msra.gmra.mxu3 %v8320_v56 }
 0x62a   :  { %5125 = vmatpush.msrb.mxu0 %v5022_v61  ;;  %5207 = vmatpush.msrb.mxu2 %v5023_v16  ;;  %v5103_v16 = vld [vmem:[#allocation11 + $0x2e8] sm:$0xff] }
 0x62b   :  { %5155 = vmatpush.msrb.mxu1 %v5103_v16  ;;  %v5083_v16 = vld [vmem:[#allocation11 + $0x248] sm:$0xff] }
 0x62c   :  { %5126 = vmatpush.msrb.mxu0 %v5019_v41  ;;  %5208 = vmatpush.msrb.mxu2 %v5020_v40  ;;  %v5104_v41 = vld [vmem:[#allocation11 + $0x2f0] sm:$0xff] }
 0x62d   :  { %v5036_v40 = vld [vmem:[#allocation11 + $0xd0] sm:$0xff]  ;;  %5237 = vmatpush.msrb.mxu3 %v5104_v41  ;;  %5156 = vmatpush.msrb.mxu1 %v5100_v45  ;;  %v5015_v41 = vld [vmem:[#allocation11 + $0x28] sm:$0xff] }
 0x62e   :  { %5127 = vmatpush.msrb.mxu0 %v5016_v27  ;;  %5209 = vmatpush.msrb.mxu2 %v5017_v17 }
 0x630   :  { %5128 = vmatpush.msrb.mxu0 %v5013_v46  ;;  %5210 = vmatpush.msrb.mxu2 %v5014_v55  ;;  %v5101_v46 = vld [vmem:[#allocation11 + $0x2d8] sm:$0xff] }
 0x631   :  { %v5033_v55 = vld [vmem:[#allocation11 + $0xb8] sm:$0xff]  ;;  %5238 = vmatpush.msrb.mxu3 %v5101_v46 }
 0x632   :  { %5129 = vmatpush.msrb.mxu0 %v5010_v24  ;;  %5211 = vmatpush.msrb.mxu2 %v5011_v8 }
 0x633   :  { %6542 = vmatmul.msk.f32.vlgmr.msrb.gmra.mxu0 %vm1050_vm12, %v7777_v9  ;;  %6544 = vmatmul.msk.f32.vlgmr.msrb.gmra.mxu2 %vm1050_vm12, %v7777_v9 }
 0x634   :  { %5278 = vmatpush.msra.mxu0 %v5057_v14 }
 0x636   :  { %5279 = vmatpush.msra.mxu0 %v5054_v7  ;;  %v5098_v7 = vld [vmem:[#allocation11 + $0x2c0] sm:$0xff] }
 0x637   :  { %5239 = vmatpush.msrb.mxu3 %v5098_v7 }
 0x638   :  { %5280 = vmatpush.msra.mxu0 %v5051_v42 }
 0x63a   :  { %5281 = vmatpush.msra.mxu0 %v5048_v20  ;;  %v5024_v20 = vld [vmem:[#allocation11 + $0x70] sm:$0xff] }
 0x63b   :  { %5133 = vmatmul.f32.gmra.mxu0 %v7943_v48  ;;  %5215 = vmatmul.f32.gmra.mxu2 %v7943_v48 }
 0x63c   :  { %5282 = vmatpush.msra.mxu0 %v5045_v50  ;;  %v5088_v50 = vld [vmem:[#allocation11 + $0x270] sm:$0xff] }
 0x63e   :  { %5283 = vmatpush.msra.mxu0 %v5042_v22  ;;  %v5085_v22 = vld [vmem:[#allocation11 + $0x258] sm:$0xff] }
 0x640   :  { %5284 = vmatpush.msra.mxu0 %v5039_v63  ;;  %v4646_v63 = vperm.slane %v8348_v47, 2 }
 0x642   :  { %5285 = vmatpush.msra.mxu0 %v5036_v40 }
 0x643   :  { %5136 = vmatmul.f32.gmra.mxu0 %v8031_v37  ;;  %5218 = vmatmul.f32.gmra.mxu2 %v8031_v37 }
 0x644   :  { %5286 = vmatpush.msra.mxu0 %v5033_v55  ;;  %v5079_v55 = vld [vmem:[#allocation11 + $0x228] sm:$0xff] }
 0x64b   :  { %5139 = vmatmul.f32.gmra.mxu0 %v8106_v11  ;;  %5221 = vmatmul.f32.gmra.mxu2 %v8106_v11 }
 0x653   :  { %5142 = vmatmul.f32.gmra.mxu0 %v8176_v26  ;;  %5224 = vmatmul.f32.gmra.mxu2 %v8176_v26 }
 0x65b   :  { %5145 = vmatmul.f32.gmra.mxu0 %v8243_v33  ;;  %5227 = vmatmul.f32.gmra.mxu2 %v8243_v33 }
 0x663   :  { %5148 = vmatmul.f32.gmra.mxu0 %v8310_v44  ;;  %5230 = vmatmul.f32.gmra.mxu2 %v8310_v44 }
 0x66c   :  { %v4673_v35 = vpop.f32.mrf.mxu0 }
 0x66d   :  { %v4674_v15 = vadd.f32 %v4673_v35, %v4644_v51  ;;  %v9438_v51 = vld [vmem:[#allocation33_spill] sm:$0xff] }
 0x66e   :  { %v393_v35 = vadd.f32 %v9438_v51, %v7748_v2  ;;  %v5091_v2 = vld [vmem:[#allocation11 + $0x288] sm:$0xff]  ;;  %v5012_v51 = vld [vmem:[#allocation11 + $0x10] sm:$0xff] }
 0x672   :  { %v4713_v29 = vpop.f32.mrf.mxu2 }
 0x673   :  { %v4714_v39 = vadd.f32 %v4713_v29, %v4645_v57  ;;  %v5030_v29 = vld [vmem:[#allocation11 + $0xa0] sm:$0xff]  ;;  %v5027_v57 = vld [vmem:[#allocation11 + $0x88] sm:$0xff] }
 0x674   :  { %5287 = vmatpush.msra.mxu0 %v5030_v29 }
 0x676   :  { %5288 = vmatpush.msra.mxu0 %v5027_v57  ;;  %v5077_v57 = vld [vmem:[#allocation11 + $0x218] sm:$0xff] }
 0x678   :  { %5289 = vmatpush.msra.mxu0 %v5024_v20  ;;  %v5073_v20 = vld [vmem:[#allocation11 + $0x1f8] sm:$0xff] }
 0x67a   :  { %v4793_v32 = vpop.f32.mrf.mxu2  ;;  %5290 = vmatpush.msra.mxu0 %v5021_v5 }
 0x67b   :  { %v4794_v17 = vadd.f32 %v4793_v32, %v4647_v25  ;;  %v5086_v25 = vld [vmem:[#allocation11 + $0x260] sm:$0xff] }
 0x684   :  { %v4693_v60 = vpop.f32.mrf.mxu1 }
 0x685   :  { %v4694_v59 = vadd.f32 %v4693_v60, %v4674_v15  ;;  %v5097_v15 = vld [vmem:[#allocation11 + $0x2b8] sm:$0xff] }
 0x686   :  { %5157 = vmatpush.msrb.mxu1 %v5097_v15 }
 0x687   :  { %v4896_v38 = vadd.f32 %v4694_v59, %v291_v43  ;;  %v5095_v43 = vld [vmem:[#allocation11 + $0x2a8] sm:$0xff] }
 0x688   :  { %5158 = vmatpush.msrb.mxu1 %v5094_v18  ;;  %5240 = vmatpush.msrb.mxu3 %v5095_v43  ;;  %v5076_v43 = vld [vmem:[#allocation11 + $0x210] sm:$0xff] }
 0x689   :  { %v6519_v49 = vmul.f32 -1.442695, %v4896_v38  ;;  %v5092_v38 = vld [vmem:[#allocation11 + $0x290] sm:$0xff] }
 0x68a   :  { %v4733_v36 = vpop.f32.mrf.mxu3  ;;  %5159 = vmatpush.msrb.mxu1 %v5091_v2  ;;  %5241 = vmatpush.msrb.mxu3 %v5092_v38 }
 0x68b   :  { %6726 = vpow2.f32 %v6519_v49  ;;  %v4734_v58 = vadd.f32 %v4733_v36, %v4714_v39  ;;  %v4753_v49 = vpop.f32.mrf.mxu0  ;;  %v5089_v36 = vld [vmem:[#allocation11 + $0x278] sm:$0xff] }
 0x68c   :  { %5160 = vmatpush.msrb.mxu1 %v5088_v50  ;;  %5242 = vmatpush.msrb.mxu3 %v5089_v36  ;;  %v4773_v40 = vpop.f32.mrf.mxu1  ;;  %v4754_v7 = vadd.f32 %v4753_v49, %v4646_v63  ;;  %v5074_v49 = vld [vmem:[#allocation11 + $0x200] sm:$0xff]  ;;  %v5071_v63 = vld [vmem:[#allocation11 + $0x1e8] sm:$0xff] }
 0x68d   :  { %v4897_v52 = vadd.f32 %v4734_v58, %v332_v53  ;;  %v9439_v50 = vld [vmem:[#allocation59_spill] sm:$0xff] }
 0x68e   :  { %5161 = vmatpush.msrb.mxu1 %v5085_v22  ;;  %5243 = vmatpush.msrb.mxu3 %v5086_v25  ;;  %v4774_v2 = vadd.f32 %v4773_v40, %v4754_v7  ;;  %v5061_v7 = vld [vmem:[#allocation11 + $0x198] sm:$0xff] }
 0x68f   :  { %v6520_v61 = vmul.f32 -1.442695, %v4897_v52  ;;  %v5018_v52 = vld [vmem:[#allocation11 + $0x40] sm:$0xff] }
 0x690   :  { %5291 = vmatpush.msra.mxu0 %v5018_v52  ;;  %5244 = vmatpush.msrb.mxu3 %v5083_v16  ;;  %v5070_v52 = vld [vmem:[#allocation11 + $0x1e0] sm:$0xff] }
 0x691   :  { %v6727_v27 = vpop.eup %6726  ;;  %6728 = vpow2.f32 %v6520_v61  ;;  %v5082_v61 = vld [vmem:[#allocation11 + $0x240] sm:$0xff] }
 0x692   :  { %v8357_v24 = vadd.f32 1.0, %v6727_v27  ;;  %v4813_v8 = vpop.f32.mrf.mxu3  ;;  %5162 = vmatpush.msrb.mxu1 %v5082_v61  ;;  %5292 = vmatpush.msra.mxu0 %v5015_v41 }
 0x693   :  { %v4814_v14 = vadd.f32 %v4813_v8, %v4794_v17  ;;  %v5080_v8 = vld [vmem:[#allocation11 + $0x230] sm:$0xff]  ;;  %v4833_v18 = vpop.f32.mrf.mxu0 }
 0x694   :  { %6730 = vrcp.f32 %v8357_v24  ;;  %v4917_v27 = vand.u32 2147483648, %v8357_v24  ;;  %v4915_v46 = vand.u32 2147483647, %v8357_v24  ;;  %5163 = vmatpush.msrb.mxu1 %v5079_v55  ;;  %5245 = vmatpush.msrb.mxu3 %v5080_v8  ;;  %vm4911_vm4 = vweird.f32 %v8357_v24 }
 0x695   :  { %v4944_v60 = vadd.f32 %v4814_v14, %v393_v35  ;;  %v4648_v14 = vperm.slane %v8348_v47, 4  ;;  %5293 = vmatpush.msra.mxu0 %v5012_v51  ;;  %v5064_v51 = vld [vmem:[#allocation11 + $0x1b0] sm:$0xff] }
 0x696   :  { %5164 = vmatpush.msrb.mxu1 %v5076_v43  ;;  %5246 = vmatpush.msrb.mxu3 %v5077_v57  ;;  %vm4916_vm9 = vcmp.eq.f32.partialorder %v4915_v46, 8.507059e+37  ;;  %v5096_v46 = vld [vmem:[#allocation11 + $0x2b0] sm:$0xff] }
 0x697   :  { %v6729_v59 = vpop.eup %6728  ;;  %v6521_v42 = vmul.f32 -1.442695, %v4944_v60  ;;  %v4834_v5 = vadd.f32 %v4833_v18, %v4648_v14  ;;  %v5065_v14 = vld [vmem:[#allocation11 + $0x1b8] sm:$0xff] }
 0x698   :  { %v8362_v39 = vadd.f32 1.0, %v6729_v59  ;;  %v4918_v59 = vor.u32 1.1754944e-38, %v4917_v27  ;;  %5165 = vmatpush.msrb.mxu1 %v5073_v20  ;;  %5247 = vmatpush.msrb.mxu3 %v5074_v49  ;;  %v5067_v27 = vld [vmem:[#allocation11 + $0x1c8] sm:$0xff] }
 0x699   :  { %6732 = vpow2.f32 %v6521_v42  ;;  %v5059_v20 = vld [vmem:[#allocation11 + $0x188] sm:$0xff] }
 0x69a   :  { %v6731_v53 = vpop.eup %6730  ;;  %6734 = vrcp.f32 %v8362_v39  ;;  %v4932_v25 = vand.u32 2147483648, %v8362_v39  ;;  %v4930_v16 = vand.u32 2147483647, %v8362_v39  ;;  %5166 = vmatpush.msrb.mxu1 %v5070_v52  ;;  %5248 = vmatpush.msrb.mxu3 %v5071_v63  ;;  %vm4926_vm15 = vweird.f32 %v8362_v39 }
 0x69b   :  { %v4907_v58 = vmul.f32 %v6731_v53, %v8357_v24  ;;  %vm4912_vm3 = vweird.f32 %v6731_v53  ;;  %v373_v24 = vadd.f32 %v9439_v50, %v9394_v54 }
 0x69c   :  { %vm4913_vm8 = vmor %vm4911_vm4, %vm4912_vm3  ;;  %5167 = vmatpush.msrb.mxu1 %v5067_v27  ;;  %v4933_v8 = vor.u32 1.1754944e-38, %v4932_v25  ;;  %vm4931_vm1 = vcmp.eq.f32.partialorder %v4930_v16, 8.507059e+37 }
 0x69d   :  { %v4908_v32 = vsub.f32 1.0, %v4907_v58 }
 0x69e   :  { %5168 = vmatpush.msrb.mxu1 %v5064_v51 }
 0x69f   :  { %v6733_v17 = vpop.eup %6732  ;;  %v4909_v45 = vmul.f32 %v6731_v53, %v4908_v32 }
 0x6a0   :  { %v8369_v35 = vpop.eup %6734  ;;  %v8372_v15 = vadd.f32 1.0, %v6733_v17  ;;  %v5068_v17 = vld [vmem:[#allocation11 + $0x1d0] sm:$0xff]  ;;  %5169 = vmatpush.msrb.mxu1 %v5061_v7 }
 0x6a1   :  { %v4922_v29 = vmul.f32 %v8369_v35, %v8362_v39  ;;  %v4910_v60 = vadd.f32 %v6731_v53, %v4909_v45  ;;  %vm4927_vm11 = vweird.f32 %v8369_v35  ;;  %5249 = vmatpush.msrb.mxu3 %v5068_v17 }
 0x6a2   :  { %6736 = vrcp.f32 %v8372_v15  ;;  %vm8391_vm0 = vmor %vm4926_vm15, %vm4927_vm11  ;;  %vm4959_vm4 = vweird.f32 %v8372_v15 }
 0x6a3   :  { %v4923_v42 = vsub.f32 1.0, %v4922_v29  ;;  %v4914_v38 = vsel %vm4913_vm8, %v6731_v53, %v4910_v60  ;;  %v9440_v53 = vld [vmem:[#allocation45_spill] sm:$0xff]  ;;  %5250 = vmatpush.msrb.mxu3 %v5065_v14  ;;  %v5062_v29 = vld [vmem:[#allocation11 + $0x1a0] sm:$0xff]  ;;  %v4649_v60 = vperm.slane %v8348_v47, 5  ;;  %v8416_v14 = vld [vmem:[#allocation13 + $0x168] sm:$0xff] }
 0x6a4   :  { %v4919_v36 = vsel %vm4916_vm9, %v4918_v59, %v4914_v38  ;;  %v434_v32 = vadd.f32 %v9440_v53, %v7768_v13  ;;  %v5058_v59 = vld [vmem:[#allocation11 + $0x180] sm:$0xff]  ;;  %5443 = vmatpush.msra.mxu2 %v8416_v14 }
 0x6a5   :  { %v4936_v58 = vmul.f32 %v4919_v36, %v4774_v2  ;;  %v4924_v22 = vmul.f32 %v8369_v35, %v4923_v42  ;;  %v4873_v42 = vpop.f32.mrf.mxu2  ;;  %v4965_v2 = vand.u32 2147483648, %v8372_v15  ;;  %5251 = vmatpush.msrb.mxu3 %v5062_v29  ;;  %5170 = vmatpush.msrb.mxu1 %v5058_v59  ;;  %v5102_v53 = vld [vmem:[#allocation11 + $0x2e0] sm:$0xff] }
 0x6a6   :  { %v4853_v61 = vpop.f32.mrf.mxu1  ;;  %v5090_v29 = vld [vmem:[#allocation11 + $0x280] sm:$0xff] }
 0x6a7   :  { %v4937_v54 = vadd.f32 %v4936_v58, %v373_v24  ;;  %v4854_v41 = vadd.f32 %v4853_v61, %v4834_v5  ;;  %v4925_v40 = vadd.f32 %v8369_v35, %v4924_v22  ;;  %5252 = vmatpush.msrb.mxu3 %v5059_v20  ;;  %v4874_v24 = vadd.f32 %v4873_v42, %v4649_v60  ;;  %v5105_v5 = vld [vmem:[#allocation11 + $0x2f8] sm:$0xff]  ;;  %v8419_v60 = vld [vmem:[#allocation13 + $0x150] sm:$0xff]  ;;  %v8426_v42 = vld [vmem:[#allocation13 + $0x120] sm:$0xff] }
 0x6a8   :  { %v6737_v45 = vpop.eup %6736  ;;  %v4966_v58 = vor.u32 1.1754944e-38, %v4965_v2  ;;  %5319 = vmatpush.msra.mxu1 %v5105_v5  ;;  %5444 = vmatpush.msra.mxu2 %v8419_v60  ;;  %v8431_v20 = vld [vmem:[#allocation13 + $0x170] sm:$0xff]  ;;  %v8441_v5 = vld [vmem:[#allocation13 + $0xd8] sm:$0xff] }
 0x6a9   :  { %6738 = vtanh.f32 %v4937_v54  ;;  %v4945_v13 = vadd.f32 %v4854_v41, %v434_v32  ;;  %v4955_v55 = vmul.f32 %v6737_v45, %v8372_v15  ;;  %v4929_v39 = vsel %vm8391_vm0, %v8369_v35, %v4925_v40  ;;  %v9443_v54 = vld [vmem:[#allocation46_spill] sm:$0xff]  ;;  %5463 = vmatpush.msra.mxu3 %v8431_v20  ;;  %5574 = vmatpush.msrb.mxu0 %v8431_v20 }
 0x6aa   :  { %v4934_v57 = vsel %vm4931_vm1, %v4933_v8, %v4929_v39  ;;  %vm4960_vm3 = vweird.f32 %v6737_v45  ;;  %v4963_v35 = vand.u32 2147483647, %v8372_v15  ;;  %5320 = vmatpush.msra.mxu1 %v5102_v53  ;;  %v475_v41 = vadd.f32 %v9443_v54, %v7815_v34  ;;  %v5093_v8 = vld [vmem:[#allocation11 + $0x298] sm:$0xff]  ;;  %v8460_v53 = vld [vmem:[#allocation13 + $0x140] sm:$0xff]  ;;  %v5075_v54 = vld [vmem:[#allocation11 + $0x208] sm:$0xff] }
 0x6ab   :  { %v6522_v18 = vmul.f32 -1.442695, %v4945_v13  ;;  %v4956_v43 = vsub.f32 1.0, %v4955_v55  ;;  %v4939_v50 = vsub.f32 1.0, %v4934_v57  ;;  %vm4961_vm8 = vmor %vm4959_vm4, %vm4960_vm3  ;;  %v4941_v25 = vmul.f32 %v4934_v57, %v8310_v44 }
 0x6ac   :  { %v4893_v49 = vpop.f32.mrf.mxu3  ;;  %vm4964_vm9 = vcmp.eq.f32.partialorder %v4963_v35, 8.507059e+37  ;;  %v8429_v35 = vld [vmem:[#allocation13 + $0x108] sm:$0xff] }
 0x6ad   :  { %6740 = vpow2.f32 %v6522_v18  ;;  %v4957_v38 = vmul.f32 %v6737_v45, %v4956_v43  ;;  %v4894_v52 = vadd.f32 %v4893_v49, %v4874_v24  ;;  %v8421_v18 = vld [vmem:[#allocation13 + $0x138] sm:$0xff] }
 0x6ae   :  { %5445 = vmatpush.msra.mxu2 %v8421_v18 }
 0x6af   :  { %v6739_v47 = vpop.eup %6738  ;;  %v4958_v36 = vadd.f32 %v6737_v45, %v4957_v38  ;;  %v5087_v38 = vld [vmem:[#allocation11 + $0x268] sm:$0xff] }
 0x6b0   :  { %v4940_v22 = vmul.f32 %v6739_v47, %v4939_v50  ;;  %5446 = vmatpush.msra.mxu2 %v8426_v42  ;;  %v5084_v50 = vld [vmem:[#allocation11 + $0x250] sm:$0xff] }
 0x6b1   :  { %v4962_v63 = vsel %vm4961_vm8, %v6737_v45, %v4958_v36  ;;  %v5099_v45 = vld [vmem:[#allocation11 + $0x2c8] sm:$0xff]  ;;  %v8434_v47 = vld [vmem:[#allocation13 + $0xf0] sm:$0xff]  ;;  %v8438_v36 = vld [vmem:[#allocation13 + $0x158] sm:$0xff] }
 0x6b2   :  { %v4967_v32 = vsel %vm4964_vm9, %v4966_v58, %v4962_v63  ;;  %v4942_v61 = vadd.f32 %v4941_v25, %v4940_v22  ;;  %5321 = vmatpush.msra.mxu1 %v5099_v45  ;;  %5447 = vmatpush.msra.mxu2 %v8429_v35  ;;  %v5081_v25 = vld [vmem:[#allocation11 + $0x238] sm:$0xff]  ;;  %v8457_v63 = vld [vmem:[#allocation13 + $0xa8] sm:$0xff]  ;;  %v5072_v45 = vld [vmem:[#allocation11 + $0x1f0] sm:$0xff] }
 0x6b3   :  { %v6741_v16 = vpop.eup %6740  ;;  %v4984_v40 = vmul.f32 %v4967_v32, %v4894_v52  ;;  %5464 = vmatpush.msra.mxu3 %v8438_v36  ;;  %5575 = vmatpush.msrb.mxu0 %v8438_v36  ;;  %v8455_v52 = vld [vmem:[#allocation13 + $0xc0] sm:$0xff] }
 0x6b4   :  { %v4953_v15 = vadd.f32 1.0, %v6741_v16  ;;  %v8409_v27 = vsel %vm1104_vm5, %v4942_v61, %v8310_v44  ;;  %5322 = vmatpush.msra.mxu1 %v5096_v46  ;;  %5448 = vmatpush.msra.mxu2 %v8434_v47  ;;  %v5078_v32 = vld [vmem:[#allocation11 + $0x220] sm:$0xff]  ;;  %v8465_v61 = vld [vmem:[#allocation13 + $0x128] sm:$0xff]  ;;  %v8469_v16 = vld [vmem:[#allocation13 + $0x78] sm:$0xff] }
 0x6b5   :  { %v4985_v17 = vadd.f32 %v4984_v40, %v475_v41  ;;  %5151 = vmatmul.f32.gmra.mxu0 %v8409_v27  ;;  %5233 = vmatmul.f32.gmra.mxu2 %v8409_v27  ;;  %v8478_v41 = vld [vmem:[#allocation13 + $0x60] sm:$0xff]  ;;  %v8480_v40 = vld [vmem:[#allocation13 + $0x110] sm:$0xff] }
 0x6b6   :  { %6742 = vrcp.f32 %v4953_v15  ;;  %v4980_v51 = vand.u32 2147483648, %v4953_v15  ;;  %5323 = vmatpush.msra.mxu1 %v5093_v8  ;;  %v4978_v39 = vand.u32 2147483647, %v4953_v15  ;;  %vm4974_vm15 = vweird.f32 %v4953_v15  ;;  %5449 = vmatpush.msra.mxu2 %v8441_v5  ;;  %9444 = vst [vmem:[#allocation35_spill] sm:$0xff] %v8478_v41  ;;  %v8492_v46 = vld [vmem:[#allocation13 + $0xe0] sm:$0xff] }
 0x6b7   :  { %6744 = vtanh.f32 %v4985_v17  ;;  %5465 = vmatpush.msra.mxu3 %v8460_v53  ;;  %5576 = vmatpush.msrb.mxu0 %v8460_v53  ;;  %v8485_v17 = vld [vmem:[#allocation13 + $0xf8] sm:$0xff]  ;;  %v8507_v8 = vld [vmem:[#allocation13] sm:$0xff] }
 0x6b8   :  { %5324 = vmatpush.msra.mxu1 %v5090_v29  ;;  %v4981_v43 = vor.u32 1.1754944e-38, %v4980_v51  ;;  %vm4979_vm1 = vcmp.eq.f32.partialorder %v4978_v39, 8.507059e+37  ;;  %5450 = vmatpush.msra.mxu2 %v8455_v52  ;;  %9448 = vst [vmem:[#allocation31_spill] sm:$0xff] %v8507_v8  ;;  %v8509_v51 = vld [vmem:[#allocation13 + $0xb0] sm:$0xff]  ;;  %v8515_v39 = vld [vmem:[#allocation13 + $0x98] sm:$0xff]  ;;  %v5066_v29 = vld [vmem:[#allocation11 + $0x1c0] sm:$0xff] }
 0x6b9   :  { %5466 = vmatpush.msra.mxu3 %v8465_v61  ;;  %5577 = vmatpush.msrb.mxu0 %v8465_v61 }
 0x6ba   :  { %5325 = vmatpush.msra.mxu1 %v5087_v38  ;;  %5451 = vmatpush.msra.mxu2 %v8457_v63  ;;  %v5063_v38 = vld [vmem:[#allocation11 + $0x1a8] sm:$0xff] }
 0x6bb   :  { %5467 = vmatpush.msra.mxu3 %v8480_v40  ;;  %5578 = vmatpush.msrb.mxu0 %v8480_v40 }
 0x6bc   :  { %v6743_v13 = vpop.eup %6742  ;;  %5326 = vmatpush.msra.mxu1 %v5084_v50  ;;  %v5060_v50 = vld [vmem:[#allocation11 + $0x190] sm:$0xff] }
 0x6bd   :  { %v4970_v55 = vmul.f32 %v6743_v13, %v4953_v15  ;;  %6546 = vmatmul.msk.f32.vlgmr.msra.gmra.mxu0 %vm1050_vm12, %v7777_v9  ;;  %vm4975_vm11 = vweird.f32 %v6743_v13  ;;  %v6745_v49 = vpop.eup %6744  ;;  %v8483_v15 = vld [vmem:[#allocation13 + $0x48] sm:$0xff]  ;;  %5468 = vmatpush.msra.mxu3 %v8485_v17 }
 0x6be   :  { %vm4976_vm0 = vmor %vm4974_vm15, %vm4975_vm11  ;;  %5327 = vmatpush.msra.mxu1 %v5081_v25  ;;  %9445 = vst [vmem:[#allocation64_spill] sm:$0xff] %v8483_v15  ;;  %5579 = vmatpush.msrb.mxu0 %v8485_v17  ;;  %v8556_v25 = vld [vmem:[#allocation13 + $0xe8] sm:$0xff] }
 0x6bf   :  { %v4971_v34 = vsub.f32 1.0, %v4970_v55  ;;  %5469 = vmatpush.msra.mxu3 %v8492_v46  ;;  %v8500_v55 = vld [vmem:[#allocation13 + $0xc8] sm:$0xff] }
 0x6c0   :  { %5328 = vmatpush.msra.mxu1 %v5078_v32  ;;  %5580 = vmatpush.msrb.mxu0 %v8492_v46  ;;  %v8562_v32 = vpop.f32.mrf.mxu0 }
 0x6c1   :  { %v4972_v7 = vmul.f32 %v6743_v13, %v4971_v34  ;;  %v5069_v34 = vld [vmem:[#allocation11 + $0x1d8] sm:$0xff]  ;;  %5470 = vmatpush.msra.mxu3 %v8500_v55 }
 0x6c2   :  { %5329 = vmatpush.msra.mxu1 %v5075_v54  ;;  %5581 = vmatpush.msrb.mxu0 %v8500_v55  ;;  %v8566_v54 = vld [vmem:[#allocation13 + $0x8] sm:$0xff] }
 0x6c3   :  { %v4973_v9 = vadd.f32 %v6743_v13, %v4972_v7  ;;  %v8512_v7 = vld [vmem:[#allocation13 + $0x178] sm:$0xff]  ;;  %5471 = vmatpush.msra.mxu3 %v8509_v51  ;;  %9454 = vst [vmem:[#allocation32_spill] sm:$0xff] %v8566_v54 }
 0x6c4   :  { %5330 = vmatpush.msra.mxu1 %v5072_v45  ;;  %5582 = vmatpush.msrb.mxu0 %v8509_v51  ;;  %v8568_v45 = vld [vmem:[#allocation13 + $0xd0] sm:$0xff] }
 0x6c5   :  { %v4977_v57 = vsel %vm4976_vm0, %v6743_v13, %v4973_v9  ;;  %5297 = vmatmul.f32.gmra.mxu0 %v7943_v48  ;;  %v8495_v13 = vld [vmem:[#allocation13 + $0x18] sm:$0xff]  ;;  %v9449_v9 = vmov 0.0   ;;  %5472 = vmatpush.msra.mxu3 %v8515_v39 }
 0x6c6   :  { %v4982_v59 = vsel %vm4979_vm1, %v4981_v43, %v4977_v57  ;;  %9447 = vst [vmem:[#allocation29_spill] sm:$0xff] %v8495_v13  ;;  %5331 = vmatpush.msra.mxu1 %v5069_v34  ;;  %v8523_v43 = vld [vmem:[#allocation13 + $0x80] sm:$0xff]  ;;  %v8527_v57 = vld [vmem:[#allocation13 + $0x148] sm:$0xff]  ;;  %5583 = vmatpush.msrb.mxu0 %v8515_v39  ;;  %v8572_v34 = vld [vmem:[#allocation13 + $0xb8] sm:$0xff] }
 0x6c7   :  { %v4987_v2 = vsub.f32 1.0, %v4982_v59  ;;  %v4989_v24 = vmul.f32 %v4982_v59, %v8320_v56  ;;  %v8529_v59 = vld [vmem:[#allocation13 + $0x68] sm:$0xff]  ;;  %5473 = vmatpush.msra.mxu3 %v8523_v43 }
 0x6c8   :  { %5332 = vmatpush.msra.mxu1 %v5066_v29  ;;  %9450 = vst [vmem:[#allocation52_spill] sm:$0xff] %v8529_v59  ;;  %5584 = vmatpush.msrb.mxu0 %v8523_v43  ;;  %v8584_v29 = vld [vmem:[#allocation13 + $0x88] sm:$0xff] }
 0x6c9   :  { %v4988_v48 = vmul.f32 %v6745_v49, %v4987_v2  ;;  %v8536_v2 = vld [vmem:[#allocation13 + $0x130] sm:$0xff]  ;;  %5474 = vmatpush.msra.mxu3 %v8529_v59 }
 0x6ca   :  { %v8538_v49 = vld [vmem:[#allocation13 + $0x50] sm:$0xff]  ;;  %5333 = vmatpush.msra.mxu1 %v5063_v38  ;;  %5585 = vmatpush.msrb.mxu0 %v8529_v59 }
 0x6cb   :  { %v4990_v58 = vadd.f32 %v4989_v24, %v4988_v48  ;;  %9451 = vst [vmem:[#allocation39_spill] sm:$0xff] %v8538_v49  ;;  %v8542_v48 = vld [vmem:[#allocation13 + $0x118] sm:$0xff]  ;;  %5475 = vmatpush.msra.mxu3 %v8538_v49  ;;  %v8549_v24 = vld [vmem:[#allocation13 + $0x100] sm:$0xff]  ;;  %v8592_v38 = vld [vmem:[#allocation13 + $0x70] sm:$0xff] }
 0x6cc   :  { %5334 = vmatpush.msra.mxu1 %v5060_v50  ;;  %5586 = vmatpush.msrb.mxu0 %v8538_v49  ;;  %v8596_v50 = vpop.f32.mrf.mxu0 }
 0x6cd   :  { %v8449_v22 = vsel %vm1050_vm12, %v4990_v58, %v8320_v56  ;;  %5300 = vmatmul.f32.gmra.mxu0 %v8031_v37  ;;  %v8463_v37 = vld [vmem:[#allocation13 + $0x90] sm:$0xff]  ;;  %v8554_v58 = vld [vmem:[#allocation13 + $0x20] sm:$0xff] }
 0x6ce   :  { %5171 = vmatmul.f32.vlgmr.msrb.gmra.mxu1 %v8449_v22  ;;  %5253 = vmatmul.f32.vlgmr.msrb.gmra.mxu3 %v8449_v22  ;;  %9453 = vst [vmem:[#allocation63_spill] sm:$0xff] %v8554_v58 }
 0x6cf   :  { %5452 = vmatpush.msra.mxu2 %v8463_v37  ;;  %5594 = vmatpush.msrb.mxu1 %v8512_v7 }
 0x6d1   :  { %5453 = vmatpush.msra.mxu2 %v8469_v16 }
 0x6d3   :  { %5454 = vmatpush.msra.mxu2 %v8478_v41 }
 0x6d4   :  { %v8626_v6 = vpop.f32.mrf.mxu0 }
 0x6d5   :  { %5303 = vmatmul.f32.gmra.mxu0 %v8106_v11  ;;  %v8488_v11 = vld [vmem:[#allocation13 + $0x30] sm:$0xff]  ;;  %5455 = vmatpush.msra.mxu2 %v8483_v15 }
 0x6d6   :  { %5174 = vmatmul.f32.gmra.mxu1 %v8320_v56  ;;  %5256 = vmatmul.f32.gmra.mxu3 %v8320_v56  ;;  %9446 = vst [vmem:[#allocation65_spill] sm:$0xff] %v8488_v11 }
 0x6d7   :  { %5456 = vmatpush.msra.mxu2 %v8488_v11 }
 0x6d9   :  { %5457 = vmatpush.msra.mxu2 %v8495_v13 }
 0x6db   :  { %5458 = vmatpush.msra.mxu2 %v8507_v8 }
 0x6dc   :  { %5459 = vmatmul.f32.vlgmr.msra.gmra.mxu2 %v9449_v9  ;;  %v8652_v3 = vpop.f32.mrf.mxu0 }
 0x6dd   :  { %5306 = vmatmul.f32.gmra.mxu0 %v8176_v26  ;;  %v8517_v26 = vld [vmem:[#allocation13 + $0x160] sm:$0xff]  ;;  %5483 = vmatpush.msrb.mxu2 %v8512_v7 }
 0x6de   :  { %5177 = vmatmul.f32.gmra.mxu1 %v8253_v30  ;;  %5259 = vmatmul.f32.gmra.mxu3 %v8253_v30 }
 0x6df   :  { %5484 = vmatpush.msrb.mxu2 %v8517_v26  ;;  %5595 = vmatpush.msrb.mxu1 %v8517_v26 }
 0x6e1   :  { %5485 = vmatpush.msrb.mxu2 %v8527_v57  ;;  %5596 = vmatpush.msrb.mxu1 %v8527_v57 }
 0x6e3   :  { %5486 = vmatpush.msrb.mxu2 %v8536_v2  ;;  %5597 = vmatpush.msrb.mxu1 %v8536_v2 }
 0x6e5   :  { %5309 = vmatmul.f32.gmra.mxu0 %v8243_v33  ;;  %v8544_v33 = vld [vmem:[#allocation13 + $0x38] sm:$0xff]  ;;  %5487 = vmatpush.msrb.mxu2 %v8542_v48 }
 0x6e6   :  { %5180 = vmatmul.f32.gmra.mxu1 %v8186_v19  ;;  %5262 = vmatmul.f32.gmra.mxu3 %v8186_v19  ;;  %9452 = vst [vmem:[#allocation62_spill] sm:$0xff] %v8544_v33 }
 0x6e7   :  { %5476 = vmatpush.msra.mxu3 %v8544_v33  ;;  %5488 = vmatpush.msrb.mxu2 %v8549_v24 }
 0x6e8   :  { %5587 = vmatpush.msrb.mxu0 %v8544_v33  ;;  %5598 = vmatpush.msrb.mxu1 %v8542_v48 }
 0x6e9   :  { %5477 = vmatpush.msra.mxu3 %v8554_v58  ;;  %5489 = vmatpush.msrb.mxu2 %v8556_v25 }
 0x6ea   :  { %5588 = vmatpush.msrb.mxu0 %v8554_v58  ;;  %5599 = vmatpush.msrb.mxu1 %v8549_v24 }
 0x6eb   :  { %5478 = vmatpush.msra.mxu3 %v8566_v54  ;;  %5490 = vmatpush.msrb.mxu2 %v8568_v45 }
 0x6ec   :  { %5589 = vmatpush.msrb.mxu0 %v8566_v54  ;;  %5600 = vmatpush.msrb.mxu1 %v8556_v25 }
 0x6ed   :  { %5312 = vmatmul.f32.gmra.mxu0 %v8310_v44  ;;  %v8578_v44 = vld [vmem:[#allocation13 + $0xa0] sm:$0xff]  ;;  %5554 = vmatpush.msrb.mxu3 %v8416_v14 }
 0x6ee   :  { %5183 = vmatmul.f32.gmra.mxu1 %v8119_v12  ;;  %5265 = vmatmul.f32.gmra.mxu3 %v8119_v12 }
 0x6ef   :  { %5491 = vmatpush.msrb.mxu2 %v8572_v34  ;;  %5555 = vmatpush.msrb.mxu3 %v8419_v60 }
 0x6f0   :  { %5705 = vmatpush.msra.mxu0 %v8512_v7  ;;  %5601 = vmatpush.msrb.mxu1 %v8568_v45 }
 0x6f1   :  { %5492 = vmatpush.msrb.mxu2 %v8578_v44  ;;  %5556 = vmatpush.msrb.mxu3 %v8421_v18 }
 0x6f2   :  { %5706 = vmatpush.msra.mxu0 %v8517_v26  ;;  %5602 = vmatpush.msrb.mxu1 %v8572_v34 }
 0x6f3   :  { %5493 = vmatpush.msrb.mxu2 %v8584_v29  ;;  %5557 = vmatpush.msrb.mxu3 %v8426_v42 }
 0x6f4   :  { %5603 = vmatpush.msrb.mxu1 %v8578_v44  ;;  %5707 = vmatpush.msra.mxu0 %v8527_v57 }
 0x6f5   :  { %5315 = vmatmul.f32.gmra.mxu0 %v8409_v27  ;;  %5494 = vmatpush.msrb.mxu2 %v8592_v38  ;;  %v8604_v27 = vld [vmem:[#allocation13 + $0x40] sm:$0xff] }
 0x6f6   :  { %5186 = vmatmul.f32.gmra.mxu1 %v8046_v28  ;;  %5268 = vmatmul.f32.gmra.mxu3 %v8046_v28  ;;  %9456 = vst [vmem:[#allocation48_spill] sm:$0xff] %v8604_v27 }
 0x6f7   :  { %5495 = vmatpush.msrb.mxu2 %v8598_v21  ;;  %5558 = vmatpush.msrb.mxu3 %v8429_v35 }
 0x6f8   :  { %5604 = vmatpush.msrb.mxu1 %v8584_v29  ;;  %5708 = vmatpush.msra.mxu0 %v8536_v2 }
 0x6f9   :  { %5496 = vmatpush.msrb.mxu2 %v8604_v27  ;;  %5559 = vmatpush.msrb.mxu3 %v8434_v47 }
 0x6fa   :  { %5605 = vmatpush.msrb.mxu1 %v8592_v38  ;;  %5709 = vmatpush.msra.mxu0 %v8542_v48 }
 0x6fb   :  { %5497 = vmatpush.msrb.mxu2 %v8610_v10  ;;  %5560 = vmatpush.msrb.mxu3 %v8441_v5 }
 0x6fc   :  { %5606 = vmatpush.msrb.mxu1 %v8598_v21  ;;  %5710 = vmatpush.msra.mxu0 %v8549_v24 }
 0x6fd   :  { %5498 = vmatpush.msrb.mxu2 %v8618_v4  ;;  %5561 = vmatpush.msrb.mxu3 %v8455_v52 }
 0x6fe   :  { %5189 = vmatmul.f32.gmra.mxu1 %v7957_v62  ;;  %5271 = vmatmul.f32.gmra.mxu3 %v7957_v62 }
 0x6ff   :  { %5499 = vmatmul.f32.vlgmr.msrb.gmra.mxu2 %v9449_v9  ;;  %5562 = vmatpush.msrb.mxu3 %v8457_v63 }
 0x700   :  { %5665 = vmatpush.msra.mxu2 %v8416_v14  ;;  %5607 = vmatpush.msrb.mxu1 %v8604_v27 }
 0x701   :  { %5563 = vmatpush.msrb.mxu3 %v8463_v37  ;;  %5711 = vmatpush.msra.mxu0 %v8556_v25 }
 0x702   :  { %5666 = vmatpush.msra.mxu2 %v8419_v60  ;;  %5608 = vmatpush.msrb.mxu1 %v8610_v10 }
 0x703   :  { %5564 = vmatpush.msrb.mxu3 %v8469_v16  ;;  %5712 = vmatpush.msra.mxu0 %v8568_v45 }
 0x704   :  { %5667 = vmatpush.msra.mxu2 %v8421_v18  ;;  %5609 = vmatpush.msrb.mxu1 %v8618_v4 }
 0x705   :  { %5565 = vmatpush.msrb.mxu3 %v8478_v41  ;;  %5713 = vmatpush.msra.mxu0 %v8572_v34 }
 0x706   :  { %6543 = vmatmul.msk.f32.gmra.mxu1 %vm1104_vm5, %v7831_v1  ;;  %6545 = vmatmul.msk.f32.gmra.mxu3 %vm1104_vm5, %v7831_v1 }
 0x707   :  { %5668 = vmatpush.msra.mxu2 %v8426_v42  ;;  %5566 = vmatpush.msrb.mxu3 %v8483_v15 }
 0x708   :  { %5714 = vmatpush.msra.mxu0 %v8578_v44 }
 0x709   :  { %5669 = vmatpush.msra.mxu2 %v8429_v35  ;;  %5567 = vmatpush.msrb.mxu3 %v8488_v11 }
 0x70a   :  { %5715 = vmatpush.msra.mxu0 %v8584_v29 }
 0x70b   :  { %5568 = vmatpush.msrb.mxu3 %v8495_v13  ;;  %5670 = vmatpush.msra.mxu2 %v8434_v47 }
 0x70c   :  { %5716 = vmatpush.msra.mxu0 %v8592_v38 }
 0x70d   :  { %5569 = vmatpush.msrb.mxu3 %v8507_v8  ;;  %5671 = vmatpush.msra.mxu2 %v8441_v5 }
 0x70e   :  { %5335 = vmatmul.f32.vlgmr.msra.gmra.mxu1 %v8449_v22  ;;  %5479 = vmatmul.f32.vlgmr.msra.gmra.mxu3 %v9449_v9  ;;  %v8674_v22 = vpop.f32.mrf.mxu0 }
 0x70f   :  { %5685 = vmatpush.msra.mxu3 %v8431_v20  ;;  %5776 = vmatpush.msra.mxu1 %v8416_v14 }
 0x710   :  { %5672 = vmatpush.msra.mxu2 %v8455_v52  ;;  %5717 = vmatpush.msra.mxu0 %v8598_v21 }
 0x711   :  { %5686 = vmatpush.msra.mxu3 %v8438_v36  ;;  %5777 = vmatpush.msra.mxu1 %v8419_v60 }
 0x712   :  { %5673 = vmatpush.msra.mxu2 %v8457_v63  ;;  %5718 = vmatpush.msra.mxu0 %v8604_v27 }
 0x713   :  { %5687 = vmatpush.msra.mxu3 %v8460_v53  ;;  %5778 = vmatpush.msra.mxu1 %v8421_v18 }
 0x714   :  { %5674 = vmatpush.msra.mxu2 %v8463_v37  ;;  %5719 = vmatpush.msra.mxu0 %v8610_v10 }
 0x715   :  { %5688 = vmatpush.msra.mxu3 %v8465_v61  ;;  %5779 = vmatpush.msra.mxu1 %v8426_v42 }
 0x716   :  { %5338 = vmatmul.f32.gmra.mxu1 %v8320_v56  ;;  %5675 = vmatpush.msra.mxu2 %v8469_v16  ;;  %v8696_v56 = vpop.f32.mrf.mxu0 }
 0x717   :  { %5689 = vmatpush.msra.mxu3 %v8480_v40  ;;  %5780 = vmatpush.msra.mxu1 %v8429_v35 }
 0x718   :  { %5676 = vmatpush.msra.mxu2 %v8478_v41  ;;  %5720 = vmatpush.msra.mxu0 %v8618_v4 }
 0x719   :  { %5690 = vmatpush.msra.mxu3 %v8485_v17  ;;  %5781 = vmatpush.msra.mxu1 %v8434_v47 }
 0x71a   :  { %5677 = vmatpush.msra.mxu2 %v8483_v15 }
 0x71b   :  { %5691 = vmatpush.msra.mxu3 %v8492_v46  ;;  %5782 = vmatpush.msra.mxu1 %v8441_v5 }
 0x71c   :  { %5678 = vmatpush.msra.mxu2 %v8488_v11 }
 0x71d   :  { %5692 = vmatpush.msra.mxu3 %v8500_v55  ;;  %5783 = vmatpush.msra.mxu1 %v8455_v52 }
 0x71e   :  { %5341 = vmatmul.f32.gmra.mxu1 %v8253_v30  ;;  %5679 = vmatpush.msra.mxu2 %v8495_v13  ;;  %v8716_v30 = vpop.f32.mrf.mxu0 }
 0x71f   :  { %5693 = vmatpush.msra.mxu3 %v8509_v51  ;;  %5784 = vmatpush.msra.mxu1 %v8457_v63  ;;  %9459 = vst [vmem:[#allocation61_spill] sm:$0xff] %v8716_v30  ;;  %v5213_v30 = vpop.f32.mrf.mxu2 }
 0x720   :  { %5680 = vmatpush.msra.mxu2 %v8507_v8 }
 0x721   :  { %5694 = vmatpush.msra.mxu3 %v8515_v39  ;;  %5785 = vmatpush.msra.mxu1 %v8463_v37 }
 0x722   :  { %5796 = vmatpush.msrb.mxu2 %v8431_v20 }
 0x723   :  { %5695 = vmatpush.msra.mxu3 %v8523_v43  ;;  %5786 = vmatpush.msra.mxu1 %v8469_v16 }
 0x724   :  { %5797 = vmatpush.msrb.mxu2 %v8438_v36 }
 0x725   :  { %5696 = vmatpush.msra.mxu3 %v8529_v59  ;;  %5787 = vmatpush.msra.mxu1 %v8478_v41 }
 0x726   :  { %5344 = vmatmul.f32.gmra.mxu1 %v8186_v19  ;;  %5798 = vmatpush.msrb.mxu2 %v8460_v53 }
 0x727   :  { %5697 = vmatpush.msra.mxu3 %v8538_v49  ;;  %5788 = vmatpush.msra.mxu1 %v8483_v15  ;;  %v5216_v4 = vpop.f32.mrf.mxu2 }
 0x728   :  { %5799 = vmatpush.msrb.mxu2 %v8465_v61 }
 0x729   :  { %5698 = vmatpush.msra.mxu3 %v8544_v33  ;;  %5789 = vmatpush.msra.mxu1 %v8488_v11 }
 0x72a   :  { %5800 = vmatpush.msrb.mxu2 %v8480_v40 }
 0x72b   :  { %5699 = vmatpush.msra.mxu3 %v8554_v58  ;;  %5790 = vmatpush.msra.mxu1 %v8495_v13 }
 0x72c   :  { %5801 = vmatpush.msrb.mxu2 %v8485_v17 }
 0x72d   :  { %5700 = vmatpush.msra.mxu3 %v8566_v54  ;;  %5791 = vmatpush.msra.mxu1 %v8507_v8 }
 0x72e   :  { %5347 = vmatmul.f32.gmra.mxu1 %v8119_v12  ;;  %5802 = vmatpush.msrb.mxu2 %v8492_v46  ;;  %v5106_v12 = vld [vmem:[#allocation17 + $0xc] sm:$0x7] }
 0x72f   :  { %v8738_v9 = vperm.slane %v5106_v12, 2  ;;  %v5219_v11 = vpop.f32.mrf.mxu2 }
 0x730   :  { %5803 = vmatpush.msrb.mxu2 %v8500_v55 }
 0x732   :  { %v8731_v19 = vpop.f32.mrf.mxu0  ;;  %5804 = vmatpush.msrb.mxu2 %v8509_v51 }
 0x734   :  { %5805 = vmatpush.msrb.mxu2 %v8515_v39 }
 0x736   :  { %5350 = vmatmul.f32.gmra.mxu1 %v8046_v28  ;;  %5806 = vmatpush.msrb.mxu2 %v8523_v43 }
 0x738   :  { %5807 = vmatpush.msrb.mxu2 %v8529_v59  ;;  %v5222_v59 = vpop.f32.mrf.mxu2 }
 0x73a   :  { %v5295_v23 = vpop.f32.mrf.mxu0  ;;  %5808 = vmatpush.msrb.mxu2 %v8538_v49 }
 0x73b   :  { %v8743_v0 = vadd.f32 %v5295_v23, %v8738_v9  ;;  %v8755_v23 = vperm.slane %v5106_v12, 0 }
 0x73c   :  { %5809 = vmatpush.msrb.mxu2 %v8544_v33 }
 0x73d   :  { %9460 = vst [vmem:[#allocation36_spill] sm:$0xff] %v8755_v23 }
 0x73e   :  { %5353 = vmatmul.f32.gmra.mxu1 %v7957_v62  ;;  %5810 = vmatpush.msrb.mxu2 %v8554_v58  ;;  %v5132_v62 = vadd.f32 %v8562_v32, %v8755_v23 }
 0x740   :  { %5811 = vmatpush.msrb.mxu2 %v8566_v54 }
 0x742   :  { %v5298_v28 = vpop.f32.mrf.mxu0 }
 0x743   :  { %v8751_v8 = vadd.f32 %v5298_v28, %v8738_v9  ;;  %v8765_v28 = vperm.slane %v5106_v12, 1 }
 0x745   :  { %v5214_v54 = vadd.f32 %v5213_v30, %v8765_v28  ;;  %v5217_v12 = vadd.f32 %v5216_v4, %v8765_v28  ;;  %v5138_v30 = vadd.f32 %v8626_v6, %v8755_v23  ;;  %v5141_v4 = vadd.f32 %v8652_v3, %v8755_v23 }
 0x746   :  { %6547 = vmatmul.msk.f32.gmra.mxu1 %vm1104_vm5, %v7831_v1  ;;  %v5135_v1 = vadd.f32 %v8596_v50, %v8755_v23 }
 0x74a   :  { %v5301_v13 = vpop.f32.mrf.mxu0 }
 0x74b   :  { %v5172_v10 = vpop.f32.mrf.mxu1  ;;  %v8763_v33 = vadd.f32 %v5301_v13, %v8738_v9 }
 0x74c   :  { %v8767_v58 = vadd.f32 %v5172_v10, %v5132_v62 }
 0x74e   :  { %9461 = vst [vmem:[#allocation38_spill] sm:$0xff] %v8767_v58 }
 0x751   :  { %v5254_v27 = vpop.f32.mrf.mxu3 }
 0x752   :  { %v8772_v49 = vadd.f32 %v5254_v27, %v5214_v54  ;;  %v5304_v15 = vpop.f32.mrf.mxu0 }
 0x753   :  { %v5175_v32 = vpop.f32.mrf.mxu1  ;;  %v8775_v21 = vadd.f32 %v5304_v15, %v8738_v9  ;;  %v5220_v15 = vadd.f32 %v5219_v11, %v8765_v28  ;;  %v5144_v11 = vadd.f32 %v8674_v22, %v8755_v23 }
 0x754   :  { %9462 = vst [vmem:[#allocation44_spill] sm:$0xff] %v8772_v49  ;;  %v8777_v13 = vadd.f32 %v5175_v32, %v5135_v1 }
 0x756   :  { %9463 = vst [vmem:[#allocation47_spill] sm:$0xff] %v8777_v13 }
 0x759   :  { %v5257_v10 = vpop.f32.mrf.mxu3 }
 0x75a   :  { %v8782_v62 = vadd.f32 %v5257_v10, %v5217_v12  ;;  %v5307_v58 = vpop.f32.mrf.mxu0 }
 0x75b   :  { %v5178_v50 = vpop.f32.mrf.mxu1  ;;  %v8785_v54 = vadd.f32 %v5307_v58, %v8738_v9  ;;  %v5223_v58 = vadd.f32 %v5222_v59, %v8765_v28  ;;  %v5147_v59 = vadd.f32 %v8696_v56, %v8755_v23 }
 0x75c   :  { %9464 = vst [vmem:[#allocation57_spill] sm:$0xff] %v8782_v62  ;;  %v8787_v27 = vadd.f32 %v5178_v50, %v5138_v30  ;;  %v5225_v62 = vpop.f32.mrf.mxu2 }
 0x75e   :  { %9465 = vst [vmem:[#allocation58_spill] sm:$0xff] %v8787_v27 }
 0x761   :  { %v5260_v1 = vpop.f32.mrf.mxu3 }
 0x762   :  { %v8792_v32 = vadd.f32 %v5260_v1, %v5220_v15  ;;  %v5310_v49 = vpop.f32.mrf.mxu0 }
 0x763   :  { %v5181_v6 = vpop.f32.mrf.mxu1  ;;  %v8795_v12 = vadd.f32 %v5310_v49, %v8738_v9 }
 0x764   :  { %9466 = vst [vmem:[#allocation40_spill] sm:$0xff] %v8792_v32  ;;  %v8797_v10 = vadd.f32 %v5181_v6, %v5141_v4  ;;  %v5228_v49 = vpop.f32.mrf.mxu2  ;;  %v5226_v4 = vadd.f32 %v5225_v62, %v8765_v28 }
 0x766   :  { %9467 = vst [vmem:[#allocation42_spill] sm:$0xff] %v8797_v10 }
 0x769   :  { %v5263_v30 = vpop.f32.mrf.mxu3 }
 0x76a   :  { %v8802_v50 = vadd.f32 %v5263_v30, %v5223_v58  ;;  %v5313_v13 = vpop.f32.mrf.mxu0  ;;  %v5229_v58 = vadd.f32 %v5228_v49, %v8765_v28 }
 0x76b   :  { %v5184_v3 = vpop.f32.mrf.mxu1  ;;  %v8805_v15 = vadd.f32 %v5313_v13, %v8738_v9 }
 0x76c   :  { %9468 = vst [vmem:[#allocation41_spill] sm:$0xff] %v8802_v50  ;;  %v8807_v1 = vadd.f32 %v5184_v3, %v5144_v11  ;;  %v8817_v30 = vpop.f32.mrf.mxu2 }
 0x76d   :  { %9472 = vst [vmem:[#allocation26_spill] sm:$0xff] %v8817_v30 }
 0x76e   :  { %9469 = vst [vmem:[#allocation51_spill] sm:$0xff] %v8807_v1  ;;  %v5435_v1 = vld [vmem:[#allocation17 + $0xf] sm:$0x7] }
 0x76f   :  { %v8825_v56 = vperm.slane %v5435_v1, 0 }
 0x771   :  { %v5266_v6 = vpop.f32.mrf.mxu3  ;;  %9476 = vst [vmem:[#allocation49_spill] sm:$0xff] %v8825_v56 }
 0x772   :  { %v8812_v27 = vadd.f32 %v5266_v6, %v5226_v4 }
 0x773   :  { %v5187_v32 = vpop.f32.mrf.mxu1 }
 0x774   :  { %9470 = vst [vmem:[#allocation53_spill] sm:$0xff] %v8812_v27  ;;  %v8814_v22 = vadd.f32 %v5187_v32, %v5147_v59  ;;  %v5234_v3 = vpop.f32.mrf.mxu2  ;;  %v5153_v32 = vadd.f32 %v8731_v19, %v8755_v23 }
 0x775   :  { %v5235_v41 = vadd.f32 %v5234_v3, %v8765_v28 }
 0x776   :  { %9471 = vst [vmem:[#allocation54_spill] sm:$0xff] %v8814_v22 }
 0x779   :  { %v5269_v13 = vpop.f32.mrf.mxu3 }
 0x77a   :  { %v8819_v50 = vadd.f32 %v5269_v13, %v5229_v58 }
 0x77b   :  { %v8821_v11 = vpop.f32.mrf.mxu1 }
 0x77c   :  { %9473 = vst [vmem:[#allocation27_spill] sm:$0xff] %v8819_v50  ;;  %v5460_v4 = vpop.f32.mrf.mxu2  ;;  %v8833_v50 = vperm.slane %v5435_v1, 1 }
 0x77d   :  { %9474 = vst [vmem:[#allocation37_spill] sm:$0xff] %v8821_v11  ;;  %v5461_v27 = vadd.f32 %v5460_v4, %v8825_v56 }
 0x77e   :  { %9478 = vst [vmem:[#allocation28_spill] sm:$0xff] %v8833_v50 }
 0x781   :  { %v8823_v62 = vpop.f32.mrf.mxu3 }
 0x782   :  { %9475 = vst [vmem:[#allocation55_spill] sm:$0xff] %v8823_v62 }
 0x783   :  { %v5193_v10 = vpop.f32.mrf.mxu1 }
 0x784   :  { %v5194_v59 = vadd.f32 %v5193_v10, %v5153_v32 }
 0x786   :  { %v5503_v13 = vadd.f32 %v5461_v27, %v5194_v59 }
 0x788   :  { %v6523_v62 = vmul.f32 -1.442695, %v5503_v13 }
 0x789   :  { %v5275_v6 = vpop.f32.mrf.mxu3 }
 0x78a   :  { %v5276_v23 = vadd.f32 %v5275_v6, %v5235_v41  ;;  %6746 = vpow2.f32 %v6523_v62 }
 0x78b   :  { %v5336_v49 = vpop.f32.mrf.mxu1 }
 0x78c   :  { %v8831_v58 = vadd.f32 %v5336_v49, %v8743_v0 }
 0x78e   :  { %9477 = vst [vmem:[#allocation50_spill] sm:$0xff] %v8831_v58 }
 0x790   :  { %v6747_v32 = vpop.eup %6746 }
 0x791   :  { %v5480_v22 = vpop.f32.mrf.mxu3  ;;  %v5511_v49 = vadd.f32 1.0, %v6747_v32 }
 0x792   :  { %v5481_v19 = vadd.f32 %v5480_v22, %v8833_v50 }
 0x793   :  { %v5339_v11 = vpop.f32.mrf.mxu1  ;;  %v5524_v32 = vand.u32 2147483648, %v5511_v49  ;;  %vm5518_vm4 = vweird.f32 %v5511_v49 }
 0x794   :  { %v8836_v30 = vadd.f32 %v5339_v11, %v8751_v8  ;;  %v5504_v10 = vadd.f32 %v5481_v19, %v5276_v23 }
 0x796   :  { %9479 = vst [vmem:[#allocation30_spill] sm:$0xff] %v8836_v30  ;;  %v6524_v27 = vmul.f32 -1.442695, %v5504_v10  ;;  %v5316_v30 = vpop.f32.mrf.mxu0 }
 0x798   :  { %6748 = vpow2.f32 %v6524_v27 }
 0x799   :  { %6750 = vrcp.f32 %v5511_v49 }
 0x79b   :  { %v5342_v4 = vpop.f32.mrf.mxu1 }
 0x79c   :  { %v8841_v0 = vadd.f32 %v5342_v4, %v8763_v33 }
 0x79e   :  { %9480 = vst [vmem:[#allocation33_spill] sm:$0xff] %v8841_v0  ;;  %v6749_v8 = vpop.eup %6748 }
 0x79f   :  { %v5512_v11 = vadd.f32 1.0, %v6749_v8  ;;  %v6751_v3 = vpop.eup %6750  ;;  %v8852_v8 = vperm.slane %v5435_v1, 2 }
 0x7a0   :  { %v5514_v23 = vmul.f32 %v6751_v3, %v5511_v49  ;;  %vm5519_vm3 = vweird.f32 %v6751_v3 }
 0x7a1   :  { %6752 = vrcp.f32 %v5512_v11  ;;  %vm5520_vm8 = vmor %vm5518_vm4, %vm5519_vm3  ;;  %vm5533_vm15 = vweird.f32 %v5512_v11 }
 0x7a2   :  { %v5515_v33 = vsub.f32 1.0, %v5514_v23  ;;  %v5500_v23 = vpop.f32.mrf.mxu2 }
 0x7a3   :  { %v5345_v59 = vpop.f32.mrf.mxu1 }
 0x7a4   :  { %v8844_v13 = vadd.f32 %v5345_v59, %v8775_v21  ;;  %v5516_v10 = vmul.f32 %v6751_v3, %v5515_v33  ;;  %v5501_v33 = vadd.f32 %v5500_v23, %v8852_v8 }
 0x7a6   :  { %9481 = vst [vmem:[#allocation59_spill] sm:$0xff] %v8844_v13  ;;  %v5517_v21 = vadd.f32 %v6751_v3, %v5516_v10  ;;  %v5539_v13 = vand.u32 2147483648, %v5512_v11 }
 0x7a7   :  { %v6753_v6 = vpop.eup %6752 }
 0x7a8   :  { %v5529_v4 = vmul.f32 %v6753_v6, %v5512_v11  ;;  %v5521_v58 = vsel %vm5520_vm8, %v6751_v3, %v5517_v21  ;;  %vm5534_vm11 = vweird.f32 %v6753_v6  ;;  %v5540_v21 = vor.u32 1.1754944e-38, %v5539_v13  ;;  %v9498_v13 = vld [vmem:[#allocation55_spill] sm:$0xff] }
 0x7a9   :  { %vm5535_vm0 = vmor %vm5533_vm15, %vm5534_vm11 }
 0x7aa   :  { %v5530_v27 = vsub.f32 1.0, %v5529_v4  ;;  %v5317_v4 = vadd.f32 %v5316_v30, %v8738_v9 }
 0x7ab   :  { %v5348_v22 = vpop.f32.mrf.mxu1 }
 0x7ac   :  { %v8847_v41 = vadd.f32 %v5348_v22, %v8785_v54  ;;  %v5522_v54 = vand.u32 2147483647, %v5511_v49 }
 0x7ae   :  { %9482 = vst [vmem:[#allocation45_spill] sm:$0xff] %v8847_v41  ;;  %vm5523_vm9 = vcmp.eq.f32.partialorder %v5522_v54, 8.507059e+37 }
 0x7b3   :  { %v5351_v62 = vpop.f32.mrf.mxu1 }
 0x7b4   :  { %v8850_v19 = vadd.f32 %v5351_v62, %v8795_v12  ;;  %v5531_v12 = vmul.f32 %v6753_v6, %v5530_v27  ;;  %v5525_v62 = vor.u32 1.1754944e-38, %v5524_v32 }
 0x7b6   :  { %v5526_v10 = vsel %vm5523_vm9, %v5525_v62, %v5521_v58  ;;  %v5532_v1 = vadd.f32 %v6753_v6, %v5531_v12  ;;  %v9499_v12 = vld [vmem:[#allocation36_spill] sm:$0xff]  ;;  %v9500_v62 = vld [vmem:[#allocation61_spill] sm:$0xff] }
 0x7b7   :  { %v5543_v49 = vmul.f32 %v5526_v10, %v5501_v33  ;;  %v5150_v33 = vadd.f32 %v9500_v62, %v9499_v12 }
 0x7b8   :  { %v5536_v3 = vsel %vm5535_vm0, %v6753_v6, %v5532_v1  ;;  %v9501_v1 = vld [vmem:[#allocation37_spill] sm:$0xff] }
 0x7bb   :  { %v5354_v59 = vpop.f32.mrf.mxu1 }
 0x7bc   :  { %v8855_v22 = vadd.f32 %v5354_v59, %v8805_v15  ;;  %v5537_v15 = vand.u32 2147483647, %v5512_v11 }
 0x7be   :  { %vm5538_vm1 = vcmp.eq.f32.partialorder %v5537_v15, 8.507059e+37 }
 0x7bf   :  { %v5541_v27 = vsel %vm5538_vm1, %v5540_v21, %v5536_v3 }
 0x7c0   :  { %v5546_v32 = vsub.f32 1.0, %v5541_v27  ;;  %v5548_v23 = vmul.f32 0.0, %v5541_v27 }
 0x7c3   :  { %v5357_v0 = vpop.f32.mrf.mxu1 }
 0x7c4   :  { %v5358_v41 = vadd.f32 %v5357_v0, %v5317_v4 }
 0x7c6   :  { %v5544_v59 = vadd.f32 %v5543_v49, %v5358_v41  ;;  %v5191_v49 = vadd.f32 %v9501_v1, %v5150_v33 }
 0x7c8   :  { %6754 = vtanh.f32 %v5544_v59 }
 0x7ce   :  { %v6755_v54 = vpop.eup %6754 }
 0x7cf   :  { %v5547_v58 = vmul.f32 %v6755_v54, %v5546_v32 }
 0x7d1   :  { %v8859_v9 = vadd.f32 %v5548_v23, %v5547_v58 }
 0x7d3   :  { %6525 = vmatmul.msk.f32.vlgmr.msrb.gmra.mxu3 %vm1104_vm5, %v8859_v9  ;;  %6526 = vmatmul.msk.f32.vlgmr.msrb.gmra.mxu0 %vm1104_vm5, %v8859_v9 }
 0x7d4   :  { %6527 = vmatmul.msk.f32.vlgmr.msrb.gmra.mxu1 %vm1104_vm5, %v8859_v9  ;;  %5816 = vmatpush.msrb.mxu3 %v8512_v7 }
 0x7d5   :  { %5887 = vmatpush.msrb.mxu0 %v8416_v14  ;;  %5907 = vmatpush.msrb.mxu1 %v8431_v20  ;;  %v9483_v14 = vld [vmem:[#allocation35_spill] sm:$0xff]  ;;  %v9488_v20 = vld [vmem:[#allocation48_spill] sm:$0xff] }
 0x7d6   :  { %5817 = vmatpush.msrb.mxu3 %v8517_v26 }
 0x7d7   :  { %5888 = vmatpush.msrb.mxu0 %v8419_v60  ;;  %5908 = vmatpush.msrb.mxu1 %v8438_v36  ;;  %v9484_v60 = vld [vmem:[#allocation52_spill] sm:$0xff]  ;;  %v9490_v36 = vld [vmem:[#allocation62_spill] sm:$0xff] }
 0x7d8   :  { %5818 = vmatpush.msrb.mxu3 %v8527_v57 }
 0x7d9   :  { %5889 = vmatpush.msrb.mxu0 %v8421_v18  ;;  %5909 = vmatpush.msrb.mxu1 %v8460_v53  ;;  %v9485_v18 = vld [vmem:[#allocation34_spill] sm:$0xff]  ;;  %v9494_v53 = vld [vmem:[#allocation60_spill] sm:$0xff] }
 0x7da   :  { %5819 = vmatpush.msrb.mxu3 %v8536_v2 }
 0x7db   :  { %5890 = vmatpush.msrb.mxu0 %v8426_v42  ;;  %5910 = vmatpush.msrb.mxu1 %v8465_v61  ;;  %v9486_v42 = vld [vmem:[#allocation64_spill] sm:$0xff] }
 0x7dc   :  { %5820 = vmatpush.msrb.mxu3 %v8542_v48  ;;  %v9496_v61 = vld [vmem:[#allocation32_spill] sm:$0xff] }
 0x7dd   :  { %5891 = vmatpush.msrb.mxu0 %v8429_v35  ;;  %5911 = vmatpush.msrb.mxu1 %v8480_v40  ;;  %v9487_v35 = vld [vmem:[#allocation39_spill] sm:$0xff] }
 0x7de   :  { %5821 = vmatpush.msrb.mxu3 %v8549_v24 }
 0x7df   :  { %5892 = vmatpush.msrb.mxu0 %v8434_v47  ;;  %5912 = vmatpush.msrb.mxu1 %v8485_v17  ;;  %v9489_v47 = vld [vmem:[#allocation65_spill] sm:$0xff] }
 0x7e0   :  { %5822 = vmatpush.msrb.mxu3 %v8556_v25 }
 0x7e1   :  { %5893 = vmatpush.msrb.mxu0 %v8441_v5  ;;  %5913 = vmatpush.msrb.mxu1 %v8492_v46  ;;  %v9491_v5 = vld [vmem:[#allocation43_spill] sm:$0xff] }
 0x7e2   :  { %5823 = vmatpush.msrb.mxu3 %v8568_v45 }
 0x7e3   :  { %5894 = vmatpush.msrb.mxu0 %v8455_v52  ;;  %5914 = vmatpush.msrb.mxu1 %v8500_v55  ;;  %v9492_v52 = vld [vmem:[#allocation29_spill] sm:$0xff] }
 0x7e4   :  { %5824 = vmatpush.msrb.mxu3 %v8572_v34 }
 0x7e5   :  { %5895 = vmatpush.msrb.mxu0 %v8457_v63  ;;  %5915 = vmatpush.msrb.mxu1 %v8509_v51  ;;  %v9493_v63 = vld [vmem:[#allocation63_spill] sm:$0xff] }
 0x7e6   :  { %5825 = vmatpush.msrb.mxu3 %v8578_v44 }
 0x7e7   :  { %5896 = vmatpush.msrb.mxu0 %v8463_v37  ;;  %5916 = vmatpush.msrb.mxu1 %v8515_v39  ;;  %v9495_v37 = vld [vmem:[#allocation31_spill] sm:$0xff] }
 0x7e8   :  { %5826 = vmatpush.msrb.mxu3 %v8584_v29 }
 0x7e9   :  { %5897 = vmatpush.msrb.mxu0 %v8469_v16  ;;  %5917 = vmatpush.msrb.mxu1 %v8523_v43  ;;  %v9497_v16 = vld [vmem:[#allocation26_spill] sm:$0xff] }
 0x7ea   :  { %5827 = vmatpush.msrb.mxu3 %v8592_v38  ;;  %v5232_v30 = vadd.f32 %v9497_v16, %v8765_v28 }
 0x7eb   :  { %5898 = vmatpush.msrb.mxu0 %v9483_v14  ;;  %5918 = vmatpush.msrb.mxu1 %v9484_v60 }
 0x7ec   :  { %5828 = vmatpush.msrb.mxu3 %v9485_v18  ;;  %v5273_v11 = vadd.f32 %v9498_v13, %v5232_v30 }
 0x7ed   :  { %5899 = vmatpush.msrb.mxu0 %v9486_v42  ;;  %5919 = vmatpush.msrb.mxu1 %v9487_v35 }
 0x7ee   :  { %5829 = vmatpush.msrb.mxu3 %v9488_v20 }
 0x7ef   :  { %5900 = vmatpush.msrb.mxu0 %v9489_v47  ;;  %5920 = vmatpush.msrb.mxu1 %v9490_v36 }
 0x7f0   :  { %5830 = vmatpush.msrb.mxu3 %v9491_v5 }
 0x7f1   :  { %5901 = vmatpush.msrb.mxu0 %v9492_v52  ;;  %5921 = vmatpush.msrb.mxu1 %v9493_v63 }
 0x7f2   :  { %5831 = vmatpush.msrb.mxu3 %v9494_v53 }
 0x7f3   :  { %5902 = vmatpush.msrb.mxu0 %v9495_v37  ;;  %5922 = vmatpush.msrb.mxu1 %v9496_v61 }
 0x850   :  { %v5591_v0 = vpop.f32.mrf.mxu0 }
 0x851   :  { %v5592_v41 = vadd.f32 %v5591_v0, %v8833_v50 }
 0x853   :  { %v5615_v6 = vadd.f32 %v5592_v41, %v5273_v11  ;;  %v5550_v41 = vsel %vm1104_vm5, %v8859_v9, 0.0 }
 0x855   :  { %v6529_v10 = vmul.f32 -1.442695, %v5615_v6 }
 0x856   :  { %v5571_v4 = vpop.f32.mrf.mxu3 }
 0x857   :  { %6756 = vpow2.f32 %v6529_v10  ;;  %v5572_v15 = vadd.f32 %v5571_v4, %v8825_v56  ;;  %v5611_v10 = vpop.f32.mrf.mxu1 }
 0x859   :  { %v5614_v59 = vadd.f32 %v5572_v15, %v5191_v49  ;;  %v5612_v49 = vadd.f32 %v5611_v10, %v8852_v8 }
 0x85b   :  { %v6528_v3 = vmul.f32 -1.442695, %v5614_v59 }
 0x85d   :  { %v6757_v21 = vpop.eup %6756  ;;  %6758 = vpow2.f32 %v6528_v3 }
 0x85e   :  { %v5623_v28 = vadd.f32 1.0, %v6757_v21 }
 0x860   :  { %6760 = vrcp.f32 %v5623_v28  ;;  %v5650_v14 = vand.u32 2147483648, %v5623_v28  ;;  %v5648_v47 = vand.u32 2147483647, %v5623_v28  ;;  %vm5644_vm4 = vweird.f32 %v5623_v28 }
 0x862   :  { %v5651_v30 = vor.u32 1.1754944e-38, %v5650_v14  ;;  %vm5649_vm9 = vcmp.eq.f32.partialorder %v5648_v47, 8.507059e+37  ;;  %v8949_v14 = vld [vmem:[#allocation13 + $0x158] sm:$0xff]  ;;  %v8963_v47 = vld [vmem:[#allocation13 + $0x128] sm:$0xff] }
 0x863   :  { %v6759_v27 = vpop.eup %6758 }
 0x864   :  { %v5622_v32 = vadd.f32 1.0, %v6759_v27 }
 0x866   :  { %v6761_v54 = vpop.eup %6760  ;;  %6762 = vrcp.f32 %v5622_v32  ;;  %v5635_v11 = vand.u32 2147483648, %v5622_v32  ;;  %v5633_v62 = vand.u32 2147483647, %v5622_v32  ;;  %vm5629_vm15 = vweird.f32 %v5622_v32 }
 0x867   :  { %v5640_v58 = vmul.f32 %v6761_v54, %v5623_v28  ;;  %vm5645_vm3 = vweird.f32 %v6761_v54 }
 0x868   :  { %vm5646_vm8 = vmor %vm5644_vm4, %vm5645_vm3  ;;  %v5636_v1 = vor.u32 1.1754944e-38, %v5635_v11  ;;  %vm5634_vm1 = vcmp.eq.f32.partialorder %v5633_v62, 8.507059e+37 }
 0x869   :  { %v5641_v23 = vsub.f32 1.0, %v5640_v58 }
 0x86b   :  { %v5642_v42 = vmul.f32 %v6761_v54, %v5641_v23  ;;  %v8946_v23 = vld [vmem:[#allocation13 + $0x150] sm:$0xff] }
 0x86c   :  { %v6763_v52 = vpop.eup %6762 }
 0x86d   :  { %v5625_v37 = vmul.f32 %v6763_v52, %v5622_v32  ;;  %v5643_v16 = vadd.f32 %v6761_v54, %v5642_v42  ;;  %vm5630_vm11 = vweird.f32 %v6763_v52  ;;  %v8939_v32 = vld [vmem:[#allocation13 + $0x168] sm:$0xff]  ;;  %v8956_v42 = vld [vmem:[#allocation13 + $0x140] sm:$0xff] }
 0x86e   :  { %vm5631_vm0 = vmor %vm5629_vm15, %vm5630_vm11 }
 0x86f   :  { %v5626_v0 = vsub.f32 1.0, %v5625_v37  ;;  %v5647_v13 = vsel %vm5646_vm8, %v6761_v54, %v5643_v16 }
 0x870   :  { %v5652_v6 = vsel %vm5649_vm9, %v5651_v30, %v5647_v13 }
 0x871   :  { %v5627_v12 = vmul.f32 %v6763_v52, %v5626_v0  ;;  %v5659_v33 = vmul.f32 %v5652_v6, %v5550_v41  ;;  %v5657_v31 = vsub.f32 1.0, %v5652_v6 }
 0x873   :  { %v5628_v4 = vadd.f32 %v6763_v52, %v5627_v12 }
 0x875   :  { %v5632_v15 = vsel %vm5631_vm0, %v6763_v52, %v5628_v4  ;;  %v8972_v52 = vld [vmem:[#allocation13 + $0xf0] sm:$0xff] }
 0x876   :  { %v5637_v59 = vsel %vm5634_vm1, %v5636_v1, %v5632_v15 }
 0x877   :  { %v5654_v3 = vmul.f32 %v5637_v59, %v5612_v49 }
 0x879   :  { %v5655_v21 = vadd.f32 %v5654_v3, %v8855_v22  ;;  %v8942_v22 = vld [vmem:[#allocation13 + $0x170] sm:$0xff] }
 0x87b   :  { %6764 = vtanh.f32 %v5655_v21 }
 0x881   :  { %v6765_v9 = vpop.eup %6764 }
 0x882   :  { %v5658_v28 = vmul.f32 %v6765_v9, %v5657_v31 }
 0x884   :  { %v5660_v27 = vadd.f32 %v5659_v33, %v5658_v28 }
 0x886   :  { %v8933_v58 = vsel %vm1666_vm13, %v5660_v27, %v5550_v41 }
 0x887   :  { %5681 = vmatmul.f32.vlgmr.msra.gmra.mxu2 %v8933_v58  ;;  %5701 = vmatmul.f32.vlgmr.msra.gmra.mxu3 %v8933_v58 }
 0x888   :  { %5721 = vmatmul.f32.vlgmr.msra.gmra.mxu0 %v8933_v58  ;;  %5927 = vmatpush.msra.mxu2 %v8512_v7  ;;  %v8953_v7 = vld [vmem:[#allocation13 + $0x138] sm:$0xff] }
 0x889   :  { %5998 = vmatpush.msra.mxu3 %v8939_v32  ;;  %6018 = vmatpush.msra.mxu0 %v8942_v22 }
 0x88a   :  { %5928 = vmatpush.msra.mxu2 %v8517_v26  ;;  %v8960_v26 = vld [vmem:[#allocation13 + $0x120] sm:$0xff] }
 0x88b   :  { %5999 = vmatpush.msra.mxu3 %v8946_v23  ;;  %6019 = vmatpush.msra.mxu0 %v8949_v14 }
 0x88c   :  { %5929 = vmatpush.msra.mxu2 %v8527_v57  ;;  %v8967_v57 = vld [vmem:[#allocation13 + $0x108] sm:$0xff] }
 0x88d   :  { %6000 = vmatpush.msra.mxu3 %v8953_v7  ;;  %6020 = vmatpush.msra.mxu0 %v8956_v42 }
 0x88e   :  { %5930 = vmatpush.msra.mxu2 %v8536_v2  ;;  %v8977_v2 = vld [vmem:[#allocation13 + $0xd8] sm:$0xff] }
 0x88f   :  { %6001 = vmatpush.msra.mxu3 %v8960_v26  ;;  %6021 = vmatpush.msra.mxu0 %v8963_v47 }
 0x890   :  { %5931 = vmatpush.msra.mxu2 %v8542_v48  ;;  %v8982_v48 = vld [vmem:[#allocation13 + $0xc0] sm:$0xff] }
 0x891   :  { %6002 = vmatpush.msra.mxu3 %v8967_v57  ;;  %6022 = vmatpush.msra.mxu0 %v8480_v40  ;;  %v8987_v40 = vld [vmem:[#allocation13 + $0xa8] sm:$0xff] }
 0x892   :  { %5932 = vmatpush.msra.mxu2 %v8549_v24  ;;  %v9022_v24 = vld [vmem:[#allocation13] sm:$0xff] }
 0x893   :  { %6003 = vmatpush.msra.mxu3 %v8972_v52  ;;  %6023 = vmatpush.msra.mxu0 %v8485_v17  ;;  %v8992_v17 = vld [vmem:[#allocation13 + $0x90] sm:$0xff]  ;;  %9505 = vst [vmem:[#allocation52_spill] sm:$0xff] %v9022_v24 }
 0x894   :  { %5933 = vmatpush.msra.mxu2 %v8556_v25 }
 0x895   :  { %6004 = vmatpush.msra.mxu3 %v8977_v2  ;;  %6024 = vmatpush.msra.mxu0 %v8492_v46  ;;  %v8997_v46 = vld [vmem:[#allocation13 + $0x78] sm:$0xff] }
 0x896   :  { %5934 = vmatpush.msra.mxu2 %v8568_v45 }
 0x897   :  { %6005 = vmatpush.msra.mxu3 %v8982_v48  ;;  %6025 = vmatpush.msra.mxu0 %v8500_v55  ;;  %v9002_v55 = vld [vmem:[#allocation13 + $0x60] sm:$0xff] }
 0x898   :  { %5935 = vmatpush.msra.mxu2 %v8572_v34 }
 0x899   :  { %6006 = vmatpush.msra.mxu3 %v8987_v40  ;;  %6026 = vmatpush.msra.mxu0 %v8509_v51  ;;  %v9007_v51 = vld [vmem:[#allocation13 + $0x48] sm:$0xff] }
 0x89a   :  { %5936 = vmatpush.msra.mxu2 %v8578_v44 }
 0x89b   :  { %6007 = vmatpush.msra.mxu3 %v8992_v17  ;;  %6027 = vmatpush.msra.mxu0 %v8515_v39  ;;  %v9012_v39 = vld [vmem:[#allocation13 + $0x30] sm:$0xff] }
 0x89c   :  { %5937 = vmatpush.msra.mxu2 %v8584_v29  ;;  %9503 = vst [vmem:[#allocation46_spill] sm:$0xff] %v9012_v39  ;;  %v9506_v29 = vld [vmem:[#allocation54_spill] sm:$0xff] }
 0x89d   :  { %6008 = vmatpush.msra.mxu3 %v8997_v46  ;;  %6028 = vmatpush.msra.mxu0 %v8523_v43  ;;  %v9017_v43 = vld [vmem:[#allocation13 + $0x18] sm:$0xff] }
 0x89e   :  { %5938 = vmatpush.msra.mxu2 %v8592_v38  ;;  %9504 = vst [vmem:[#allocation35_spill] sm:$0xff] %v9017_v43 }
 0x89f   :  { %6009 = vmatpush.msra.mxu3 %v9002_v55  ;;  %6029 = vmatpush.msra.mxu0 %v9484_v60  ;;  %v9507_v60 = vld [vmem:[#allocation27_spill] sm:$0xff] }
 0x8a0   :  { %5939 = vmatpush.msra.mxu2 %v9485_v18 }
 0x8a1   :  { %6010 = vmatpush.msra.mxu3 %v9007_v51  ;;  %6030 = vmatpush.msra.mxu0 %v9487_v35 }
 0x8a2   :  { %5940 = vmatpush.msra.mxu2 %v9488_v20 }
 0x8a3   :  { %6011 = vmatpush.msra.mxu3 %v9012_v39  ;;  %6031 = vmatpush.msra.mxu0 %v9490_v36 }
 0x8a4   :  { %5941 = vmatpush.msra.mxu2 %v9491_v5 }
 0x8a5   :  { %6012 = vmatpush.msra.mxu3 %v9017_v43  ;;  %6032 = vmatpush.msra.mxu0 %v9493_v63 }
 0x8a6   :  { %5942 = vmatpush.msra.mxu2 %v9494_v53 }
 0x8a7   :  { %6013 = vmatpush.msra.mxu3 %v9022_v24  ;;  %6033 = vmatpush.msra.mxu0 %v9496_v61 }
 0x905   :  { %v5722_v12 = vpop.f32.mrf.mxu0 }
 0x906   :  { %v5723_v4 = vadd.f32 %v5722_v12, %v8852_v8  ;;  %v9114_v12 = vld [vmem:[#allocation13 + $0x68] sm:$0xff] }
 0x90a   :  { %v5682_v25 = vpop.f32.mrf.mxu2  ;;  %v5702_v45 = vpop.f32.mrf.mxu3 }
 0x90b   :  { %v5683_v34 = vadd.f32 %v5682_v25, %v8825_v56  ;;  %v5703_v44 = vadd.f32 %v5702_v45, %v8833_v50 }
 0x90d   :  { %v5725_v38 = vadd.f32 %v5683_v34, %v9506_v29  ;;  %v5726_v18 = vadd.f32 %v5703_v44, %v9507_v60  ;;  %v9046_v60 = vld [vmem:[#allocation13 + $0x160] sm:$0xff] }
 0x90f   :  { %v6530_v35 = vmul.f32 -1.442695, %v5725_v38  ;;  %v6531_v20 = vmul.f32 -1.442695, %v5726_v18  ;;  %v9056_v18 = vld [vmem:[#allocation13 + $0x130] sm:$0xff] }
 0x911   :  { %6766 = vpow2.f32 %v6530_v35  ;;  %v9061_v35 = vld [vmem:[#allocation13 + $0x118] sm:$0xff] }
 0x912   :  { %6768 = vpow2.f32 %v6531_v20  ;;  %v9065_v20 = vld [vmem:[#allocation13 + $0x110] sm:$0xff] }
 0x917   :  { %v6767_v36 = vpop.eup %6766 }
 0x918   :  { %v6769_v5 = vpop.eup %6768  ;;  %v5733_v63 = vadd.f32 1.0, %v6767_v36  ;;  %v9068_v36 = vld [vmem:[#allocation13 + $0x100] sm:$0xff] }
 0x919   :  { %v5734_v53 = vadd.f32 1.0, %v6769_v5  ;;  %v9072_v5 = vld [vmem:[#allocation13 + $0xf8] sm:$0xff] }
 0x91a   :  { %6770 = vrcp.f32 %v5733_v63  ;;  %v5746_v13 = vand.u32 2147483648, %v5733_v63  ;;  %v5744_v6 = vand.u32 2147483647, %v5733_v63  ;;  %vm5740_vm13 = vweird.f32 %v5733_v63 }
 0x91b   :  { %6772 = vrcp.f32 %v5734_v53  ;;  %v5761_v3 = vand.u32 2147483648, %v5734_v53  ;;  %vm5755_vm9 = vweird.f32 %v5734_v53  ;;  %v5759_v21 = vand.u32 2147483647, %v5734_v53 }
 0x91c   :  { %v5747_v10 = vor.u32 1.1754944e-38, %v5746_v13  ;;  %vm5745_vm4 = vcmp.eq.f32.partialorder %v5744_v6, 8.507059e+37  ;;  %v9100_v13 = vld [vmem:[#allocation13 + $0x98] sm:$0xff]  ;;  %v9110_v6 = vld [vmem:[#allocation13 + $0x70] sm:$0xff] }
 0x91d   :  { %v5762_v28 = vor.u32 1.1754944e-38, %v5761_v3  ;;  %vm5760_vm15 = vcmp.eq.f32.partialorder %v5759_v21, 8.507059e+37 }
 0x920   :  { %v6771_v61 = vpop.eup %6770 }
 0x921   :  { %v6773_v37 = vpop.eup %6772  ;;  %v5736_v16 = vmul.f32 %v6771_v61, %v5733_v63  ;;  %vm5741_vm5 = vweird.f32 %v6771_v61  ;;  %v9075_v63 = vld [vmem:[#allocation13 + $0xe8] sm:$0xff] }
 0x922   :  { %v5751_v30 = vmul.f32 %v6773_v37, %v5734_v53  ;;  %vm5742_vm3 = vmor %vm5740_vm13, %vm5741_vm5  ;;  %vm5756_vm8 = vweird.f32 %v6773_v37  ;;  %v9079_v53 = vld [vmem:[#allocation13 + $0xe0] sm:$0xff] }
 0x923   :  { %v5737_v0 = vsub.f32 1.0, %v5736_v16  ;;  %vm5757_vm11 = vmor %vm5755_vm9, %vm5756_vm8  ;;  %v9089_v16 = vld [vmem:[#allocation13 + $0xb8] sm:$0xff] }
 0x924   :  { %v5752_v11 = vsub.f32 1.0, %v5751_v30  ;;  %v9093_v30 = vld [vmem:[#allocation13 + $0xb0] sm:$0xff] }
 0x925   :  { %v5738_v41 = vmul.f32 %v6771_v61, %v5737_v0  ;;  %v9096_v0 = vld [vmem:[#allocation13 + $0xa0] sm:$0xff] }
 0x926   :  { %v5753_v62 = vmul.f32 %v6773_v37, %v5752_v11  ;;  %v9103_v11 = vld [vmem:[#allocation13 + $0x88] sm:$0xff] }
 0x927   :  { %v5739_v33 = vadd.f32 %v6771_v61, %v5738_v41  ;;  %v9107_v41 = vld [vmem:[#allocation13 + $0x80] sm:$0xff] }
 0x928   :  { %v5754_v15 = vadd.f32 %v6773_v37, %v5753_v62  ;;  %v9117_v62 = vld [vmem:[#allocation13 + $0x58] sm:$0xff] }
 0x929   :  { %v5743_v1 = vsel %vm5742_vm3, %v6771_v61, %v5739_v33  ;;  %v9082_v61 = vld [vmem:[#allocation13 + $0xd0] sm:$0xff] }
 0x92a   :  { %v5748_v49 = vsel %vm5745_vm4, %v5747_v10, %v5743_v1  ;;  %v5758_v9 = vsel %vm5757_vm11, %v6773_v37, %v5754_v15  ;;  %v9086_v37 = vld [vmem:[#allocation13 + $0xc8] sm:$0xff]  ;;  %v9121_v33 = vld [vmem:[#allocation13 + $0x50] sm:$0xff]  ;;  %v9124_v10 = vld [vmem:[#allocation13 + $0x40] sm:$0xff] }
 0x92b   :  { %v5765_v59 = vmul.f32 %v5748_v49, %v5723_v4  ;;  %v5763_v27 = vsel %vm5760_vm15, %v5762_v28, %v5758_v9  ;;  %v9128_v4 = vld [vmem:[#allocation13 + $0x38] sm:$0xff]  ;;  %v9131_v1 = vld [vmem:[#allocation13 + $0x28] sm:$0xff]  ;;  %v9135_v49 = vld [vmem:[#allocation13 + $0x20] sm:$0xff] }
 0x92c   :  { %v5768_v54 = vsub.f32 1.0, %v5763_v27  ;;  %v5770_v34 = vmul.f32 %v5763_v27, %v8933_v58  ;;  %9509 = vst [vmem:[#allocation34_spill] sm:$0xff] %v9128_v4  ;;  %v9138_v15 = vld [vmem:[#allocation13 + $0x10] sm:$0xff] }
 0x92d   :  { %v5766_v31 = vadd.f32 %v5765_v59, %v8850_v19  ;;  %v9041_v19 = vld [vmem:[#allocation13 + $0x178] sm:$0xff]  ;;  %9510 = vst [vmem:[#allocation64_spill] sm:$0xff] %v9131_v1  ;;  %v9142_v59 = vld [vmem:[#allocation13 + $0x8] sm:$0xff] }
 0x92e   :  { %9511 = vst [vmem:[#allocation39_spill] sm:$0xff] %v9135_v49 }
 0x92f   :  { %6774 = vtanh.f32 %v5766_v31  ;;  %9512 = vst [vmem:[#allocation48_spill] sm:$0xff] %v9138_v15  ;;  %v9514_v31 = vld [vmem:[#allocation51_spill] sm:$0xff] }
 0x930   :  { %9513 = vst [vmem:[#allocation65_spill] sm:$0xff] %v9142_v59 }
 0x935   :  { %v6775_v25 = vpop.eup %6774 }
 0x936   :  { %v5769_v45 = vmul.f32 %v6775_v25, %v5768_v54  ;;  %v9515_v25 = vld [vmem:[#allocation53_spill] sm:$0xff] }
 0x938   :  { %v5771_v44 = vadd.f32 %v5770_v34, %v5769_v45 }
 0x93a   :  { %v9036_v38 = vsel %vm2228_vm6, %v5771_v44, %v8933_v58  ;;  %v9051_v58 = vld [vmem:[#allocation13 + $0x148] sm:$0xff] }
 0x93b   :  { %5792 = vmatmul.f32.vlgmr.msra.gmra.mxu1 %v9036_v38  ;;  %5812 = vmatmul.f32.vlgmr.msrb.gmra.mxu2 %v9036_v38 }
 0x93c   :  { %5832 = vmatmul.f32.vlgmr.msrb.gmra.mxu3 %v9036_v38  ;;  %6038 = vmatpush.msra.mxu1 %v9041_v19 }
 0x93d   :  { %6109 = vmatpush.msrb.mxu2 %v8939_v32  ;;  %6129 = vmatpush.msrb.mxu3 %v8942_v22 }
 0x93e   :  { %6039 = vmatpush.msra.mxu1 %v9046_v60 }
 0x93f   :  { %6110 = vmatpush.msrb.mxu2 %v8946_v23  ;;  %6130 = vmatpush.msrb.mxu3 %v8949_v14 }
 0x940   :  { %6040 = vmatpush.msra.mxu1 %v9051_v58 }
 0x941   :  { %6111 = vmatpush.msrb.mxu2 %v8953_v7  ;;  %6131 = vmatpush.msrb.mxu3 %v8956_v42 }
 0x942   :  { %6041 = vmatpush.msra.mxu1 %v9056_v18 }
 0x943   :  { %6112 = vmatpush.msrb.mxu2 %v8960_v26  ;;  %6132 = vmatpush.msrb.mxu3 %v8963_v47 }
 0x944   :  { %6042 = vmatpush.msra.mxu1 %v9061_v35 }
 0x945   :  { %6113 = vmatpush.msrb.mxu2 %v8967_v57  ;;  %6133 = vmatpush.msrb.mxu3 %v9065_v20 }
 0x946   :  { %6043 = vmatpush.msra.mxu1 %v9068_v36 }
 0x947   :  { %6114 = vmatpush.msrb.mxu2 %v8972_v52  ;;  %6134 = vmatpush.msrb.mxu3 %v9072_v5 }
 0x948   :  { %6044 = vmatpush.msra.mxu1 %v9075_v63 }
 0x949   :  { %6115 = vmatpush.msrb.mxu2 %v8977_v2  ;;  %6135 = vmatpush.msrb.mxu3 %v9079_v53 }
 0x94a   :  { %6045 = vmatpush.msra.mxu1 %v9082_v61 }
 0x94b   :  { %6116 = vmatpush.msrb.mxu2 %v8982_v48  ;;  %6136 = vmatpush.msrb.mxu3 %v9086_v37 }
 0x94c   :  { %6046 = vmatpush.msra.mxu1 %v9089_v16 }
 0x94d   :  { %6117 = vmatpush.msrb.mxu2 %v8987_v40  ;;  %6137 = vmatpush.msrb.mxu3 %v9093_v30 }
 0x94e   :  { %6047 = vmatpush.msra.mxu1 %v9096_v0 }
 0x94f   :  { %6118 = vmatpush.msrb.mxu2 %v8992_v17  ;;  %6138 = vmatpush.msrb.mxu3 %v9100_v13 }
 0x950   :  { %6048 = vmatpush.msra.mxu1 %v9103_v11 }
 0x951   :  { %6119 = vmatpush.msrb.mxu2 %v8997_v46  ;;  %6139 = vmatpush.msrb.mxu3 %v9107_v41 }
 0x952   :  { %6049 = vmatpush.msra.mxu1 %v9110_v6 }
 0x953   :  { %6120 = vmatpush.msrb.mxu2 %v9002_v55  ;;  %6140 = vmatpush.msrb.mxu3 %v9114_v12 }
 0x954   :  { %6050 = vmatpush.msra.mxu1 %v9117_v62 }
 0x955   :  { %6121 = vmatpush.msrb.mxu2 %v9007_v51  ;;  %6141 = vmatpush.msrb.mxu3 %v9121_v33 }
 0x956   :  { %6051 = vmatpush.msra.mxu1 %v9124_v10 }
 0x957   :  { %6122 = vmatpush.msrb.mxu2 %v9012_v39  ;;  %6142 = vmatpush.msrb.mxu3 %v9128_v4  ;;  %v9516_v4 = vld [vmem:[#allocation45_spill] sm:$0xff] }
 0x958   :  { %6052 = vmatpush.msra.mxu1 %v9131_v1 }
 0x959   :  { %6123 = vmatpush.msrb.mxu2 %v9017_v43  ;;  %6143 = vmatpush.msrb.mxu3 %v9135_v49 }
 0x95a   :  { %6053 = vmatpush.msra.mxu1 %v9138_v15 }
 0x95b   :  { %6124 = vmatpush.msrb.mxu2 %v9022_v24  ;;  %6144 = vmatpush.msrb.mxu3 %v9142_v59 }
 0x9b8   :  { %v5793_v3 = vpop.f32.mrf.mxu1 }
 0x9b9   :  { %v5794_v21 = vadd.f32 %v5793_v3, %v8825_v56 }
 0x9bb   :  { %v5836_v9 = vadd.f32 %v5794_v21, %v9514_v31 }
 0x9bd   :  { %v6532_v28 = vmul.f32 -1.442695, %v5836_v9 }
 0x9be   :  { %v5813_v27 = vpop.f32.mrf.mxu2 }
 0x9bf   :  { %6776 = vpow2.f32 %v6532_v28  ;;  %v5814_v54 = vadd.f32 %v5813_v27, %v8833_v50  ;;  %v5833_v28 = vpop.f32.mrf.mxu3 }
 0x9c1   :  { %v5837_v45 = vadd.f32 %v5814_v54, %v9515_v25 }
 0x9c3   :  { %v6533_v34 = vmul.f32 -1.442695, %v5837_v45  ;;  %v5834_v45 = vadd.f32 %v5833_v28, %v8852_v8 }
 0x9c5   :  { %v6777_v44 = vpop.eup %6776  ;;  %6778 = vpow2.f32 %v6533_v34 }
 0x9c6   :  { %v5844_v29 = vadd.f32 1.0, %v6777_v44 }
 0x9c8   :  { %6780 = vrcp.f32 %v5844_v29  ;;  %v5857_v56 = vand.u32 2147483648, %v5844_v29  ;;  %v5855_v31 = vand.u32 2147483647, %v5844_v29  ;;  %vm5851_vm0 = vweird.f32 %v5844_v29 }
 0x9ca   :  { %v5858_v54 = vor.u32 1.1754944e-38, %v5857_v56  ;;  %vm5856_vm5 = vcmp.eq.f32.partialorder %v5855_v31, 8.507059e+37 }
 0x9cb   :  { %v6779_v24 = vpop.eup %6778 }
 0x9cc   :  { %v5845_v15 = vadd.f32 1.0, %v6779_v24 }
 0x9ce   :  { %v6781_v59 = vpop.eup %6780  ;;  %6782 = vrcp.f32 %v5845_v15  ;;  %vm5866_vm3 = vweird.f32 %v5845_v15 }
 0x9cf   :  { %v5847_v49 = vmul.f32 %v6781_v59, %v5844_v29  ;;  %vm5852_vm6 = vweird.f32 %v6781_v59 }
 0x9d0   :  { %vm5853_vm1 = vmor %vm5851_vm0, %vm5852_vm6 }
 0x9d1   :  { %v5848_v3 = vsub.f32 1.0, %v5847_v49  ;;  %v5872_v49 = vand.u32 2147483648, %v5845_v15 }
 0x9d3   :  { %v5849_v21 = vmul.f32 %v6781_v59, %v5848_v3  ;;  %v5870_v3 = vand.u32 2147483647, %v5845_v15 }
 0x9d4   :  { %v6783_v9 = vpop.eup %6782 }
 0x9d5   :  { %v5862_v27 = vmul.f32 %v6783_v9, %v5845_v15  ;;  %v5850_v50 = vadd.f32 %v6781_v59, %v5849_v21  ;;  %vm5867_vm13 = vweird.f32 %v6783_v9  ;;  %v5873_v21 = vor.u32 1.1754944e-38, %v5872_v49 }
 0x9d6   :  { %vm5868_vm4 = vmor %vm5866_vm3, %vm5867_vm13  ;;  %vm5871_vm8 = vcmp.eq.f32.partialorder %v5870_v3, 8.507059e+37 }
 0x9d7   :  { %v5863_v25 = vsub.f32 1.0, %v5862_v27  ;;  %v5854_v34 = vsel %vm5853_vm1, %v6781_v59, %v5850_v50 }
 0x9d8   :  { %v5859_v24 = vsel %vm5856_vm5, %v5858_v54, %v5854_v34 }
 0x9d9   :  { %v5864_v44 = vmul.f32 %v6783_v9, %v5863_v25  ;;  %v5876_v43 = vmul.f32 %v5859_v24, %v5834_v45 }
 0x9db   :  { %v5865_v1 = vadd.f32 %v6783_v9, %v5864_v44  ;;  %v5877_v39 = vadd.f32 %v5876_v43, %v9516_v4 }
 0x9dd   :  { %v5869_v29 = vsel %vm5868_vm4, %v6783_v9, %v5865_v1  ;;  %6784 = vtanh.f32 %v5877_v39 }
 0x9de   :  { %v5874_v56 = vsel %vm5871_vm8, %v5873_v21, %v5869_v29 }
 0x9df   :  { %v5879_v27 = vsub.f32 1.0, %v5874_v56  ;;  %v5881_v59 = vmul.f32 %v5874_v56, %v9036_v38 }
 0x9e3   :  { %v6785_v28 = vpop.eup %6784 }
 0x9e4   :  { %v5880_v50 = vmul.f32 %v6785_v28, %v5879_v27 }
 0x9e6   :  { %v5882_v31 = vadd.f32 %v5881_v59, %v5880_v50  ;;  %v9530_v50 = vld [vmem:[#allocation59_spill] sm:$0xff] }
 0x9e8   :  { %v9155_v25 = vsel %vm2790_vm2, %v5882_v31, %v9036_v38 }
 0x9e9   :  { %5903 = vmatmul.f32.vlgmr.msrb.gmra.mxu0 %v9155_v25  ;;  %5923 = vmatmul.f32.vlgmr.msrb.gmra.mxu1 %v9155_v25 }
 0x9ea   :  { %5943 = vmatmul.f32.vlgmr.msra.gmra.mxu2 %v9155_v25  ;;  %6149 = vmatpush.msrb.mxu0 %v9041_v19 }
 0x9eb   :  { %6220 = vmatpush.msrb.mxu1 %v8939_v32  ;;  %6240 = vmatpush.msra.mxu2 %v8942_v22  ;;  %v9518_v32 = vld [vmem:[#allocation46_spill] sm:$0xff] }
 0x9ec   :  { %6150 = vmatpush.msrb.mxu0 %v9046_v60  ;;  %v9519_v22 = vld [vmem:[#allocation34_spill] sm:$0xff] }
 0x9ed   :  { %6221 = vmatpush.msrb.mxu1 %v8946_v23  ;;  %6241 = vmatpush.msra.mxu2 %v8949_v14  ;;  %v9520_v23 = vld [vmem:[#allocation64_spill] sm:$0xff]  ;;  %v9521_v14 = vld [vmem:[#allocation35_spill] sm:$0xff] }
 0x9ee   :  { %6151 = vmatpush.msrb.mxu0 %v9051_v58 }
 0x9ef   :  { %6222 = vmatpush.msrb.mxu1 %v8953_v7  ;;  %6242 = vmatpush.msra.mxu2 %v8956_v42  ;;  %v9522_v7 = vld [vmem:[#allocation39_spill] sm:$0xff]  ;;  %v9523_v42 = vld [vmem:[#allocation48_spill] sm:$0xff] }
 0x9f0   :  { %6152 = vmatpush.msrb.mxu0 %v9056_v18 }
 0x9f1   :  { %6223 = vmatpush.msrb.mxu1 %v8960_v26  ;;  %6243 = vmatpush.msra.mxu2 %v8963_v47  ;;  %v9524_v26 = vld [vmem:[#allocation52_spill] sm:$0xff]  ;;  %v9525_v47 = vld [vmem:[#allocation65_spill] sm:$0xff] }
 0x9f2   :  { %6153 = vmatpush.msrb.mxu0 %v9061_v35 }
 0x9f3   :  { %6224 = vmatpush.msrb.mxu1 %v8967_v57  ;;  %6244 = vmatpush.msra.mxu2 %v9065_v20 }
 0x9f4   :  { %6154 = vmatpush.msrb.mxu0 %v9068_v36 }
 0x9f5   :  { %6225 = vmatpush.msrb.mxu1 %v8972_v52  ;;  %6245 = vmatpush.msra.mxu2 %v9072_v5 }
 0x9f6   :  { %6155 = vmatpush.msrb.mxu0 %v9075_v63 }
 0x9f7   :  { %6226 = vmatpush.msrb.mxu1 %v8977_v2  ;;  %6246 = vmatpush.msra.mxu2 %v9079_v53  ;;  %v9526_v2 = vld [vmem:[#allocation49_spill] sm:$0xff] }
 0x9f8   :  { %6156 = vmatpush.msrb.mxu0 %v9082_v61 }
 0x9f9   :  { %6227 = vmatpush.msrb.mxu1 %v8982_v48  ;;  %6247 = vmatpush.msra.mxu2 %v9086_v37 }
 0x9fa   :  { %6157 = vmatpush.msrb.mxu0 %v9089_v16 }
 0x9fb   :  { %6228 = vmatpush.msrb.mxu1 %v8987_v40  ;;  %6248 = vmatpush.msra.mxu2 %v9093_v30  ;;  %v9527_v40 = vld [vmem:[#allocation28_spill] sm:$0xff] }
 0x9fc   :  { %6158 = vmatpush.msrb.mxu0 %v9096_v0 }
 0x9fd   :  { %6229 = vmatpush.msrb.mxu1 %v8992_v17  ;;  %6249 = vmatpush.msra.mxu2 %v9100_v13 }
 0x9fe   :  { %6159 = vmatpush.msrb.mxu0 %v9103_v11 }
 0x9ff   :  { %6230 = vmatpush.msrb.mxu1 %v8997_v46  ;;  %6250 = vmatpush.msra.mxu2 %v9107_v41  ;;  %v9528_v46 = vld [vmem:[#allocation42_spill] sm:$0xff] }
 0xa00   :  { %6160 = vmatpush.msrb.mxu0 %v9110_v6 }
 0xa01   :  { %6231 = vmatpush.msrb.mxu1 %v9002_v55  ;;  %6251 = vmatpush.msra.mxu2 %v9114_v12 }
 0xa02   :  { %6161 = vmatpush.msrb.mxu0 %v9117_v62 }
 0xa03   :  { %6232 = vmatpush.msrb.mxu1 %v9007_v51  ;;  %6252 = vmatpush.msra.mxu2 %v9121_v33  ;;  %v9529_v51 = vld [vmem:[#allocation41_spill] sm:$0xff] }
 0xa04   :  { %6162 = vmatpush.msrb.mxu0 %v9124_v10 }
 0xa05   :  { %6233 = vmatpush.msrb.mxu1 %v9518_v32  ;;  %6253 = vmatpush.msra.mxu2 %v9519_v22 }
 0xa06   :  { %6163 = vmatpush.msrb.mxu0 %v9520_v23 }
 0xa07   :  { %6234 = vmatpush.msrb.mxu1 %v9521_v14  ;;  %6254 = vmatpush.msra.mxu2 %v9522_v7 }
 0xa08   :  { %6164 = vmatpush.msrb.mxu0 %v9523_v42 }
 0xa09   :  { %6235 = vmatpush.msrb.mxu1 %v9524_v26  ;;  %6255 = vmatpush.msra.mxu2 %v9525_v47 }
 0xa66   :  { %v5904_v57 = vpop.f32.mrf.mxu0  ;;  %v5924_v52 = vpop.f32.mrf.mxu1 }
 0xa67   :  { %v5905_v48 = vadd.f32 %v5904_v57, %v9526_v2  ;;  %v5925_v17 = vadd.f32 %v5924_v52, %v9527_v40 }
 0xa69   :  { %v5947_v55 = vadd.f32 %v5905_v48, %v9528_v46  ;;  %v5948_v39 = vadd.f32 %v5925_v17, %v9529_v51 }
 0xa6b   :  { %v6534_v43 = vmul.f32 -1.442695, %v5947_v55  ;;  %v6535_v38 = vmul.f32 -1.442695, %v5948_v39 }
 0xa6d   :  { %6786 = vpow2.f32 %v6534_v43  ;;  %v5944_v34 = vpop.f32.mrf.mxu2 }
 0xa6e   :  { %6788 = vpow2.f32 %v6535_v38  ;;  %v5945_v49 = vadd.f32 %v5944_v34, %v8852_v8 }
 0xa73   :  { %v6787_v20 = vpop.eup %6786 }
 0xa74   :  { %v6789_v5 = vpop.eup %6788  ;;  %v5955_v53 = vadd.f32 1.0, %v6787_v20 }
 0xa75   :  { %v5956_v37 = vadd.f32 1.0, %v6789_v5 }
 0xa76   :  { %6790 = vrcp.f32 %v5955_v53  ;;  %v5968_v1 = vand.u32 2147483648, %v5955_v53  ;;  %v5966_v9 = vand.u32 2147483647, %v5955_v53  ;;  %vm5962_vm9 = vweird.f32 %v5955_v53 }
 0xa77   :  { %6792 = vrcp.f32 %v5956_v37  ;;  %v5983_v56 = vand.u32 2147483648, %v5956_v37  ;;  %vm5977_vm0 = vweird.f32 %v5956_v37  ;;  %v5981_v28 = vand.u32 2147483647, %v5956_v37 }
 0xa78   :  { %v5969_v44 = vor.u32 1.1754944e-38, %v5968_v1  ;;  %vm5967_vm15 = vcmp.eq.f32.partialorder %v5966_v9, 8.507059e+37 }
 0xa79   :  { %v5984_v54 = vor.u32 1.1754944e-38, %v5983_v56  ;;  %vm5982_vm5 = vcmp.eq.f32.partialorder %v5981_v28, 8.507059e+37 }
 0xa7c   :  { %v6791_v30 = vpop.eup %6790 }
 0xa7d   :  { %v6793_v13 = vpop.eup %6792  ;;  %v5958_v41 = vmul.f32 %v6791_v30, %v5955_v53  ;;  %vm5963_vm2 = vweird.f32 %v6791_v30 }
 0xa7e   :  { %v5973_v12 = vmul.f32 %v6793_v13, %v5956_v37  ;;  %vm5964_vm11 = vmor %vm5962_vm9, %vm5963_vm2  ;;  %vm5978_vm6 = vweird.f32 %v6793_v13 }
 0xa7f   :  { %v5959_v33 = vsub.f32 1.0, %v5958_v41  ;;  %vm5979_vm1 = vmor %vm5977_vm0, %vm5978_vm6 }
 0xa80   :  { %v5974_v4 = vsub.f32 1.0, %v5973_v12 }
 0xa81   :  { %v5960_v15 = vmul.f32 %v6791_v30, %v5959_v33 }
 0xa82   :  { %v5975_v45 = vmul.f32 %v6793_v13, %v5974_v4  ;;  %v9534_v4 = vld [vmem:[#allocation33_spill] sm:$0xff] }
 0xa83   :  { %v5961_v24 = vadd.f32 %v6791_v30, %v5960_v15 }
 0xa84   :  { %v5976_v29 = vadd.f32 %v6793_v13, %v5975_v45 }
 0xa85   :  { %v5965_v3 = vsel %vm5964_vm11, %v6791_v30, %v5961_v24 }
 0xa86   :  { %v5970_v21 = vsel %vm5967_vm15, %v5969_v44, %v5965_v3  ;;  %v5980_v31 = vsel %vm5979_vm1, %v6793_v13, %v5976_v29 }
 0xa87   :  { %v5987_v27 = vmul.f32 %v5970_v21, %v5945_v49  ;;  %v5985_v32 = vsel %vm5982_vm5, %v5984_v54, %v5980_v31  ;;  %v9537_v54 = vld [vmem:[#allocation57_spill] sm:$0xff] }
 0xa88   :  { %v5990_v22 = vsub.f32 1.0, %v5985_v32  ;;  %v5992_v26 = vmul.f32 %v5985_v32, %v9155_v25  ;;  %v6334_v21 = vld [vmem:[#allocation14 + $0x30] sm:$0xff] }
 0xa89   :  { %v5988_v59 = vadd.f32 %v5987_v27, %v9530_v50 }
 0xa8b   :  { %6794 = vtanh.f32 %v5988_v59  ;;  %v9536_v59 = vld [vmem:[#allocation47_spill] sm:$0xff] }
 0xa91   :  { %v6795_v14 = vpop.eup %6794 }
 0xa92   :  { %v5991_v7 = vmul.f32 %v6795_v14, %v5990_v22 }
 0xa94   :  { %v5993_v47 = vadd.f32 %v5992_v26, %v5991_v7 }
 0xa96   :  { %v9218_v52 = vsel %vm2736_vm10, %v5993_v47, %v9155_v25 }
 0xa97   :  { %6014 = vmatmul.f32.vlgmr.msra.gmra.mxu3 %v9218_v52  ;;  %6034 = vmatmul.f32.vlgmr.msra.gmra.mxu0 %v9218_v52 }
 0xa98   :  { %6054 = vmatmul.f32.vlgmr.msra.gmra.mxu1 %v9218_v52  ;;  %6260 = vmatpush.msra.mxu3 %v9041_v19 }
 0xa9a   :  { %6261 = vmatpush.msra.mxu3 %v9046_v60 }
 0xa9c   :  { %6262 = vmatpush.msra.mxu3 %v9051_v58  ;;  %v9532_v58 = vld [vmem:[#allocation40_spill] sm:$0xff] }
 0xa9e   :  { %6263 = vmatpush.msra.mxu3 %v9056_v18 }
 0xaa0   :  { %6264 = vmatpush.msra.mxu3 %v9061_v35 }
 0xaa2   :  { %6265 = vmatpush.msra.mxu3 %v9068_v36 }
 0xaa4   :  { %6266 = vmatpush.msra.mxu3 %v9075_v63 }
 0xaa6   :  { %6267 = vmatpush.msra.mxu3 %v9082_v61  ;;  %v9533_v61 = vld [vmem:[#allocation58_spill] sm:$0xff] }
 0xaa8   :  { %6268 = vmatpush.msra.mxu3 %v9089_v16 }
 0xaaa   :  { %6269 = vmatpush.msra.mxu3 %v9096_v0 }
 0xaac   :  { %6270 = vmatpush.msra.mxu3 %v9103_v11 }
 0xaae   :  { %6271 = vmatpush.msra.mxu3 %v9110_v6 }
 0xab0   :  { %6272 = vmatpush.msra.mxu3 %v9117_v62 }
 0xab2   :  { %6273 = vmatpush.msra.mxu3 %v9124_v10 }
 0xab4   :  { %6274 = vmatpush.msra.mxu3 %v9520_v23 }
 0xab6   :  { %6275 = vmatpush.msra.mxu3 %v9523_v42 }
 0xb14   :  { %v6035_v19 = vpop.f32.mrf.mxu0 }
 0xb15   :  { %v6036_v60 = vadd.f32 %v6035_v19, %v9527_v40  ;;  %v6055_v38 = vpop.f32.mrf.mxu1 }
 0xb16   :  { %v6056_v53 = vadd.f32 %v6055_v38, %v8852_v8 }
 0xb17   :  { %v6059_v18 = vadd.f32 %v6036_v60, %v9532_v58 }
 0xb19   :  { %v6537_v35 = vmul.f32 -1.442695, %v6059_v18 }
 0xb1a   :  { %v6015_v36 = vpop.f32.mrf.mxu3 }
 0xb1b   :  { %6796 = vpow2.f32 %v6537_v35  ;;  %v6016_v63 = vadd.f32 %v6015_v36, %v9526_v2 }
 0xb1d   :  { %v6058_v16 = vadd.f32 %v6016_v63, %v9533_v61 }
 0xb1f   :  { %v6536_v0 = vmul.f32 -1.442695, %v6058_v16 }
 0xb21   :  { %v6797_v11 = vpop.eup %6796  ;;  %6798 = vpow2.f32 %v6536_v0 }
 0xb22   :  { %v6067_v6 = vadd.f32 1.0, %v6797_v11 }
 0xb24   :  { %6800 = vrcp.f32 %v6067_v6  ;;  %v6094_v41 = vand.u32 2147483648, %v6067_v6  ;;  %vm6088_vm2 = vweird.f32 %v6067_v6  ;;  %v6092_v33 = vand.u32 2147483647, %v6067_v6 }
 0xb26   :  { %v6095_v9 = vor.u32 1.1754944e-38, %v6094_v41  ;;  %vm6093_vm11 = vcmp.eq.f32.partialorder %v6092_v33, 8.507059e+37  ;;  %v6343_v41 = vld [vmem:[#allocation14 + $0x78] sm:$0xff]  ;;  %v6341_v33 = vld [vmem:[#allocation14 + $0x68] sm:$0xff] }
 0xb27   :  { %v6799_v62 = vpop.eup %6798  ;;  %6348 = vmatpush.msra.mxu0 %v6343_v41  ;;  %v6374_v41 = vld [vmem:[#allocation16 + $0x28] sm:$0xff] }
 0xb28   :  { %v6066_v10 = vadd.f32 1.0, %v6799_v62 }
 0xb2a   :  { %6802 = vrcp.f32 %v6066_v10  ;;  %v6801_v25 = vpop.eup %6800  ;;  %v6079_v55 = vand.u32 2147483648, %v6066_v10  ;;  %v6077_v39 = vand.u32 2147483647, %v6066_v10  ;;  %vm6073_vm13 = vweird.f32 %v6066_v10 }
 0xb2b   :  { %v6084_v23 = vmul.f32 %v6801_v25, %v6067_v6  ;;  %vm6089_vm8 = vweird.f32 %v6801_v25 }
 0xb2c   :  { %v6080_v5 = vor.u32 1.1754944e-38, %v6079_v55  ;;  %vm6078_vm4 = vcmp.eq.f32.partialorder %v6077_v39, 8.507059e+37  ;;  %vm6090_vm9 = vmor %vm6088_vm2, %vm6089_vm8 }
 0xb2d   :  { %v6085_v17 = vsub.f32 1.0, %v6084_v23 }
 0xb2f   :  { %v6086_v43 = vmul.f32 %v6801_v25, %v6085_v17 }
 0xb30   :  { %v6803_v42 = vpop.eup %6802 }
 0xb31   :  { %v6069_v48 = vmul.f32 %v6803_v42, %v6066_v10  ;;  %vm6074_vm10 = vweird.f32 %v6803_v42  ;;  %v6087_v13 = vadd.f32 %v6801_v25, %v6086_v43 }
 0xb32   :  { %vm6075_vm3 = vmor %vm6073_vm13, %vm6074_vm10 }
 0xb33   :  { %v6070_v46 = vsub.f32 1.0, %v6069_v48  ;;  %v6091_v15 = vsel %vm6090_vm9, %v6801_v25, %v6087_v13 }
 0xb34   :  { %v6096_v45 = vsel %vm6093_vm11, %v6095_v9, %v6091_v15  ;;  %v6338_v15 = vld [vmem:[#allocation14 + $0x50] sm:$0xff]  ;;  %v6337_v9 = vld [vmem:[#allocation14 + $0x48] sm:$0xff] }
 0xb35   :  { %v6071_v51 = vmul.f32 %v6803_v42, %v6070_v46  ;;  %v6101_v34 = vsub.f32 1.0, %v6096_v45  ;;  %v6103_v49 = vmul.f32 %v6096_v45, %v9218_v52  ;;  %v9538_v46 = vld [vmem:[#allocation30_spill] sm:$0xff] }
 0xb37   :  { %v6072_v20 = vadd.f32 %v6803_v42, %v6071_v51 }
 0xb39   :  { %v6076_v37 = vsel %vm6075_vm3, %v6803_v42, %v6072_v20 }
 0xb3a   :  { %v6081_v30 = vsel %vm6078_vm4, %v6080_v5, %v6076_v37 }
 0xb3b   :  { %v6098_v12 = vmul.f32 %v6081_v30, %v6056_v53 }
 0xb3d   :  { %v6099_v1 = vadd.f32 %v6098_v12, %v9534_v4  ;;  %v6342_v12 = vld [vmem:[#allocation14 + $0x70] sm:$0xff]  ;;  %v6340_v4 = vld [vmem:[#allocation14 + $0x60] sm:$0xff] }
 0xb3e   :  { %6349 = vmatpush.msra.mxu0 %v6342_v12 }
 0xb3f   :  { %6804 = vtanh.f32 %v6099_v1  ;;  %v6339_v1 = vld [vmem:[#allocation14 + $0x58] sm:$0xff] }
 0xb40   :  { %6350 = vmatpush.msra.mxu0 %v6341_v33  ;;  %v6373_v33 = vld [vmem:[#allocation16 + $0x20] sm:$0xff] }
 0xb42   :  { %6351 = vmatpush.msra.mxu0 %v6340_v4 }
 0xb44   :  { %6352 = vmatpush.msra.mxu0 %v6339_v1  ;;  %v6372_v1 = vld [vmem:[#allocation16 + $0x18] sm:$0xff] }
 0xb45   :  { %v6805_v24 = vpop.eup %6804 }
 0xb46   :  { %v6102_v44 = vmul.f32 %v6805_v24, %v6101_v34  ;;  %6353 = vmatpush.msra.mxu0 %v6338_v15  ;;  %v6336_v34 = vld [vmem:[#allocation14 + $0x40] sm:$0xff] }
 0xb48   :  { %v6104_v3 = vadd.f32 %v6103_v49, %v6102_v44  ;;  %6354 = vmatpush.msra.mxu0 %v6337_v9  ;;  %v6335_v44 = vld [vmem:[#allocation14 + $0x38] sm:$0xff] }
 0xb49   :  { %v9540_v49 = vld [vmem:[#allocation38_spill] sm:$0xff] }
 0xb4a   :  { %v6105_v29 = vsel %vm2174_vm14, %v6104_v3, %v9218_v52  ;;  %6355 = vmatpush.msra.mxu0 %v6336_v34 }
 0xb4b   :  { %6125 = vmatmul.f32.vlgmr.msrb.gmra.mxu2 %v6105_v29  ;;  %6145 = vmatmul.f32.vlgmr.msrb.gmra.mxu3 %v6105_v29 }
 0xb4c   :  { %6165 = vmatmul.f32.vlgmr.msrb.gmra.mxu0 %v6105_v29 }
 0xb4d   :  { %6356 = vmatpush.msra.mxu0 %v6335_v44 }
 0xb4f   :  { %6357 = vmatpush.msra.mxu0 %v6334_v21  ;;  %v6370_v21 = vld [vmem:[#allocation16 + $0x8] sm:$0xff] }
 0xbc9   :  { %v6166_v16 = vpop.f32.mrf.mxu0 }
 0xbca   :  { %v6167_v62 = vadd.f32 %v6166_v16, %v8852_v8 }
 0xbce   :  { %v6126_v56 = vpop.f32.mrf.mxu2  ;;  %v6146_v27 = vpop.f32.mrf.mxu3 }
 0xbcf   :  { %v6127_v28 = vadd.f32 %v6126_v56, %v9526_v2  ;;  %v6147_v50 = vadd.f32 %v6146_v27, %v9527_v40  ;;  %v6333_v27 = vld [vmem:[#allocation14 + $0x28] sm:$0xff] }
 0xbd0   :  { %6358 = vmatpush.msra.mxu0 %v6333_v27 }
 0xbd1   :  { %v6169_v31 = vadd.f32 %v6127_v28, %v9536_v59  ;;  %v6170_v32 = vadd.f32 %v6147_v50, %v9537_v54  ;;  %v6332_v50 = vld [vmem:[#allocation14 + $0x20] sm:$0xff]  ;;  %v9541_v59 = vld [vmem:[#allocation44_spill] sm:$0xff]  ;;  %v6331_v54 = vld [vmem:[#allocation14 + $0x18] sm:$0xff] }
 0xbd2   :  { %6359 = vmatpush.msra.mxu0 %v6332_v50 }
 0xbd3   :  { %v6538_v22 = vmul.f32 -1.442695, %v6169_v31  ;;  %v6539_v14 = vmul.f32 -1.442695, %v6170_v32  ;;  %v6330_v32 = vld [vmem:[#allocation14 + $0x10] sm:$0xff] }
 0xbd4   :  { %6360 = vmatpush.msra.mxu0 %v6331_v54 }
 0xbd5   :  { %6806 = vpow2.f32 %v6538_v22  ;;  %v6329_v22 = vld [vmem:[#allocation14 + $0x8] sm:$0xff] }
 0xbd6   :  { %6808 = vpow2.f32 %v6539_v14  ;;  %6361 = vmatpush.msra.mxu0 %v6330_v32 }
 0xbd8   :  { %6362 = vmatpush.msra.mxu0 %v6329_v22 }
 0xbdb   :  { %v6807_v7 = vpop.eup %6806 }
 0xbdc   :  { %v6809_v26 = vpop.eup %6808  ;;  %v6177_v47 = vadd.f32 1.0, %v6807_v7 }
 0xbdd   :  { %v6178_v57 = vadd.f32 1.0, %v6809_v26  ;;  %v6328_v26 = vld [vmem:[#allocation14] sm:$0xff] }
 0xbde   :  { %6810 = vrcp.f32 %v6177_v47  ;;  %v6190_v35 = vand.u32 2147483648, %v6177_v47  ;;  %v6188_v61 = vand.u32 2147483647, %v6177_v47  ;;  %vm6184_vm15 = vweird.f32 %v6177_v47  ;;  %6363 = vmatpush.msra.mxu0 %v6328_v26 }
 0xbdf   :  { %6812 = vrcp.f32 %v6178_v57  ;;  %v6205_v48 = vand.u32 2147483648, %v6178_v57  ;;  %vm6199_vm5 = vweird.f32 %v6178_v57  ;;  %v6203_v17 = vand.u32 2147483647, %v6178_v57 }
 0xbe0   :  { %v6191_v6 = vor.u32 1.1754944e-38, %v6190_v35  ;;  %vm6189_vm0 = vcmp.eq.f32.partialorder %v6188_v61, 8.507059e+37  ;;  %v6380_v35 = vld [vmem:[#allocation16 + $0x58] sm:$0xff] }
 0xbe1   :  { %v6206_v39 = vor.u32 1.1754944e-38, %v6205_v48  ;;  %vm6204_vm13 = vcmp.eq.f32.partialorder %v6203_v17, 8.507059e+37 }
 0xbe4   :  { %v6811_v52 = vpop.eup %6810 }
 0xbe5   :  { %v6813_v19 = vpop.eup %6812  ;;  %v6180_v60 = vmul.f32 %v6811_v52, %v6177_v47  ;;  %vm6185_vm14 = vweird.f32 %v6811_v52  ;;  %v6384_v47 = vld [vmem:[#allocation16 + $0x78] sm:$0xff] }
 0xbe6   :  { %v6195_v58 = vmul.f32 %v6813_v19, %v6178_v57  ;;  %vm6186_vm6 = vmor %vm6184_vm15, %vm6185_vm14  ;;  %vm6200_vm1 = vweird.f32 %v6813_v19  ;;  %6389 = vmatpush.msra.mxu1 %v6384_v47 }
 0xbe7   :  { %v6181_v18 = vsub.f32 1.0, %v6180_v60  ;;  %vm6201_vm10 = vmor %vm6199_vm5, %vm6200_vm1  ;;  %v6381_v60 = vld [vmem:[#allocation16 + $0x60] sm:$0xff] }
 0xbe8   :  { %v6196_v36 = vsub.f32 1.0, %v6195_v58 }
 0xbe9   :  { %v6182_v63 = vmul.f32 %v6811_v52, %v6181_v18 }
 0xbea   :  { %v6197_v0 = vmul.f32 %v6813_v19, %v6196_v36 }
 0xbeb   :  { %v6183_v11 = vadd.f32 %v6811_v52, %v6182_v63  ;;  %v6379_v63 = vld [vmem:[#allocation16 + $0x50] sm:$0xff] }
 0xbec   :  { %v6198_v23 = vadd.f32 %v6813_v19, %v6197_v0 }
 0xbed   :  { %v6187_v10 = vsel %vm6186_vm6, %v6811_v52, %v6183_v11  ;;  %v6382_v52 = vld [vmem:[#allocation16 + $0x68] sm:$0xff] }
 0xbee   :  { %v6192_v25 = vsel %vm6189_vm0, %v6191_v6, %v6187_v10  ;;  %v6202_v51 = vsel %vm6201_vm10, %v6813_v19, %v6198_v23  ;;  %v6378_v11 = vld [vmem:[#allocation16 + $0x48] sm:$0xff]  ;;  %v6377_v23 = vld [vmem:[#allocation16 + $0x40] sm:$0xff] }
 0xbef   :  { %v6209_v42 = vmul.f32 %v6192_v25, %v6167_v62  ;;  %v6207_v43 = vsel %vm6204_vm13, %v6206_v39, %v6202_v51 }
 0xbf0   :  { %v6212_v38 = vsub.f32 1.0, %v6207_v43  ;;  %v6214_v53 = vmul.f32 %v6207_v43, %v6105_v29 }
 0xbf1   :  { %v6210_v55 = vadd.f32 %v6209_v42, %v9538_v46 }
 0xbf3   :  { %6814 = vtanh.f32 %v6210_v55  ;;  %v6376_v55 = vld [vmem:[#allocation16 + $0x38] sm:$0xff] }
 0xbf9   :  { %v6815_v20 = vpop.eup %6814 }
 0xbfa   :  { %v6213_v5 = vmul.f32 %v6815_v20, %v6212_v38  ;;  %v6375_v20 = vld [vmem:[#allocation16 + $0x30] sm:$0xff] }
 0xbfc   :  { %v6215_v37 = vadd.f32 %v6214_v53, %v6213_v5 }
 0xbfe   :  { %v9257_v13 = vsel %vm1612_vm7, %v6215_v37, %v6105_v29  ;;  %v9542_v37 = vld [vmem:[#allocation50_spill] sm:$0xff] }
 0xbff   :  { %6236 = vmatmul.f32.vlgmr.msrb.gmra.mxu1 %v9257_v13  ;;  %6256 = vmatmul.f32.vlgmr.msra.gmra.mxu2 %v9257_v13 }
 0xc00   :  { %6276 = vmatmul.f32.vlgmr.msra.gmra.mxu3 %v9257_v13 }
 0xc7c   :  { %v6237_v45 = vpop.f32.mrf.mxu1 }
 0xc7d   :  { %v6238_v24 = vadd.f32 %v6237_v45, %v9526_v2 }
 0xc7f   :  { %v6280_v3 = vadd.f32 %v6238_v24, %v9540_v49 }
 0xc81   :  { %v6540_v29 = vmul.f32 -1.442695, %v6280_v3  ;;  %v6371_v3 = vld [vmem:[#allocation16 + $0x10] sm:$0xff] }
 0xc82   :  { %v6257_v56 = vpop.f32.mrf.mxu2 }
 0xc83   :  { %6816 = vpow2.f32 %v6540_v29  ;;  %v6258_v28 = vadd.f32 %v6257_v56, %v9527_v40  ;;  %v6383_v40 = vld [vmem:[#allocation16 + $0x70] sm:$0xff]  ;;  %v6277_v62 = vpop.f32.mrf.mxu3  ;;  %v6369_v29 = vld [vmem:[#allocation16] sm:$0xff] }
 0xc84   :  { %6390 = vmatpush.msra.mxu1 %v6383_v40  ;;  %v6278_v17 = vadd.f32 %v6277_v62, %v8852_v8  ;;  %v6584_v56 = vld [vmem:[#allocation17 + $0x12] ss:$0 sm:$0xff] }
 0xc85   :  { %v6281_v31 = vadd.f32 %v6258_v28, %v9541_v59  ;;  %v6585_v59 = vld [vmem:[#allocation17 + $0x13] ss:$0 sm:$0xff] }
 0xc86   :  { %6391 = vmatpush.msra.mxu1 %v6382_v52 }
 0xc87   :  { %v6541_v2 = vmul.f32 -1.442695, %v6281_v31 }
 0xc88   :  { %6392 = vmatpush.msra.mxu1 %v6381_v60 }
 0xc89   :  { %v6817_v14 = vpop.eup %6816  ;;  %6818 = vpow2.f32 %v6541_v2 }
 0xc8a   :  { %v6288_v7 = vadd.f32 1.0, %v6817_v14  ;;  %6393 = vmatpush.msra.mxu1 %v6380_v35 }
 0xc8c   :  { %6820 = vrcp.f32 %v6288_v7  ;;  %v6301_v61 = vand.u32 2147483648, %v6288_v7  ;;  %v6299_v0 = vand.u32 2147483647, %v6288_v7  ;;  %6394 = vmatpush.msra.mxu1 %v6379_v63  ;;  %vm6295_vm3 = vweird.f32 %v6288_v7 }
 0xc8e   :  { %v6302_v42 = vor.u32 1.1754944e-38, %v6301_v61  ;;  %6395 = vmatpush.msra.mxu1 %v6378_v11  ;;  %vm6300_vm8 = vcmp.eq.f32.partialorder %v6299_v0, 8.507059e+37 }
 0xc8f   :  { %v6819_v57 = vpop.eup %6818 }
 0xc90   :  { %v6289_v19 = vadd.f32 1.0, %v6819_v57  ;;  %6396 = vmatpush.msra.mxu1 %v6377_v23 }
 0xc92   :  { %v6821_v58 = vpop.eup %6820  ;;  %6822 = vrcp.f32 %v6289_v19  ;;  %v6316_v43 = vand.u32 2147483648, %v6289_v19  ;;  %v6314_v5 = vand.u32 2147483647, %v6289_v19  ;;  %6397 = vmatpush.msra.mxu1 %v6376_v55  ;;  %vm6310_vm9 = vweird.f32 %v6289_v19 }
 0xc93   :  { %v6291_v18 = vmul.f32 %v6821_v58, %v6288_v7  ;;  %vm6296_vm7 = vweird.f32 %v6821_v58 }
 0xc94   :  { %vm6297_vm4 = vmor %vm6295_vm3, %vm6296_vm7  ;;  %6398 = vmatpush.msra.mxu1 %v6375_v20  ;;  %v6317_v8 = vor.u32 1.1754944e-38, %v6316_v43  ;;  %vm6315_vm14 = vcmp.eq.f32.partialorder %v6314_v5, 8.507059e+37 }
 0xc95   :  { %v6292_v36 = vsub.f32 1.0, %v6291_v18 }
 0xc96   :  { %6399 = vmatpush.msra.mxu1 %v6374_v41 }
 0xc97   :  { %v6293_v16 = vmul.f32 %v6821_v58, %v6292_v36 }
 0xc98   :  { %v6823_v6 = vpop.eup %6822  ;;  %6400 = vmatpush.msra.mxu1 %v6373_v33 }
 0xc99   :  { %v6306_v10 = vmul.f32 %v6823_v6, %v6289_v19  ;;  %v6294_v25 = vadd.f32 %v6821_v58, %v6293_v16  ;;  %vm6311_vm2 = vweird.f32 %v6823_v6 }
 0xc9a   :  { %vm6312_vm11 = vmor %vm6310_vm9, %vm6311_vm2  ;;  %6401 = vmatpush.msra.mxu1 %v6372_v1 }
 0xc9b   :  { %v6307_v48 = vsub.f32 1.0, %v6306_v10  ;;  %v6298_v46 = vsel %vm6297_vm4, %v6821_v58, %v6294_v25 }
 0xc9c   :  { %v6303_v51 = vsel %vm6300_vm8, %v6302_v42, %v6298_v46  ;;  %6402 = vmatpush.msra.mxu1 %v6371_v3 }
 0xc9d   :  { %v6308_v39 = vmul.f32 %v6823_v6, %v6307_v48  ;;  %v6320_v38 = vmul.f32 %v6303_v51, %v6278_v17 }
 0xc9e   :  { %6403 = vmatpush.msra.mxu1 %v6370_v21 }
 0xc9f   :  { %v6309_v53 = vadd.f32 %v6823_v6, %v6308_v39  ;;  %v6321_v30 = vadd.f32 %v6320_v38, %v9542_v37 }
 0xca0   :  { %6404 = vmatpush.msra.mxu1 %v6369_v29 }
 0xca1   :  { %v6313_v12 = vsel %vm6312_vm11, %v6823_v6, %v6309_v53  ;;  %6824 = vtanh.f32 %v6321_v30 }
 0xca2   :  { %v6318_v4 = vsel %vm6315_vm14, %v6317_v8, %v6313_v12 }
 0xca3   :  { %v6323_v15 = vsub.f32 1.0, %v6318_v4  ;;  %v6325_v34 = vmul.f32 %v6318_v4, %v9257_v13 }
 0xca7   :  { %v6825_v9 = vpop.eup %6824 }
 0xca8   :  { %v6324_v45 = vmul.f32 %v6825_v9, %v6323_v15 }
 0xcaa   :  { %v6326_v24 = vadd.f32 %v6325_v34, %v6324_v45 }
 0xcac   :  { %v6327_v49 = vsel %vm1050_vm12, %v6326_v24, %v9257_v13 }
 0xcad   :  { %6364 = vmatmul.f32.vlgmr.msra.gmra.mxu0 %v6327_v49 }
 0xd2a   :  { %v6365_v27 = vpop.f32.mrf.mxu0 }
 0xd2b   :  { %v6366_v28 = vadd.f32 %v6584_v56, %v6365_v27 }
 0xd2d   :  { %v6368_v50 = vmax.f32 %v6366_v28, 0.0 }
 0xd2f   :  { %6405 = vmatmul.f32.vlgmr.msra.gmra.mxu1 %v6368_v50 }
 0xdac   :  { %v6406_v13 = vpop.f32.mrf.mxu1 }
 0xdad   :  { %v6407_v31 = vadd.f32 %v6585_v59, %v6406_v13 }
 0xdaf   :  { %6409 = vst [vmem:[#allocation19] sm:$0xff] %v6407_v31 }
 0xdb0   :  { %6420 = dma.vmem_to_hbm [thread:$0]  %s6416_s30, 128, %s6418_s12, [#allocation7]  }
 0xdb1   :  { %7126 = dma.done.wait [#allocation7], 128  }
 0xdb2   :  { %7127 = vsyncadd [#allocation7], 4294967168 }
 0xdb3   :  { %6425 = vsyncpa [#allocation6], 1 }
 0xdb4   :  { %6426 = vsyncpa [#allocation9], 1 }
 0xdb5   :  { %6427 = vsyncpa [#allocation12], 1 }
 0xdb6   :  { %6428 = vsyncpa [#allocation15], 1 }
 0xdb7   :  { %6429 = vsyncpa [#allocation18], 1 }
 0xdb8   :  { %6430 = vsyncpa [#allocation7], 1 }

</bundles_post_ra>
